<compile_context>
chip_gen: v6e
topology: v6e:2x2x1
jax: 0.10.0
libtpu: 0.0.40
codegen_flags: <defaults>
</compile_context>

<pallas_src>
import functools

import jax
import jax.numpy as jnp
from jax.experimental import pallas as pl
from jax.experimental.pallas import tpu as pltpu


# ----------------------------------------------------------------------------
# Pallas kernel 1: M-tiled fused matmul + bias + optional ReLU (encoder convs
# after im2col lowering).  bf16 operands, f32 accumulate, f32 epilogue.
# ----------------------------------------------------------------------------
def _mm_bias_act_kernel(a_ref, w_ref, b_ref, o_ref, *, apply_relu):
    acc = jnp.dot(a_ref[...], w_ref[...], preferred_element_type=jnp.float32)
    acc = acc + b_ref[...]                      # (1, N) f32 broadcast
    if apply_relu:
        acc = jnp.maximum(acc, 0.0)
    o_ref[...] = acc.astype(o_ref.dtype)


def matmul_bias_act(a, w, b_row, *, apply_relu, out_dtype, tm=128):
    """act(a @ w + b): a [M,K] bf16, w [K,N] bf16, b_row [1,N] f32 -> [M,N]."""
    M, K = a.shape
    K2, N = w.shape
    assert K == K2 and b_row.shape == (1, N)
    tm = min(tm, M)
    assert M % tm == 0
    kernel = functools.partial(_mm_bias_act_kernel, apply_relu=apply_relu)
    return pl.pallas_call(
        kernel,
        out_shape=jax.ShapeDtypeStruct((M, N), out_dtype),
        grid=(M // tm,),
        in_specs=[
            pl.BlockSpec((tm, K), lambda i: (i, 0)),
            pl.BlockSpec((K, N), lambda i: (0, 0)),
            pl.BlockSpec((1, N), lambda i: (0, 0)),
        ],
        out_specs=pl.BlockSpec((tm, N), lambda i: (i, 0)),
        compiler_params=pltpu.CompilerParams(
            dimension_semantics=("parallel",),          # megacore-shardable M
            vmem_limit_bytes=32 * 1024 * 1024,
        ),
    )(a, w, b_row)


# ----------------------------------------------------------------------------
# Pallas kernel 2: fused middle-conv + full decoder.
#   a_ref  : [M, 2304]  im2col of x3 (M = B*4*4 rows in (b,i,j) order), bf16
#   wm     : [2304,512] middle conv weight      bm  : [1,512]
#   wd0    : [512,1024] ConvT d0, cols (a,c,co) bd0 : [1,1024] (bias tiled x4)
#   wd1    : [256, 512] ConvT d1, cols (e,f,co) bd1 : [1,512]
#   wd2    : [512, 4]   block-diag 1x1-conv weight (block u = (e,f) tap)
#   bd2    : [1, 4]
#   o_ref  : [M, 16] f32; column index = ((a*2+c)*2+e)*2+f
# All intermediates live in VMEM / vregs; no HBM round trips, no pixel-shuffle
# data movement (the 2x2 / 2x2 up-sampling taps are just lane blocks).
# ----------------------------------------------------------------------------
def _mid_decoder_kernel(a_ref, wm_ref, bm_ref, wd0_ref, bd0_ref,
                        wd1_ref, bd1_ref, wd2_ref, bd2_ref, o_ref):
    f32, bf16 = jnp.float32, jnp.bfloat16
    c4 = wd0_ref.shape[1] // 4          # 256 = channels of x4

    # middle: Conv(256->512, 3x3, pad 1) + ReLU  (input already im2col'd)
    mid = jnp.dot(a_ref[...], wm_ref[...], preferred_element_type=f32)
    mid = jnp.maximum(mid + bm_ref[...], 0.0)                     # [M, 512]

    # decoder[0]: ConvT(512->256, k2, s2) + ReLU.  Lane block t=(a,c) holds the
    # x4 pixel at spatial (2i+a, 2j+c) for the mid pixel in that row.
    t0 = jnp.dot(mid.astype(bf16), wd0_ref[...], preferred_element_type=f32)
    t0 = jnp.maximum(t0 + bd0_ref[...], 0.0)                      # [M, 1024]

    pieces = []
    for t in range(4):                                            # t = a*2 + c
        x4_t = t0[:, t * c4:(t + 1) * c4].astype(bf16)            # [M, 256]
        # decoder[2]: ConvT(256->128, k2, s2) + ReLU; cols ordered (e, f, c)
        y = jnp.dot(x4_t, wd1_ref[...], preferred_element_type=f32)
        y = jnp.maximum(y + bd1_ref[...], 0.0)                    # [M, 512]
        # decoder[4]: Conv(128->1, 1x1) applied to all four (e,f) taps at once
        # via the block-diagonal [512, 4] weight.
        o_t = jnp.dot(y.astype(bf16), wd2_ref[...], preferred_element_type=f32)
        pieces.append(o_t + bd2_ref[...])                         # [M, 4]
    o_ref[...] = jnp.concatenate(pieces, axis=1).astype(o_ref.dtype)


def mid_decoder_fused(a_mid, prep):
    M = a_mid.shape[0]
    args = (a_mid, prep["m_w"], prep["m_b"], prep["d0_w"], prep["d0_b"],
            prep["d1_w"], prep["d1_b"], prep["d2_w"], prep["d2_b"])

    def full_spec(arr):
        return pl.BlockSpec(arr.shape, lambda i: (0, 0))

    return pl.pallas_call(
        _mid_decoder_kernel,
        out_shape=jax.ShapeDtypeStruct((M, 16), jnp.float32),
        grid=(1,),
        in_specs=[full_spec(a) for a in args],
        out_specs=pl.BlockSpec((M, 16), lambda i: (0, 0)),
        compiler_params=pltpu.CompilerParams(
            dimension_semantics=("arbitrary",),
            vmem_limit_bytes=32 * 1024 * 1024,
        ),
    )(*args)


# ----------------------------------------------------------------------------
# Plain-JAX glue: im2col / layout plumbing around the Pallas kernels.
# ----------------------------------------------------------------------------
def _im2col(x_nhwc, kh, kw, stride, padding):
    B, H, W, C = x_nhwc.shape
    xp = jnp.pad(x_nhwc, ((0, 0), (padding, padding), (padding, padding), (0, 0)))
    Ho = (H + 2 * padding - kh) // stride + 1
    Wo = (W + 2 * padding - kw) // stride + 1
    patches = []
    for a in range(kh):
        for b in range(kw):
            patches.append(
                xp[:, a:a + stride * Ho:stride, b:b + stride * Wo:stride, :])
    p = jnp.stack(patches, axis=3)                       # (B,Ho,Wo,kh*kw,C)
    return p.reshape(B * Ho * Wo, kh * kw * C)


# ----------------------------------------------------------------------------
# Parameters: PyTorch-layout init, plus a ONE-TIME matmul-layout / bf16 prep.
# ----------------------------------------------------------------------------
def init_params(key):
    ks = jax.random.split(key, 14)

    def w(k, shape, fan_in):
        return jax.random.normal(k, shape, jnp.float32) / jnp.sqrt(fan_in)

    def b(k, n):
        return jax.random.normal(k, (n,), jnp.float32) * 0.01

    return {
        # encoder (Conv2d weights are [Cout, Cin, kh, kw])
        "e0_w": w(ks[0], (64, 3, 3, 3), 3 * 9),       "e0_b": b(ks[1], 64),
        "e1_w": w(ks[2], (128, 64, 3, 3), 64 * 9),    "e1_b": b(ks[3], 128),
        "e2_w": w(ks[4], (256, 128, 3, 3), 128 * 9),  "e2_b": b(ks[5], 256),
        # middle
        "m_w": w(ks[6], (512, 256, 3, 3), 256 * 9),   "m_b": b(ks[7], 512),
        # decoder (ConvTranspose weights are [Cin, Cout, kh, kw])
        "d0_w": w(ks[8], (512, 256, 2, 2), 512 * 4),  "d0_b": b(ks[9], 256),
        "d1_w": w(ks[10], (256, 128, 2, 2), 256 * 4), "d1_b": b(ks[11], 128),
        "d2_w": w(ks[12], (1, 128, 1, 1), 128),       "d2_b": b(ks[13], 1),
    }


def prepare_params(p):
    """One-time weight layout + bf16 cast (hoisted out of the forward path)."""
    bf16 = jnp.bfloat16

    def conv_w(w):   # [Cout,Cin,kh,kw] -> [kh*kw*Cin, Cout], K-order (kh,kw,Cin)
        Cout, Cin, kh, kw = w.shape
        return jnp.transpose(w, (2, 3, 1, 0)).reshape(kh * kw * Cin, Cout).astype(bf16)

    def convt_w(w):  # [Cin,Cout,kh,kw] -> [Cin, kh*kw*Cout], N-order (a,c,Cout)
        Cin, Cout, kh, kw = w.shape
        return jnp.transpose(w, (0, 2, 3, 1)).reshape(Cin, kh * kw * Cout).astype(bf16)

    def rowb(b):
        return b.reshape(1, -1).astype(jnp.float32)

    # 1x1 conv (128->1) as a block-diagonal [4*128, 4] weight: block u applies
    # the projection to the (e,f)=u lane block of the d1 output.
    wd2_vec = p["d2_w"][0, :, 0, 0]                       # [128]
    wd2_bd = jnp.zeros((4 * 128, 4), jnp.float32)
    for u in range(4):
        wd2_bd = wd2_bd.at[u * 128:(u + 1) * 128, u].set(wd2_vec)

    return {
        "e0_w": conv_w(p["e0_w"]), "e0_b": rowb(p["e0_b"]),
        "e1_w": conv_w(p["e1_w"]), "e1_b": rowb(p["e1_b"]),
        "e2_w": conv_w(p["e2_w"]), "e2_b": rowb(p["e2_b"]),
        "m_w":  conv_w(p["m_w"]),  "m_b":  rowb(p["m_b"]),
        "d0_w": convt_w(p["d0_w"]), "d0_b": rowb(jnp.tile(p["d0_b"], 4)),
        "d1_w": convt_w(p["d1_w"]), "d1_b": rowb(jnp.tile(p["d1_b"], 4)),
        "d2_w": wd2_bd.astype(bf16),
        "d2_b": jnp.full((1, 4), p["d2_b"][0], jnp.float32),
    }


# ----------------------------------------------------------------------------
# Forward pass (semantics identical to the PyTorch module).
# ----------------------------------------------------------------------------
def unet_forward(prep, x_nchw):
    bf16 = jnp.bfloat16
    B, _, H, W = x_nchw.shape
    x = jnp.transpose(x_nchw, (0, 2, 3, 1)).astype(bf16)          # NHWC

    # encoder[0:2]: Conv(3->64, s1, p1) + ReLU
    a0 = _im2col(x, 3, 3, 1, 1)                                   # [B*H*W, 27]
    x1 = matmul_bias_act(a0, prep["e0_w"], prep["e0_b"],
                         apply_relu=True, out_dtype=bf16)
    # encoder[2:4]: Conv(64->128, s2, p1) + ReLU
    a1 = _im2col(x1.reshape(B, H, W, 64), 3, 3, 2, 1)             # [B*H*W/4, 576]
    x2 = matmul_bias_act(a1, prep["e1_w"], prep["e1_b"],
                         apply_relu=True, out_dtype=bf16)
    # encoder[4:]: Conv(128->256, s2, p1) + ReLU
    a2 = _im2col(x2.reshape(B, H // 2, W // 2, 128), 3, 3, 2, 1)  # [B*H*W/16, 1152]
    x3 = matmul_bias_act(a2, prep["e2_w"], prep["e2_b"],
                         apply_relu=True, out_dtype=bf16)

    # middle + full decoder, fused in one Pallas kernel.
    a3 = _im2col(x3.reshape(B, H // 4, W // 4, 256), 3, 3, 1, 1)  # [B*H*W/16, 2304]
    o = mid_decoder_fused(a3, prep)                               # [B*H*W/16, 16]

    # Assemble the tiny [B,1,H,W] output: rows are (b,i,j), columns (a,c,e,f)
    # with final pixel (4i+2a+e, 4j+2c+f).
    o = o.reshape(B, H // 4, W // 4, 2, 2, 2, 2)
    o = jnp.transpose(o, (0, 1, 3, 5, 2, 4, 6)).reshape(B, H, W)
    return o[:, None, :, :]                                       # NCHW, f32


if __name__ == "__main__":
    key = jax.random.PRNGKey(0)
    k_param, k_x = jax.random.split(key)
    params = init_params(k_param)
    prep = prepare_params(params)
    x = jax.random.normal(k_x, (2, 3, 16, 16), jnp.float32)       # NCHW

    fwd = jax.jit(unet_forward)
    y = fwd(prep, x)
    jax.block_until_ready(y)

    assert y.shape == (2, 1, 16, 16), y.shape
    assert y.dtype == jnp.float32
    assert bool(jnp.all(jnp.isfinite(y)))
    print("KERNEL_OK")
</pallas_src>

<mosaic_0001>
module attributes {stable_mosaic.version = 11 : i64} {
  func.func @_mm_bias_act_kernel(%arg0: i32, %arg1: memref<128x27xbf16, #tpu.memory_space<vmem>>, %arg2: memref<27x64xbf16, #tpu.memory_space<vmem>>, %arg3: memref<1x64xf32, #tpu.memory_space<vmem>>, %arg4: memref<128x64xbf16, #tpu.memory_space<vmem>>) attributes {dimension_semantics = [#tpu.dimension_semantics<parallel>], iteration_bounds = array<i64: 4>, scalar_prefetch = 0 : i64, scratch_operands = 0 : i64, tpu.core_type = #tpu.core_type<tc>, window_params = [{transform_indices = @transform_0, window_bounds = array<i64: 128, 27>}, {pipeline_mode = #tpu.pipeline_mode<synchronous>, transform_indices = @transform_1, window_bounds = array<i64: 27, 64>}, {pipeline_mode = #tpu.pipeline_mode<synchronous>, transform_indices = @transform_2, window_bounds = array<i64: 1, 64>}, {transform_indices = @transform_3, window_bounds = array<i64: 128, 64>}]} {
    %c0 = arith.constant 0 : index
    %c0_0 = arith.constant 0 : index
    %0 = vector.load %arg1[%c0, %c0_0] : memref<128x27xbf16, #tpu.memory_space<vmem>>, vector<128x27xbf16>
    %c0_1 = arith.constant 0 : index
    %c0_2 = arith.constant 0 : index
    %1 = vector.load %arg2[%c0_1, %c0_2] : memref<27x64xbf16, #tpu.memory_space<vmem>>, vector<27x64xbf16>
    %cst = arith.constant dense<0.000000e+00> : vector<128x64xf32>
    %2 = tpu.matmul %0, %1, %cst {dimension_numbers = #tpu.dot_dimension_numbers<[1], [0], [0], [1], [0, 0, 1, 1], [], []>} : vector<128x27xbf16>, vector<27x64xbf16>, vector<128x64xf32> -> vector<128x64xf32>
    %c0_3 = arith.constant 0 : index
    %c0_4 = arith.constant 0 : index
    %3 = vector.load %arg3[%c0_3, %c0_4] : memref<1x64xf32, #tpu.memory_space<vmem>>, vector<1x64xf32>
    %4 = vector.broadcast %3 : vector<1x64xf32> to vector<128x64xf32>
    %5 = arith.addf %2, %4 : vector<128x64xf32>
    %cst_5 = arith.constant 0.000000e+00 : f32
    %6 = vector.broadcast %cst_5 : f32 to vector<128x64xf32>
    %7 = arith.maximumf %5, %6 : vector<128x64xf32>
    %8 = arith.truncf %7 : vector<128x64xf32> to vector<128x64xbf16>
    %c0_6 = arith.constant 0 : index
    %c0_7 = arith.constant 0 : index
    %9 = vector.load %arg4[%c0_6, %c0_7] : memref<128x64xbf16, #tpu.memory_space<vmem>>, vector<128x64xbf16>
    tpu.vector_store %arg4[%c0_6, %c0_7], %8 {strides = array<i32>} : memref<128x64xbf16, #tpu.memory_space<vmem>>, vector<128x64xbf16>,
    return
  }
  func.func @transform_0(%arg0: i32) -> (i32, i32) {
    %c0_i32 = arith.constant 0 : i32
    %c0_i32_0 = arith.constant 0 : i32
    return %arg0, %c0_i32 : i32, i32
  }
  func.func @transform_1(%arg0: i32) -> (i32, i32) {
    %c0_i32 = arith.constant 0 : i32
    %c0_i32_0 = arith.constant 0 : i32
    %c0_i32_1 = arith.constant 0 : i32
    return %c0_i32, %c0_i32_0 : i32, i32
  }
  func.func @transform_2(%arg0: i32) -> (i32, i32) {
    %c0_i32 = arith.constant 0 : i32
    %c0_i32_0 = arith.constant 0 : i32
    %c0_i32_1 = arith.constant 0 : i32
    return %c0_i32, %c0_i32_0 : i32, i32
  }
  func.func @transform_3(%arg0: i32) -> (i32, i32) {
    %c0_i32 = arith.constant 0 : i32
    %c0_i32_0 = arith.constant 0 : i32
    return %arg0, %c0_i32 : i32, i32
  }
}

module attributes {stable_mosaic.version = 11 : i64} {
  func.func @_mm_bias_act_kernel(%arg0: i32, %arg1: memref<128x576xbf16, #tpu.memory_space<vmem>>, %arg2: memref<576x128xbf16, #tpu.memory_space<vmem>>, %arg3: memref<1x128xf32, #tpu.memory_space<vmem>>, %arg4: memref<128x128xbf16, #tpu.memory_space<vmem>>) attributes {dimension_semantics = [#tpu.dimension_semantics<parallel>], iteration_bounds = array<i64: 1>, scalar_prefetch = 0 : i64, scratch_operands = 0 : i64, tpu.core_type = #tpu.core_type<tc>, window_params = [{transform_indices = @transform_0, window_bounds = array<i64: 128, 576>}, {pipeline_mode = #tpu.pipeline_mode<synchronous>, transform_indices = @transform_1, window_bounds = array<i64: 576, 128>}, {pipeline_mode = #tpu.pipeline_mode<synchronous>, transform_indices = @transform_2, window_bounds = array<i64: 1, 128>}, {transform_indices = @transform_3, window_bounds = array<i64: 128, 128>}]} {
    %c0 = arith.constant 0 : index
    %c0_0 = arith.constant 0 : index
    %0 = vector.load %arg1[%c0, %c0_0] : memref<128x576xbf16, #tpu.memory_space<vmem>>, vector<128x576xbf16>
    %c0_1 = arith.constant 0 : index
    %c0_2 = arith.constant 0 : index
    %1 = vector.load %arg2[%c0_1, %c0_2] : memref<576x128xbf16, #tpu.memory_space<vmem>>, vector<576x128xbf16>
    %cst = arith.constant dense<0.000000e+00> : vector<128x128xf32>
    %2 = tpu.matmul %0, %1, %cst {dimension_numbers = #tpu.dot_dimension_numbers<[1], [0], [0], [1], [0, 0, 1, 1], [], []>} : vector<128x576xbf16>, vector<576x128xbf16>, vector<128x128xf32> -> vector<128x128xf32>
    %c0_3 = arith.constant 0 : index
    %c0_4 = arith.constant 0 : index
    %3 = vector.load %arg3[%c0_3, %c0_4] : memref<1x128xf32, #tpu.memory_space<vmem>>, vector<1x128xf32>
    %4 = vector.broadcast %3 : vector<1x128xf32> to vector<128x128xf32>
    %5 = arith.addf %2, %4 : vector<128x128xf32>
    %cst_5 = arith.constant 0.000000e+00 : f32
    %6 = vector.broadcast %cst_5 : f32 to vector<128x128xf32>
    %7 = arith.maximumf %5, %6 : vector<128x128xf32>
    %8 = arith.truncf %7 : vector<128x128xf32> to vector<128x128xbf16>
    %c0_6 = arith.constant 0 : index
    %c0_7 = arith.constant 0 : index
    %9 = vector.load %arg4[%c0_6, %c0_7] : memref<128x128xbf16, #tpu.memory_space<vmem>>, vector<128x128xbf16>
    tpu.vector_store %arg4[%c0_6, %c0_7], %8 {strides = array<i32>} : memref<128x128xbf16, #tpu.memory_space<vmem>>, vector<128x128xbf16>,
    return
  }
  func.func @transform_0(%arg0: i32) -> (i32, i32) {
    %c0_i32 = arith.constant 0 : i32
    %c0_i32_0 = arith.constant 0 : i32
    return %arg0, %c0_i32 : i32, i32
  }
  func.func @transform_1(%arg0: i32) -> (i32, i32) {
    %c0_i32 = arith.constant 0 : i32
    %c0_i32_0 = arith.constant 0 : i32
    %c0_i32_1 = arith.constant 0 : i32
    return %c0_i32, %c0_i32_0 : i32, i32
  }
  func.func @transform_2(%arg0: i32) -> (i32, i32) {
    %c0_i32 = arith.constant 0 : i32
    %c0_i32_0 = arith.constant 0 : i32
    %c0_i32_1 = arith.constant 0 : i32
    return %c0_i32, %c0_i32_0 : i32, i32
  }
  func.func @transform_3(%arg0: i32) -> (i32, i32) {
    %c0_i32 = arith.constant 0 : i32
    %c0_i32_0 = arith.constant 0 : i32
    return %arg0, %c0_i32 : i32, i32
  }
}

module attributes {stable_mosaic.version = 11 : i64} {
  func.func @_mm_bias_act_kernel(%arg0: i32, %arg1: memref<32x1152xbf16, #tpu.memory_space<vmem>>, %arg2: memref<1152x256xbf16, #tpu.memory_space<vmem>>, %arg3: memref<1x256xf32, #tpu.memory_space<vmem>>, %arg4: memref<32x256xbf16, #tpu.memory_space<vmem>>) attributes {dimension_semantics = [#tpu.dimension_semantics<parallel>], iteration_bounds = array<i64: 1>, scalar_prefetch = 0 : i64, scratch_operands = 0 : i64, tpu.core_type = #tpu.core_type<tc>, window_params = [{transform_indices = @transform_0, window_bounds = array<i64: 32, 1152>}, {pipeline_mode = #tpu.pipeline_mode<synchronous>, transform_indices = @transform_1, window_bounds = array<i64: 1152, 256>}, {pipeline_mode = #tpu.pipeline_mode<synchronous>, transform_indices = @transform_2, window_bounds = array<i64: 1, 256>}, {transform_indices = @transform_3, window_bounds = array<i64: 32, 256>}]} {
    %c0 = arith.constant 0 : index
    %c0_0 = arith.constant 0 : index
    %0 = vector.load %arg1[%c0, %c0_0] : memref<32x1152xbf16, #tpu.memory_space<vmem>>, vector<32x1152xbf16>
    %c0_1 = arith.constant 0 : index
    %c0_2 = arith.constant 0 : index
    %1 = vector.load %arg2[%c0_1, %c0_2] : memref<1152x256xbf16, #tpu.memory_space<vmem>>, vector<1152x256xbf16>
    %cst = arith.constant dense<0.000000e+00> : vector<32x256xf32>
    %2 = tpu.matmul %0, %1, %cst {dimension_numbers = #tpu.dot_dimension_numbers<[1], [0], [0], [1], [0, 0, 1, 1], [], []>} : vector<32x1152xbf16>, vector<1152x256xbf16>, vector<32x256xf32> -> vector<32x256xf32>
    %c0_3 = arith.constant 0 : index
    %c0_4 = arith.constant 0 : index
    %3 = vector.load %arg3[%c0_3, %c0_4] : memref<1x256xf32, #tpu.memory_space<vmem>>, vector<1x256xf32>
    %4 = vector.broadcast %3 : vector<1x256xf32> to vector<32x256xf32>
    %5 = arith.addf %2, %4 : vector<32x256xf32>
    %cst_5 = arith.constant 0.000000e+00 : f32
    %6 = vector.broadcast %cst_5 : f32 to vector<32x256xf32>
    %7 = arith.maximumf %5, %6 : vector<32x256xf32>
    %8 = arith.truncf %7 : vector<32x256xf32> to vector<32x256xbf16>
    %c0_6 = arith.constant 0 : index
    %c0_7 = arith.constant 0 : index
    %9 = vector.load %arg4[%c0_6, %c0_7] : memref<32x256xbf16, #tpu.memory_space<vmem>>, vector<32x256xbf16>
    tpu.vector_store %arg4[%c0_6, %c0_7], %8 {strides = array<i32>} : memref<32x256xbf16, #tpu.memory_space<vmem>>, vector<32x256xbf16>,
    return
  }
  func.func @transform_0(%arg0: i32) -> (i32, i32) {
    %c0_i32 = arith.constant 0 : i32
    %c0_i32_0 = arith.constant 0 : i32
    return %arg0, %c0_i32 : i32, i32
  }
  func.func @transform_1(%arg0: i32) -> (i32, i32) {
    %c0_i32 = arith.constant 0 : i32
    %c0_i32_0 = arith.constant 0 : i32
    %c0_i32_1 = arith.constant 0 : i32
    return %c0_i32, %c0_i32_0 : i32, i32
  }
  func.func @transform_2(%arg0: i32) -> (i32, i32) {
    %c0_i32 = arith.constant 0 : i32
    %c0_i32_0 = arith.constant 0 : i32
    %c0_i32_1 = arith.constant 0 : i32
    return %c0_i32, %c0_i32_0 : i32, i32
  }
  func.func @transform_3(%arg0: i32) -> (i32, i32) {
    %c0_i32 = arith.constant 0 : i32
    %c0_i32_0 = arith.constant 0 : i32
    return %arg0, %c0_i32 : i32, i32
  }
}

module attributes {stable_mosaic.version = 11 : i64} {
  func.func @_mid_decoder_kernel(%arg0: i32, %arg1: memref<32x2304xbf16, #tpu.memory_space<vmem>>, %arg2: memref<2304x512xbf16, #tpu.memory_space<vmem>>, %arg3: memref<1x512xf32, #tpu.memory_space<vmem>>, %arg4: memref<512x1024xbf16, #tpu.memory_space<vmem>>, %arg5: memref<1x1024xf32, #tpu.memory_space<vmem>>, %arg6: memref<256x512xbf16, #tpu.memory_space<vmem>>, %arg7: memref<1x512xf32, #tpu.memory_space<vmem>>, %arg8: memref<512x4xbf16, #tpu.memory_space<vmem>>, %arg9: memref<1x4xf32, #tpu.memory_space<vmem>>, %arg10: memref<32x16xf32, #tpu.memory_space<vmem>>) attributes {dimension_semantics = [#tpu.dimension_semantics<arbitrary>], iteration_bounds = array<i64: 1>, scalar_prefetch = 0 : i64, scratch_operands = 0 : i64, tpu.core_type = #tpu.core_type<tc>, window_params = [{pipeline_mode = #tpu.pipeline_mode<synchronous>, transform_indices = @transform_0, window_bounds = array<i64: 32, 2304>}, {pipeline_mode = #tpu.pipeline_mode<synchronous>, transform_indices = @transform_1, window_bounds = array<i64: 2304, 512>}, {pipeline_mode = #tpu.pipeline_mode<synchronous>, transform_indices = @transform_2, window_bounds = array<i64: 1, 512>}, {pipeline_mode = #tpu.pipeline_mode<synchronous>, transform_indices = @transform_3, window_bounds = array<i64: 512, 1024>}, {pipeline_mode = #tpu.pipeline_mode<synchronous>, transform_indices = @transform_4, window_bounds = array<i64: 1, 1024>}, {pipeline_mode = #tpu.pipeline_mode<synchronous>, transform_indices = @transform_5, window_bounds = array<i64: 256, 512>}, {pipeline_mode = #tpu.pipeline_mode<synchronous>, transform_indices = @transform_6, window_bounds = array<i64: 1, 512>}, {pipeline_mode = #tpu.pipeline_mode<synchronous>, transform_indices = @transform_7, window_bounds = array<i64: 512, 4>}, {pipeline_mode = #tpu.pipeline_mode<synchronous>, transform_indices = @transform_8, window_bounds = array<i64: 1, 4>}, {pipeline_mode = #tpu.pipeline_mode<synchronous>, transform_indices = @transform_9, window_bounds = array<i64: 32, 16>}]} {
    %c0 = arith.constant 0 : index
    %c0_0 = arith.constant 0 : index
    %0 = vector.load %arg1[%c0, %c0_0] : memref<32x2304xbf16, #tpu.memory_space<vmem>>, vector<32x2304xbf16>
    %c0_1 = arith.constant 0 : index
    %c0_2 = arith.constant 0 : index
    %1 = vector.load %arg2[%c0_1, %c0_2] : memref<2304x512xbf16, #tpu.memory_space<vmem>>, vector<2304x512xbf16>
    %cst = arith.constant dense<0.000000e+00> : vector<32x512xf32>
    %2 = tpu.matmul %0, %1, %cst {dimension_numbers = #tpu.dot_dimension_numbers<[1], [0], [0], [1], [0, 0, 1, 1], [], []>} : vector<32x2304xbf16>, vector<2304x512xbf16>, vector<32x512xf32> -> vector<32x512xf32>
    %c0_3 = arith.constant 0 : index
    %c0_4 = arith.constant 0 : index
    %3 = vector.load %arg3[%c0_3, %c0_4] : memref<1x512xf32, #tpu.memory_space<vmem>>, vector<1x512xf32>
    %4 = vector.broadcast %3 : vector<1x512xf32> to vector<32x512xf32>
    %5 = arith.addf %2, %4 : vector<32x512xf32>
    %cst_5 = arith.constant 0.000000e+00 : f32
    %6 = vector.broadcast %cst_5 : f32 to vector<32x512xf32>
    %7 = arith.maximumf %5, %6 : vector<32x512xf32>
    %8 = arith.truncf %7 : vector<32x512xf32> to vector<32x512xbf16>
    %c0_6 = arith.constant 0 : index
    %c0_7 = arith.constant 0 : index
    %9 = vector.load %arg4[%c0_6, %c0_7] : memref<512x1024xbf16, #tpu.memory_space<vmem>>, vector<512x1024xbf16>
    %cst_8 = arith.constant dense<0.000000e+00> : vector<32x1024xf32>
    %10 = tpu.matmul %8, %9, %cst_8 {dimension_numbers = #tpu.dot_dimension_numbers<[1], [0], [0], [1], [0, 0, 1, 1], [], []>} : vector<32x512xbf16>, vector<512x1024xbf16>, vector<32x1024xf32> -> vector<32x1024xf32>
    %c0_9 = arith.constant 0 : index
    %c0_10 = arith.constant 0 : index
    %11 = vector.load %arg5[%c0_9, %c0_10] : memref<1x1024xf32, #tpu.memory_space<vmem>>, vector<1x1024xf32>
    %12 = vector.broadcast %11 : vector<1x1024xf32> to vector<32x1024xf32>
    %13 = arith.addf %10, %12 : vector<32x1024xf32>
    %cst_11 = arith.constant 0.000000e+00 : f32
    %14 = vector.broadcast %cst_11 : f32 to vector<32x1024xf32>
    %15 = arith.maximumf %13, %14 : vector<32x1024xf32>
    %16 = vector.extract_strided_slice %15 {offsets = [0, 0], sizes = [32, 256], strides = [1, 1]} : vector<32x1024xf32> to vector<32x256xf32>
    %17 = arith.truncf %16 : vector<32x256xf32> to vector<32x256xbf16>
    %c0_12 = arith.constant 0 : index
    %c0_13 = arith.constant 0 : index
    %18 = vector.load %arg6[%c0_12, %c0_13] : memref<256x512xbf16, #tpu.memory_space<vmem>>, vector<256x512xbf16>
    %cst_14 = arith.constant dense<0.000000e+00> : vector<32x512xf32>
    %19 = tpu.matmul %17, %18, %cst_14 {dimension_numbers = #tpu.dot_dimension_numbers<[1], [0], [0], [1], [0, 0, 1, 1], [], []>} : vector<32x256xbf16>, vector<256x512xbf16>, vector<32x512xf32> -> vector<32x512xf32>
    %c0_15 = arith.constant 0 : index
    %c0_16 = arith.constant 0 : index
    %20 = vector.load %arg7[%c0_15, %c0_16] : memref<1x512xf32, #tpu.memory_space<vmem>>, vector<1x512xf32>
    %21 = vector.broadcast %20 : vector<1x512xf32> to vector<32x512xf32>
    %22 = arith.addf %19, %21 : vector<32x512xf32>
    %cst_17 = arith.constant 0.000000e+00 : f32
    %23 = vector.broadcast %cst_17 : f32 to vector<32x512xf32>
    %24 = arith.maximumf %22, %23 : vector<32x512xf32>
    %25 = arith.truncf %24 : vector<32x512xf32> to vector<32x512xbf16>
    %c0_18 = arith.constant 0 : index
    %c0_19 = arith.constant 0 : index
    %26 = vector.load %arg8[%c0_18, %c0_19] : memref<512x4xbf16, #tpu.memory_space<vmem>>, vector<512x4xbf16>
    %cst_20 = arith.constant dense<0.000000e+00> : vector<32x4xf32>
    %27 = tpu.matmul %25, %26, %cst_20 {dimension_numbers = #tpu.dot_dimension_numbers<[1], [0], [0], [1], [0, 0, 1, 1], [], []>} : vector<32x512xbf16>, vector<512x4xbf16>, vector<32x4xf32> -> vector<32x4xf32>
    %c0_21 = arith.constant 0 : index
    %c0_22 = arith.constant 0 : index
    %28 = vector.load %arg9[%c0_21, %c0_22] : memref<1x4xf32, #tpu.memory_space<vmem>>, vector<1x4xf32>
    %29 = vector.broadcast %28 : vector<1x4xf32> to vector<32x4xf32>
    %30 = arith.addf %27, %29 : vector<32x4xf32>
    %31 = vector.extract_strided_slice %15 {offsets = [0, 256], sizes = [32, 256], strides = [1, 1]} : vector<32x1024xf32> to vector<32x256xf32>
    %32 = arith.truncf %31 : vector<32x256xf32> to vector<32x256xbf16>
    %c0_23 = arith.constant 0 : index
    %c0_24 = arith.constant 0 : index
    %33 = vector.load %arg6[%c0_23, %c0_24] : memref<256x512xbf16, #tpu.memory_space<vmem>>, vector<256x512xbf16>
    %cst_25 = arith.constant dense<0.000000e+00> : vector<32x512xf32>
    %34 = tpu.matmul %32, %33, %cst_25 {dimension_numbers = #tpu.dot_dimension_numbers<[1], [0], [0], [1], [0, 0, 1, 1], [], []>} : vector<32x256xbf16>, vector<256x512xbf16>, vector<32x512xf32> -> vector<32x512xf32>
    %c0_26 = arith.constant 0 : index
    %c0_27 = arith.constant 0 : index
    %35 = vector.load %arg7[%c0_26, %c0_27] : memref<1x512xf32, #tpu.memory_space<vmem>>, vector<1x512xf32>
    %36 = vector.broadcast %35 : vector<1x512xf32> to vector<32x512xf32>
    %37 = arith.addf %34, %36 : vector<32x512xf32>
    %cst_28 = arith.constant 0.000000e+00 : f32
    %38 = vector.broadcast %cst_28 : f32 to vector<32x512xf32>
    %39 = arith.maximumf %37, %38 : vector<32x512xf32>
    %40 = arith.truncf %39 : vector<32x512xf32> to vector<32x512xbf16>
    %c0_29 = arith.constant 0 : index
    %c0_30 = arith.constant 0 : index
    %41 = vector.load %arg8[%c0_29, %c0_30] : memref<512x4xbf16, #tpu.memory_space<vmem>>, vector<512x4xbf16>
    %cst_31 = arith.constant dense<0.000000e+00> : vector<32x4xf32>
    %42 = tpu.matmul %40, %41, %cst_31 {dimension_numbers = #tpu.dot_dimension_numbers<[1], [0], [0], [1], [0, 0, 1, 1], [], []>} : vector<32x512xbf16>, vector<512x4xbf16>, vector<32x4xf32> -> vector<32x4xf32>
    %c0_32 = arith.constant 0 : index
    %c0_33 = arith.constant 0 : index
    %43 = vector.load %arg9[%c0_32, %c0_33] : memref<1x4xf32, #tpu.memory_space<vmem>>, vector<1x4xf32>
    %44 = vector.broadcast %43 : vector<1x4xf32> to vector<32x4xf32>
    %45 = arith.addf %42, %44 : vector<32x4xf32>
    %46 = vector.extract_strided_slice %15 {offsets = [0, 512], sizes = [32, 256], strides = [1, 1]} : vector<32x1024xf32> to vector<32x256xf32>
    %47 = arith.truncf %46 : vector<32x256xf32> to vector<32x256xbf16>
    %c0_34 = arith.constant 0 : index
    %c0_35 = arith.constant 0 : index
    %48 = vector.load %arg6[%c0_34, %c0_35] : memref<256x512xbf16, #tpu.memory_space<vmem>>, vector<256x512xbf16>
    %cst_36 = arith.constant dense<0.000000e+00> : vector<32x512xf32>
    %49 = tpu.matmul %47, %48, %cst_36 {dimension_numbers = #tpu.dot_dimension_numbers<[1], [0], [0], [1], [0, 0, 1, 1], [], []>} : vector<32x256xbf16>, vector<256x512xbf16>, vector<32x512xf32> -> vector<32x512xf32>
    %c0_37 = arith.constant 0 : index
    %c0_38 = arith.constant 0 : index
    %50 = vector.load %arg7[%c0_37, %c0_38] : memref<1x512xf32, #tpu.memory_space<vmem>>, vector<1x512xf32>
    %51 = vector.broadcast %50 : vector<1x512xf32> to vector<32x512xf32>
    %52 = arith.addf %49, %51 : vector<32x512xf32>
    %cst_39 = arith.constant 0.000000e+00 : f32
    %53 = vector.broadcast %cst_39 : f32 to vector<32x512xf32>
    %54 = arith.maximumf %52, %53 : vector<32x512xf32>
    %55 = arith.truncf %54 : vector<32x512xf32> to vector<32x512xbf16>
    %c0_40 = arith.constant 0 : index
    %c0_41 = arith.constant 0 : index
    %56 = vector.load %arg8[%c0_40, %c0_41] : memref<512x4xbf16, #tpu.memory_space<vmem>>, vector<512x4xbf16>
    %cst_42 = arith.constant dense<0.000000e+00> : vector<32x4xf32>
    %57 = tpu.matmul %55, %56, %cst_42 {dimension_numbers = #tpu.dot_dimension_numbers<[1], [0], [0], [1], [0, 0, 1, 1], [], []>} : vector<32x512xbf16>, vector<512x4xbf16>, vector<32x4xf32> -> vector<32x4xf32>
    %c0_43 = arith.constant 0 : index
    %c0_44 = arith.constant 0 : index
    %58 = vector.load %arg9[%c0_43, %c0_44] : memref<1x4xf32, #tpu.memory_space<vmem>>, vector<1x4xf32>
    %59 = vector.broadcast %58 : vector<1x4xf32> to vector<32x4xf32>
    %60 = arith.addf %57, %59 : vector<32x4xf32>
    %61 = vector.extract_strided_slice %15 {offsets = [0, 768], sizes = [32, 256], strides = [1, 1]} : vector<32x1024xf32> to vector<32x256xf32>
    %62 = arith.truncf %61 : vector<32x256xf32> to vector<32x256xbf16>
    %c0_45 = arith.constant 0 : index
    %c0_46 = arith.constant 0 : index
    %63 = vector.load %arg6[%c0_45, %c0_46] : memref<256x512xbf16, #tpu.memory_space<vmem>>, vector<256x512xbf16>
    %cst_47 = arith.constant dense<0.000000e+00> : vector<32x512xf32>
    %64 = tpu.matmul %62, %63, %cst_47 {dimension_numbers = #tpu.dot_dimension_numbers<[1], [0], [0], [1], [0, 0, 1, 1], [], []>} : vector<32x256xbf16>, vector<256x512xbf16>, vector<32x512xf32> -> vector<32x512xf32>
    %c0_48 = arith.constant 0 : index
    %c0_49 = arith.constant 0 : index
    %65 = vector.load %arg7[%c0_48, %c0_49] : memref<1x512xf32, #tpu.memory_space<vmem>>, vector<1x512xf32>
    %66 = vector.broadcast %65 : vector<1x512xf32> to vector<32x512xf32>
    %67 = arith.addf %64, %66 : vector<32x512xf32>
    %cst_50 = arith.constant 0.000000e+00 : f32
    %68 = vector.broadcast %cst_50 : f32 to vector<32x512xf32>
    %69 = arith.maximumf %67, %68 : vector<32x512xf32>
    %70 = arith.truncf %69 : vector<32x512xf32> to vector<32x512xbf16>
    %c0_51 = arith.constant 0 : index
    %c0_52 = arith.constant 0 : index
    %71 = vector.load %arg8[%c0_51, %c0_52] : memref<512x4xbf16, #tpu.memory_space<vmem>>, vector<512x4xbf16>
    %cst_53 = arith.constant dense<0.000000e+00> : vector<32x4xf32>
    %72 = tpu.matmul %70, %71, %cst_53 {dimension_numbers = #tpu.dot_dimension_numbers<[1], [0], [0], [1], [0, 0, 1, 1], [], []>} : vector<32x512xbf16>, vector<512x4xbf16>, vector<32x4xf32> -> vector<32x4xf32>
    %c0_54 = arith.constant 0 : index
    %c0_55 = arith.constant 0 : index
    %73 = vector.load %arg9[%c0_54, %c0_55] : memref<1x4xf32, #tpu.memory_space<vmem>>, vector<1x4xf32>
    %74 = vector.broadcast %73 : vector<1x4xf32> to vector<32x4xf32>
    %75 = arith.addf %72, %74 : vector<32x4xf32>
    %76 = tpu.concatenate %30, %45, %60, %75 in 1 : vector<32x4xf32>, vector<32x4xf32>, vector<32x4xf32>, vector<32x4xf32> -> vector<32x16xf32>
    %c0_56 = arith.constant 0 : index
    %c0_57 = arith.constant 0 : index
    %77 = vector.load %arg10[%c0_56, %c0_57] : memref<32x16xf32, #tpu.memory_space<vmem>>, vector<32x16xf32>
    tpu.vector_store %arg10[%c0_56, %c0_57], %76 {strides = array<i32>} : memref<32x16xf32, #tpu.memory_space<vmem>>, vector<32x16xf32>,
    return
  }
  func.func @transform_0(%arg0: i32) -> (i32, i32) {
    %c0_i32 = arith.constant 0 : i32
    %c0_i32_0 = arith.constant 0 : i32
    %c0_i32_1 = arith.constant 0 : i32
    return %c0_i32, %c0_i32_0 : i32, i32
  }
  func.func @transform_1(%arg0: i32) -> (i32, i32) {
    %c0_i32 = arith.constant 0 : i32
    %c0_i32_0 = arith.constant 0 : i32
    %c0_i32_1 = arith.constant 0 : i32
    return %c0_i32, %c0_i32_0 : i32, i32
  }
  func.func @transform_2(%arg0: i32) -> (i32, i32) {
    %c0_i32 = arith.constant 0 : i32
    %c0_i32_0 = arith.constant 0 : i32
    %c0_i32_1 = arith.constant 0 : i32
    return %c0_i32, %c0_i32_0 : i32, i32
  }
  func.func @transform_3(%arg0: i32) -> (i32, i32) {
    %c0_i32 = arith.constant 0 : i32
    %c0_i32_0 = arith.constant 0 : i32
    %c0_i32_1 = arith.constant 0 : i32
    return %c0_i32, %c0_i32_0 : i32, i32
  }
  func.func @transform_4(%arg0: i32) -> (i32, i32) {
    %c0_i32 = arith.constant 0 : i32
    %c0_i32_0 = arith.constant 0 : i32
    %c0_i32_1 = arith.constant 0 : i32
    return %c0_i32, %c0_i32_0 : i32, i32
  }
  func.func @transform_5(%arg0: i32) -> (i32, i32) {
    %c0_i32 = arith.constant 0 : i32
    %c0_i32_0 = arith.constant 0 : i32
    %c0_i32_1 = arith.constant 0 : i32
    return %c0_i32, %c0_i32_0 : i32, i32
  }
  func.func @transform_6(%arg0: i32) -> (i32, i32) {
    %c0_i32 = arith.constant 0 : i32
    %c0_i32_0 = arith.constant 0 : i32
    %c0_i32_1 = arith.constant 0 : i32
    return %c0_i32, %c0_i32_0 : i32, i32
  }
  func.func @transform_7(%arg0: i32) -> (i32, i32) {
    %c0_i32 = arith.constant 0 : i32
    %c0_i32_0 = arith.constant 0 : i32
    %c0_i32_1 = arith.constant 0 : i32
    return %c0_i32, %c0_i32_0 : i32, i32
  }
  func.func @transform_8(%arg0: i32) -> (i32, i32) {
    %c0_i32 = arith.constant 0 : i32
    %c0_i32_0 = arith.constant 0 : i32
    %c0_i32_1 = arith.constant 0 : i32
    return %c0_i32, %c0_i32_0 : i32, i32
  }
  func.func @transform_9(%arg0: i32) -> (i32, i32) {
    %c0_i32 = arith.constant 0 : i32
    %c0_i32_0 = arith.constant 0 : i32
    %c0_i32_1 = arith.constant 0 : i32
    return %c0_i32, %c0_i32_0 : i32, i32
  }
}

</mosaic_0001>

<bundles_post_ra>
// kernel: unet_forward.4
= control target key start
LH: loop header
LB: loop body
LE: loop exit
PB: predicated region body
PF: predicated region fallthrough
CT: control target
= control target key end

     0   :  { %8 = vsyncpa [#allocation3], 0  ;;  %s952_s0 = inlined_call_operand.vmem [shape: bf16[512,27], index: 0, kind: input, shape index: {}]   ;;  %s953_s1 = inlined_call_operand.hbm [shape: bf16[27,64], index: 1, kind: input, shape index: {}]   ;;  %s954_s2 = inlined_call_operand.hbm [shape: f32[1,64], index: 2, kind: input, shape index: {}]   ;;  %s955_s3 = inlined_call_operand.vmem [shape: bf16[512,64], index: 3, kind: output, shape index: {}]  }
   0x1   :  { %9 = vsyncpa [#allocation5], 0  ;;  %s820_s12 = smov 0  }
   0x2 LB: > { %s585_s13 = sadd.s32 4294967295, %s793_s12   ;;  %p587_p0 = scmp.ge.s32.totalorder %s793_s12, 1  ;;  %s793_s12 = sphi %s820_s12, %s15_s12  }
   0x3   : > { %p114_p1 = scmp.lt.s32.totalorder %s793_s12, 5  ;;  %s795_s14 = smov [#allocation2]  }
   0x4   : > { %s126_s15 = sshll.u32 %s795_s14, 4  ;;  %p834_p3 = scmp.eq.s32.totalorder %s585_s13, 0  ;;  %s127_s15 = int_to_ptr.vmem [resolvable:$true] %s126_s15 }
   0x5   : > { %p828_p2 = pnand %p587_p0, %p114_p1  ;;  %s796_s18 = smov [#allocation4]  }
   0x6   : > { %s140_s19 = sshll.u32 %s796_s18, 4  ;;  %s738_s21 = scalar_lea.vmem %s127_s15, 256  ;;  %s141_s19 = int_to_ptr.vmem [resolvable:$true] %s140_s19 }
   0x7   : > { %p693_p4 = pneg %p828_p2  ;;  %p739_p7 = scmp.ne.s32.totalorder %s127_s15, %s738_s21 }
   0x8   : > { %p746_p10 = scmp.lt.s32.totalorder %s127_s15, %s127_s15  ;;  %p747_p11 = scmp.lt.s32.totalorder %s738_s21, %s738_s21 }
   0x9   : > { %p842_p5 = pnand %p834_p3, %p693_p4 }
   0xa   : > { %p748_p12 = por %p747_p11, %p746_p10 }
   0xb   : > { %p729_p6 = pneg %p842_p5 }
   0xd   : > { %p741_p8 = pnand %p739_p7, %p729_p6 }
   0xf   : > { %p742_p9 = pneg %p741_p8 }
  0x11   : > { %p749_p13 = pnand %p748_p12, %p742_p9 }
  0x13   : > { %752 = shalt.err (!%p749_p13)
}
  0x14   : > { %s797_s22 = smov 64   ;;  %s798_s23 = smov 4  }
  0x15   : > { %696 = dma.hbm_to_vmem [thread:$0]  (!%p842_p5), %s953_s1, 256, %s127_s15, [#allocation3], %s797_s22, %s797_s22, %s798_s23  }
  0x16   : > { %s764_s26 = scalar_lea.vmem %s141_s19, 16  ;;  %s771_s27 = scalar_lea.vmem %s141_s19, 32 }
  0x17   : > { %p765_p0 = scmp.ne.s32.totalorder %s141_s19, %s764_s26  ;;  %p772_p7 = scmp.lt.s32.totalorder %s141_s19, %s141_s19 }
  0x18   : > { %p773_p8 = scmp.lt.s32.totalorder %s771_s27, %s764_s26 }
  0x19   : > { %p767_p1 = pnand %p765_p0, %p729_p6 }
  0x1a   : > { %p774_p9 = por %p773_p8, %p772_p7 }
  0x1b   : > { %p768_p4 = pneg %p767_p1 }
  0x1d   : > { %p775_p10 = pnand %p774_p9, %p768_p4 }
  0x1f   : > { %778 = shalt.err (!%p775_p10)
}
  0x20   : > { %699 = dma.hbm_to_vmem [thread:$0]  (!%p842_p5), %s954_s2, 16, %s141_s19, [#allocation5]  }
  0x21   : > { %162 = sbr.rel (%p828_p2) target bundleno = 268 (0x10c), region = 32 }
  0x26   : > { %784 = dma.done.wait (%p834_p3), [#allocation3], 256  }
  0x27   : > { %786 = vsyncadd (%p834_p3), [#allocation3], 4294967040 }
  0x28   : > { %788 = dma.done.wait (%p834_p3), [#allocation5], 16  }
  0x29   : > { %790 = vsyncadd (%p834_p3), [#allocation5], 4294967280  ;;  %vm306_vm0 = vcmask 1044480   ;;  %s594_s30 = sshll.u32 %s585_s13, 4  ;;  %vm307_vm1 = vcmask 1045504   ;;  %v799_v0 = vmov 65535  }
  0x2a   : > { %p191_p5 = scmp.lt.s32.totalorder %s594_s30, 63  ;;  %v308_v1 = vsel %vm306_vm0, 4294967295, %v799_v0  ;;  %v717_v3 = vld [vmem:[#allocation2 + $0x8] sm:$0x3f]   ;;  %v718_v4 = vld [vmem:[#allocation2] sm:$0xff]   ;;  %vm281_vm2 = vcmask 220160  }
  0x2b   : > { %v309_v2 = vsel %vm307_vm1, %v308_v1, 0  ;;  %v892_v14 = vld [vmem:[#allocation4] ss:$0 sm:$0xff]  ;;  %vm490_vm3 = vcmask 519168  }
  0x2c   : > { %s960_s30 = smov (!%p191_p5, %s594_s30), 63  ;;  %v311_v5 = vand.u32 %v717_v3, %v309_v2 }
  0x2d   : > { %s595_s4 = sshll.u32 %s960_s30, 2 }
  0x2e   : > { %s194_s7 = scalar_lea.vmem %s952_s0, %s595_s4  ;;  %661 = vmatprep.subr.bf16.mxu0 %v311_v5  ;;  %681 = vmatprep.subr.bf16.mxu1 %v311_v5  ;;  %s903_s10 = scalar_lea.vmem %s955_s3, %s595_s4 }
  0x2f   : > { %v719_v6 = vld [vmem:[%s194_s7] sm:$0xff]   ;;  %662 = vmatpush3.bf16.msra.mxu0 %v311_v5  ;;  %683 = vmatpush3.bf16.msra.mxu1 %v311_v5  ;;  %v721_v8 = vld [vmem:[%s194_s7 + $0x8] sm:$0xff]   ;;  %v723_v10 = vld [vmem:[%s194_s7 + $0x10] sm:$0xff]  }
  0x30   : > { %v720_v7 = vld [vmem:[%s194_s7 + $0x20] sm:$0xff]   ;;  %663 = vmatprep.subr.bf16.mxu0 %v718_v4  ;;  %682 = vmatprep.subr.bf16.mxu1 %v718_v4  ;;  %v722_v9 = vld [vmem:[%s194_s7 + $0x28] sm:$0xff]   ;;  %v724_v11 = vld [vmem:[%s194_s7 + $0x30] sm:$0xff]  }
  0x31   : > { %665 = vmatprep.mubr.msk.bf16.mxu0 %vm281_vm2, %v719_v6  ;;  %673 = vmatprep.mubr.msk.bf16.mxu1 %vm281_vm2, %v720_v7  ;;  %v725_v12 = vld [vmem:[%s194_s7 + $0x18] sm:$0xff]  }
  0x32   : > { %v726_v13 = vld [vmem:[%s194_s7 + $0x38] sm:$0xff]  }
  0x33   : > { %664 = vmatpush3.bf16.msra.mxu0 %v718_v4  ;;  %684 = vmatpush3.bf16.msra.mxu1 %v718_v4 }
  0x36   : > { %666 = vmatmul.mubr.msk.bf16.vlgmr.msra.gmra.mxu0 %vm281_vm2, %v721_v8  ;;  %674 = vmatmul.mubr.msk.bf16.vlgmr.msra.gmra.mxu1 %vm281_vm2, %v722_v9 }
  0x37   : > { %669 = vmatprep.mubr.msk.bf16.mxu0 %vm281_vm2, %v723_v10  ;;  %677 = vmatprep.mubr.msk.bf16.mxu1 %vm281_vm2, %v724_v11 }
  0x3e   : > { %670 = vmatmul.mubr.msk.bf16.gmra.mxu0 %vm281_vm2, %v725_v12  ;;  %678 = vmatmul.mubr.msk.bf16.gmra.mxu1 %vm281_vm2, %v726_v13 }
  0xf6   : > { %v667_v15 = vpop.f32.mrf.mxu0  ;;  %v675_v16 = vpop.f32.mrf.mxu1 }
  0xf7   : > { %v356_v17 = vadd.f32 %v667_v15, %v892_v14  ;;  %v388_v18 = vadd.f32 %v675_v16, %v892_v14 }
  0xf8   : > { %v347_v19 = vpop.f32.mrf.mxu0  ;;  %v379_v20 = vpop.f32.mrf.mxu1 }
  0xf9   : > { %v412_v21 = vmax.f32 %v356_v17, 0.0  ;;  %v420_v22 = vmax.f32 %v388_v18, 0.0  ;;  %v348_v23 = vadd.f32 %v892_v14, %v347_v19  ;;  %v380_v24 = vadd.f32 %v892_v14, %v379_v20 }
  0xfa   : > { %v668_v25 = vpop.f32.mrf.mxu0  ;;  %v676_v26 = vpop.f32.mrf.mxu1 }
  0xfb   : > { %v637_v27 = vpack.c.bf16 %v412_v21, %v412_v21  ;;  %v645_v28 = vpack.c.bf16 %v420_v22, %v420_v22  ;;  %v410_v29 = vmax.f32 %v348_v23, 0.0  ;;  %v418_v30 = vmax.f32 %v380_v24, 0.0 }
  0xfc   : > { %v359_v31 = vadd.f32 %v668_v25, %v892_v14  ;;  %v391_v32 = vadd.f32 %v676_v26, %v892_v14  ;;  %v350_v33 = vpop.f32.mrf.mxu0  ;;  %v382_v34 = vpop.f32.mrf.mxu1 }
  0xfd   : > { %493 = vst.msk [vmem:[%s903_s10 + $0x8] sm:$0xf] %vm490_vm3, %v637_v27  ;;  %501 = vst.msk [vmem:[%s903_s10 + $0x28] sm:$0xf] %vm490_vm3, %v645_v28  ;;  %v635_v35 = vpack.c.bf16 %v410_v29, %v410_v29  ;;  %v643_v36 = vpack.c.bf16 %v418_v30, %v418_v30  ;;  %v351_v37 = vadd.f32 %v892_v14, %v350_v33 }
  0xfe   : > { %v383_v38 = vadd.f32 %v892_v14, %v382_v34  ;;  %v413_v39 = vmax.f32 %v359_v31, 0.0  ;;  %v421_v40 = vmax.f32 %v391_v32, 0.0  ;;  %v671_v41 = vpop.f32.mrf.mxu0  ;;  %v679_v42 = vpop.f32.mrf.mxu1 }
  0xff   : > { %491 = vst.msk [vmem:[%s903_s10] sm:$0xf] %vm490_vm3, %v635_v35  ;;  %499 = vst.msk [vmem:[%s903_s10 + $0x20] sm:$0xf] %vm490_vm3, %v643_v36  ;;  %v411_v43 = vmax.f32 %v351_v37, 0.0  ;;  %v372_v45 = vadd.f32 %v671_v41, %v892_v14  ;;  %v404_v46 = vadd.f32 %v679_v42, %v892_v14 }
 0x100   : > { %v419_v44 = vmax.f32 %v383_v38, 0.0  ;;  %v638_v47 = vpack.c.bf16 %v413_v39, %v413_v39  ;;  %v646_v48 = vpack.c.bf16 %v421_v40, %v421_v40  ;;  %v363_v49 = vpop.f32.mrf.mxu0  ;;  %v395_v50 = vpop.f32.mrf.mxu1 }
 0x101   : > { %v636_v51 = vpack.c.bf16 %v411_v43, %v411_v43  ;;  %v416_v53 = vmax.f32 %v372_v45, 0.0  ;;  %v424_v54 = vmax.f32 %v404_v46, 0.0  ;;  %v364_v55 = vadd.f32 %v892_v14, %v363_v49 }
 0x102   : > { %v644_v52 = vpack.c.bf16 %v419_v44, %v419_v44  ;;  %494 = vst.msk [vmem:[%s903_s10 + $0xc] sm:$0xf] %vm490_vm3, %v638_v47  ;;  %502 = vst.msk [vmem:[%s903_s10 + $0x2c] sm:$0xf] %vm490_vm3, %v646_v48  ;;  %v396_v56 = vadd.f32 %v892_v14, %v395_v50  ;;  %v672_v57 = vpop.f32.mrf.mxu0  ;;  %v680_v58 = vpop.f32.mrf.mxu1 }
 0x103   : > { %492 = vst.msk [vmem:[%s903_s10 + $0x4] sm:$0xf] %vm490_vm3, %v636_v51  ;;  %v641_v59 = vpack.c.bf16 %v416_v53, %v416_v53  ;;  %v649_v60 = vpack.c.bf16 %v424_v54, %v424_v54  ;;  %v375_v61 = vadd.f32 %v672_v57, %v892_v14  ;;  %v407_v62 = vadd.f32 %v680_v58, %v892_v14 }
 0x104   : > { %500 = vst.msk [vmem:[%s903_s10 + $0x24] sm:$0xf] %vm490_vm3, %v644_v52  ;;  %v414_v63 = vmax.f32 %v364_v55, 0.0  ;;  %v422_v0 = vmax.f32 %v396_v56, 0.0  ;;  %v366_v1 = vpop.f32.mrf.mxu0  ;;  %v398_v2 = vpop.f32.mrf.mxu1 }
 0x105   : > { %497 = vst.msk [vmem:[%s903_s10 + $0x18] sm:$0xf] %vm490_vm3, %v641_v59  ;;  %505 = vst.msk [vmem:[%s903_s10 + $0x38] sm:$0xf] %vm490_vm3, %v649_v60  ;;  %v417_v3 = vmax.f32 %v375_v61, 0.0  ;;  %v425_v4 = vmax.f32 %v407_v62, 0.0  ;;  %v367_v5 = vadd.f32 %v892_v14, %v366_v1  ;;  %v399_v6 = vadd.f32 %v892_v14, %v398_v2 }
 0x106   : > { %v639_v7 = vpack.c.bf16 %v414_v63, %v414_v63  ;;  %v647_v8 = vpack.c.bf16 %v422_v0, %v422_v0 }
 0x107   : > { %v642_v9 = vpack.c.bf16 %v417_v3, %v417_v3  ;;  %v650_v10 = vpack.c.bf16 %v425_v4, %v425_v4  ;;  %v415_v11 = vmax.f32 %v367_v5, 0.0  ;;  %v423_v12 = vmax.f32 %v399_v6, 0.0 }
 0x108   : > { %495 = vst.msk [vmem:[%s903_s10 + $0x10] sm:$0xf] %vm490_vm3, %v639_v7  ;;  %503 = vst.msk [vmem:[%s903_s10 + $0x30] sm:$0xf] %vm490_vm3, %v647_v8 }
 0x109   : > { %498 = vst.msk [vmem:[%s903_s10 + $0x1c] sm:$0xf] %vm490_vm3, %v642_v9  ;;  %506 = vst.msk [vmem:[%s903_s10 + $0x3c] sm:$0xf] %vm490_vm3, %v650_v10  ;;  %v640_v13 = vpack.c.bf16 %v415_v11, %v415_v11  ;;  %v648_v15 = vpack.c.bf16 %v423_v12, %v423_v12 }
 0x10b   : > { %496 = vst.msk [vmem:[%s903_s10 + $0x14] sm:$0xf] %vm490_vm3, %v640_v13  ;;  %504 = vst.msk [vmem:[%s903_s10 + $0x34] sm:$0xf] %vm490_vm3, %v648_v15 }
 0x10c PF: > { %s15_s12 = sadd.s32 1, %s793_s12  }
 0x10d   : > { %p12_p2 = scmp.ge.s32.totalorder %s15_s12, 6  }
 0x10f   :  { %14 = sbr.rel (!%p12_p2) target bundleno = 2 (0x2), region = 71 }
 0x114   :  { %529 = vsyncpa [#allocation3], 1 }
 0x115   :  { %531 = vsyncpa [#allocation3 + $0x1], 1 }
 0x116   :  { %532 = vsyncpa [#allocation5], 1 }

// kernel: unet_forward.5
= control target key start
LH: loop header
LB: loop body
LE: loop exit
PB: predicated region body
PF: predicated region fallthrough
CT: control target
= control target key end

     0   :  { %vm558_vm0 = vcmask 523264   ;;  %s1757_s1 = inlined_call_operand.vmem [shape: bf16[576,128], index: 1, kind: input, shape index: {}]   ;;  %s1758_s0 = inlined_call_operand.vmem [shape: bf16[128,576], index: 0, kind: input, shape index: {}]   ;;  %s1759_s2 = inlined_call_operand.vmem [shape: f32[1,128], index: 2, kind: input, shape index: {}]   ;;  %s1760_s3 = inlined_call_operand.vmem [shape: bf16[128,128], index: 3, kind: output, shape index: {}]  }
   0x1   :  { %v1310_v0 = vld [vmem:[%s1757_s1 + $0x78] sm:$0xff]   ;;  %v1314_v4 = vld [vmem:[%s1757_s1 + $0x70] sm:$0xff]   ;;  %v1318_v8 = vld [vmem:[%s1757_s1 + $0x68] sm:$0xff]  }
   0x2   :  { %v1311_v1 = vld [vmem:[%s1757_s1 + $0xf8] sm:$0xff]   ;;  %1138 = vmatprep.subr.bf16.mxu0 %v1310_v0  ;;  %v1315_v5 = vld [vmem:[%s1757_s1 + $0xf0] sm:$0xff]   ;;  %v1319_v9 = vld [vmem:[%s1757_s1 + $0xe8] sm:$0xff]  }
   0x3   :  { %v1312_v2 = vld [vmem:[%s1757_s1 + $0x38] sm:$0xff]   ;;  %1202 = vmatprep.subr.bf16.mxu1 %v1311_v1  ;;  %v1316_v6 = vld [vmem:[%s1757_s1 + $0x30] sm:$0xff]   ;;  %v1320_v10 = vld [vmem:[%s1757_s1 + $0x28] sm:$0xff]  }
   0x4   :  { %v1313_v3 = vld [vmem:[%s1757_s1 + $0xb8] sm:$0xff]   ;;  %1139 = vmatpush3.bf16.msra.mxu0 %v1312_v2  ;;  %v1317_v7 = vld [vmem:[%s1757_s1 + $0xb0] sm:$0xff]   ;;  %v1321_v11 = vld [vmem:[%s1757_s1 + $0xa8] sm:$0xff]  }
   0x5   :  { %1203 = vmatpush3.bf16.msra.mxu1 %v1313_v3  ;;  %1140 = vmatprep.subr.bf16.mxu0 %v1314_v4  ;;  %v1322_v12 = vld [vmem:[%s1757_s1 + $0x60] sm:$0xff]   ;;  %v1326_v16 = vld [vmem:[%s1757_s1 + $0x58] sm:$0xff]   ;;  %v1330_v20 = vld [vmem:[%s1757_s1 + $0x50] sm:$0xff]  }
   0x6   :  { %1204 = vmatprep.subr.bf16.mxu1 %v1315_v5  ;;  %v1323_v13 = vld [vmem:[%s1757_s1 + $0xe0] sm:$0xff]   ;;  %v1327_v17 = vld [vmem:[%s1757_s1 + $0xd8] sm:$0xff]   ;;  %v1331_v21 = vld [vmem:[%s1757_s1 + $0xd0] sm:$0xff]  }
   0x7   :  { %v1324_v14 = vld [vmem:[%s1757_s1 + $0x20] sm:$0xff]   ;;  %v1328_v18 = vld [vmem:[%s1757_s1 + $0x18] sm:$0xff]   ;;  %v1332_v22 = vld [vmem:[%s1757_s1 + $0x10] sm:$0xff]  }
   0x8   :  { %1141 = vmatpush3.bf16.msra.mxu0 %v1316_v6  ;;  %v1325_v15 = vld [vmem:[%s1757_s1 + $0xa0] sm:$0xff]   ;;  %v1329_v19 = vld [vmem:[%s1757_s1 + $0x98] sm:$0xff]   ;;  %v1333_v23 = vld [vmem:[%s1757_s1 + $0x90] sm:$0xff]  }
   0x9   :  { %1205 = vmatpush3.bf16.msra.mxu1 %v1317_v7  ;;  %1142 = vmatprep.subr.bf16.mxu0 %v1318_v8  ;;  %v1334_v24 = vld [vmem:[%s1757_s1 + $0x48] sm:$0xff]   ;;  %v1338_v28 = vld [vmem:[%s1757_s1 + $0x40] sm:$0xff]   ;;  %v1348_v36 = vld [vmem:[%s1757_s1 + $0x118] sm:$0xff]  }
   0xa   :  { %1206 = vmatprep.subr.bf16.mxu1 %v1319_v9  ;;  %v1335_v25 = vld [vmem:[%s1757_s1 + $0xc8] sm:$0xff]   ;;  %v1339_v29 = vld [vmem:[%s1757_s1 + $0xc0] sm:$0xff]   ;;  %v1361_v42 = vld [vmem:[%s1757_s1 + $0x110] sm:$0xff]  }
   0xb   :  { %v1336_v26 = vld [vmem:[%s1757_s1 + $0x8] sm:$0xff]   ;;  %v1340_v30 = vld [vmem:[%s1757_s1] sm:$0xff]   ;;  %v1357_v43 = vld [vmem:[%s1758_s0 + $0x5c] ss:$20 sps:$4 sm:$0xff]  }
   0xc   :  { %1143 = vmatpush3.bf16.msra.mxu0 %v1320_v10  ;;  %v1337_v27 = vld [vmem:[%s1757_s1 + $0x88] sm:$0xff]   ;;  %v1341_v31 = vld [vmem:[%s1757_s1 + $0x80] sm:$0xff]   ;;  %v1362_v47 = vld [vmem:[%s1758_s0 + $0x7c] ss:$20 sps:$4 sm:$0xff]  }
   0xd   :  { %1207 = vmatpush3.bf16.msra.mxu1 %v1321_v11  ;;  %1144 = vmatprep.subr.bf16.mxu0 %v1322_v12  ;;  %v1342_v32 = vld [vmem:[%s1758_s0] ss:$20 sps:$4 sm:$0xff]   ;;  %v1344_v33 = vld [vmem:[%s1758_s0 + $0x4] ss:$20 sps:$4 sm:$0xff]   ;;  %v1345_v34 = vld [vmem:[%s1758_s0 + $0x8] ss:$20 sps:$4 sm:$0xff]  }
   0xe   :  { %1208 = vmatprep.subr.bf16.mxu1 %v1323_v13  ;;  %v1347_v35 = vld [vmem:[%s1758_s0 + $0xc] ss:$20 sps:$4 sm:$0xff]   ;;  %615 = vmatprep.mubr.bf16.mxu0 %v1344_v33  ;;  %v1351_v38 = vld [vmem:[%s1758_s0 + $0x34] ss:$20 sps:$4 sm:$0xff]   ;;  %v1354_v40 = vld [vmem:[%s1758_s0 + $0x30] ss:$20 sps:$4 sm:$0xff]  }
   0xf   :  { %712 = vmatprep.mubr.bf16.mxu1 %v1347_v35  ;;  %v1349_v37 = vld [vmem:[%s1758_s0 + $0x2c] ss:$20 sps:$4 sm:$0xff]   ;;  %v1353_v39 = vld [vmem:[%s1758_s0 + $0x28] ss:$20 sps:$4 sm:$0xff]   ;;  %v1359_v44 = vld [vmem:[%s1758_s0 + $0x50] ss:$20 sps:$4 sm:$0xff]  }
  0x10   :  { %1145 = vmatpush3.bf16.msra.mxu0 %v1324_v14  ;;  %v1355_v41 = vld [vmem:[%s1758_s0 + $0x54] ss:$20 sps:$4 sm:$0xff]   ;;  %v1360_v45 = vld [vmem:[%s1758_s0 + $0x58] ss:$20 sps:$4 sm:$0xff]   ;;  %v1387_v49 = vld [vmem:[%s1757_s1 + $0x100] sm:$0xff]  }
  0x11   :  { %1209 = vmatpush3.bf16.msra.mxu1 %v1325_v15  ;;  %1146 = vmatprep.subr.bf16.mxu0 %v1326_v16  ;;  %v1374_v46 = vld [vmem:[%s1757_s1 + $0x108] sm:$0xff]   ;;  %v1364_v48 = vld [vmem:[%s1758_s0 + $0x84] ss:$20 sps:$4 sm:$0xff]   ;;  %v1367_v51 = vld [vmem:[%s1758_s0 + $0x80] ss:$20 sps:$4 sm:$0xff]  }
  0x12   :  { %1210 = vmatprep.subr.bf16.mxu1 %v1327_v17  ;;  %v1366_v50 = vld [vmem:[%s1758_s0 + $0x78] ss:$20 sps:$4 sm:$0xff]   ;;  %v1372_v54 = vld [vmem:[%s1758_s0 + $0xa0] ss:$20 sps:$4 sm:$0xff]   ;;  %v1373_v55 = vld [vmem:[%s1758_s0 + $0xa8] ss:$20 sps:$4 sm:$0xff]  }
  0x13   :  { %v1368_v52 = vld [vmem:[%s1758_s0 + $0xa4] ss:$20 sps:$4 sm:$0xff]   ;;  %v1370_v53 = vld [vmem:[%s1758_s0 + $0xac] ss:$20 sps:$4 sm:$0xff]   ;;  %v1377_v57 = vld [vmem:[%s1758_s0 + $0xd4] ss:$20 sps:$4 sm:$0xff]  }
  0x14   :  { %1147 = vmatpush3.bf16.msra.mxu0 %v1328_v18  ;;  %v1375_v56 = vld [vmem:[%s1758_s0 + $0xcc] ss:$20 sps:$4 sm:$0xff]   ;;  %v1379_v58 = vld [vmem:[%s1758_s0 + $0xc8] ss:$20 sps:$4 sm:$0xff]   ;;  %v1380_v59 = vld [vmem:[%s1758_s0 + $0xd0] ss:$20 sps:$4 sm:$0xff]  }
  0x15   :  { %1211 = vmatpush3.bf16.msra.mxu1 %v1329_v19  ;;  %1148 = vmatprep.subr.bf16.mxu0 %v1330_v20  ;;  %v1381_v60 = vld [vmem:[%s1758_s0 + $0xf4] ss:$20 sps:$4 sm:$0xff]   ;;  %v1383_v61 = vld [vmem:[%s1758_s0 + $0xfc] ss:$20 sps:$4 sm:$0xff]   ;;  %v1386_v63 = vld [vmem:[%s1758_s0 + $0xf8] ss:$20 sps:$4 sm:$0xff]  }
  0x16   :  { %1212 = vmatprep.subr.bf16.mxu1 %v1331_v21  ;;  %v1385_v62 = vld [vmem:[%s1758_s0 + $0xf0] ss:$20 sps:$4 sm:$0xff]   ;;  %v1392_v2 = vld [vmem:[%s1758_s0 + $0x118] ss:$20 sps:$4 sm:$0xff]   ;;  %v1393_v3 = vld [vmem:[%s1758_s0 + $0x120] ss:$20 sps:$4 sm:$0xff]  }
  0x17   :  { %v1388_v0 = vld [vmem:[%s1758_s0 + $0x11c] ss:$20 sps:$4 sm:$0xff]   ;;  %v1390_v1 = vld [vmem:[%s1758_s0 + $0x124] ss:$20 sps:$4 sm:$0xff]   ;;  %v1398_v8 = vld [vmem:[%s1758_s0 + $0x60] ss:$20 sps:$4 sm:$0xff]  }
  0x18   :  { %1149 = vmatpush3.bf16.msra.mxu0 %v1332_v22  ;;  %v1394_v4 = vld [vmem:[%s1758_s0 + $0x10] ss:$20 sps:$4 sm:$0xff]   ;;  %v1396_v6 = vld [vmem:[%s1758_s0 + $0x38] ss:$20 sps:$4 sm:$0xff]   ;;  %v1399_v9 = vld [vmem:[%s1758_s0 + $0x100] ss:$20 sps:$4 sm:$0xff]  }
  0x19   :  { %1213 = vmatpush3.bf16.msra.mxu1 %v1333_v23  ;;  %1150 = vmatprep.subr.bf16.mxu0 %v1334_v24  ;;  %v1395_v5 = vld [vmem:[%s1758_s0 + $0xb0] ss:$20 sps:$4 sm:$0xff]   ;;  %v1397_v7 = vld [vmem:[%s1758_s0 + $0xd8] ss:$20 sps:$4 sm:$0xff]   ;;  %v1400_v10 = vld [vmem:[%s1758_s0 + $0x88] ss:$20 sps:$4 sm:$0xff]  }
  0x1a   :  { %1214 = vmatprep.subr.bf16.mxu1 %v1335_v25  ;;  %v1401_v11 = vld [vmem:[%s1758_s0 + $0x128] ss:$20 sps:$4 sm:$0xff]   ;;  %v1661_v14 = vld [vmem:[%s1759_s2] ss:$0 sm:$0xff] }
  0x1c   :  { %1151 = vmatpush3.bf16.msra.mxu0 %v1336_v26 }
  0x1d   :  { %1215 = vmatpush3.bf16.msra.mxu1 %v1337_v27  ;;  %1152 = vmatprep.subr.bf16.mxu0 %v1338_v28 }
  0x1e   :  { %1216 = vmatprep.subr.bf16.mxu1 %v1339_v29 }
  0x20   :  { %1153 = vmatpush3.bf16.msra.mxu0 %v1340_v30 }
  0x21   :  { %1217 = vmatpush3.bf16.msra.mxu1 %v1341_v31  ;;  %1278 = vmatprep.subr.bf16.mxu0 %v1348_v36 }
  0x22   :  { %1302 = vmatprep.subr.bf16.mxu1 %v1348_v36 }
  0x23   :  { %616 = vmatmul.mubr.bf16.vlgmr.msra.gmra.mxu0 %v1342_v32 }
  0x24   :  { %713 = vmatmul.mubr.bf16.vlgmr.msra.gmra.mxu1 %v1345_v34  ;;  %1279 = vmatpush3.bf16.msra.mxu0 %v1348_v36 }
  0x25   :  { %1306 = vmatpush3.bf16.msra.mxu1 %v1348_v36  ;;  %623 = vmatprep.mubr.bf16.mxu0 %v1349_v37 }
  0x26   :  { %720 = vmatprep.mubr.bf16.mxu1 %v1351_v38  ;;  %1280 = vmatprep.subr.bf16.mxu0 %v1361_v42 }
  0x27   :  { %1303 = vmatprep.subr.bf16.mxu1 %v1361_v42 }
  0x28   :  { %1281 = vmatpush3.bf16.msra.mxu0 %v1361_v42 }
  0x29   :  { %1307 = vmatpush3.bf16.msra.mxu1 %v1361_v42  ;;  %1282 = vmatprep.subr.bf16.mxu0 %v1374_v46 }
  0x2a   :  { %1304 = vmatprep.subr.bf16.mxu1 %v1374_v46 }
  0x2b   :  { %624 = vmatmul.mubr.bf16.gmra.mxu0 %v1353_v39 }
  0x2c   :  { %721 = vmatmul.mubr.bf16.gmra.mxu1 %v1354_v40  ;;  %631 = vmatprep.mubr.bf16.mxu0 %v1355_v41 }
  0x2d   :  { %728 = vmatprep.mubr.bf16.mxu1 %v1357_v43  ;;  %1283 = vmatpush3.bf16.msra.mxu0 %v1374_v46 }
  0x2e   :  { %1308 = vmatpush3.bf16.msra.mxu1 %v1374_v46  ;;  %1284 = vmatprep.subr.bf16.mxu0 %v1387_v49 }
  0x2f   :  { %1305 = vmatprep.subr.bf16.mxu1 %v1387_v49 }
  0x31   :  { %1285 = vmatpush3.bf16.msra.mxu0 %v1387_v49 }
  0x32   :  { %1309 = vmatpush3.bf16.msra.mxu1 %v1387_v49 }
  0x33   :  { %632 = vmatmul.mubr.bf16.gmra.mxu0 %v1359_v44 }
  0x34   :  { %729 = vmatmul.mubr.bf16.gmra.mxu1 %v1360_v45  ;;  %639 = vmatprep.mubr.bf16.mxu0 %v1362_v47 }
  0x35   :  { %736 = vmatprep.mubr.bf16.mxu1 %v1364_v48 }
  0x3b   :  { %640 = vmatmul.mubr.bf16.gmra.mxu0 %v1366_v50 }
  0x3c   :  { %737 = vmatmul.mubr.bf16.gmra.mxu1 %v1367_v51  ;;  %647 = vmatprep.mubr.bf16.mxu0 %v1368_v52 }
  0x3d   :  { %744 = vmatprep.mubr.bf16.mxu1 %v1370_v53 }
  0x43   :  { %648 = vmatmul.mubr.bf16.gmra.mxu0 %v1372_v54 }
  0x44   :  { %745 = vmatmul.mubr.bf16.gmra.mxu1 %v1373_v55  ;;  %655 = vmatprep.mubr.bf16.mxu0 %v1375_v56 }
  0x45   :  { %752 = vmatprep.mubr.bf16.mxu1 %v1377_v57 }
  0x4b   :  { %656 = vmatmul.mubr.bf16.gmra.mxu0 %v1379_v58 }
  0x4c   :  { %753 = vmatmul.mubr.bf16.gmra.mxu1 %v1380_v59  ;;  %663 = vmatprep.mubr.bf16.mxu0 %v1381_v60 }
  0x4d   :  { %760 = vmatprep.mubr.bf16.mxu1 %v1383_v61 }
  0x53   :  { %664 = vmatmul.mubr.bf16.gmra.mxu0 %v1385_v62 }
  0x54   :  { %761 = vmatmul.mubr.bf16.gmra.mxu1 %v1386_v63  ;;  %671 = vmatprep.mubr.bf16.mxu0 %v1388_v0 }
  0x55   :  { %768 = vmatprep.mubr.bf16.mxu1 %v1390_v1 }
  0x5b   :  { %672 = vmatmul.mubr.bf16.gmra.mxu0 %v1392_v2 }
  0x5c   :  { %769 = vmatmul.mubr.bf16.gmra.mxu1 %v1393_v3  ;;  %1286 = vmatprep.mubr.msk.bf16.mxu0 %vm558_vm0, %v1394_v4 }
  0x5d   :  { %1294 = vmatprep.mubr.msk.bf16.mxu1 %vm558_vm0, %v1395_v5 }
  0x63   :  { %1287 = vmatmul.mubr.msk.bf16.vlgmr.msra.gmra.mxu0 %vm558_vm0, %v1396_v6 }
  0x64   :  { %1295 = vmatmul.mubr.msk.bf16.vlgmr.msra.gmra.mxu1 %vm558_vm0, %v1397_v7  ;;  %1290 = vmatprep.mubr.msk.bf16.mxu0 %vm558_vm0, %v1398_v8 }
  0x65   :  { %1298 = vmatprep.mubr.msk.bf16.mxu1 %vm558_vm0, %v1399_v9 }
  0x6b   :  { %1291 = vmatmul.mubr.msk.bf16.gmra.mxu0 %vm558_vm0, %v1400_v10 }
  0x6c   :  { %1299 = vmatmul.mubr.msk.bf16.gmra.mxu1 %vm558_vm0, %v1401_v11 }
  0xe3   :  { %v1154_v12 = vpop.f32.mrf.mxu0 }
  0xe4   :  { %v1218_v13 = vpop.f32.mrf.mxu1 }
  0xe5   :  { %v1155_v15 = vpop.f32.mrf.mxu0 }
  0xe6   :  { %v1156_v16 = vadd.f32 %v1155_v15, %v1154_v12  ;;  %v1219_v17 = vpop.f32.mrf.mxu1 }
  0xe7   :  { %v1157_v18 = vpop.f32.mrf.mxu0  ;;  %v1220_v20 = vadd.f32 %v1219_v17, %v1218_v13 }
  0xe8   :  { %v618_v19 = vadd.f32 %v1156_v16, %v1661_v14  ;;  %v1664_v21 = vpop.f32.mrf.mxu1 }
  0xe9   :  { %v1158_v22 = vpop.f32.mrf.mxu0 }
  0xea   :  { %v1666_v23 = vpop.f32.mrf.mxu1  ;;  %v1668_v24 = vadd.f32 %v1220_v20, %v618_v19  ;;  %v1159_v6 = vadd.f32 %v1158_v22, %v1157_v18 }
  0xeb   :  { %v1160_v25 = vpop.f32.mrf.mxu0 }
  0xec   :  { %1761 = vst [vmem:[#allocation2_spill] sm:$0xff] %v1668_v24  ;;  %v1224_v26 = vpop.f32.mrf.mxu1  ;;  %v621_v15 = vadd.f32 %v1159_v6, %v1661_v14 }
  0xed   :  { %v1161_v27 = vpop.f32.mrf.mxu0 }
  0xee   :  { %v1225_v28 = vpop.f32.mrf.mxu1  ;;  %v1162_v8 = vadd.f32 %v1161_v27, %v1160_v25  ;;  %v1223_v25 = vadd.f32 %v1666_v23, %v1664_v21 }
  0xef   :  { %v1163_v29 = vpop.f32.mrf.mxu0  ;;  %v1226_v27 = vadd.f32 %v1225_v28, %v1224_v26 }
  0xf0   :  { %v1227_v30 = vpop.f32.mrf.mxu1  ;;  %v626_v19 = vadd.f32 %v1162_v8, %v1661_v14 }
  0xf1   :  { %v1164_v31 = vpop.f32.mrf.mxu0 }
  0xf2   :  { %v1228_v32 = vpop.f32.mrf.mxu1  ;;  %v1165_v9 = vadd.f32 %v1164_v31, %v1163_v29 }
  0xf3   :  { %v1166_v33 = vpop.f32.mrf.mxu0  ;;  %v1229_v29 = vadd.f32 %v1228_v32, %v1227_v30 }
  0xf4   :  { %v1230_v34 = vpop.f32.mrf.mxu1  ;;  %v629_v20 = vadd.f32 %v1165_v9, %v1661_v14  ;;  %v718_v9 = vadd.f32 %v1223_v25, %v621_v15 }
  0xf5   :  { %v1167_v35 = vpop.f32.mrf.mxu0 }
  0xf6   :  { %v1231_v36 = vpop.f32.mrf.mxu1  ;;  %v1168_v10 = vadd.f32 %v1167_v35, %v1166_v33  ;;  %v726_v24 = vadd.f32 %v1229_v29, %v629_v20 }
  0xf7   :  { %v1169_v37 = vpop.f32.mrf.mxu0  ;;  %v1232_v35 = vadd.f32 %v1231_v36, %v1230_v34 }
  0xf8   :  { %v1670_v38 = vpop.f32.mrf.mxu1  ;;  %v634_v18 = vadd.f32 %v1168_v10, %v1661_v14  ;;  %v723_v10 = vadd.f32 %v1226_v27, %v626_v19 }
  0xf9   :  { %v1170_v39 = vpop.f32.mrf.mxu0 }
  0xfa   :  { %v1672_v40 = vpop.f32.mrf.mxu1  ;;  %v1171_v6 = vadd.f32 %v1170_v39, %v1169_v37  ;;  %v1702_v21 = vadd.f32 %v1232_v35, %v634_v18 }
  0xfb   :  { %v1172_v41 = vpop.f32.mrf.mxu0  ;;  %v1706_v23 = vadd.f32 %v1672_v40, %v1670_v38 }
  0xfc   :  { %v1674_v42 = vpop.f32.mrf.mxu1  ;;  %v1711_v34 = vadd.f32 %v1171_v6, %v1661_v14 }
  0xfd   :  { %v1173_v43 = vpop.f32.mrf.mxu0 }
  0xfe   :  { %v1237_v44 = vpop.f32.mrf.mxu1  ;;  %v1174_v16 = vadd.f32 %v1173_v43, %v1172_v41 }
  0xff   :  { %v1175_v45 = vpop.f32.mrf.mxu0  ;;  %v1238_v26 = vadd.f32 %v1237_v44, %v1674_v42 }
 0x100   :  { %v1676_v46 = vpop.f32.mrf.mxu1  ;;  %v642_v8 = vadd.f32 %v1174_v16, %v1661_v14 }
 0x101   :  { %v1176_v47 = vpop.f32.mrf.mxu0 }
 0x102   :  { %v1678_v48 = vpop.f32.mrf.mxu1  ;;  %v1177_v28 = vadd.f32 %v1176_v47, %v1175_v45 }
 0x103   :  { %v1178_v49 = vpop.f32.mrf.mxu0  ;;  %v1241_v15 = vadd.f32 %v1678_v48, %v1676_v46 }
 0x104   :  { %v1680_v50 = vpop.f32.mrf.mxu1 }
 0x105   :  { %v1179_v51 = vpop.f32.mrf.mxu0 }
 0x106   :  { %v1243_v52 = vpop.f32.mrf.mxu1  ;;  %v1180_v31 = vadd.f32 %v1179_v51, %v1178_v49 }
 0x107   :  { %v1181_v53 = vpop.f32.mrf.mxu0  ;;  %v1244_v51 = vadd.f32 %v1243_v52, %v1680_v50 }
 0x108   :  { %v1245_v54 = vpop.f32.mrf.mxu1  ;;  %v650_v30 = vadd.f32 %v1180_v31, %v1661_v14 }
 0x109   :  { %v1182_v55 = vpop.f32.mrf.mxu0 }
 0x10a   :  { %v1246_v56 = vpop.f32.mrf.mxu1  ;;  %v1183_v41 = vadd.f32 %v1182_v55, %v1181_v53  ;;  %v739_v55 = vadd.f32 %v1238_v26, %v642_v8 }
 0x10b   :  { %v1184_v57 = vpop.f32.mrf.mxu0  ;;  %v1247_v53 = vadd.f32 %v1246_v56, %v1245_v54 }
 0x10c   :  { %v1248_v58 = vpop.f32.mrf.mxu1  ;;  %v653_v36 = vadd.f32 %v1183_v41, %v1661_v14 }
 0x10d   :  { %v1185_v59 = vpop.f32.mrf.mxu0 }
 0x10e   :  { %v1249_v60 = vpop.f32.mrf.mxu1  ;;  %v1186_v22 = vadd.f32 %v1185_v59, %v1184_v57  ;;  %v750_v54 = vadd.f32 %v1247_v53, %v653_v36 }
 0x10f   :  { %v1187_v61 = vpop.f32.mrf.mxu0  ;;  %v1250_v37 = vadd.f32 %v1249_v60, %v1248_v58  ;;  %v747_v60 = vadd.f32 %v1244_v51, %v650_v30 }
 0x110   :  { %v1251_v62 = vpop.f32.mrf.mxu1  ;;  %v658_v57 = vadd.f32 %v1186_v22, %v1661_v14 }
 0x111   :  { %v1188_v63 = vpop.f32.mrf.mxu0 }
 0x112   :  { %v1252_v0 = vpop.f32.mrf.mxu1  ;;  %v1189_v43 = vadd.f32 %v1188_v63, %v1187_v61  ;;  %v755_v47 = vadd.f32 %v1250_v37, %v658_v57  ;;  %v645_v63 = vadd.f32 %v1177_v28, %v1661_v14 }
 0x113   :  { %v1190_v1 = vpop.f32.mrf.mxu0  ;;  %v1253_v42 = vadd.f32 %v1252_v0, %v1251_v62  ;;  %v1765_v0 = vld [vmem:[#allocation2_spill] sm:$0xff] }
 0x114   :  { %v1682_v2 = vpop.f32.mrf.mxu1  ;;  %v661_v39 = vadd.f32 %v1189_v43, %v1661_v14  ;;  %v742_v37 = vadd.f32 %v1241_v15, %v645_v63 }
 0x115   :  { %v1191_v3 = vpop.f32.mrf.mxu0 }
 0x116   :  { %v1684_v4 = vpop.f32.mrf.mxu1  ;;  %v1192_v44 = vadd.f32 %v1191_v3, %v1190_v1  ;;  %v758_v52 = vadd.f32 %v1253_v42, %v661_v39 }
 0x117   :  { %v1193_v5 = vpop.f32.mrf.mxu0  ;;  %v1256_v56 = vadd.f32 %v1684_v4, %v1682_v2 }
 0x118   :  { %v1686_v7 = vpop.f32.mrf.mxu1 }
 0x119   :  { %1762 = vst [vmem:[#allocation3_spill] sm:$0xff] %v1686_v7  ;;  %v1194_v11 = vpop.f32.mrf.mxu0 }
 0x11a   :  { %v1688_v12 = vpop.f32.mrf.mxu1  ;;  %v1195_v45 = vadd.f32 %v1194_v11, %v1193_v5 }
 0x11b   :  { %1763 = vst [vmem:[#allocation4_spill] sm:$0xff] %v1688_v12  ;;  %v1196_v13 = vpop.f32.mrf.mxu0 }
 0x11c   :  { %v1691_v17 = vpop.f32.mrf.mxu1  ;;  %v669_v46 = vadd.f32 %v1195_v45, %v1661_v14 }
 0x11d   :  { %1764 = vst [vmem:[#allocation5_spill] sm:$0xff] %v1691_v17  ;;  %v1197_v7 = vpop.f32.mrf.mxu0 }
 0x11e   :  { %v1261_v33 = vpop.f32.mrf.mxu1  ;;  %v1198_v38 = vadd.f32 %v1197_v7, %v1196_v13  ;;  %v666_v7 = vadd.f32 %v1192_v44, %v1661_v14  ;;  %v734_v44 = vadd.f32 %v1706_v23, %v1711_v34 }
 0x11f   :  { %v1199_v12 = vpop.f32.mrf.mxu0 }
 0x120   :  { %v1699_v17 = vpop.f32.mrf.mxu1  ;;  %v674_v62 = vadd.f32 %v1198_v38, %v1661_v14  ;;  %v763_v30 = vadd.f32 %v1256_v56, %v666_v7  ;;  %v1767_v39 = vld [vmem:[#allocation3_spill] sm:$0xff] }
 0x121   :  { %v1200_v59 = vpop.f32.mrf.mxu0 }
 0x122   :  { %v1264_v32 = vpop.f32.mrf.mxu1  ;;  %v1201_v19 = vadd.f32 %v1200_v59, %v1199_v12 }
 0x123   :  { %v1288_v49 = vpop.f32.mrf.mxu0  ;;  %v1265_v59 = vadd.f32 %v1264_v32, %v1699_v17 }
 0x124   :  { %v1296_v40 = vpop.f32.mrf.mxu1  ;;  %v820_v58 = vadd.f32 %v1288_v49, %v723_v10  ;;  %v1766_v13 = vld [vmem:[#allocation5_spill] sm:$0xff]  ;;  %v677_v2 = vadd.f32 %v1201_v19, %v1661_v14  ;;  %v1768_v49 = vld [vmem:[#allocation4_spill] sm:$0xff] }
 0x125   :  { %v811_v61 = vpop.f32.mrf.mxu0  ;;  %v852_v20 = vadd.f32 %v1296_v40, %v755_v47  ;;  %v1262_v18 = vadd.f32 %v1261_v33, %v1766_v13  ;;  %v1259_v51 = vadd.f32 %v1768_v49, %v1767_v39 }
 0x126   :  { %v843_v16 = vpop.f32.mrf.mxu1  ;;  %v812_v1 = vadd.f32 %v811_v61, %v1765_v0  ;;  %v876_v22 = vmax.f32 %v820_v58, 0.0  ;;  %v774_v38 = vadd.f32 %v1265_v59, %v677_v2 }
 0x127   :  { %v1289_v50 = vpop.f32.mrf.mxu0  ;;  %v844_v48 = vadd.f32 %v843_v16, %v747_v60  ;;  %v884_v4 = vmax.f32 %v852_v20, 0.0  ;;  %v771_v8 = vadd.f32 %v1262_v18, %v674_v62  ;;  %v766_v63 = vadd.f32 %v1259_v51, %v669_v46 }
 0x128   :  { %v823_v3 = vadd.f32 %v1289_v50, %v726_v24  ;;  %v1297_v5 = vpop.f32.mrf.mxu1  ;;  %v874_v6 = vmax.f32 %v812_v1, 0.0 }
 0x129   :  { %v855_v11 = vadd.f32 %v1297_v5, %v758_v52  ;;  %v814_v12 = vpop.f32.mrf.mxu0  ;;  %v882_v10 = vmax.f32 %v844_v48, 0.0 }
 0x12a   :  { %v877_v25 = vmax.f32 %v823_v3, 0.0  ;;  %v815_v27 = vadd.f32 %v814_v12, %v718_v9  ;;  %v846_v29 = vpop.f32.mrf.mxu1 }
 0x12b   :  { %v885_v31 = vmax.f32 %v855_v11, 0.0  ;;  %v847_v35 = vadd.f32 %v846_v29, %v750_v54  ;;  %v1292_v24 = vpop.f32.mrf.mxu0 }
 0x12c   :  { %v1099_v41 = vpack.c.bf16 %v877_v25, %v876_v22  ;;  %v875_v43 = vmax.f32 %v815_v27, 0.0  ;;  %v1300_v57 = vpop.f32.mrf.mxu1  ;;  %v836_v9 = vadd.f32 %v1292_v24, %v739_v55 }
 0x12d   :  { %v1119_v26 = vpack.c.bf16 %v885_v31, %v884_v4  ;;  %v883_v33 = vmax.f32 %v847_v35, 0.0  ;;  %v827_v28 = vpop.f32.mrf.mxu0  ;;  %v868_v32 = vadd.f32 %v1300_v57, %v771_v8 }
 0x12e   :  { %1131 = vst [vmem:[%s1760_s3 + $0x8] sm:$0xff] %v1099_v41   ;;  %v1094_v14 = vpack.c.bf16 %v875_v43, %v874_v6  ;;  %v859_v36 = vpop.f32.mrf.mxu1  ;;  %v828_v40 = vadd.f32 %v827_v28, %v1702_v21  ;;  %v880_v15 = vmax.f32 %v836_v9, 0.0 }
 0x12f   :  { %1135 = vst [vmem:[%s1760_s3 + $0x28] sm:$0xff] %v1119_v26   ;;  %v1114_v17 = vpack.c.bf16 %v883_v33, %v882_v10  ;;  %v1293_v53 = vpop.f32.mrf.mxu0  ;;  %v860_v45 = vadd.f32 %v859_v36, %v763_v30  ;;  %v888_v19 = vmax.f32 %v868_v32, 0.0 }
 0x130   :  { %1095 = vst [vmem:[%s1760_s3] sm:$0xff] %v1094_v14   ;;  %v839_v55 = vadd.f32 %v1293_v53, %v742_v37  ;;  %v1301_v42 = vpop.f32.mrf.mxu1  ;;  %v878_v50 = vmax.f32 %v828_v40, 0.0 }
 0x131   :  { %1134 = vst [vmem:[%s1760_s3 + $0x20] sm:$0xff] %v1114_v17   ;;  %v871_v47 = vadd.f32 %v1301_v42, %v774_v38  ;;  %v830_v61 = vpop.f32.mrf.mxu0  ;;  %v886_v56 = vmax.f32 %v860_v45, 0.0 }
 0x132   :  { %v881_v58 = vmax.f32 %v839_v55, 0.0  ;;  %v831_v60 = vadd.f32 %v830_v61, %v734_v44  ;;  %v862_v16 = vpop.f32.mrf.mxu1 }
 0x133   :  { %v889_v20 = vmax.f32 %v871_v47, 0.0  ;;  %v863_v21 = vadd.f32 %v862_v16, %v766_v63 }
 0x134   :  { %v1109_v52 = vpack.c.bf16 %v881_v58, %v880_v15  ;;  %v879_v54 = vmax.f32 %v831_v60, 0.0 }
 0x135   :  { %v1129_v23 = vpack.c.bf16 %v889_v20, %v888_v19  ;;  %v887_v34 = vmax.f32 %v863_v21, 0.0 }
 0x136   :  { %1133 = vst [vmem:[%s1760_s3 + $0x18] sm:$0xff] %v1109_v52   ;;  %v1104_v62 = vpack.c.bf16 %v879_v54, %v878_v50 }
 0x137   :  { %1137 = vst [vmem:[%s1760_s3 + $0x38] sm:$0xff] %v1129_v23   ;;  %v1124_v0 = vpack.c.bf16 %v887_v34, %v886_v56 }
 0x138   :  { %1132 = vst [vmem:[%s1760_s3 + $0x10] sm:$0xff] %v1104_v62  }
 0x139   :  { %1136 = vst [vmem:[%s1760_s3 + $0x30] sm:$0xff] %v1124_v0  }

// kernel: unet_forward.6
= control target key start
LH: loop header
LB: loop body
LE: loop exit
PB: predicated region body
PF: predicated region fallthrough
CT: control target
= control target key end

     0   :  { %s2259_s1 = inlined_call_operand.vmem [shape: bf16[1152,256], index: 1, kind: input, shape index: {}]   ;;  %s2260_s0 = inlined_call_operand.vmem [shape: bf16[32,1152], index: 0, kind: input, shape index: {}]   ;;  %s2261_s2 = inlined_call_operand.vmem [shape: f32[1,256], index: 2, kind: input, shape index: {}]   ;;  %s2262_s3 = inlined_call_operand.vmem [shape: bf16[32,256], index: 3, kind: output, shape index: {}]  }
   0x1   :  { %v1495_v0 = vld [vmem:[%s2259_s1 + $0x74] ss:$8 sps:$4 sm:$0xff]   ;;  %v1499_v2 = vld [vmem:[%s2259_s1 + $0x70] ss:$8 sps:$4 sm:$0xff]   ;;  %v1501_v4 = vld [vmem:[%s2259_s1 + $0x64] ss:$8 sps:$4 sm:$0xff]  }
   0x2   :  { %v1497_v1 = vld [vmem:[%s2259_s1 + $0x174] ss:$8 sps:$4 sm:$0xff]   ;;  %1003 = vmatprep.subr.bf16.mxu0 %v1495_v0  ;;  %v1500_v3 = vld [vmem:[%s2259_s1 + $0x170] ss:$8 sps:$4 sm:$0xff]   ;;  %v1503_v5 = vld [vmem:[%s2259_s1 + $0x164] ss:$8 sps:$4 sm:$0xff]  }
   0x3   :  { %1056 = vmatprep.subr.bf16.mxu1 %v1497_v1  ;;  %1004 = vmatpush1.bf16.msra.mxu0 %v1499_v2  ;;  %v1505_v6 = vld [vmem:[%s2259_s1 + $0x60] ss:$8 sps:$4 sm:$0xff]   ;;  %v1507_v8 = vld [vmem:[%s2259_s1 + $0x54] ss:$8 sps:$4 sm:$0xff]   ;;  %v1511_v10 = vld [vmem:[%s2259_s1 + $0x50] ss:$8 sps:$4 sm:$0xff]  }
   0x4   :  { %1057 = vmatpush1.bf16.msra.mxu1 %v1500_v3  ;;  %1005 = vmatprep.subr.bf16.mxu0 %v1501_v4  ;;  %v1506_v7 = vld [vmem:[%s2259_s1 + $0x160] ss:$8 sps:$4 sm:$0xff]   ;;  %v1509_v9 = vld [vmem:[%s2259_s1 + $0x154] ss:$8 sps:$4 sm:$0xff]   ;;  %v1512_v11 = vld [vmem:[%s2259_s1 + $0x150] ss:$8 sps:$4 sm:$0xff]  }
   0x5   :  { %1058 = vmatprep.subr.bf16.mxu1 %v1503_v5  ;;  %v1513_v12 = vld [vmem:[%s2259_s1 + $0x44] ss:$8 sps:$4 sm:$0xff]   ;;  %v1517_v14 = vld [vmem:[%s2259_s1 + $0x40] ss:$8 sps:$4 sm:$0xff]   ;;  %v1519_v16 = vld [vmem:[%s2259_s1 + $0x34] ss:$8 sps:$4 sm:$0xff]  }
   0x6   :  { %v1515_v13 = vld [vmem:[%s2259_s1 + $0x144] ss:$8 sps:$4 sm:$0xff]   ;;  %v1518_v15 = vld [vmem:[%s2259_s1 + $0x140] ss:$8 sps:$4 sm:$0xff]   ;;  %v1521_v17 = vld [vmem:[%s2259_s1 + $0x134] ss:$8 sps:$4 sm:$0xff]  }
   0x7   :  { %1006 = vmatpush1.bf16.msra.mxu0 %v1505_v6  ;;  %v1523_v18 = vld [vmem:[%s2259_s1 + $0x30] ss:$8 sps:$4 sm:$0xff]   ;;  %v1525_v20 = vld [vmem:[%s2259_s1 + $0x24] ss:$8 sps:$4 sm:$0xff]   ;;  %v1529_v22 = vld [vmem:[%s2259_s1 + $0x20] ss:$8 sps:$4 sm:$0xff]  }
   0x8   :  { %1059 = vmatpush1.bf16.msra.mxu1 %v1506_v7  ;;  %1007 = vmatprep.subr.bf16.mxu0 %v1507_v8  ;;  %v1524_v19 = vld [vmem:[%s2259_s1 + $0x130] ss:$8 sps:$4 sm:$0xff]   ;;  %v1527_v21 = vld [vmem:[%s2259_s1 + $0x124] ss:$8 sps:$4 sm:$0xff]   ;;  %v1530_v23 = vld [vmem:[%s2259_s1 + $0x120] ss:$8 sps:$4 sm:$0xff]  }
   0x9   :  { %1060 = vmatprep.subr.bf16.mxu1 %v1509_v9  ;;  %v1531_v24 = vld [vmem:[%s2259_s1 + $0x14] ss:$8 sps:$4 sm:$0xff]   ;;  %v1535_v26 = vld [vmem:[%s2259_s1 + $0x10] ss:$8 sps:$4 sm:$0xff]   ;;  %v1537_v28 = vld [vmem:[%s2259_s1 + $0x4] ss:$8 sps:$4 sm:$0xff]  }
   0xa   :  { %v1533_v25 = vld [vmem:[%s2259_s1 + $0x114] ss:$8 sps:$4 sm:$0xff]   ;;  %v1536_v27 = vld [vmem:[%s2259_s1 + $0x110] ss:$8 sps:$4 sm:$0xff]   ;;  %v1539_v29 = vld [vmem:[%s2259_s1 + $0x104] ss:$8 sps:$4 sm:$0xff]  }
   0xb   :  { %1008 = vmatpush1.bf16.msra.mxu0 %v1511_v10  ;;  %v1541_v30 = vld [vmem:[%s2259_s1] ss:$8 sps:$4 sm:$0xff]   ;;  %v1543_v32 = vld [vmem:[%s2259_s1 + $0xf4] ss:$8 sps:$4 sm:$0xff]   ;;  %v1547_v34 = vld [vmem:[%s2259_s1 + $0xf0] ss:$8 sps:$4 sm:$0xff]  }
   0xc   :  { %1061 = vmatpush1.bf16.msra.mxu1 %v1512_v11  ;;  %1009 = vmatprep.subr.bf16.mxu0 %v1513_v12  ;;  %v1542_v31 = vld [vmem:[%s2259_s1 + $0x100] ss:$8 sps:$4 sm:$0xff]   ;;  %v1545_v33 = vld [vmem:[%s2259_s1 + $0x1f4] ss:$8 sps:$4 sm:$0xff]   ;;  %v1548_v35 = vld [vmem:[%s2259_s1 + $0x1f0] ss:$8 sps:$4 sm:$0xff]  }
   0xd   :  { %1062 = vmatprep.subr.bf16.mxu1 %v1515_v13  ;;  %v1549_v36 = vld [vmem:[%s2259_s1 + $0xe4] ss:$8 sps:$4 sm:$0xff]   ;;  %v1553_v38 = vld [vmem:[%s2259_s1 + $0xe0] ss:$8 sps:$4 sm:$0xff]   ;;  %v1555_v40 = vld [vmem:[%s2259_s1 + $0xd4] ss:$8 sps:$4 sm:$0xff]  }
   0xe   :  { %v1551_v37 = vld [vmem:[%s2259_s1 + $0x1e4] ss:$8 sps:$4 sm:$0xff]   ;;  %v1554_v39 = vld [vmem:[%s2259_s1 + $0x1e0] ss:$8 sps:$4 sm:$0xff]   ;;  %v1557_v41 = vld [vmem:[%s2259_s1 + $0x1d4] ss:$8 sps:$4 sm:$0xff]  }
   0xf   :  { %1010 = vmatpush1.bf16.msra.mxu0 %v1517_v14  ;;  %v1559_v42 = vld [vmem:[%s2259_s1 + $0xd0] ss:$8 sps:$4 sm:$0xff]   ;;  %v1561_v44 = vld [vmem:[%s2259_s1 + $0xc4] ss:$8 sps:$4 sm:$0xff]   ;;  %v1565_v46 = vld [vmem:[%s2259_s1 + $0xc0] ss:$8 sps:$4 sm:$0xff]  }
  0x10   :  { %1063 = vmatpush1.bf16.msra.mxu1 %v1518_v15  ;;  %1011 = vmatprep.subr.bf16.mxu0 %v1519_v16  ;;  %v1560_v43 = vld [vmem:[%s2259_s1 + $0x1d0] ss:$8 sps:$4 sm:$0xff]   ;;  %v1563_v45 = vld [vmem:[%s2259_s1 + $0x1c4] ss:$8 sps:$4 sm:$0xff]   ;;  %v1566_v47 = vld [vmem:[%s2259_s1 + $0x1c0] ss:$8 sps:$4 sm:$0xff]  }
  0x11   :  { %1064 = vmatprep.subr.bf16.mxu1 %v1521_v17  ;;  %v1567_v48 = vld [vmem:[%s2259_s1 + $0xb4] ss:$8 sps:$4 sm:$0xff]   ;;  %v1593_v49 = vld [vmem:[%s2260_s0 + $0x4] ss:$36 sps:$4 sm:$0xff]   ;;  %v1596_v51 = vld [vmem:[%s2260_s0 + $0xc] ss:$36 sps:$4 sm:$0xff]  }
  0x12   :  { %v1569_v50 = vld [vmem:[%s2259_s1 + $0x1b4] ss:$8 sps:$4 sm:$0xff]   ;;  %1035 = vmatprep.mubr.bf16.mxu0 %v1593_v49  ;;  %v1571_v52 = vld [vmem:[%s2259_s1 + $0xb0] ss:$8 sps:$4 sm:$0xff]   ;;  %1088 = vmatprep.mubr.bf16.mxu1 %v1596_v51  ;;  %v1573_v54 = vld [vmem:[%s2259_s1 + $0xa4] ss:$8 sps:$4 sm:$0xff]  }
  0x13   :  { %1012 = vmatpush1.bf16.msra.mxu0 %v1523_v18  ;;  %v1572_v53 = vld [vmem:[%s2259_s1 + $0x1b0] ss:$8 sps:$4 sm:$0xff]   ;;  %v1575_v55 = vld [vmem:[%s2259_s1 + $0x1a4] ss:$8 sps:$4 sm:$0xff]   ;;  %v1577_v56 = vld [vmem:[%s2259_s1 + $0xa0] ss:$8 sps:$4 sm:$0xff]  }
  0x14   :  { %1065 = vmatpush1.bf16.msra.mxu1 %v1524_v19  ;;  %1013 = vmatprep.subr.bf16.mxu0 %v1525_v20  ;;  %v1578_v57 = vld [vmem:[%s2259_s1 + $0x1a0] ss:$8 sps:$4 sm:$0xff]   ;;  %v1579_v58 = vld [vmem:[%s2259_s1 + $0x94] ss:$8 sps:$4 sm:$0xff]   ;;  %v1583_v60 = vld [vmem:[%s2259_s1 + $0x90] ss:$8 sps:$4 sm:$0xff]  }
  0x15   :  { %1066 = vmatprep.subr.bf16.mxu1 %v1527_v21  ;;  %v1581_v59 = vld [vmem:[%s2259_s1 + $0x194] ss:$8 sps:$4 sm:$0xff]   ;;  %v1584_v61 = vld [vmem:[%s2259_s1 + $0x190] ss:$8 sps:$4 sm:$0xff]   ;;  %v1585_v62 = vld [vmem:[%s2259_s1 + $0x84] ss:$8 sps:$4 sm:$0xff]  }
  0x16   :  { %v1587_v63 = vld [vmem:[%s2259_s1 + $0x184] ss:$8 sps:$4 sm:$0xff]   ;;  %v1589_v0 = vld [vmem:[%s2259_s1 + $0x80] ss:$8 sps:$4 sm:$0xff]   ;;  %v1599_v2 = vld [vmem:[%s2259_s1 + $0x274] ss:$8 sps:$4 sm:$0xff]  }
  0x17   :  { %1014 = vmatpush1.bf16.msra.mxu0 %v1529_v22  ;;  %v1590_v1 = vld [vmem:[%s2259_s1 + $0x180] ss:$8 sps:$4 sm:$0xff]   ;;  %v1602_v3 = vld [vmem:[%s2259_s1 + $0x374] ss:$8 sps:$4 sm:$0xff]   ;;  %v1597_v6 = vld [vmem:[%s2259_s1 + $0x270] ss:$8 sps:$4 sm:$0xff]  }
  0x18   :  { %1067 = vmatpush1.bf16.msra.mxu1 %v1530_v23  ;;  %1015 = vmatprep.subr.bf16.mxu0 %v1531_v24  ;;  %v1591_v4 = vld [vmem:[%s2260_s0] ss:$36 sps:$4 sm:$0xff]   ;;  %v1594_v5 = vld [vmem:[%s2260_s0 + $0x8] ss:$36 sps:$4 sm:$0xff]   ;;  %v1600_v7 = vld [vmem:[%s2259_s1 + $0x370] ss:$8 sps:$4 sm:$0xff]  }
  0x19   :  { %1068 = vmatprep.subr.bf16.mxu1 %v1533_v25  ;;  %v1605_v8 = vld [vmem:[%s2259_s1 + $0x264] ss:$8 sps:$4 sm:$0xff]   ;;  %v1603_v10 = vld [vmem:[%s2259_s1 + $0x260] ss:$8 sps:$4 sm:$0xff]   ;;  %v1611_v12 = vld [vmem:[%s2259_s1 + $0x254] ss:$8 sps:$4 sm:$0xff]  }
  0x1a   :  { %v1608_v9 = vld [vmem:[%s2259_s1 + $0x364] ss:$8 sps:$4 sm:$0xff]   ;;  %v1606_v11 = vld [vmem:[%s2259_s1 + $0x360] ss:$8 sps:$4 sm:$0xff]   ;;  %v1614_v13 = vld [vmem:[%s2259_s1 + $0x354] ss:$8 sps:$4 sm:$0xff]  }
  0x1b   :  { %1016 = vmatpush1.bf16.msra.mxu0 %v1535_v26  ;;  %v1609_v14 = vld [vmem:[%s2259_s1 + $0x250] ss:$8 sps:$4 sm:$0xff]   ;;  %v1617_v16 = vld [vmem:[%s2259_s1 + $0x244] ss:$8 sps:$4 sm:$0xff]   ;;  %v1615_v18 = vld [vmem:[%s2259_s1 + $0x240] ss:$8 sps:$4 sm:$0xff]  }
  0x1c   :  { %1069 = vmatpush1.bf16.msra.mxu1 %v1536_v27  ;;  %1017 = vmatprep.subr.bf16.mxu0 %v1537_v28  ;;  %v1612_v15 = vld [vmem:[%s2259_s1 + $0x350] ss:$8 sps:$4 sm:$0xff]   ;;  %v1620_v17 = vld [vmem:[%s2259_s1 + $0x344] ss:$8 sps:$4 sm:$0xff]   ;;  %v1618_v19 = vld [vmem:[%s2259_s1 + $0x340] ss:$8 sps:$4 sm:$0xff]  }
  0x1d   :  { %1070 = vmatprep.subr.bf16.mxu1 %v1539_v29  ;;  %v1623_v20 = vld [vmem:[%s2259_s1 + $0x234] ss:$8 sps:$4 sm:$0xff]   ;;  %v1669_v22 = vld [vmem:[%s2260_s0 + $0x4c] ss:$36 sps:$4 sm:$0xff]   ;;  %v1627_v28 = vld [vmem:[%s2259_s1 + $0x220] ss:$8 sps:$4 sm:$0xff]  }
  0x1e   :  { %v1626_v21 = vld [vmem:[%s2259_s1 + $0x334] ss:$8 sps:$4 sm:$0xff]   ;;  %v1621_v23 = vld [vmem:[%s2259_s1 + $0x230] ss:$8 sps:$4 sm:$0xff]   ;;  %v1629_v25 = vld [vmem:[%s2259_s1 + $0x224] ss:$8 sps:$4 sm:$0xff]  }
  0x1f   :  { %1018 = vmatpush1.bf16.msra.mxu0 %v1541_v30  ;;  %v1624_v24 = vld [vmem:[%s2259_s1 + $0x330] ss:$8 sps:$4 sm:$0xff]   ;;  %v1632_v26 = vld [vmem:[%s2259_s1 + $0x324] ss:$8 sps:$4 sm:$0xff]   ;;  %v1630_v30 = vld [vmem:[%s2259_s1 + $0x320] ss:$8 sps:$4 sm:$0xff]  }
  0x20   :  { %1071 = vmatpush1.bf16.msra.mxu1 %v1542_v31  ;;  %1019 = vmatprep.subr.bf16.mxu0 %v1543_v32  ;;  %v1677_v27 = vld [vmem:[%s2260_s0 + $0x48] ss:$36 sps:$4 sm:$0xff]   ;;  %v1678_v29 = vld [vmem:[%s2260_s0 + $0x54] ss:$36 sps:$4 sm:$0xff]  }
  0x21   :  { %1072 = vmatprep.subr.bf16.mxu1 %v1545_v33  ;;  %v1680_v31 = vld [vmem:[%s2260_s0 + $0x50] ss:$36 sps:$4 sm:$0xff]   ;;  %v1654_v49 = vld [vmem:[%s2259_s1 + $0x3e0] ss:$8 sps:$4 sm:$0xff]  }
  0x22   :  { %v1635_v32 = vld [vmem:[%s2259_s1 + $0x214] ss:$8 sps:$4 sm:$0xff]  }
  0x23   :  { %1020 = vmatpush2.bf16.msra.mxu0 %v1547_v34  ;;  %v1638_v33 = vld [vmem:[%s2259_s1 + $0x314] ss:$8 sps:$4 sm:$0xff]   ;;  %v1633_v34 = vld [vmem:[%s2259_s1 + $0x210] ss:$8 sps:$4 sm:$0xff]  }
  0x24   :  { %1073 = vmatpush2.bf16.msra.mxu1 %v1548_v35  ;;  %1021 = vmatprep.subr.bf16.mxu0 %v1549_v36  ;;  %v1636_v35 = vld [vmem:[%s2259_s1 + $0x310] ss:$8 sps:$4 sm:$0xff]   ;;  %v1641_v36 = vld [vmem:[%s2259_s1 + $0x204] ss:$8 sps:$4 sm:$0xff]   ;;  %v1662_v51 = vld [vmem:[%s2259_s1 + $0x3d4] ss:$8 sps:$4 sm:$0xff]  }
  0x25   :  { %1074 = vmatprep.subr.bf16.mxu1 %v1551_v37  ;;  %v1644_v37 = vld [vmem:[%s2259_s1 + $0x304] ss:$8 sps:$4 sm:$0xff]  }
  0x27   :  { %1022 = vmatpush2.bf16.msra.mxu0 %v1553_v38  ;;  %v1639_v38 = vld [vmem:[%s2259_s1 + $0x200] ss:$8 sps:$4 sm:$0xff]  }
  0x28   :  { %1075 = vmatpush2.bf16.msra.mxu1 %v1554_v39  ;;  %1023 = vmatprep.subr.bf16.mxu0 %v1555_v40  ;;  %v1642_v39 = vld [vmem:[%s2259_s1 + $0x300] ss:$8 sps:$4 sm:$0xff]   ;;  %v1647_v40 = vld [vmem:[%s2259_s1 + $0x2f4] ss:$8 sps:$4 sm:$0xff]  }
  0x29   :  { %1076 = vmatprep.subr.bf16.mxu1 %v1557_v41  ;;  %v1701_v41 = vld [vmem:[%s2260_s0 + $0x14] ss:$36 sps:$4 sm:$0xff]  }
  0x2b   :  { %1024 = vmatpush2.bf16.msra.mxu0 %v1559_v42  ;;  %v1650_v42 = vld [vmem:[%s2259_s1 + $0x3f4] ss:$8 sps:$4 sm:$0xff]  }
  0x2c   :  { %1077 = vmatpush2.bf16.msra.mxu1 %v1560_v43  ;;  %1025 = vmatprep.subr.bf16.mxu0 %v1561_v44  ;;  %v1704_v43 = vld [vmem:[%s2260_s0 + $0x1c] ss:$36 sps:$4 sm:$0xff]   ;;  %v1645_v44 = vld [vmem:[%s2259_s1 + $0x2f0] ss:$8 sps:$4 sm:$0xff]  }
  0x2d   :  { %1078 = vmatprep.subr.bf16.mxu1 %v1563_v45  ;;  %v1648_v45 = vld [vmem:[%s2259_s1 + $0x3f0] ss:$8 sps:$4 sm:$0xff]  }
  0x2f   :  { %1026 = vmatpush2.bf16.msra.mxu0 %v1565_v46  ;;  %v1653_v46 = vld [vmem:[%s2259_s1 + $0x2e4] ss:$8 sps:$4 sm:$0xff]  }
  0x30   :  { %1079 = vmatpush2.bf16.msra.mxu1 %v1566_v47  ;;  %1027 = vmatprep.subr.bf16.mxu0 %v1567_v48  ;;  %v1656_v47 = vld [vmem:[%s2259_s1 + $0x3e4] ss:$8 sps:$4 sm:$0xff]   ;;  %v1651_v48 = vld [vmem:[%s2259_s1 + $0x2e0] ss:$8 sps:$4 sm:$0xff]  }
  0x31   :  { %1080 = vmatprep.subr.bf16.mxu1 %v1569_v50  ;;  %v1659_v50 = vld [vmem:[%s2259_s1 + $0x2d4] ss:$8 sps:$4 sm:$0xff]  }
  0x33   :  { %1028 = vmatpush2.bf16.msra.mxu0 %v1571_v52  ;;  %v1657_v52 = vld [vmem:[%s2259_s1 + $0x2d0] ss:$8 sps:$4 sm:$0xff]  }
  0x34   :  { %1081 = vmatpush2.bf16.msra.mxu1 %v1572_v53  ;;  %1029 = vmatprep.subr.bf16.mxu0 %v1573_v54  ;;  %v1660_v53 = vld [vmem:[%s2259_s1 + $0x3d0] ss:$8 sps:$4 sm:$0xff]   ;;  %v1665_v54 = vld [vmem:[%s2259_s1 + $0x2c4] ss:$8 sps:$4 sm:$0xff]  }
  0x35   :  { %1082 = vmatprep.subr.bf16.mxu1 %v1575_v55  ;;  %v1668_v55 = vld [vmem:[%s2259_s1 + $0x3c4] ss:$8 sps:$4 sm:$0xff]  }
  0x37   :  { %1030 = vmatpush2.bf16.msra.mxu0 %v1577_v56  ;;  %v1663_v56 = vld [vmem:[%s2259_s1 + $0x2c0] ss:$8 sps:$4 sm:$0xff]  }
  0x38   :  { %1083 = vmatpush2.bf16.msra.mxu1 %v1578_v57  ;;  %1031 = vmatprep.subr.bf16.mxu0 %v1579_v58  ;;  %v1666_v57 = vld [vmem:[%s2259_s1 + $0x3c0] ss:$8 sps:$4 sm:$0xff]   ;;  %v1673_v58 = vld [vmem:[%s2259_s1 + $0x2b4] ss:$8 sps:$4 sm:$0xff]  }
  0x39   :  { %1084 = vmatprep.subr.bf16.mxu1 %v1581_v59  ;;  %v1676_v59 = vld [vmem:[%s2259_s1 + $0x3b4] ss:$8 sps:$4 sm:$0xff]  }
  0x3b   :  { %1032 = vmatpush2.bf16.msra.mxu0 %v1583_v60  ;;  %v1671_v60 = vld [vmem:[%s2259_s1 + $0x2b0] ss:$8 sps:$4 sm:$0xff]  }
  0x3c   :  { %1085 = vmatpush2.bf16.msra.mxu1 %v1584_v61  ;;  %1033 = vmatprep.subr.bf16.mxu0 %v1585_v62  ;;  %v1674_v61 = vld [vmem:[%s2259_s1 + $0x3b0] ss:$8 sps:$4 sm:$0xff]   ;;  %v1683_v62 = vld [vmem:[%s2259_s1 + $0x2a4] ss:$8 sps:$4 sm:$0xff]  }
  0x3d   :  { %1086 = vmatprep.subr.bf16.mxu1 %v1587_v63  ;;  %v1686_v63 = vld [vmem:[%s2259_s1 + $0x3a4] ss:$8 sps:$4 sm:$0xff]  }
  0x3f   :  { %1034 = vmatpush2.bf16.msra.mxu0 %v1589_v0  ;;  %v1681_v0 = vld [vmem:[%s2259_s1 + $0x2a0] ss:$8 sps:$4 sm:$0xff]  }
  0x40   :  { %1087 = vmatpush2.bf16.msra.mxu1 %v1590_v1  ;;  %1109 = vmatprep.subr.bf16.mxu0 %v1599_v2  ;;  %v1684_v1 = vld [vmem:[%s2259_s1 + $0x3a0] ss:$8 sps:$4 sm:$0xff]   ;;  %v1689_v2 = vld [vmem:[%s2259_s1 + $0x294] ss:$8 sps:$4 sm:$0xff]  }
  0x41   :  { %1162 = vmatprep.subr.bf16.mxu1 %v1602_v3  ;;  %v1692_v3 = vld [vmem:[%s2259_s1 + $0x394] ss:$8 sps:$4 sm:$0xff]  }
  0x42   :  { %1036 = vmatmul.mubr.bf16.vlgmr.msra.gmra.mxu0 %v1591_v4  ;;  %v1687_v4 = vld [vmem:[%s2259_s1 + $0x290] ss:$8 sps:$4 sm:$0xff]  }
  0x43   :  { %1089 = vmatmul.mubr.bf16.vlgmr.msra.gmra.mxu1 %v1594_v5  ;;  %1110 = vmatpush1.bf16.msra.mxu0 %v1597_v6  ;;  %v1690_v5 = vld [vmem:[%s2259_s1 + $0x390] ss:$8 sps:$4 sm:$0xff]   ;;  %v1695_v6 = vld [vmem:[%s2259_s1 + $0x284] ss:$8 sps:$4 sm:$0xff]  }
  0x44   :  { %1163 = vmatpush1.bf16.msra.mxu1 %v1600_v7  ;;  %1111 = vmatprep.subr.bf16.mxu0 %v1605_v8  ;;  %v1698_v7 = vld [vmem:[%s2259_s1 + $0x384] ss:$8 sps:$4 sm:$0xff]   ;;  %v1693_v8 = vld [vmem:[%s2259_s1 + $0x280] ss:$8 sps:$4 sm:$0xff]  }
  0x45   :  { %1164 = vmatprep.subr.bf16.mxu1 %v1608_v9  ;;  %1045 = vmatprep.mubr.bf16.mxu0 %v1669_v22  ;;  %v1696_v9 = vld [vmem:[%s2259_s1 + $0x380] ss:$8 sps:$4 sm:$0xff]   ;;  %v1722_v22 = vld [vmem:[%s2259_s1 + $0x444] ss:$8 sps:$4 sm:$0xff]  }
  0x46   :  { %1098 = vmatprep.mubr.bf16.mxu1 %v1678_v29  ;;  %v1731_v29 = vld [vmem:[%s2259_s1 + $0x414] ss:$8 sps:$4 sm:$0xff]  }
  0x47   :  { %1112 = vmatpush1.bf16.msra.mxu0 %v1603_v10  ;;  %v1707_v10 = vld [vmem:[%s2259_s1 + $0x474] ss:$8 sps:$4 sm:$0xff]  }
  0x48   :  { %1165 = vmatpush1.bf16.msra.mxu1 %v1606_v11  ;;  %1113 = vmatprep.subr.bf16.mxu0 %v1611_v12  ;;  %v1699_v11 = vld [vmem:[%s2260_s0 + $0x10] ss:$36 sps:$4 sm:$0xff]   ;;  %v1702_v12 = vld [vmem:[%s2260_s0 + $0x18] ss:$36 sps:$4 sm:$0xff]  }
  0x49   :  { %1166 = vmatprep.subr.bf16.mxu1 %v1614_v13  ;;  %v1705_v13 = vld [vmem:[%s2259_s1 + $0x470] ss:$8 sps:$4 sm:$0xff]  }
  0x4a   :  { %1046 = vmatmul.mubr.bf16.gmra.mxu0 %v1677_v27  ;;  %v1728_v27 = vld [vmem:[%s2259_s1 + $0x424] ss:$8 sps:$4 sm:$0xff]  }
  0x4b   :  { %1114 = vmatpush1.bf16.msra.mxu0 %v1609_v14  ;;  %1099 = vmatmul.mubr.bf16.gmra.mxu1 %v1680_v31  ;;  %v1710_v14 = vld [vmem:[%s2259_s1 + $0x464] ss:$8 sps:$4 sm:$0xff]  }
  0x4c   :  { %1167 = vmatpush1.bf16.msra.mxu1 %v1612_v15  ;;  %1115 = vmatprep.subr.bf16.mxu0 %v1617_v16  ;;  %v1711_v15 = vld [vmem:[%s2260_s0 + $0x5c] ss:$36 sps:$4 sm:$0xff]   ;;  %v1717_v16 = vld [vmem:[%s2260_s0 + $0x64] ss:$36 sps:$4 sm:$0xff]  }
  0x4d   :  { %1168 = vmatprep.subr.bf16.mxu1 %v1620_v17  ;;  %1141 = vmatprep.mubr.bf16.mxu0 %v1701_v41  ;;  %v1708_v17 = vld [vmem:[%s2259_s1 + $0x460] ss:$8 sps:$4 sm:$0xff]   ;;  %v1734_v31 = vld [vmem:[%s2259_s1 + $0x404] ss:$8 sps:$4 sm:$0xff]  }
  0x4e   :  { %1194 = vmatprep.mubr.bf16.mxu1 %v1704_v43 }
  0x4f   :  { %1116 = vmatpush1.bf16.msra.mxu0 %v1615_v18  ;;  %v1716_v18 = vld [vmem:[%s2259_s1 + $0x454] ss:$8 sps:$4 sm:$0xff]  }
  0x50   :  { %1169 = vmatpush1.bf16.msra.mxu1 %v1618_v19  ;;  %1117 = vmatprep.subr.bf16.mxu0 %v1623_v20  ;;  %v1713_v19 = vld [vmem:[%s2260_s0 + $0x58] ss:$36 sps:$4 sm:$0xff]   ;;  %v1719_v20 = vld [vmem:[%s2260_s0 + $0x60] ss:$36 sps:$4 sm:$0xff]  }
  0x51   :  { %1170 = vmatprep.subr.bf16.mxu1 %v1626_v21  ;;  %v1714_v21 = vld [vmem:[%s2259_s1 + $0x450] ss:$8 sps:$4 sm:$0xff]  }
  0x53   :  { %1118 = vmatpush1.bf16.msra.mxu0 %v1621_v23  ;;  %v1720_v23 = vld [vmem:[%s2259_s1 + $0x440] ss:$8 sps:$4 sm:$0xff]  }
  0x54   :  { %1171 = vmatpush1.bf16.msra.mxu1 %v1624_v24  ;;  %1119 = vmatprep.subr.bf16.mxu0 %v1629_v25  ;;  %v1725_v24 = vld [vmem:[%s2259_s1 + $0x434] ss:$8 sps:$4 sm:$0xff]   ;;  %v1737_v25 = vmov 0  }
  0x55   :  { %1172 = vmatprep.subr.bf16.mxu1 %v1632_v26  ;;  %v1723_v26 = vld [vmem:[%s2259_s1 + $0x430] ss:$8 sps:$4 sm:$0xff]  }
  0x57   :  { %1120 = vmatpush1.bf16.msra.mxu0 %v1627_v28  ;;  %v1726_v28 = vld [vmem:[%s2259_s1 + $0x420] ss:$8 sps:$4 sm:$0xff]  }
  0x58   :  { %1173 = vmatpush1.bf16.msra.mxu1 %v1630_v30  ;;  %1121 = vmatprep.subr.bf16.mxu0 %v1635_v32  ;;  %v1729_v30 = vld [vmem:[%s2259_s1 + $0x410] ss:$8 sps:$4 sm:$0xff]   ;;  %v1732_v32 = vld [vmem:[%s2259_s1 + $0x400] ss:$8 sps:$4 sm:$0xff]  }
  0x59   :  { %1174 = vmatprep.subr.bf16.mxu1 %v1638_v33  ;;  %v1735_v33 = vld [vmem:[%s2260_s0 + $0x20] ss:$36 sps:$4 sm:$0xff]  }
  0x5b   :  { %1122 = vmatpush1.bf16.msra.mxu0 %v1633_v34  ;;  %v1736_v34 = vld [vmem:[%s2260_s0 + $0x68] ss:$36 sps:$4 sm:$0xff]  }
  0x5c   :  { %1175 = vmatpush1.bf16.msra.mxu1 %v1636_v35  ;;  %1123 = vmatprep.subr.bf16.mxu0 %v1641_v36 }
  0x5d   :  { %1176 = vmatprep.subr.bf16.mxu1 %v1644_v37 }
  0x5f   :  { %1124 = vmatpush1.bf16.msra.mxu0 %v1639_v38 }
  0x60   :  { %1177 = vmatpush1.bf16.msra.mxu1 %v1642_v39  ;;  %1125 = vmatprep.subr.bf16.mxu0 %v1647_v40 }
  0x61   :  { %1178 = vmatprep.subr.bf16.mxu1 %v1650_v42 }
  0x63   :  { %1126 = vmatpush2.bf16.msra.mxu0 %v1645_v44 }
  0x64   :  { %1179 = vmatpush2.bf16.msra.mxu1 %v1648_v45  ;;  %1127 = vmatprep.subr.bf16.mxu0 %v1653_v46 }
  0x65   :  { %1180 = vmatprep.subr.bf16.mxu1 %v1656_v47 }
  0x67   :  { %1128 = vmatpush2.bf16.msra.mxu0 %v1651_v48 }
  0x68   :  { %1181 = vmatpush2.bf16.msra.mxu1 %v1654_v49  ;;  %1129 = vmatprep.subr.bf16.mxu0 %v1659_v50 }
  0x69   :  { %1182 = vmatprep.subr.bf16.mxu1 %v1662_v51 }
  0x6b   :  { %1130 = vmatpush2.bf16.msra.mxu0 %v1657_v52 }
  0x6c   :  { %1183 = vmatpush2.bf16.msra.mxu1 %v1660_v53  ;;  %1131 = vmatprep.subr.bf16.mxu0 %v1665_v54  ;;  %v181_v53 = vlaneseq }
  0x6d   :  { %1184 = vmatprep.subr.bf16.mxu1 %v1668_v55 }
  0x6f   :  { %1132 = vmatpush2.bf16.msra.mxu0 %v1663_v56  ;;  %v182_v56 = vshrl.u32 %v181_v53, 7 }
  0x70   :  { %1185 = vmatpush2.bf16.msra.mxu1 %v1666_v57  ;;  %1133 = vmatprep.subr.bf16.mxu0 %v1673_v58 }
  0x71   :  { %1186 = vmatprep.subr.bf16.mxu1 %v1676_v59  ;;  %v183_v59 = vsub.s32 0, %v182_v56 }
  0x73   :  { %1134 = vmatpush2.bf16.msra.mxu0 %v1671_v60  ;;  %v179_v60 = vld [vmem:[%s2261_s2] sm:$0x3] }
  0x74   :  { %1187 = vmatpush2.bf16.msra.mxu1 %v1674_v61  ;;  %1135 = vmatprep.subr.bf16.mxu0 %v1683_v62  ;;  %v187_v62 = vsub.s32 1, %v182_v56 }
  0x75   :  { %1188 = vmatprep.subr.bf16.mxu1 %v1686_v63 }
  0x77   :  { %1136 = vmatpush2.bf16.msra.mxu0 %v1681_v0  ;;  %v184_v0 = vrot.slane %v179_v60, %v183_v59 }
  0x78   :  { %1189 = vmatpush2.bf16.msra.mxu1 %v1684_v1  ;;  %1137 = vmatprep.subr.bf16.mxu0 %v1689_v2 }
  0x79   :  { %1190 = vmatprep.subr.bf16.mxu1 %v1692_v3  ;;  %v188_v3 = vrot.slane %v179_v60, %v187_v62 }
  0x7b   :  { %1138 = vmatpush2.bf16.msra.mxu0 %v1687_v4 }
  0x7c   :  { %1191 = vmatpush2.bf16.msra.mxu1 %v1690_v5  ;;  %1139 = vmatprep.subr.bf16.mxu0 %v1695_v6 }
  0x7d   :  { %1192 = vmatprep.subr.bf16.mxu1 %v1698_v7 }
  0x7f   :  { %1140 = vmatpush2.bf16.msra.mxu0 %v1693_v8 }
  0x80   :  { %1193 = vmatpush2.bf16.msra.mxu1 %v1696_v9  ;;  %1215 = vmatprep.subr.bf16.mxu0 %v1707_v10 }
  0x81   :  { %1478 = vmatprep.subr.bf16.mxu1 %v1707_v10 }
  0x82   :  { %1142 = vmatmul.mubr.bf16.vlgmr.msra.gmra.mxu0 %v1699_v11 }
  0x83   :  { %1195 = vmatmul.mubr.bf16.vlgmr.msra.gmra.mxu1 %v1702_v12  ;;  %1216 = vmatpush1.bf16.msra.mxu0 %v1705_v13 }
  0x84   :  { %1486 = vmatpush1.bf16.msra.mxu1 %v1705_v13  ;;  %1217 = vmatprep.subr.bf16.mxu0 %v1710_v14 }
  0x85   :  { %1479 = vmatprep.subr.bf16.mxu1 %v1710_v14  ;;  %1151 = vmatprep.mubr.bf16.mxu0 %v1711_v15 }
  0x86   :  { %1204 = vmatprep.mubr.bf16.mxu1 %v1717_v16 }
  0x87   :  { %1218 = vmatpush1.bf16.msra.mxu0 %v1708_v17 }
  0x88   :  { %1487 = vmatpush1.bf16.msra.mxu1 %v1708_v17  ;;  %1219 = vmatprep.subr.bf16.mxu0 %v1716_v18 }
  0x89   :  { %1480 = vmatprep.subr.bf16.mxu1 %v1716_v18 }
  0x8a   :  { %1152 = vmatmul.mubr.bf16.gmra.mxu0 %v1713_v19 }
  0x8b   :  { %1205 = vmatmul.mubr.bf16.gmra.mxu1 %v1719_v20  ;;  %1220 = vmatpush1.bf16.msra.mxu0 %v1714_v21 }
  0x8c   :  { %1488 = vmatpush1.bf16.msra.mxu1 %v1714_v21  ;;  %1221 = vmatprep.subr.bf16.mxu0 %v1722_v22 }
  0x8d   :  { %1481 = vmatprep.subr.bf16.mxu1 %v1722_v22  ;;  %1247 = vmatprep.mubr.bf16.mxu0 %v1737_v25 }
  0x8e   :  { %1257 = vmatprep.mubr.bf16.mxu1 %v1737_v25 }
  0x8f   :  { %1222 = vmatpush1.bf16.msra.mxu0 %v1720_v23 }
  0x90   :  { %1489 = vmatpush1.bf16.msra.mxu1 %v1720_v23  ;;  %1223 = vmatprep.subr.bf16.mxu0 %v1725_v24 }
  0x91   :  { %1482 = vmatprep.subr.bf16.mxu1 %v1725_v24 }
  0x93   :  { %1224 = vmatpush1.bf16.msra.mxu0 %v1723_v26 }
  0x94   :  { %1490 = vmatpush1.bf16.msra.mxu1 %v1723_v26  ;;  %1225 = vmatprep.subr.bf16.mxu0 %v1728_v27 }
  0x95   :  { %1483 = vmatprep.subr.bf16.mxu1 %v1728_v27 }
  0x97   :  { %1226 = vmatpush1.bf16.msra.mxu0 %v1726_v28 }
  0x98   :  { %1491 = vmatpush1.bf16.msra.mxu1 %v1726_v28  ;;  %1227 = vmatprep.subr.bf16.mxu0 %v1731_v29 }
  0x99   :  { %1484 = vmatprep.subr.bf16.mxu1 %v1731_v29 }
  0x9b   :  { %1228 = vmatpush1.bf16.msra.mxu0 %v1729_v30 }
  0x9c   :  { %1492 = vmatpush1.bf16.msra.mxu1 %v1729_v30  ;;  %1229 = vmatprep.subr.bf16.mxu0 %v1734_v31 }
  0x9d   :  { %1485 = vmatprep.subr.bf16.mxu1 %v1734_v31 }
  0x9f   :  { %1230 = vmatpush1.bf16.msra.mxu0 %v1732_v32 }
  0xa0   :  { %1493 = vmatpush1.bf16.msra.mxu1 %v1732_v32 }
  0xa2   :  { %1248 = vmatmul.mubr.bf16.vlgmr.msra.gmra.mxu0 %v1735_v33 }
  0xa3   :  { %1258 = vmatmul.mubr.bf16.vlgmr.msra.gmra.mxu1 %v1736_v34 }
 0x102   :  { %v1037_v35 = vpop.f32.mrf.mxu0 }
 0x103   :  { %v1090_v36 = vpop.f32.mrf.mxu1  ;;  %v1038_v4 = vadd.f32 %v1037_v35, %v184_v0 }
 0x104   :  { %v1039_v37 = vpop.f32.mrf.mxu0 }
 0x105   :  { %v1092_v38 = vpop.f32.mrf.mxu1  ;;  %v1040_v8 = vadd.f32 %v1039_v37, %v188_v3  ;;  %v1091_v10 = vadd.f32 %v1090_v36, %v1038_v4 }
 0x106   :  { %v1041_v39 = vpop.f32.mrf.mxu0 }
 0x107   :  { %v1094_v40 = vpop.f32.mrf.mxu1  ;;  %v1042_v12 = vadd.f32 %v1041_v39, %v184_v0  ;;  %v1093_v16 = vadd.f32 %v1092_v38, %v1040_v8 }
 0x108   :  { %v1043_v41 = vpop.f32.mrf.mxu0 }
 0x109   :  { %v1096_v42 = vpop.f32.mrf.mxu1  ;;  %v1044_v20 = vadd.f32 %v1043_v41, %v188_v3  ;;  %v1095_v24 = vadd.f32 %v1094_v40, %v1042_v12 }
 0x10a   :  { %v1047_v43 = vpop.f32.mrf.mxu0 }
 0x10b   :  { %v1100_v44 = vpop.f32.mrf.mxu1  ;;  %v1048_v5 = vadd.f32 %v1047_v43, %v184_v0  ;;  %v1097_v30 = vadd.f32 %v1096_v42, %v1044_v20 }
 0x10c   :  { %v1049_v45 = vpop.f32.mrf.mxu0 }
 0x10d   :  { %v1102_v46 = vpop.f32.mrf.mxu1  ;;  %v1050_v9 = vadd.f32 %v1049_v45, %v188_v3  ;;  %v1101_v11 = vadd.f32 %v1100_v44, %v1048_v5 }
 0x10e   :  { %v1051_v47 = vpop.f32.mrf.mxu0 }
 0x10f   :  { %v1104_v48 = vpop.f32.mrf.mxu1  ;;  %v1052_v13 = vadd.f32 %v1051_v47, %v184_v0  ;;  %v1103_v17 = vadd.f32 %v1102_v46, %v1050_v9 }
 0x110   :  { %v1053_v49 = vpop.f32.mrf.mxu0 }
 0x111   :  { %v1106_v50 = vpop.f32.mrf.mxu1  ;;  %v1054_v21 = vadd.f32 %v1053_v49, %v188_v3  ;;  %v1105_v25 = vadd.f32 %v1104_v48, %v1052_v13 }
 0x113   :  { %v1107_v31 = vadd.f32 %v1106_v50, %v1054_v21 }
 0x142   :  { %v1143_v51 = vpop.f32.mrf.mxu0 }
 0x143   :  { %v1196_v52 = vpop.f32.mrf.mxu1  ;;  %v1144_v18 = vadd.f32 %v1143_v51, %v1091_v10 }
 0x144   :  { %v1145_v54 = vpop.f32.mrf.mxu0 }
 0x145   :  { %v1198_v55 = vpop.f32.mrf.mxu1  ;;  %v1146_v22 = vadd.f32 %v1145_v54, %v1093_v16  ;;  %v1197_v28 = vadd.f32 %v1196_v52, %v1144_v18 }
 0x146   :  { %v1147_v57 = vpop.f32.mrf.mxu0 }
 0x147   :  { %v1200_v58 = vpop.f32.mrf.mxu1  ;;  %v1148_v32 = vadd.f32 %v1147_v57, %v1095_v24  ;;  %v1199_v36 = vadd.f32 %v1198_v55, %v1146_v22 }
 0x148   :  { %v1149_v61 = vpop.f32.mrf.mxu0 }
 0x149   :  { %v1202_v63 = vpop.f32.mrf.mxu1  ;;  %v1150_v41 = vadd.f32 %v1149_v61, %v1097_v30  ;;  %v1201_v47 = vadd.f32 %v1200_v58, %v1148_v32 }
 0x14a   :  { %v1153_v1 = vpop.f32.mrf.mxu0 }
 0x14b   :  { %v1206_v2 = vpop.f32.mrf.mxu1  ;;  %v1154_v19 = vadd.f32 %v1153_v1, %v1101_v11  ;;  %v1203_v54 = vadd.f32 %v1202_v63, %v1150_v41 }
 0x14c   :  { %v1155_v6 = vpop.f32.mrf.mxu0 }
 0x14d   :  { %v1208_v7 = vpop.f32.mrf.mxu1  ;;  %v1156_v23 = vadd.f32 %v1155_v6, %v1103_v17  ;;  %v1207_v29 = vadd.f32 %v1206_v2, %v1154_v19 }
 0x14e   :  { %v1157_v14 = vpop.f32.mrf.mxu0 }
 0x14f   :  { %v1210_v15 = vpop.f32.mrf.mxu1  ;;  %v1158_v33 = vadd.f32 %v1157_v14, %v1105_v25  ;;  %v1209_v37 = vadd.f32 %v1208_v7, %v1156_v23 }
 0x150   :  { %v1159_v26 = vpop.f32.mrf.mxu0 }
 0x151   :  { %v1212_v27 = vpop.f32.mrf.mxu1  ;;  %v1160_v43 = vadd.f32 %v1159_v26, %v1107_v31  ;;  %v1211_v48 = vadd.f32 %v1210_v15, %v1158_v33 }
 0x153   :  { %v1213_v56 = vadd.f32 %v1212_v27, %v1160_v43 }
 0x162   :  { %v1249_v34 = vpop.f32.mrf.mxu0 }
 0x163   :  { %v1259_v35 = vpop.f32.mrf.mxu1  ;;  %v1250_v38 = vadd.f32 %v1249_v34, %v1197_v28 }
 0x164   :  { %v1260_v39 = vadd.f32 %v1259_v35, %v1207_v29  ;;  %v1251_v44 = vpop.f32.mrf.mxu0 }
 0x165   :  { %v1261_v45 = vpop.f32.mrf.mxu1  ;;  %v1252_v40 = vadd.f32 %v1251_v44, %v1199_v36  ;;  %v1268_v42 = vmax.f32 %v1250_v38, 0.0 }
 0x166   :  { %v1262_v46 = vadd.f32 %v1261_v45, %v1209_v37  ;;  %v1253_v49 = vpop.f32.mrf.mxu0  ;;  %v1272_v50 = vmax.f32 %v1260_v39, 0.0 }
 0x167   :  { %v1263_v51 = vpop.f32.mrf.mxu1  ;;  %v1269_v52 = vmax.f32 %v1252_v40, 0.0  ;;  %v1254_v55 = vadd.f32 %v1253_v49, %v1201_v47 }
 0x168   :  { %v1273_v53 = vmax.f32 %v1262_v46, 0.0  ;;  %v1264_v57 = vadd.f32 %v1263_v51, %v1211_v48  ;;  %v1255_v59 = vpop.f32.mrf.mxu0 }
 0x169   :  { %v1265_v60 = vpop.f32.mrf.mxu1  ;;  %v1474_v61 = vpack.c.bf16 %v1269_v52, %v1268_v42  ;;  %v1256_v0 = vadd.f32 %v1255_v59, %v1203_v54  ;;  %v1270_v58 = vmax.f32 %v1254_v55, 0.0 }
 0x16a   :  { %v1476_v62 = vpack.c.bf16 %v1273_v53, %v1272_v50  ;;  %v1266_v1 = vadd.f32 %v1265_v60, %v1213_v56  ;;  %v1274_v2 = vmax.f32 %v1264_v57, 0.0 }
 0x16b   :  { %1300 = vst [vmem:[%s2262_s3] sm:$0xff] %v1474_v61  ;;  %v1271_v63 = vmax.f32 %v1256_v0, 0.0 }
 0x16c   :  { %1302 = vst [vmem:[%s2262_s3 + $0x10] sm:$0xff] %v1476_v62  ;;  %v1275_v3 = vmax.f32 %v1266_v1, 0.0 }
 0x16d   :  { %v1475_v4 = vpack.c.bf16 %v1271_v63, %v1270_v58 }
 0x16e   :  { %v1477_v5 = vpack.c.bf16 %v1275_v3, %v1274_v2 }
 0x16f   :  { %1301 = vst [vmem:[%s2262_s3 + $0x8] sm:$0xff] %v1475_v4 }
 0x170   :  { %1303 = vst [vmem:[%s2262_s3 + $0x18] sm:$0xff] %v1477_v5 }

// kernel: unet_forward.7
= control target key start
LH: loop header
LB: loop body
LE: loop exit
PB: predicated region body
PF: predicated region fallthrough
CT: control target
= control target key end

     0   :  { %s10782_s20 = smov 12   ;;  %vm8384_vm0 = vcmask 31744   ;;  %vm8389_vm1 = vcmask 64512   ;;  %vm8394_vm2 = vcmask 97280   ;;  %vm8399_vm3 = vcmask 130048   ;;  %s15359_s1 = inlined_call_operand.vmem [shape: bf16[2304,512], index: 1, kind: input, shape index: {}]   ;;  %s15360_s0 = inlined_call_operand.vmem [shape: bf16[32,2304], index: 0, kind: input, shape index: {}]   ;;  %s15361_s2 = inlined_call_operand.vmem [shape: f32[1,512], index: 2, kind: input, shape index: {}]   ;;  %s15362_s3 = inlined_call_operand.vmem [shape: bf16[512,1024], index: 3, kind: input, shape index: {}]   ;;  %s15363_s5 = inlined_call_operand.vmem [shape: bf16[256,512], index: 5, kind: input, shape index: {}]   ;;  %s15364_s4 = inlined_call_operand.vmem [shape: f32[1,1024], index: 4, kind: input, shape index: {}]   ;;  %s15365_s7 = inlined_call_operand.vmem [shape: bf16[512,4], index: 7, kind: input, shape index: {}]   ;;  %s15366_s6 = inlined_call_operand.vmem [shape: f32[1,512], index: 6, kind: input, shape index: {}]   ;;  %s15367_s8 = inlined_call_operand.vmem [shape: f32[1,4], index: 8, kind: input, shape index: {}]   ;;  %s15368_s9 = inlined_call_operand.vmem [shape: f32[32,16], index: 9, kind: output, shape index: {}]  }
   0x1   :  { %v9600_v0 = vld [vmem:[%s15359_s1 + $0xe4] ss:$16 sps:$4 sm:$0xff]   ;;  %v9604_v2 = vld [vmem:[%s15359_s1 + $0xe0] ss:$16 sps:$4 sm:$0xff]  }
   0x2   :  { %v9602_v1 = vld [vmem:[%s15359_s1 + $0x2e4] ss:$16 sps:$4 sm:$0xff]   ;;  %3727 = vmatprep.subr.bf16.mxu0 %v9600_v0  ;;  %v9605_v3 = vld [vmem:[%s15359_s1 + $0x2e0] ss:$16 sps:$4 sm:$0xff]  }
   0x3   :  { %3780 = vmatprep.subr.bf16.mxu1 %v9602_v1  ;;  %v9606_v4 = vld [vmem:[%s15359_s1 + $0xc4] ss:$16 sps:$4 sm:$0xff]   ;;  %3728 = vmatpush1.bf16.msra.mxu0 %v9604_v2  ;;  %v9610_v6 = vld [vmem:[%s15359_s1 + $0xc0] ss:$16 sps:$4 sm:$0xff]  }
   0x4   :  { %3781 = vmatpush1.bf16.msra.mxu1 %v9605_v3  ;;  %v9608_v5 = vld [vmem:[%s15359_s1 + $0x2c4] ss:$16 sps:$4 sm:$0xff]   ;;  %3729 = vmatprep.subr.bf16.mxu0 %v9606_v4  ;;  %v9611_v7 = vld [vmem:[%s15359_s1 + $0x2c0] ss:$16 sps:$4 sm:$0xff]  }
   0x5   :  { %3782 = vmatprep.subr.bf16.mxu1 %v9608_v5  ;;  %v9612_v8 = vld [vmem:[%s15359_s1 + $0xa4] ss:$16 sps:$4 sm:$0xff]   ;;  %v9616_v10 = vld [vmem:[%s15359_s1 + $0xa0] ss:$16 sps:$4 sm:$0xff]  }
   0x6   :  { %v9614_v9 = vld [vmem:[%s15359_s1 + $0x2a4] ss:$16 sps:$4 sm:$0xff]   ;;  %v9617_v11 = vld [vmem:[%s15359_s1 + $0x2a0] ss:$16 sps:$4 sm:$0xff]  }
   0x7   :  { %3730 = vmatpush1.bf16.msra.mxu0 %v9610_v6  ;;  %v9618_v12 = vld [vmem:[%s15359_s1 + $0x84] ss:$16 sps:$4 sm:$0xff]   ;;  %v9622_v14 = vld [vmem:[%s15359_s1 + $0x80] ss:$16 sps:$4 sm:$0xff]  }
   0x8   :  { %3783 = vmatpush1.bf16.msra.mxu1 %v9611_v7  ;;  %3731 = vmatprep.subr.bf16.mxu0 %v9612_v8  ;;  %v9620_v13 = vld [vmem:[%s15359_s1 + $0x284] ss:$16 sps:$4 sm:$0xff]   ;;  %v9623_v15 = vld [vmem:[%s15359_s1 + $0x280] ss:$16 sps:$4 sm:$0xff]  }
   0x9   :  { %3784 = vmatprep.subr.bf16.mxu1 %v9614_v9  ;;  %v9624_v16 = vld [vmem:[%s15359_s1 + $0x64] ss:$16 sps:$4 sm:$0xff]   ;;  %v9628_v18 = vld [vmem:[%s15359_s1 + $0x60] ss:$16 sps:$4 sm:$0xff]  }
   0xa   :  { %v9626_v17 = vld [vmem:[%s15359_s1 + $0x264] ss:$16 sps:$4 sm:$0xff]   ;;  %v9629_v19 = vld [vmem:[%s15359_s1 + $0x260] ss:$16 sps:$4 sm:$0xff]  }
   0xb   :  { %3732 = vmatpush1.bf16.msra.mxu0 %v9616_v10  ;;  %v9630_v20 = vld [vmem:[%s15359_s1 + $0x44] ss:$16 sps:$4 sm:$0xff]   ;;  %v9634_v22 = vld [vmem:[%s15359_s1 + $0x40] ss:$16 sps:$4 sm:$0xff]  }
   0xc   :  { %3785 = vmatpush1.bf16.msra.mxu1 %v9617_v11  ;;  %3733 = vmatprep.subr.bf16.mxu0 %v9618_v12  ;;  %v9632_v21 = vld [vmem:[%s15359_s1 + $0x244] ss:$16 sps:$4 sm:$0xff]   ;;  %v9635_v23 = vld [vmem:[%s15359_s1 + $0x240] ss:$16 sps:$4 sm:$0xff]  }
   0xd   :  { %3786 = vmatprep.subr.bf16.mxu1 %v9620_v13  ;;  %v9636_v24 = vld [vmem:[%s15359_s1 + $0x24] ss:$16 sps:$4 sm:$0xff]   ;;  %v9640_v26 = vld [vmem:[%s15359_s1 + $0x20] ss:$16 sps:$4 sm:$0xff]  }
   0xe   :  { %v9638_v25 = vld [vmem:[%s15359_s1 + $0x224] ss:$16 sps:$4 sm:$0xff]   ;;  %v9641_v27 = vld [vmem:[%s15359_s1 + $0x220] ss:$16 sps:$4 sm:$0xff]  }
   0xf   :  { %3734 = vmatpush1.bf16.msra.mxu0 %v9622_v14  ;;  %v9642_v28 = vld [vmem:[%s15359_s1 + $0x4] ss:$16 sps:$4 sm:$0xff]   ;;  %v9646_v30 = vld [vmem:[%s15359_s1] ss:$16 sps:$4 sm:$0xff]  }
  0x10   :  { %3787 = vmatpush1.bf16.msra.mxu1 %v9623_v15  ;;  %3735 = vmatprep.subr.bf16.mxu0 %v9624_v16  ;;  %v9644_v29 = vld [vmem:[%s15359_s1 + $0x204] ss:$16 sps:$4 sm:$0xff]   ;;  %v9647_v31 = vld [vmem:[%s15359_s1 + $0x200] ss:$16 sps:$4 sm:$0xff]  }
  0x11   :  { %3788 = vmatprep.subr.bf16.mxu1 %v9626_v17  ;;  %v9648_v32 = vld [vmem:[%s15359_s1 + $0x1e4] ss:$16 sps:$4 sm:$0xff]   ;;  %v9652_v34 = vld [vmem:[%s15359_s1 + $0x1e0] ss:$16 sps:$4 sm:$0xff]  }
  0x12   :  { %v9650_v33 = vld [vmem:[%s15359_s1 + $0x3e4] ss:$16 sps:$4 sm:$0xff]   ;;  %v9653_v35 = vld [vmem:[%s15359_s1 + $0x3e0] ss:$16 sps:$4 sm:$0xff]  }
  0x13   :  { %3736 = vmatpush1.bf16.msra.mxu0 %v9628_v18  ;;  %v9654_v36 = vld [vmem:[%s15359_s1 + $0x1c4] ss:$16 sps:$4 sm:$0xff]   ;;  %v9658_v38 = vld [vmem:[%s15359_s1 + $0x1c0] ss:$16 sps:$4 sm:$0xff]  }
  0x14   :  { %3789 = vmatpush1.bf16.msra.mxu1 %v9629_v19  ;;  %3737 = vmatprep.subr.bf16.mxu0 %v9630_v20  ;;  %v9656_v37 = vld [vmem:[%s15359_s1 + $0x3c4] ss:$16 sps:$4 sm:$0xff]   ;;  %v9659_v39 = vld [vmem:[%s15359_s1 + $0x3c0] ss:$16 sps:$4 sm:$0xff]  }
  0x15   :  { %3790 = vmatprep.subr.bf16.mxu1 %v9632_v21  ;;  %v9660_v40 = vld [vmem:[%s15359_s1 + $0x1a4] ss:$16 sps:$4 sm:$0xff]   ;;  %v9664_v42 = vld [vmem:[%s15359_s1 + $0x1a0] ss:$16 sps:$4 sm:$0xff]  }
  0x16   :  { %v9662_v41 = vld [vmem:[%s15359_s1 + $0x3a4] ss:$16 sps:$4 sm:$0xff]   ;;  %v9665_v43 = vld [vmem:[%s15359_s1 + $0x3a0] ss:$16 sps:$4 sm:$0xff]  }
  0x17   :  { %3738 = vmatpush1.bf16.msra.mxu0 %v9634_v22  ;;  %v9666_v44 = vld [vmem:[%s15359_s1 + $0x184] ss:$16 sps:$4 sm:$0xff]   ;;  %v9670_v46 = vld [vmem:[%s15359_s1 + $0x180] ss:$16 sps:$4 sm:$0xff]  }
  0x18   :  { %3791 = vmatpush1.bf16.msra.mxu1 %v9635_v23  ;;  %3739 = vmatprep.subr.bf16.mxu0 %v9636_v24  ;;  %v9668_v45 = vld [vmem:[%s15359_s1 + $0x384] ss:$16 sps:$4 sm:$0xff]   ;;  %v9671_v47 = vld [vmem:[%s15359_s1 + $0x380] ss:$16 sps:$4 sm:$0xff]  }
  0x19   :  { %3792 = vmatprep.subr.bf16.mxu1 %v9638_v25  ;;  %v9672_v48 = vld [vmem:[%s15359_s1 + $0x164] ss:$16 sps:$4 sm:$0xff]   ;;  %v9676_v52 = vld [vmem:[%s15359_s1 + $0x160] ss:$16 sps:$4 sm:$0xff]  }
  0x1a   :  { %v9698_v49 = vld [vmem:[%s15360_s0 + $0x4] ss:$72 sps:$4 sm:$0xff]   ;;  %v9677_v53 = vld [vmem:[%s15359_s1 + $0x360] ss:$16 sps:$4 sm:$0xff]  }
  0x1b   :  { %3740 = vmatpush1.bf16.msra.mxu0 %v9640_v26  ;;  %v9674_v50 = vld [vmem:[%s15359_s1 + $0x364] ss:$16 sps:$4 sm:$0xff]   ;;  %3759 = vmatprep.mubr.bf16.mxu0 %v9698_v49  ;;  %v9682_v56 = vld [vmem:[%s15359_s1 + $0x140] ss:$16 sps:$4 sm:$0xff]  }
  0x1c   :  { %3793 = vmatpush1.bf16.msra.mxu1 %v9641_v27  ;;  %3741 = vmatprep.subr.bf16.mxu0 %v9642_v28  ;;  %v9701_v51 = vld [vmem:[%s15360_s0 + $0xc] ss:$72 sps:$4 sm:$0xff]   ;;  %v9683_v57 = vld [vmem:[%s15359_s1 + $0x340] ss:$16 sps:$4 sm:$0xff]   ;;  %v9783_v28 = vld [vmem:[%s15360_s0 + $0x9c] ss:$72 sps:$4 sm:$0xff]  }
  0x1d   :  { %3794 = vmatprep.subr.bf16.mxu1 %v9644_v29  ;;  %3812 = vmatprep.mubr.bf16.mxu1 %v9701_v51  ;;  %v9678_v54 = vld [vmem:[%s15359_s1 + $0x144] ss:$16 sps:$4 sm:$0xff]   ;;  %v9688_v60 = vld [vmem:[%s15359_s1 + $0x120] ss:$16 sps:$4 sm:$0xff]  }
  0x1e   :  { %v9680_v55 = vld [vmem:[%s15359_s1 + $0x344] ss:$16 sps:$4 sm:$0xff]   ;;  %v9689_v61 = vld [vmem:[%s15359_s1 + $0x320] ss:$16 sps:$4 sm:$0xff]  }
  0x1f   :  { %3742 = vmatpush1.bf16.msra.mxu0 %v9646_v30  ;;  %v9684_v58 = vld [vmem:[%s15359_s1 + $0x124] ss:$16 sps:$4 sm:$0xff]   ;;  %v9694_v0 = vld [vmem:[%s15359_s1 + $0x100] ss:$16 sps:$4 sm:$0xff]  }
  0x20   :  { %3795 = vmatpush1.bf16.msra.mxu1 %v9647_v31  ;;  %3743 = vmatprep.subr.bf16.mxu0 %v9648_v32  ;;  %v9686_v59 = vld [vmem:[%s15359_s1 + $0x324] ss:$16 sps:$4 sm:$0xff]   ;;  %v9695_v1 = vld [vmem:[%s15359_s1 + $0x300] ss:$16 sps:$4 sm:$0xff]  }
  0x21   :  { %3796 = vmatprep.subr.bf16.mxu1 %v9650_v33  ;;  %v9690_v62 = vld [vmem:[%s15359_s1 + $0x104] ss:$16 sps:$4 sm:$0xff]   ;;  %v9696_v4 = vld [vmem:[%s15360_s0] ss:$72 sps:$4 sm:$0xff]   ;;  %v9782_v27 = vld [vmem:[%s15360_s0 + $0x90] ss:$72 sps:$4 sm:$0xff]  }
  0x22   :  { %v9692_v63 = vld [vmem:[%s15359_s1 + $0x304] ss:$16 sps:$4 sm:$0xff]   ;;  %v9699_v5 = vld [vmem:[%s15360_s0 + $0x8] ss:$72 sps:$4 sm:$0xff]   ;;  %v9791_v33 = vld [vmem:[%s15360_s0 + $0x98] ss:$72 sps:$4 sm:$0xff]  }
  0x23   :  { %3744 = vmatpush2.bf16.msra.mxu0 %v9652_v34  ;;  %v9704_v2 = vld [vmem:[%s15359_s1 + $0x4e4] ss:$16 sps:$4 sm:$0xff]   ;;  %v9702_v6 = vld [vmem:[%s15359_s1 + $0x4e0] ss:$16 sps:$4 sm:$0xff]  }
  0x24   :  { %3797 = vmatpush2.bf16.msra.mxu1 %v9653_v35  ;;  %3745 = vmatprep.subr.bf16.mxu0 %v9654_v36  ;;  %v9707_v3 = vld [vmem:[%s15359_s1 + $0x6e4] ss:$16 sps:$4 sm:$0xff]   ;;  %v9705_v7 = vld [vmem:[%s15359_s1 + $0x6e0] ss:$16 sps:$4 sm:$0xff]  }
  0x25   :  { %3798 = vmatprep.subr.bf16.mxu1 %v9656_v37  ;;  %v9710_v8 = vld [vmem:[%s15359_s1 + $0x4c4] ss:$16 sps:$4 sm:$0xff]   ;;  %v9708_v10 = vld [vmem:[%s15359_s1 + $0x4c0] ss:$16 sps:$4 sm:$0xff]  }
  0x26   :  { %v9713_v9 = vld [vmem:[%s15359_s1 + $0x6c4] ss:$16 sps:$4 sm:$0xff]   ;;  %v9711_v11 = vld [vmem:[%s15359_s1 + $0x6c0] ss:$16 sps:$4 sm:$0xff]  }
  0x27   :  { %3746 = vmatpush2.bf16.msra.mxu0 %v9658_v38  ;;  %v9716_v12 = vld [vmem:[%s15359_s1 + $0x4a4] ss:$16 sps:$4 sm:$0xff]   ;;  %v9714_v14 = vld [vmem:[%s15359_s1 + $0x4a0] ss:$16 sps:$4 sm:$0xff]  }
  0x28   :  { %3799 = vmatpush2.bf16.msra.mxu1 %v9659_v39  ;;  %3747 = vmatprep.subr.bf16.mxu0 %v9660_v40  ;;  %v9719_v13 = vld [vmem:[%s15359_s1 + $0x6a4] ss:$16 sps:$4 sm:$0xff]   ;;  %v9717_v15 = vld [vmem:[%s15359_s1 + $0x6a0] ss:$16 sps:$4 sm:$0xff]  }
  0x29   :  { %3800 = vmatprep.subr.bf16.mxu1 %v9662_v41  ;;  %v9722_v16 = vld [vmem:[%s15359_s1 + $0x484] ss:$16 sps:$4 sm:$0xff]   ;;  %v9720_v18 = vld [vmem:[%s15359_s1 + $0x480] ss:$16 sps:$4 sm:$0xff]  }
  0x2a   :  { %v9725_v17 = vld [vmem:[%s15359_s1 + $0x684] ss:$16 sps:$4 sm:$0xff]   ;;  %v9723_v19 = vld [vmem:[%s15359_s1 + $0x680] ss:$16 sps:$4 sm:$0xff]  }
  0x2b   :  { %3748 = vmatpush2.bf16.msra.mxu0 %v9664_v42  ;;  %v9728_v20 = vld [vmem:[%s15359_s1 + $0x464] ss:$16 sps:$4 sm:$0xff]   ;;  %v9726_v22 = vld [vmem:[%s15359_s1 + $0x460] ss:$16 sps:$4 sm:$0xff]  }
  0x2c   :  { %3801 = vmatpush2.bf16.msra.mxu1 %v9665_v43  ;;  %3749 = vmatprep.subr.bf16.mxu0 %v9666_v44  ;;  %v9731_v21 = vld [vmem:[%s15359_s1 + $0x664] ss:$16 sps:$4 sm:$0xff]   ;;  %v9729_v23 = vld [vmem:[%s15359_s1 + $0x660] ss:$16 sps:$4 sm:$0xff]  }
  0x2d   :  { %3802 = vmatprep.subr.bf16.mxu1 %v9668_v45  ;;  %v9734_v24 = vld [vmem:[%s15359_s1 + $0x444] ss:$16 sps:$4 sm:$0xff]   ;;  %v9732_v29 = vld [vmem:[%s15359_s1 + $0x440] ss:$16 sps:$4 sm:$0xff]  }
  0x2e   :  { %v9737_v25 = vld [vmem:[%s15359_s1 + $0x644] ss:$16 sps:$4 sm:$0xff]   ;;  %v9735_v30 = vld [vmem:[%s15359_s1 + $0x640] ss:$16 sps:$4 sm:$0xff]  }
  0x2f   :  { %3750 = vmatpush2.bf16.msra.mxu0 %v9670_v46  ;;  %v9780_v26 = vld [vmem:[%s15360_s0 + $0x94] ss:$72 sps:$4 sm:$0xff]   ;;  %v9738_v34 = vld [vmem:[%s15359_s1 + $0x420] ss:$16 sps:$4 sm:$0xff]  }
  0x30   :  { %3803 = vmatpush2.bf16.msra.mxu1 %v9671_v47  ;;  %3751 = vmatprep.subr.bf16.mxu0 %v9672_v48  ;;  %v9740_v31 = vld [vmem:[%s15359_s1 + $0x424] ss:$16 sps:$4 sm:$0xff]   ;;  %v9741_v35 = vld [vmem:[%s15359_s1 + $0x620] ss:$16 sps:$4 sm:$0xff]  }
  0x31   :  { %3804 = vmatprep.subr.bf16.mxu1 %v9674_v50  ;;  %v9743_v32 = vld [vmem:[%s15359_s1 + $0x624] ss:$16 sps:$4 sm:$0xff]   ;;  %v9744_v38 = vld [vmem:[%s15359_s1 + $0x400] ss:$16 sps:$4 sm:$0xff]  }
  0x32   :  { %v9746_v36 = vld [vmem:[%s15359_s1 + $0x404] ss:$16 sps:$4 sm:$0xff]   ;;  %v9747_v39 = vld [vmem:[%s15359_s1 + $0x600] ss:$16 sps:$4 sm:$0xff]  }
  0x33   :  { %3752 = vmatpush2.bf16.msra.mxu0 %v9676_v52  ;;  %v9749_v37 = vld [vmem:[%s15359_s1 + $0x604] ss:$16 sps:$4 sm:$0xff]   ;;  %v9750_v44 = vld [vmem:[%s15359_s1 + $0x5e0] ss:$16 sps:$4 sm:$0xff]  }
  0x34   :  { %3805 = vmatpush2.bf16.msra.mxu1 %v9677_v53  ;;  %3753 = vmatprep.subr.bf16.mxu0 %v9678_v54  ;;  %v9752_v40 = vld [vmem:[%s15359_s1 + $0x5e4] ss:$16 sps:$4 sm:$0xff]   ;;  %v9753_v45 = vld [vmem:[%s15359_s1 + $0x7e0] ss:$16 sps:$4 sm:$0xff]  }
  0x35   :  { %3806 = vmatprep.subr.bf16.mxu1 %v9680_v55  ;;  %v9806_v41 = vld [vmem:[%s15360_s0 + $0x14] ss:$72 sps:$4 sm:$0xff]   ;;  %v9756_v48 = vld [vmem:[%s15359_s1 + $0x5c0] ss:$16 sps:$4 sm:$0xff]  }
  0x36   :  { %v9755_v42 = vld [vmem:[%s15359_s1 + $0x7e4] ss:$16 sps:$4 sm:$0xff]   ;;  %v9759_v49 = vld [vmem:[%s15359_s1 + $0x7c0] ss:$16 sps:$4 sm:$0xff]  }
  0x37   :  { %3754 = vmatpush2.bf16.msra.mxu0 %v9682_v56  ;;  %v9809_v43 = vld [vmem:[%s15360_s0 + $0x1c] ss:$72 sps:$4 sm:$0xff]   ;;  %v9762_v52 = vld [vmem:[%s15359_s1 + $0x5a0] ss:$16 sps:$4 sm:$0xff]  }
  0x38   :  { %3807 = vmatpush2.bf16.msra.mxu1 %v9683_v57  ;;  %3755 = vmatprep.subr.bf16.mxu0 %v9684_v58  ;;  %v9758_v46 = vld [vmem:[%s15359_s1 + $0x5c4] ss:$16 sps:$4 sm:$0xff]   ;;  %v9765_v53 = vld [vmem:[%s15359_s1 + $0x7a0] ss:$16 sps:$4 sm:$0xff]  }
  0x39   :  { %3808 = vmatprep.subr.bf16.mxu1 %v9686_v59  ;;  %v9761_v47 = vld [vmem:[%s15359_s1 + $0x7c4] ss:$16 sps:$4 sm:$0xff]   ;;  %v9768_v56 = vld [vmem:[%s15359_s1 + $0x580] ss:$16 sps:$4 sm:$0xff]  }
  0x3a   :  { %v9764_v50 = vld [vmem:[%s15359_s1 + $0x5a4] ss:$16 sps:$4 sm:$0xff]   ;;  %v9771_v57 = vld [vmem:[%s15359_s1 + $0x780] ss:$16 sps:$4 sm:$0xff]  }
  0x3b   :  { %3756 = vmatpush2.bf16.msra.mxu0 %v9688_v60  ;;  %v9767_v51 = vld [vmem:[%s15359_s1 + $0x7a4] ss:$16 sps:$4 sm:$0xff]   ;;  %v9774_v60 = vld [vmem:[%s15359_s1 + $0x560] ss:$16 sps:$4 sm:$0xff]  }
  0x3c   :  { %3809 = vmatpush2.bf16.msra.mxu1 %v9689_v61  ;;  %3757 = vmatprep.subr.bf16.mxu0 %v9690_v62  ;;  %v9770_v54 = vld [vmem:[%s15359_s1 + $0x584] ss:$16 sps:$4 sm:$0xff]   ;;  %v9777_v61 = vld [vmem:[%s15359_s1 + $0x760] ss:$16 sps:$4 sm:$0xff]  }
  0x3d   :  { %3810 = vmatprep.subr.bf16.mxu1 %v9692_v63  ;;  %v9773_v55 = vld [vmem:[%s15359_s1 + $0x784] ss:$16 sps:$4 sm:$0xff]  }
  0x3e   :  { %v9776_v58 = vld [vmem:[%s15359_s1 + $0x564] ss:$16 sps:$4 sm:$0xff]  }
  0x3f   :  { %3758 = vmatpush2.bf16.msra.mxu0 %v9694_v0  ;;  %v9779_v59 = vld [vmem:[%s15359_s1 + $0x764] ss:$16 sps:$4 sm:$0xff]   ;;  %v9785_v0 = vld [vmem:[%s15359_s1 + $0x540] ss:$16 sps:$4 sm:$0xff]  }
  0x40   :  { %3811 = vmatpush2.bf16.msra.mxu1 %v9695_v1  ;;  %3833 = vmatprep.subr.bf16.mxu0 %v9704_v2  ;;  %v9787_v62 = vld [vmem:[%s15359_s1 + $0x544] ss:$16 sps:$4 sm:$0xff]   ;;  %v9788_v1 = vld [vmem:[%s15359_s1 + $0x740] ss:$16 sps:$4 sm:$0xff]  }
  0x41   :  { %3886 = vmatprep.subr.bf16.mxu1 %v9707_v3  ;;  %v9790_v63 = vld [vmem:[%s15359_s1 + $0x744] ss:$16 sps:$4 sm:$0xff]  }
  0x42   :  { %3760 = vmatmul.mubr.bf16.vlgmr.msra.gmra.mxu0 %v9696_v4  ;;  %v9794_v2 = vld [vmem:[%s15359_s1 + $0x524] ss:$16 sps:$4 sm:$0xff]   ;;  %v9792_v4 = vld [vmem:[%s15359_s1 + $0x520] ss:$16 sps:$4 sm:$0xff]  }
  0x43   :  { %3813 = vmatmul.mubr.bf16.vlgmr.msra.gmra.mxu1 %v9699_v5  ;;  %3834 = vmatpush1.bf16.msra.mxu0 %v9702_v6  ;;  %v9797_v3 = vld [vmem:[%s15359_s1 + $0x724] ss:$16 sps:$4 sm:$0xff]   ;;  %v9795_v5 = vld [vmem:[%s15359_s1 + $0x720] ss:$16 sps:$4 sm:$0xff]  }
  0x44   :  { %3887 = vmatpush1.bf16.msra.mxu1 %v9705_v7  ;;  %3835 = vmatprep.subr.bf16.mxu0 %v9710_v8  ;;  %v9800_v6 = vld [vmem:[%s15359_s1 + $0x504] ss:$16 sps:$4 sm:$0xff]   ;;  %v9798_v8 = vld [vmem:[%s15359_s1 + $0x500] ss:$16 sps:$4 sm:$0xff]  }
  0x45   :  { %3888 = vmatprep.subr.bf16.mxu1 %v9713_v9  ;;  %3769 = vmatprep.mubr.bf16.mxu0 %v9780_v26  ;;  %v9803_v7 = vld [vmem:[%s15359_s1 + $0x704] ss:$16 sps:$4 sm:$0xff]   ;;  %v9801_v9 = vld [vmem:[%s15359_s1 + $0x700] ss:$16 sps:$4 sm:$0xff]  }
  0x46   :  { %3822 = vmatprep.mubr.bf16.mxu1 %v9783_v28  ;;  %v9828_v26 = vld [vmem:[%s15359_s1 + $0xaa0] ss:$16 sps:$4 sm:$0xff]   ;;  %v9836_v28 = vld [vmem:[%s15359_s1 + $0x884] ss:$16 sps:$4 sm:$0xff]  }
  0x47   :  { %3836 = vmatpush1.bf16.msra.mxu0 %v9708_v10  ;;  %v9812_v10 = vld [vmem:[%s15359_s1 + $0x8e4] ss:$16 sps:$4 sm:$0xff]  }
  0x48   :  { %3889 = vmatpush1.bf16.msra.mxu1 %v9711_v11  ;;  %3837 = vmatprep.subr.bf16.mxu0 %v9716_v12  ;;  %v9815_v11 = vld [vmem:[%s15359_s1 + $0xae4] ss:$16 sps:$4 sm:$0xff]   ;;  %v9804_v12 = vld [vmem:[%s15360_s0 + $0x10] ss:$72 sps:$4 sm:$0xff]  }
  0x49   :  { %3890 = vmatprep.subr.bf16.mxu1 %v9719_v13  ;;  %v9807_v13 = vld [vmem:[%s15360_s0 + $0x18] ss:$72 sps:$4 sm:$0xff]  }
  0x4a   :  { %3770 = vmatmul.mubr.bf16.gmra.mxu0 %v9782_v27  ;;  %v9833_v27 = vld [vmem:[%s15360_s0 + $0xa8] ss:$72 sps:$4 sm:$0xff]  }
  0x4b   :  { %3838 = vmatpush1.bf16.msra.mxu0 %v9714_v14  ;;  %3823 = vmatmul.mubr.bf16.gmra.mxu1 %v9791_v33  ;;  %v9810_v14 = vld [vmem:[%s15359_s1 + $0x8e0] ss:$16 sps:$4 sm:$0xff]   ;;  %v9914_v33 = vld [vmem:[%s15360_s0 + $0x24] ss:$72 sps:$4 sm:$0xff]  }
  0x4c   :  { %3891 = vmatpush1.bf16.msra.mxu1 %v9717_v15  ;;  %3839 = vmatprep.subr.bf16.mxu0 %v9722_v16  ;;  %v9813_v15 = vld [vmem:[%s15359_s1 + $0xae0] ss:$16 sps:$4 sm:$0xff]   ;;  %v9818_v16 = vld [vmem:[%s15359_s1 + $0x8c4] ss:$16 sps:$4 sm:$0xff]  }
  0x4d   :  { %3892 = vmatprep.subr.bf16.mxu1 %v9725_v17  ;;  %3865 = vmatprep.mubr.bf16.mxu0 %v9806_v41  ;;  %v9821_v17 = vld [vmem:[%s15359_s1 + $0xac4] ss:$16 sps:$4 sm:$0xff]   ;;  %v9849_v41 = vld [vmem:[%s15359_s1 + $0xa40] ss:$16 sps:$4 sm:$0xff]  }
  0x4e   :  { %3918 = vmatprep.mubr.bf16.mxu1 %v9809_v43  ;;  %v9857_v43 = vld [vmem:[%s15359_s1 + $0xa24] ss:$16 sps:$4 sm:$0xff]  }
  0x4f   :  { %3840 = vmatpush1.bf16.msra.mxu0 %v9720_v18  ;;  %v9822_v18 = vld [vmem:[%s15360_s0 + $0xa4] ss:$72 sps:$4 sm:$0xff]  }
  0x50   :  { %3893 = vmatpush1.bf16.msra.mxu1 %v9723_v19  ;;  %3841 = vmatprep.subr.bf16.mxu0 %v9728_v20  ;;  %v9831_v19 = vld [vmem:[%s15360_s0 + $0xac] ss:$72 sps:$4 sm:$0xff]   ;;  %v9816_v20 = vld [vmem:[%s15359_s1 + $0x8c0] ss:$16 sps:$4 sm:$0xff]  }
  0x51   :  { %3894 = vmatprep.subr.bf16.mxu1 %v9731_v21  ;;  %v9819_v21 = vld [vmem:[%s15359_s1 + $0xac0] ss:$16 sps:$4 sm:$0xff]  }
  0x53   :  { %3842 = vmatpush1.bf16.msra.mxu0 %v9726_v22  ;;  %v9827_v22 = vld [vmem:[%s15359_s1 + $0x8a4] ss:$16 sps:$4 sm:$0xff]  }
  0x54   :  { %3895 = vmatpush1.bf16.msra.mxu1 %v9729_v23  ;;  %3843 = vmatprep.subr.bf16.mxu0 %v9734_v24  ;;  %v9830_v23 = vld [vmem:[%s15359_s1 + $0xaa4] ss:$16 sps:$4 sm:$0xff]   ;;  %v9824_v24 = vld [vmem:[%s15360_s0 + $0xa0] ss:$72 sps:$4 sm:$0xff]  }
  0x55   :  { %3896 = vmatprep.subr.bf16.mxu1 %v9737_v25  ;;  %v9825_v25 = vld [vmem:[%s15359_s1 + $0x8a0] ss:$16 sps:$4 sm:$0xff]  }
  0x57   :  { %3844 = vmatpush1.bf16.msra.mxu0 %v9732_v29  ;;  %v9839_v29 = vld [vmem:[%s15359_s1 + $0xa84] ss:$16 sps:$4 sm:$0xff]  }
  0x58   :  { %3897 = vmatpush1.bf16.msra.mxu1 %v9735_v30  ;;  %3845 = vmatprep.subr.bf16.mxu0 %v9740_v31  ;;  %v9834_v30 = vld [vmem:[%s15359_s1 + $0x880] ss:$16 sps:$4 sm:$0xff]  }
  0x59   :  { %3898 = vmatprep.subr.bf16.mxu1 %v9743_v32  ;;  %v9837_v31 = vld [vmem:[%s15359_s1 + $0xa80] ss:$16 sps:$4 sm:$0xff]   ;;  %v9842_v32 = vld [vmem:[%s15359_s1 + $0x864] ss:$16 sps:$4 sm:$0xff]  }
  0x5b   :  { %3846 = vmatpush1.bf16.msra.mxu0 %v9738_v34  ;;  %v9845_v34 = vld [vmem:[%s15359_s1 + $0xa64] ss:$16 sps:$4 sm:$0xff]  }
  0x5c   :  { %3899 = vmatpush1.bf16.msra.mxu1 %v9741_v35  ;;  %3847 = vmatprep.subr.bf16.mxu0 %v9746_v36  ;;  %v9917_v35 = vld [vmem:[%s15360_s0 + $0x2c] ss:$72 sps:$4 sm:$0xff]   ;;  %v9840_v36 = vld [vmem:[%s15359_s1 + $0x860] ss:$16 sps:$4 sm:$0xff]  }
  0x5d   :  { %3900 = vmatprep.subr.bf16.mxu1 %v9749_v37  ;;  %v9843_v37 = vld [vmem:[%s15359_s1 + $0xa60] ss:$16 sps:$4 sm:$0xff]  }
  0x5f   :  { %3848 = vmatpush1.bf16.msra.mxu0 %v9744_v38  ;;  %v9848_v38 = vld [vmem:[%s15359_s1 + $0x844] ss:$16 sps:$4 sm:$0xff]  }
  0x60   :  { %3901 = vmatpush1.bf16.msra.mxu1 %v9747_v39  ;;  %3849 = vmatprep.subr.bf16.mxu0 %v9752_v40  ;;  %v9851_v39 = vld [vmem:[%s15359_s1 + $0xa44] ss:$16 sps:$4 sm:$0xff]   ;;  %v9846_v40 = vld [vmem:[%s15359_s1 + $0x840] ss:$16 sps:$4 sm:$0xff]  }
  0x61   :  { %3902 = vmatprep.subr.bf16.mxu1 %v9755_v42  ;;  %v9854_v42 = vld [vmem:[%s15359_s1 + $0x824] ss:$16 sps:$4 sm:$0xff]  }
  0x63   :  { %3850 = vmatpush2.bf16.msra.mxu0 %v9750_v44  ;;  %v9852_v44 = vld [vmem:[%s15359_s1 + $0x820] ss:$16 sps:$4 sm:$0xff]  }
  0x64   :  { %3903 = vmatpush2.bf16.msra.mxu1 %v9753_v45  ;;  %3851 = vmatprep.subr.bf16.mxu0 %v9758_v46  ;;  %v9855_v45 = vld [vmem:[%s15359_s1 + $0xa20] ss:$16 sps:$4 sm:$0xff]   ;;  %v9860_v46 = vld [vmem:[%s15359_s1 + $0x804] ss:$16 sps:$4 sm:$0xff]  }
  0x65   :  { %3904 = vmatprep.subr.bf16.mxu1 %v9761_v47  ;;  %v9863_v47 = vld [vmem:[%s15359_s1 + $0xa04] ss:$16 sps:$4 sm:$0xff]  }
  0x67   :  { %3852 = vmatpush2.bf16.msra.mxu0 %v9756_v48  ;;  %v9858_v48 = vld [vmem:[%s15359_s1 + $0x800] ss:$16 sps:$4 sm:$0xff]  }
  0x68   :  { %3905 = vmatpush2.bf16.msra.mxu1 %v9759_v49  ;;  %3853 = vmatprep.subr.bf16.mxu0 %v9764_v50  ;;  %v9861_v49 = vld [vmem:[%s15359_s1 + $0xa00] ss:$16 sps:$4 sm:$0xff]   ;;  %v9866_v50 = vld [vmem:[%s15359_s1 + $0x9e4] ss:$16 sps:$4 sm:$0xff]  }
  0x69   :  { %3906 = vmatprep.subr.bf16.mxu1 %v9767_v51  ;;  %v9869_v51 = vld [vmem:[%s15359_s1 + $0xbe4] ss:$16 sps:$4 sm:$0xff]  }
  0x6b   :  { %3854 = vmatpush2.bf16.msra.mxu0 %v9762_v52  ;;  %v9864_v52 = vld [vmem:[%s15359_s1 + $0x9e0] ss:$16 sps:$4 sm:$0xff]  }
  0x6c   :  { %3907 = vmatpush2.bf16.msra.mxu1 %v9765_v53  ;;  %3855 = vmatprep.subr.bf16.mxu0 %v9770_v54  ;;  %v9867_v53 = vld [vmem:[%s15359_s1 + $0xbe0] ss:$16 sps:$4 sm:$0xff]   ;;  %v9872_v54 = vld [vmem:[%s15359_s1 + $0x9c4] ss:$16 sps:$4 sm:$0xff]  }
  0x6d   :  { %3908 = vmatprep.subr.bf16.mxu1 %v9773_v55  ;;  %v9875_v55 = vld [vmem:[%s15359_s1 + $0xbc4] ss:$16 sps:$4 sm:$0xff]  }
  0x6f   :  { %3856 = vmatpush2.bf16.msra.mxu0 %v9768_v56  ;;  %v9870_v56 = vld [vmem:[%s15359_s1 + $0x9c0] ss:$16 sps:$4 sm:$0xff]  }
  0x70   :  { %3909 = vmatpush2.bf16.msra.mxu1 %v9771_v57  ;;  %3857 = vmatprep.subr.bf16.mxu0 %v9776_v58  ;;  %v9873_v57 = vld [vmem:[%s15359_s1 + $0xbc0] ss:$16 sps:$4 sm:$0xff]   ;;  %v9878_v58 = vld [vmem:[%s15359_s1 + $0x9a4] ss:$16 sps:$4 sm:$0xff]  }
  0x71   :  { %3910 = vmatprep.subr.bf16.mxu1 %v9779_v59  ;;  %v9881_v59 = vld [vmem:[%s15359_s1 + $0xba4] ss:$16 sps:$4 sm:$0xff]  }
  0x73   :  { %3858 = vmatpush2.bf16.msra.mxu0 %v9774_v60  ;;  %v9876_v60 = vld [vmem:[%s15359_s1 + $0x9a0] ss:$16 sps:$4 sm:$0xff]  }
  0x74   :  { %3911 = vmatpush2.bf16.msra.mxu1 %v9777_v61  ;;  %3859 = vmatprep.subr.bf16.mxu0 %v9787_v62  ;;  %v9879_v61 = vld [vmem:[%s15359_s1 + $0xba0] ss:$16 sps:$4 sm:$0xff]   ;;  %v9884_v62 = vld [vmem:[%s15359_s1 + $0x984] ss:$16 sps:$4 sm:$0xff]  }
  0x75   :  { %3912 = vmatprep.subr.bf16.mxu1 %v9790_v63  ;;  %v9887_v63 = vld [vmem:[%s15359_s1 + $0xb84] ss:$16 sps:$4 sm:$0xff]  }
  0x77   :  { %3860 = vmatpush2.bf16.msra.mxu0 %v9785_v0  ;;  %v9882_v0 = vld [vmem:[%s15359_s1 + $0x980] ss:$16 sps:$4 sm:$0xff]  }
  0x78   :  { %3913 = vmatpush2.bf16.msra.mxu1 %v9788_v1  ;;  %3861 = vmatprep.subr.bf16.mxu0 %v9794_v2  ;;  %v9885_v1 = vld [vmem:[%s15359_s1 + $0xb80] ss:$16 sps:$4 sm:$0xff]   ;;  %v9890_v2 = vld [vmem:[%s15359_s1 + $0x964] ss:$16 sps:$4 sm:$0xff]  }
  0x79   :  { %3914 = vmatprep.subr.bf16.mxu1 %v9797_v3  ;;  %v9893_v3 = vld [vmem:[%s15359_s1 + $0xb64] ss:$16 sps:$4 sm:$0xff]  }
  0x7b   :  { %3862 = vmatpush2.bf16.msra.mxu0 %v9792_v4  ;;  %v9888_v4 = vld [vmem:[%s15359_s1 + $0x960] ss:$16 sps:$4 sm:$0xff]  }
  0x7c   :  { %3915 = vmatpush2.bf16.msra.mxu1 %v9795_v5  ;;  %3863 = vmatprep.subr.bf16.mxu0 %v9800_v6  ;;  %v9891_v5 = vld [vmem:[%s15359_s1 + $0xb60] ss:$16 sps:$4 sm:$0xff]   ;;  %v9896_v6 = vld [vmem:[%s15359_s1 + $0x944] ss:$16 sps:$4 sm:$0xff]  }
  0x7d   :  { %3916 = vmatprep.subr.bf16.mxu1 %v9803_v7  ;;  %v9899_v7 = vld [vmem:[%s15359_s1 + $0xb44] ss:$16 sps:$4 sm:$0xff]  }
  0x7f   :  { %3864 = vmatpush2.bf16.msra.mxu0 %v9798_v8  ;;  %v9894_v8 = vld [vmem:[%s15359_s1 + $0x940] ss:$16 sps:$4 sm:$0xff]  }
  0x80   :  { %3917 = vmatpush2.bf16.msra.mxu1 %v9801_v9  ;;  %3939 = vmatprep.subr.bf16.mxu0 %v9812_v10  ;;  %v9897_v9 = vld [vmem:[%s15359_s1 + $0xb40] ss:$16 sps:$4 sm:$0xff]   ;;  %v9902_v10 = vld [vmem:[%s15359_s1 + $0x924] ss:$16 sps:$4 sm:$0xff]  }
  0x81   :  { %3992 = vmatprep.subr.bf16.mxu1 %v9815_v11  ;;  %v9905_v11 = vld [vmem:[%s15359_s1 + $0xb24] ss:$16 sps:$4 sm:$0xff]  }
  0x82   :  { %3866 = vmatmul.mubr.bf16.vlgmr.msra.gmra.mxu0 %v9804_v12  ;;  %v9900_v12 = vld [vmem:[%s15359_s1 + $0x920] ss:$16 sps:$4 sm:$0xff]  }
  0x83   :  { %3919 = vmatmul.mubr.bf16.vlgmr.msra.gmra.mxu1 %v9807_v13  ;;  %3940 = vmatpush1.bf16.msra.mxu0 %v9810_v14  ;;  %v9903_v13 = vld [vmem:[%s15359_s1 + $0xb20] ss:$16 sps:$4 sm:$0xff]   ;;  %v9908_v14 = vld [vmem:[%s15359_s1 + $0x904] ss:$16 sps:$4 sm:$0xff]  }
  0x84   :  { %3993 = vmatpush1.bf16.msra.mxu1 %v9813_v15  ;;  %3941 = vmatprep.subr.bf16.mxu0 %v9818_v16  ;;  %v9911_v15 = vld [vmem:[%s15359_s1 + $0xb04] ss:$16 sps:$4 sm:$0xff]   ;;  %v9906_v16 = vld [vmem:[%s15359_s1 + $0x900] ss:$16 sps:$4 sm:$0xff]  }
  0x85   :  { %3994 = vmatprep.subr.bf16.mxu1 %v9821_v17  ;;  %3875 = vmatprep.mubr.bf16.mxu0 %v9822_v18  ;;  %v9909_v17 = vld [vmem:[%s15359_s1 + $0xb00] ss:$16 sps:$4 sm:$0xff]   ;;  %v9920_v18 = vld [vmem:[%s15359_s1 + $0xce4] ss:$16 sps:$4 sm:$0xff]  }
  0x86   :  { %3928 = vmatprep.mubr.bf16.mxu1 %v9831_v19  ;;  %v9923_v19 = vld [vmem:[%s15359_s1 + $0xee4] ss:$16 sps:$4 sm:$0xff]  }
  0x87   :  { %3942 = vmatpush1.bf16.msra.mxu0 %v9816_v20  ;;  %v9912_v20 = vld [vmem:[%s15360_s0 + $0x20] ss:$72 sps:$4 sm:$0xff]  }
  0x88   :  { %3995 = vmatpush1.bf16.msra.mxu1 %v9819_v21  ;;  %3943 = vmatprep.subr.bf16.mxu0 %v9827_v22  ;;  %v9915_v21 = vld [vmem:[%s15360_s0 + $0x28] ss:$72 sps:$4 sm:$0xff]  }
  0x89   :  { %3996 = vmatprep.subr.bf16.mxu1 %v9830_v23  ;;  %v9918_v22 = vld [vmem:[%s15359_s1 + $0xce0] ss:$16 sps:$4 sm:$0xff]  }
  0x8a   :  { %3876 = vmatmul.mubr.bf16.gmra.mxu0 %v9824_v24  ;;  %v9921_v23 = vld [vmem:[%s15359_s1 + $0xee0] ss:$16 sps:$4 sm:$0xff]   ;;  %v9926_v24 = vld [vmem:[%s15359_s1 + $0xcc4] ss:$16 sps:$4 sm:$0xff]  }
  0x8b   :  { %3929 = vmatmul.mubr.bf16.gmra.mxu1 %v9833_v27  ;;  %3944 = vmatpush1.bf16.msra.mxu0 %v9825_v25  ;;  %v9929_v25 = vld [vmem:[%s15359_s1 + $0xec4] ss:$16 sps:$4 sm:$0xff]  }
  0x8c   :  { %3997 = vmatpush1.bf16.msra.mxu1 %v9828_v26  ;;  %3945 = vmatprep.subr.bf16.mxu0 %v9836_v28  ;;  %v9930_v26 = vld [vmem:[%s15360_s0 + $0xb4] ss:$72 sps:$4 sm:$0xff]   ;;  %v9924_v28 = vld [vmem:[%s15359_s1 + $0xcc0] ss:$16 sps:$4 sm:$0xff]  }
  0x8d   :  { %3998 = vmatprep.subr.bf16.mxu1 %v9839_v29  ;;  %3971 = vmatprep.mubr.bf16.mxu0 %v9914_v33  ;;  %v9939_v27 = vld [vmem:[%s15360_s0 + $0xbc] ss:$72 sps:$4 sm:$0xff]   ;;  %v9927_v29 = vld [vmem:[%s15359_s1 + $0xec0] ss:$16 sps:$4 sm:$0xff]  }
  0x8e   :  { %4024 = vmatprep.mubr.bf16.mxu1 %v9917_v35  ;;  %v9933_v33 = vld [vmem:[%s15359_s1 + $0xca0] ss:$16 sps:$4 sm:$0xff]  }
  0x8f   :  { %3946 = vmatpush1.bf16.msra.mxu0 %v9834_v30  ;;  %v9932_v30 = vld [vmem:[%s15360_s0 + $0xb0] ss:$72 sps:$4 sm:$0xff]  }
  0x90   :  { %3999 = vmatpush1.bf16.msra.mxu1 %v9837_v31  ;;  %3947 = vmatprep.subr.bf16.mxu0 %v9842_v32  ;;  %v9935_v31 = vld [vmem:[%s15359_s1 + $0xca4] ss:$16 sps:$4 sm:$0xff]   ;;  %v9936_v35 = vld [vmem:[%s15359_s1 + $0xea0] ss:$16 sps:$4 sm:$0xff]  }
  0x91   :  { %4000 = vmatprep.subr.bf16.mxu1 %v9845_v34  ;;  %v9938_v32 = vld [vmem:[%s15359_s1 + $0xea4] ss:$16 sps:$4 sm:$0xff]   ;;  %v9941_v34 = vld [vmem:[%s15360_s0 + $0xb8] ss:$72 sps:$4 sm:$0xff]  }
  0x93   :  { %3948 = vmatpush1.bf16.msra.mxu0 %v9840_v36  ;;  %v9944_v36 = vld [vmem:[%s15359_s1 + $0xc84] ss:$16 sps:$4 sm:$0xff]  }
  0x94   :  { %4001 = vmatpush1.bf16.msra.mxu1 %v9843_v37  ;;  %3949 = vmatprep.subr.bf16.mxu0 %v9848_v38  ;;  %v9947_v37 = vld [vmem:[%s15359_s1 + $0xe84] ss:$16 sps:$4 sm:$0xff]  }
  0x95   :  { %4002 = vmatprep.subr.bf16.mxu1 %v9851_v39  ;;  %v10022_v38 = vld [vmem:[%s15360_s0 + $0x34] ss:$72 sps:$4 sm:$0xff]  }
  0x96   :  { %v10025_v39 = vld [vmem:[%s15360_s0 + $0x3c] ss:$72 sps:$4 sm:$0xff]  }
  0x97   :  { %3950 = vmatpush1.bf16.msra.mxu0 %v9846_v40  ;;  %v9942_v40 = vld [vmem:[%s15359_s1 + $0xc80] ss:$16 sps:$4 sm:$0xff]  }
  0x98   :  { %4003 = vmatpush1.bf16.msra.mxu1 %v9849_v41  ;;  %3951 = vmatprep.subr.bf16.mxu0 %v9854_v42  ;;  %v9945_v41 = vld [vmem:[%s15359_s1 + $0xe80] ss:$16 sps:$4 sm:$0xff]   ;;  %v9950_v42 = vld [vmem:[%s15359_s1 + $0xc64] ss:$16 sps:$4 sm:$0xff]  }
  0x99   :  { %4004 = vmatprep.subr.bf16.mxu1 %v9857_v43  ;;  %v9953_v43 = vld [vmem:[%s15359_s1 + $0xe64] ss:$16 sps:$4 sm:$0xff]  }
  0x9b   :  { %3952 = vmatpush1.bf16.msra.mxu0 %v9852_v44  ;;  %v9948_v44 = vld [vmem:[%s15359_s1 + $0xc60] ss:$16 sps:$4 sm:$0xff]  }
  0x9c   :  { %4005 = vmatpush1.bf16.msra.mxu1 %v9855_v45  ;;  %3953 = vmatprep.subr.bf16.mxu0 %v9860_v46  ;;  %v9951_v45 = vld [vmem:[%s15359_s1 + $0xe60] ss:$16 sps:$4 sm:$0xff]   ;;  %v9956_v46 = vld [vmem:[%s15359_s1 + $0xc44] ss:$16 sps:$4 sm:$0xff]  }
  0x9d   :  { %4006 = vmatprep.subr.bf16.mxu1 %v9863_v47  ;;  %v9959_v47 = vld [vmem:[%s15359_s1 + $0xe44] ss:$16 sps:$4 sm:$0xff]  }
  0x9f   :  { %3954 = vmatpush1.bf16.msra.mxu0 %v9858_v48  ;;  %v9954_v48 = vld [vmem:[%s15359_s1 + $0xc40] ss:$16 sps:$4 sm:$0xff]  }
  0xa0   :  { %4007 = vmatpush1.bf16.msra.mxu1 %v9861_v49  ;;  %3955 = vmatprep.subr.bf16.mxu0 %v9866_v50  ;;  %v9957_v49 = vld [vmem:[%s15359_s1 + $0xe40] ss:$16 sps:$4 sm:$0xff]   ;;  %v9962_v50 = vld [vmem:[%s15359_s1 + $0xc24] ss:$16 sps:$4 sm:$0xff]  }
  0xa1   :  { %4008 = vmatprep.subr.bf16.mxu1 %v9869_v51  ;;  %v9965_v51 = vld [vmem:[%s15359_s1 + $0xe24] ss:$16 sps:$4 sm:$0xff]  }
  0xa3   :  { %3956 = vmatpush2.bf16.msra.mxu0 %v9864_v52  ;;  %v9960_v52 = vld [vmem:[%s15359_s1 + $0xc20] ss:$16 sps:$4 sm:$0xff]  }
  0xa4   :  { %4009 = vmatpush2.bf16.msra.mxu1 %v9867_v53  ;;  %3957 = vmatprep.subr.bf16.mxu0 %v9872_v54  ;;  %v9963_v53 = vld [vmem:[%s15359_s1 + $0xe20] ss:$16 sps:$4 sm:$0xff]   ;;  %v9968_v54 = vld [vmem:[%s15359_s1 + $0xc04] ss:$16 sps:$4 sm:$0xff]  }
  0xa5   :  { %4010 = vmatprep.subr.bf16.mxu1 %v9875_v55  ;;  %v9971_v55 = vld [vmem:[%s15359_s1 + $0xe04] ss:$16 sps:$4 sm:$0xff]  }
  0xa7   :  { %3958 = vmatpush2.bf16.msra.mxu0 %v9870_v56  ;;  %v9966_v56 = vld [vmem:[%s15359_s1 + $0xc00] ss:$16 sps:$4 sm:$0xff]  }
  0xa8   :  { %4011 = vmatpush2.bf16.msra.mxu1 %v9873_v57  ;;  %3959 = vmatprep.subr.bf16.mxu0 %v9878_v58  ;;  %v9969_v57 = vld [vmem:[%s15359_s1 + $0xe00] ss:$16 sps:$4 sm:$0xff]   ;;  %v9974_v58 = vld [vmem:[%s15359_s1 + $0xde4] ss:$16 sps:$4 sm:$0xff]  }
  0xa9   :  { %4012 = vmatprep.subr.bf16.mxu1 %v9881_v59  ;;  %v9977_v59 = vld [vmem:[%s15359_s1 + $0xfe4] ss:$16 sps:$4 sm:$0xff]  }
  0xab   :  { %3960 = vmatpush2.bf16.msra.mxu0 %v9876_v60  ;;  %v9972_v60 = vld [vmem:[%s15359_s1 + $0xde0] ss:$16 sps:$4 sm:$0xff]  }
  0xac   :  { %4013 = vmatpush2.bf16.msra.mxu1 %v9879_v61  ;;  %3961 = vmatprep.subr.bf16.mxu0 %v9884_v62  ;;  %v9975_v61 = vld [vmem:[%s15359_s1 + $0xfe0] ss:$16 sps:$4 sm:$0xff]   ;;  %v9980_v62 = vld [vmem:[%s15359_s1 + $0xdc4] ss:$16 sps:$4 sm:$0xff]  }
  0xad   :  { %4014 = vmatprep.subr.bf16.mxu1 %v9887_v63  ;;  %v9983_v63 = vld [vmem:[%s15359_s1 + $0xfc4] ss:$16 sps:$4 sm:$0xff]  }
  0xaf   :  { %3962 = vmatpush2.bf16.msra.mxu0 %v9882_v0  ;;  %v9978_v0 = vld [vmem:[%s15359_s1 + $0xdc0] ss:$16 sps:$4 sm:$0xff]  }
  0xb0   :  { %4015 = vmatpush2.bf16.msra.mxu1 %v9885_v1  ;;  %3963 = vmatprep.subr.bf16.mxu0 %v9890_v2  ;;  %v9981_v1 = vld [vmem:[%s15359_s1 + $0xfc0] ss:$16 sps:$4 sm:$0xff]   ;;  %v9986_v2 = vld [vmem:[%s15359_s1 + $0xda4] ss:$16 sps:$4 sm:$0xff]  }
  0xb1   :  { %4016 = vmatprep.subr.bf16.mxu1 %v9893_v3  ;;  %v9989_v3 = vld [vmem:[%s15359_s1 + $0xfa4] ss:$16 sps:$4 sm:$0xff]  }
  0xb3   :  { %3964 = vmatpush2.bf16.msra.mxu0 %v9888_v4  ;;  %v9984_v4 = vld [vmem:[%s15359_s1 + $0xda0] ss:$16 sps:$4 sm:$0xff]  }
  0xb4   :  { %4017 = vmatpush2.bf16.msra.mxu1 %v9891_v5  ;;  %3965 = vmatprep.subr.bf16.mxu0 %v9896_v6  ;;  %v9987_v5 = vld [vmem:[%s15359_s1 + $0xfa0] ss:$16 sps:$4 sm:$0xff]   ;;  %v9992_v6 = vld [vmem:[%s15359_s1 + $0xd84] ss:$16 sps:$4 sm:$0xff]  }
  0xb5   :  { %4018 = vmatprep.subr.bf16.mxu1 %v9899_v7  ;;  %v9995_v7 = vld [vmem:[%s15359_s1 + $0xf84] ss:$16 sps:$4 sm:$0xff]  }
  0xb7   :  { %3966 = vmatpush2.bf16.msra.mxu0 %v9894_v8  ;;  %v9990_v8 = vld [vmem:[%s15359_s1 + $0xd80] ss:$16 sps:$4 sm:$0xff]  }
  0xb8   :  { %4019 = vmatpush2.bf16.msra.mxu1 %v9897_v9  ;;  %3967 = vmatprep.subr.bf16.mxu0 %v9902_v10  ;;  %v9993_v9 = vld [vmem:[%s15359_s1 + $0xf80] ss:$16 sps:$4 sm:$0xff]   ;;  %v9998_v10 = vld [vmem:[%s15359_s1 + $0xd64] ss:$16 sps:$4 sm:$0xff]  }
  0xb9   :  { %4020 = vmatprep.subr.bf16.mxu1 %v9905_v11  ;;  %v10001_v11 = vld [vmem:[%s15359_s1 + $0xf64] ss:$16 sps:$4 sm:$0xff]  }
  0xbb   :  { %3968 = vmatpush2.bf16.msra.mxu0 %v9900_v12  ;;  %v9996_v12 = vld [vmem:[%s15359_s1 + $0xd60] ss:$16 sps:$4 sm:$0xff]  }
  0xbc   :  { %4021 = vmatpush2.bf16.msra.mxu1 %v9903_v13  ;;  %3969 = vmatprep.subr.bf16.mxu0 %v9908_v14  ;;  %v9999_v13 = vld [vmem:[%s15359_s1 + $0xf60] ss:$16 sps:$4 sm:$0xff]   ;;  %v10004_v14 = vld [vmem:[%s15359_s1 + $0xd44] ss:$16 sps:$4 sm:$0xff]  }
  0xbd   :  { %4022 = vmatprep.subr.bf16.mxu1 %v9911_v15  ;;  %v10007_v15 = vld [vmem:[%s15359_s1 + $0xf44] ss:$16 sps:$4 sm:$0xff]  }
  0xbf   :  { %3970 = vmatpush2.bf16.msra.mxu0 %v9906_v16  ;;  %v10002_v16 = vld [vmem:[%s15359_s1 + $0xd40] ss:$16 sps:$4 sm:$0xff]  }
  0xc0   :  { %4023 = vmatpush2.bf16.msra.mxu1 %v9909_v17  ;;  %4045 = vmatprep.subr.bf16.mxu0 %v9920_v18  ;;  %v10005_v17 = vld [vmem:[%s15359_s1 + $0xf40] ss:$16 sps:$4 sm:$0xff]   ;;  %v647_v18 = vlaneseq }
  0xc1   :  { %4098 = vmatprep.subr.bf16.mxu1 %v9923_v19  ;;  %v10010_v19 = vld [vmem:[%s15359_s1 + $0xd24] ss:$16 sps:$4 sm:$0xff]  }
  0xc2   :  { %3972 = vmatmul.mubr.bf16.vlgmr.msra.gmra.mxu0 %v9912_v20  ;;  %v10013_v20 = vld [vmem:[%s15359_s1 + $0xf24] ss:$16 sps:$4 sm:$0xff]  }
  0xc3   :  { %4025 = vmatmul.mubr.bf16.vlgmr.msra.gmra.mxu1 %v9915_v21  ;;  %4046 = vmatpush1.bf16.msra.mxu0 %v9918_v22  ;;  %v10008_v21 = vld [vmem:[%s15359_s1 + $0xd20] ss:$16 sps:$4 sm:$0xff]  }
  0xc4   :  { %4099 = vmatpush1.bf16.msra.mxu1 %v9921_v23  ;;  %4047 = vmatprep.subr.bf16.mxu0 %v9926_v24  ;;  %v10011_v22 = vld [vmem:[%s15359_s1 + $0xf20] ss:$16 sps:$4 sm:$0xff]   ;;  %v11667_v23 = vshrl.u32 %v647_v18, 7  ;;  %v10016_v24 = vld [vmem:[%s15359_s1 + $0xd04] ss:$16 sps:$4 sm:$0xff]  }
  0xc5   :  { %4100 = vmatprep.subr.bf16.mxu1 %v9929_v25  ;;  %3981 = vmatprep.mubr.bf16.mxu0 %v9930_v26  ;;  %v10019_v25 = vld [vmem:[%s15359_s1 + $0xf04] ss:$16 sps:$4 sm:$0xff]   ;;  %v10014_v26 = vld [vmem:[%s15359_s1 + $0xd00] ss:$16 sps:$4 sm:$0xff]  }
  0xc6   :  { %4034 = vmatprep.mubr.bf16.mxu1 %v9939_v27  ;;  %15498 = vst [vmem:[#allocation2_spill] sm:$0xff] %v11667_v23  ;;  %v10017_v27 = vld [vmem:[%s15359_s1 + $0xf00] ss:$16 sps:$4 sm:$0xff]  }
  0xc7   :  { %4048 = vmatpush1.bf16.msra.mxu0 %v9924_v28  ;;  %v11684_v28 = vld [vmem:[%s15361_s2] sm:$0xf] }
  0xc8   :  { %4101 = vmatpush1.bf16.msra.mxu1 %v9927_v29  ;;  %4049 = vmatprep.subr.bf16.mxu0 %v9935_v31  ;;  %v11687_v29 = vsub.s32 0, %v11667_v23  ;;  %v10028_v31 = vld [vmem:[%s15359_s1 + $0x10e4] ss:$16 sps:$4 sm:$0xff]  }
  0xc9   :  { %4102 = vmatprep.subr.bf16.mxu1 %v9938_v32  ;;  %v10031_v32 = vld [vmem:[%s15359_s1 + $0xec] ss:$16 sps:$4 sm:$0xff]  }
  0xca   :  { %3982 = vmatmul.mubr.bf16.gmra.mxu0 %v9932_v30  ;;  %15499 = vst [vmem:[#allocation3_spill] sm:$0xff] %v11687_v29  ;;  %v10020_v30 = vld [vmem:[%s15360_s0 + $0x30] ss:$72 sps:$4 sm:$0xff]  }
  0xcb   :  { %4035 = vmatmul.mubr.bf16.gmra.mxu1 %v9941_v34  ;;  %4050 = vmatpush1.bf16.msra.mxu0 %v9933_v33  ;;  %v10023_v33 = vld [vmem:[%s15360_s0 + $0x38] ss:$72 sps:$4 sm:$0xff]  }
  0xcc   :  { %4103 = vmatpush1.bf16.msra.mxu1 %v9936_v35  ;;  %4051 = vmatprep.subr.bf16.mxu0 %v9944_v36  ;;  %v10026_v34 = vld [vmem:[%s15359_s1 + $0x10e0] ss:$16 sps:$4 sm:$0xff]   ;;  %v11706_v35 = vrot.slane %v11684_v28, %v11687_v29  ;;  %v10029_v36 = vld [vmem:[%s15359_s1 + $0xe8] ss:$16 sps:$4 sm:$0xff]  }
  0xcd   :  { %4104 = vmatprep.subr.bf16.mxu1 %v9947_v37  ;;  %4077 = vmatprep.mubr.bf16.mxu0 %v10022_v38  ;;  %v10034_v37 = vld [vmem:[%s15359_s1 + $0x10c4] ss:$16 sps:$4 sm:$0xff]   ;;  %v10037_v38 = vld [vmem:[%s15359_s1 + $0xcc] ss:$16 sps:$4 sm:$0xff]   ;;  %v10682_v29 = vld [vmem:[%s15361_s2] sm:$0xf] }
  0xce   :  { %4130 = vmatprep.mubr.bf16.mxu1 %v10025_v39  ;;  %v10038_v39 = vld [vmem:[%s15360_s0 + $0xc4] ss:$72 sps:$4 sm:$0xff]  }
  0xcf   :  { %4052 = vmatpush1.bf16.msra.mxu0 %v9942_v40  ;;  %v10047_v40 = vld [vmem:[%s15360_s0 + $0xcc] ss:$72 sps:$4 sm:$0xff]  }
  0xd0   :  { %4105 = vmatpush1.bf16.msra.mxu1 %v9945_v41  ;;  %4053 = vmatprep.subr.bf16.mxu0 %v9950_v42 }
  0xd1   :  { %4106 = vmatprep.subr.bf16.mxu1 %v9953_v43 }
  0xd3   :  { %4054 = vmatpush1.bf16.msra.mxu0 %v9948_v44  ;;  %v10032_v44 = vld [vmem:[%s15359_s1 + $0x10c0] ss:$16 sps:$4 sm:$0xff]  }
  0xd4   :  { %4107 = vmatpush1.bf16.msra.mxu1 %v9951_v45  ;;  %4055 = vmatprep.subr.bf16.mxu0 %v9956_v46  ;;  %v10035_v45 = vld [vmem:[%s15359_s1 + $0xc8] ss:$16 sps:$4 sm:$0xff]  }
  0xd5   :  { %4108 = vmatprep.subr.bf16.mxu1 %v9959_v47 }
  0xd7   :  { %4056 = vmatpush1.bf16.msra.mxu0 %v9954_v48  ;;  %v10043_v48 = vld [vmem:[%s15359_s1 + $0x10a4] ss:$16 sps:$4 sm:$0xff]  }
  0xd8   :  { %4109 = vmatpush1.bf16.msra.mxu1 %v9957_v49  ;;  %4057 = vmatprep.subr.bf16.mxu0 %v9962_v50  ;;  %v10046_v49 = vld [vmem:[%s15359_s1 + $0xac] ss:$16 sps:$4 sm:$0xff]  }
  0xd9   :  { %4110 = vmatprep.subr.bf16.mxu1 %v9965_v51  ;;  %v10040_v51 = vld [vmem:[%s15360_s0 + $0xc0] ss:$72 sps:$4 sm:$0xff]  }
  0xdb   :  { %4058 = vmatpush1.bf16.msra.mxu0 %v9960_v52 }
  0xdc   :  { %4111 = vmatpush1.bf16.msra.mxu1 %v9963_v53  ;;  %4059 = vmatprep.subr.bf16.mxu0 %v9968_v54  ;;  %v10049_v53 = vld [vmem:[%s15360_s0 + $0xc8] ss:$72 sps:$4 sm:$0xff]  }
  0xdd   :  { %4112 = vmatprep.subr.bf16.mxu1 %v9971_v55  ;;  %v10041_v55 = vld [vmem:[%s15359_s1 + $0x10a0] ss:$16 sps:$4 sm:$0xff]  }
  0xdf   :  { %4060 = vmatpush1.bf16.msra.mxu0 %v9966_v56  ;;  %v10044_v56 = vld [vmem:[%s15359_s1 + $0xa8] ss:$16 sps:$4 sm:$0xff]  }
  0xe0   :  { %4113 = vmatpush1.bf16.msra.mxu1 %v9969_v57  ;;  %4061 = vmatprep.subr.bf16.mxu0 %v9974_v58  ;;  %v10052_v58 = vld [vmem:[%s15359_s1 + $0x1084] ss:$16 sps:$4 sm:$0xff]  }
  0xe1   :  { %4114 = vmatprep.subr.bf16.mxu1 %v9977_v59  ;;  %v10055_v59 = vld [vmem:[%s15359_s1 + $0x8c] ss:$16 sps:$4 sm:$0xff]  }
  0xe3   :  { %4062 = vmatpush2.bf16.msra.mxu0 %v9972_v60 }
  0xe4   :  { %4115 = vmatpush2.bf16.msra.mxu1 %v9975_v61  ;;  %4063 = vmatprep.subr.bf16.mxu0 %v9980_v62  ;;  %v10130_v61 = vld [vmem:[%s15360_s0 + $0x44] ss:$72 sps:$4 sm:$0xff]   ;;  %v10050_v62 = vld [vmem:[%s15359_s1 + $0x1080] ss:$16 sps:$4 sm:$0xff]  }
  0xe5   :  { %4116 = vmatprep.subr.bf16.mxu1 %v9983_v63  ;;  %v10053_v63 = vld [vmem:[%s15359_s1 + $0x88] ss:$16 sps:$4 sm:$0xff]  }
  0xe7   :  { %4064 = vmatpush2.bf16.msra.mxu0 %v9978_v0  ;;  %v10058_v0 = vld [vmem:[%s15359_s1 + $0x1064] ss:$16 sps:$4 sm:$0xff]  }
  0xe8   :  { %4117 = vmatpush2.bf16.msra.mxu1 %v9981_v1  ;;  %4065 = vmatprep.subr.bf16.mxu0 %v9986_v2  ;;  %v10061_v1 = vld [vmem:[%s15359_s1 + $0x6c] ss:$16 sps:$4 sm:$0xff]  }
  0xe9   :  { %4118 = vmatprep.subr.bf16.mxu1 %v9989_v3  ;;  %v10646_v2 = vld [vmem:[%s15360_s0 + $0x4] ss:$72 sps:$4 sm:$0xff]   ;;  %v11782_v3 = vsub.s32 1, %v11667_v23 }
  0xeb   :  { %4066 = vmatpush2.bf16.msra.mxu0 %v9984_v4  ;;  %15500 = vst [vmem:[#allocation4_spill] sm:$0xff] %v11782_v3  ;;  %v10056_v4 = vld [vmem:[%s15359_s1 + $0x1060] ss:$16 sps:$4 sm:$0xff]  }
  0xec   :  { %4119 = vmatpush2.bf16.msra.mxu1 %v9987_v5  ;;  %4067 = vmatprep.subr.bf16.mxu0 %v9992_v6  ;;  %v10059_v5 = vld [vmem:[%s15359_s1 + $0x68] ss:$16 sps:$4 sm:$0xff]  }
  0xed   :  { %4120 = vmatprep.subr.bf16.mxu1 %v9995_v7  ;;  %v10064_v7 = vld [vmem:[%s15359_s1 + $0x1044] ss:$16 sps:$4 sm:$0xff]  }
  0xef   :  { %4068 = vmatpush2.bf16.msra.mxu0 %v9990_v8  ;;  %v10067_v8 = vld [vmem:[%s15359_s1 + $0x4c] ss:$16 sps:$4 sm:$0xff]  }
  0xf0   :  { %4121 = vmatpush2.bf16.msra.mxu1 %v9993_v9  ;;  %4069 = vmatprep.subr.bf16.mxu0 %v9998_v10  ;;  %v11800_v10 = vrot.slane %v11684_v28, %v11782_v3 }
  0xf1   :  { %4122 = vmatprep.subr.bf16.mxu1 %v10001_v11  ;;  %v10062_v11 = vld [vmem:[%s15359_s1 + $0x1040] ss:$16 sps:$4 sm:$0xff]  }
  0xf3   :  { %4070 = vmatpush2.bf16.msra.mxu0 %v9996_v12  ;;  %v10065_v12 = vld [vmem:[%s15359_s1 + $0x48] ss:$16 sps:$4 sm:$0xff]  }
  0xf4   :  { %4123 = vmatpush2.bf16.msra.mxu1 %v9999_v13  ;;  %4071 = vmatprep.subr.bf16.mxu0 %v10004_v14 }
  0xf5   :  { %4124 = vmatprep.subr.bf16.mxu1 %v10007_v15  ;;  %v10070_v15 = vld [vmem:[%s15359_s1 + $0x1024] ss:$16 sps:$4 sm:$0xff]  }
  0xf7   :  { %4072 = vmatpush2.bf16.msra.mxu0 %v10002_v16  ;;  %v10073_v16 = vld [vmem:[%s15359_s1 + $0x2c] ss:$16 sps:$4 sm:$0xff]  }
  0xf8   :  { %4125 = vmatpush2.bf16.msra.mxu1 %v10005_v17  ;;  %4073 = vmatprep.subr.bf16.mxu0 %v10010_v19 }
  0xf9   :  { %4126 = vmatprep.subr.bf16.mxu1 %v10013_v20 }
  0xfb   :  { %4074 = vmatpush2.bf16.msra.mxu0 %v10008_v21  ;;  %v10068_v21 = vld [vmem:[%s15359_s1 + $0x1020] ss:$16 sps:$4 sm:$0xff]  }
  0xfc   :  { %4127 = vmatpush2.bf16.msra.mxu1 %v10011_v22  ;;  %4075 = vmatprep.subr.bf16.mxu0 %v10016_v24  ;;  %v10071_v22 = vld [vmem:[%s15359_s1 + $0x28] ss:$16 sps:$4 sm:$0xff]  }
  0xfd   :  { %4128 = vmatprep.subr.bf16.mxu1 %v10019_v25 }
  0xff   :  { %4076 = vmatpush2.bf16.msra.mxu0 %v10014_v26  ;;  %v10076_v26 = vld [vmem:[%s15359_s1 + $0x1004] ss:$16 sps:$4 sm:$0xff]  }
 0x100   :  { %4129 = vmatpush2.bf16.msra.mxu1 %v10017_v27  ;;  %4151 = vmatprep.subr.bf16.mxu0 %v10028_v31  ;;  %v10079_v27 = vld [vmem:[%s15359_s1 + $0xc] ss:$16 sps:$4 sm:$0xff]  }
 0x101   :  { %4204 = vmatprep.subr.bf16.mxu1 %v10031_v32  ;;  %v10074_v32 = vld [vmem:[%s15359_s1 + $0x1000] ss:$16 sps:$4 sm:$0xff]  }
 0x102   :  { %v3761_v41 = vpop.f32.mrf.mxu0  ;;  %4078 = vmatmul.mubr.bf16.vlgmr.msra.gmra.mxu0 %v10020_v30 }
 0x103   :  { %v3814_v42 = vpop.f32.mrf.mxu1  ;;  %4131 = vmatmul.mubr.bf16.vlgmr.msra.gmra.mxu1 %v10023_v33  ;;  %v3762_v43 = vadd.f32 %v3761_v41, %v11706_v35  ;;  %4152 = vmatpush1.bf16.msra.mxu0 %v10026_v34  ;;  %v10077_v33 = vld [vmem:[%s15359_s1 + $0x8] ss:$16 sps:$4 sm:$0xff]   ;;  %v10086_v41 = vld [vmem:[%s15359_s1 + $0x11c0] ss:$16 sps:$4 sm:$0xff]  }
 0x104   :  { %4205 = vmatpush1.bf16.msra.mxu1 %v10029_v36  ;;  %v11730_v46 = vpop.f32.mrf.mxu0  ;;  %4153 = vmatprep.subr.bf16.mxu0 %v10034_v37  ;;  %v10085_v36 = vld [vmem:[%s15359_s1 + $0x1ec] ss:$16 sps:$4 sm:$0xff]   ;;  %v10080_v37 = vld [vmem:[%s15359_s1 + $0x11e0] ss:$16 sps:$4 sm:$0xff]  }
 0x105   :  { %v11732_v47 = vpop.f32.mrf.mxu1  ;;  %4206 = vmatprep.subr.bf16.mxu1 %v10037_v38  ;;  %v11740_v50 = vadd.f32 %v3814_v42, %v3762_v43  ;;  %4087 = vmatprep.mubr.bf16.mxu0 %v10038_v39  ;;  %v10083_v38 = vld [vmem:[%s15359_s1 + $0x1e8] ss:$16 sps:$4 sm:$0xff]   ;;  %v10088_v39 = vld [vmem:[%s15359_s1 + $0x11c4] ss:$16 sps:$4 sm:$0xff]  }
 0x106   :  { %4140 = vmatprep.mubr.bf16.mxu1 %v10047_v40  ;;  %v3765_v52 = vpop.f32.mrf.mxu0  ;;  %v10091_v40 = vld [vmem:[%s15359_s1 + $0x1cc] ss:$16 sps:$4 sm:$0xff]   ;;  %v10089_v42 = vld [vmem:[%s15359_s1 + $0x1c8] ss:$16 sps:$4 sm:$0xff]   ;;  %v10094_v43 = vld [vmem:[%s15359_s1 + $0x11a4] ss:$16 sps:$4 sm:$0xff]  }
 0x107   :  { %v3766_v54 = vadd.f32 %v3765_v52, %v11706_v35  ;;  %4154 = vmatpush1.bf16.msra.mxu0 %v10032_v44  ;;  %v3818_v57 = vpop.f32.mrf.mxu1  ;;  %v10097_v44 = vld [vmem:[%s15359_s1 + $0x1ac] ss:$16 sps:$4 sm:$0xff]   ;;  %v10098_v52 = vld [vmem:[%s15359_s1 + $0x1180] ss:$16 sps:$4 sm:$0xff]  }
 0x108   :  { %4207 = vmatpush1.bf16.msra.mxu1 %v10035_v45  ;;  %4155 = vmatprep.subr.bf16.mxu0 %v10043_v48  ;;  %v11790_v6 = vpop.f32.mrf.mxu0  ;;  %v10092_v45 = vld [vmem:[%s15359_s1 + $0x11a0] ss:$16 sps:$4 sm:$0xff]   ;;  %v10095_v48 = vld [vmem:[%s15359_s1 + $0x1a8] ss:$16 sps:$4 sm:$0xff]  }
 0x109   :  { %4208 = vmatprep.subr.bf16.mxu1 %v10046_v49  ;;  %v11761_v60 = vadd.f32 %v3818_v57, %v3766_v54  ;;  %v11809_v14 = vpop.f32.mrf.mxu1  ;;  %v10100_v49 = vld [vmem:[%s15359_s1 + $0x1184] ss:$16 sps:$4 sm:$0xff]   ;;  %v10107_v57 = vld [vmem:[%s15359_s1 + $0x168] ss:$16 sps:$4 sm:$0xff]  }
 0x10a   :  { %4088 = vmatmul.mubr.bf16.gmra.mxu0 %v10040_v51  ;;  %v3771_v9 = vpop.f32.mrf.mxu0  ;;  %v10103_v51 = vld [vmem:[%s15359_s1 + $0x18c] ss:$16 sps:$4 sm:$0xff]   ;;  %v10106_v54 = vld [vmem:[%s15359_s1 + $0x1164] ss:$16 sps:$4 sm:$0xff]  }
 0x10b   :  { %4141 = vmatmul.mubr.bf16.gmra.mxu1 %v10049_v53  ;;  %4156 = vmatpush1.bf16.msra.mxu0 %v10041_v55  ;;  %v3772_v13 = vadd.f32 %v3771_v9, %v11706_v35  ;;  %v3824_v19 = vpop.f32.mrf.mxu1  ;;  %v10101_v53 = vld [vmem:[%s15359_s1 + $0x188] ss:$16 sps:$4 sm:$0xff]   ;;  %v10109_v55 = vld [vmem:[%s15359_s1 + $0x16c] ss:$16 sps:$4 sm:$0xff]  }
 0x10c   :  { %4209 = vmatpush1.bf16.msra.mxu1 %v10044_v56  ;;  %4157 = vmatprep.subr.bf16.mxu0 %v10052_v58  ;;  %v3773_v17 = vpop.f32.mrf.mxu0  ;;  %v10104_v56 = vld [vmem:[%s15359_s1 + $0x1160] ss:$16 sps:$4 sm:$0xff]   ;;  %v10112_v58 = vld [vmem:[%s15359_s1 + $0x1144] ss:$16 sps:$4 sm:$0xff]   ;;  %v10133_v9 = vld [vmem:[%s15359_s1 + $0x2ec] ss:$16 sps:$4 sm:$0xff]  }
 0x10d   :  { %4210 = vmatprep.subr.bf16.mxu1 %v10055_v59  ;;  %4183 = vmatprep.mubr.bf16.mxu0 %v10130_v61  ;;  %v3774_v18 = vadd.f32 %v3773_v17, %v11800_v10  ;;  %v11824_v24 = vadd.f32 %v3824_v19, %v3772_v13  ;;  %v3826_v28 = vpop.f32.mrf.mxu1  ;;  %v10115_v59 = vld [vmem:[%s15359_s1 + $0x14c] ss:$16 sps:$4 sm:$0xff]   ;;  %v10110_v61 = vld [vmem:[%s15359_s1 + $0x1140] ss:$16 sps:$4 sm:$0xff]   ;;  %v10131_v13 = vld [vmem:[%s15359_s1 + $0x2e8] ss:$16 sps:$4 sm:$0xff]  }
 0x10e   :  { %4236 = vmatprep.mubr.bf16.mxu1 %v10646_v2  ;;  %v3775_v20 = vpop.f32.mrf.mxu0  ;;  %v10119_v2 = vld [vmem:[%s15359_s1 + $0x128] ss:$16 sps:$4 sm:$0xff]   ;;  %v10142_v19 = vld [vmem:[%s15359_s1 + $0x4cc] ss:$16 sps:$4 sm:$0xff]  }
 0x10f   :  { %4158 = vmatpush1.bf16.msra.mxu0 %v10050_v62  ;;  %v3776_v25 = vadd.f32 %v3775_v20, %v11706_v35  ;;  %v11833_v30 = vadd.f32 %v3826_v28, %v3774_v18  ;;  %v3828_v31 = vpop.f32.mrf.mxu1  ;;  %v10082_v35 = vld [vmem:[%s15359_s1 + $0x11e4] ss:$16 sps:$4 sm:$0xff]   ;;  %v10113_v62 = vld [vmem:[%s15359_s1 + $0x148] ss:$16 sps:$4 sm:$0xff]   ;;  %v10139_v18 = vld [vmem:[%s15359_s1 + $0x2cc] ss:$16 sps:$4 sm:$0xff]  }
 0x110   :  { %4211 = vmatpush1.bf16.msra.mxu1 %v10053_v63  ;;  %4159 = vmatprep.subr.bf16.mxu0 %v10058_v0  ;;  %v10118_v63 = vld [vmem:[%s15359_s1 + $0x1124] ss:$16 sps:$4 sm:$0xff]   ;;  %v10121_v0 = vld [vmem:[%s15359_s1 + $0x12c] ss:$16 sps:$4 sm:$0xff]   ;;  %v10140_v28 = vld [vmem:[%s15359_s1 + $0x4c8] ss:$16 sps:$4 sm:$0xff]  }
 0x111   :  { %4212 = vmatprep.subr.bf16.mxu1 %v10061_v1  ;;  %v11841_v34 = vadd.f32 %v3828_v31, %v3776_v25  ;;  %v10116_v1 = vld [vmem:[%s15359_s1 + $0x1120] ss:$16 sps:$4 sm:$0xff]   ;;  %v11956_v17 = vpop.f32.mrf.mxu1  ;;  %v10143_v20 = vld [vmem:[%s15360_s0 + $0xd4] ss:$72 sps:$4 sm:$0xff]  }
 0x112   :  { %v10647_v25 = vld [vmem:[%s15360_s0] ss:$72 sps:$4 sm:$0xff]  }
 0x113   :  { %4160 = vmatpush1.bf16.msra.mxu0 %v10056_v4  ;;  %v10124_v4 = vld [vmem:[%s15359_s1 + $0x1104] ss:$16 sps:$4 sm:$0xff]  }
 0x114   :  { %4213 = vmatpush1.bf16.msra.mxu1 %v10059_v5  ;;  %4161 = vmatprep.subr.bf16.mxu0 %v10064_v7  ;;  %v10127_v5 = vld [vmem:[%s15359_s1 + $0x10c] ss:$16 sps:$4 sm:$0xff]   ;;  %v10122_v7 = vld [vmem:[%s15359_s1 + $0x1100] ss:$16 sps:$4 sm:$0xff]  }
 0x115   :  { %4214 = vmatprep.subr.bf16.mxu1 %v10067_v8  ;;  %v10125_v8 = vld [vmem:[%s15359_s1 + $0x108] ss:$16 sps:$4 sm:$0xff]  }
 0x117   :  { %4162 = vmatpush1.bf16.msra.mxu0 %v10062_v11  ;;  %v10136_v11 = vld [vmem:[%s15359_s1 + $0x4ec] ss:$16 sps:$4 sm:$0xff]  }
 0x118   :  { %4215 = vmatpush1.bf16.msra.mxu1 %v10065_v12  ;;  %4163 = vmatprep.subr.bf16.mxu0 %v10070_v15  ;;  %v10128_v12 = vld [vmem:[%s15360_s0 + $0x40] ss:$72 sps:$4 sm:$0xff]  }
 0x119   :  { %4216 = vmatprep.subr.bf16.mxu1 %v10073_v16  ;;  %v10134_v15 = vld [vmem:[%s15359_s1 + $0x4e8] ss:$16 sps:$4 sm:$0xff]   ;;  %v11954_v16 = vpop.f32.mrf.mxu0 }
 0x11b   :  { %4164 = vmatpush1.bf16.msra.mxu0 %v10068_v21 }
 0x11c   :  { %4217 = vmatpush1.bf16.msra.mxu1 %v10071_v22  ;;  %4165 = vmatprep.subr.bf16.mxu0 %v10076_v26 }
 0x11d   :  { %4218 = vmatprep.subr.bf16.mxu1 %v10079_v27  ;;  %v10137_v27 = vld [vmem:[%s15359_s1 + $0x2c8] ss:$16 sps:$4 sm:$0xff]  }
 0x11f   :  { %4166 = vmatpush1.bf16.msra.mxu0 %v10074_v32 }
 0x120   :  { %4219 = vmatpush1.bf16.msra.mxu1 %v10077_v33  ;;  %4167 = vmatprep.subr.bf16.mxu0 %v10082_v35  ;;  %v10151_v33 = vld [vmem:[%s15359_s1 + $0x4ac] ss:$16 sps:$4 sm:$0xff]  }
 0x121   :  { %4220 = vmatprep.subr.bf16.mxu1 %v10085_v36  ;;  %v10145_v36 = vld [vmem:[%s15360_s0 + $0xd0] ss:$72 sps:$4 sm:$0xff]  }
 0x123   :  { %4168 = vmatpush2.bf16.msra.mxu0 %v10080_v37  ;;  %v10648_v37 = vld [vmem:[%s15360_s0 + $0x94] ss:$72 sps:$4 sm:$0xff]  }
 0x124   :  { %4221 = vmatpush2.bf16.msra.mxu1 %v10083_v38  ;;  %4169 = vmatprep.subr.bf16.mxu0 %v10088_v39 }
 0x125   :  { %4222 = vmatprep.subr.bf16.mxu1 %v10091_v40  ;;  %v10146_v40 = vld [vmem:[%s15359_s1 + $0x2a8] ss:$16 sps:$4 sm:$0xff]  }
 0x127   :  { %4170 = vmatpush2.bf16.msra.mxu0 %v10086_v41 }
 0x128   :  { %4223 = vmatpush2.bf16.msra.mxu1 %v10089_v42  ;;  %4171 = vmatprep.subr.bf16.mxu0 %v10094_v43  ;;  %v10149_v42 = vld [vmem:[%s15359_s1 + $0x4a8] ss:$16 sps:$4 sm:$0xff]   ;;  %v10154_v43 = vld [vmem:[%s15359_s1 + $0x28c] ss:$16 sps:$4 sm:$0xff]  }
 0x129   :  { %4224 = vmatprep.subr.bf16.mxu1 %v10097_v44 }
 0x12b   :  { %4172 = vmatpush2.bf16.msra.mxu0 %v10092_v45 }
 0x12c   :  { %4225 = vmatpush2.bf16.msra.mxu1 %v10095_v48  ;;  %4173 = vmatprep.subr.bf16.mxu0 %v10100_v49  ;;  %v10152_v49 = vld [vmem:[%s15359_s1 + $0x288] ss:$16 sps:$4 sm:$0xff]  }
 0x12d   :  { %4226 = vmatprep.subr.bf16.mxu1 %v10103_v51 }
 0x12f   :  { %4174 = vmatpush2.bf16.msra.mxu0 %v10098_v52 }
 0x130   :  { %4227 = vmatpush2.bf16.msra.mxu1 %v10101_v53  ;;  %4175 = vmatprep.subr.bf16.mxu0 %v10106_v54  ;;  %v10155_v53 = vld [vmem:[%s15359_s1 + $0x488] ss:$16 sps:$4 sm:$0xff]  }
 0x131   :  { %4228 = vmatprep.subr.bf16.mxu1 %v10109_v55  ;;  %v10649_v54 = vld [vmem:[%s15360_s0 + $0x90] ss:$72 sps:$4 sm:$0xff]  }
 0x133   :  { %4176 = vmatpush2.bf16.msra.mxu0 %v10104_v56 }
 0x134   :  { %4229 = vmatpush2.bf16.msra.mxu1 %v10107_v57  ;;  %4177 = vmatprep.subr.bf16.mxu0 %v10112_v58  ;;  %v10160_v58 = vld [vmem:[%s15359_s1 + $0x26c] ss:$16 sps:$4 sm:$0xff]  }
 0x135   :  { %4230 = vmatprep.subr.bf16.mxu1 %v10115_v59  ;;  %v10163_v59 = vld [vmem:[%s15359_s1 + $0x46c] ss:$16 sps:$4 sm:$0xff]  }
 0x137   :  { %4178 = vmatpush2.bf16.msra.mxu0 %v10110_v61 }
 0x138   :  { %4231 = vmatpush2.bf16.msra.mxu1 %v10113_v62  ;;  %4179 = vmatprep.subr.bf16.mxu0 %v10118_v63  ;;  %v10161_v63 = vld [vmem:[%s15359_s1 + $0x468] ss:$16 sps:$4 sm:$0xff]  }
 0x139   :  { %4232 = vmatprep.subr.bf16.mxu1 %v10121_v0  ;;  %v10650_v0 = vld [vmem:[%s15360_s0 + $0xc] ss:$72 sps:$4 sm:$0xff]  }
 0x13b   :  { %4180 = vmatpush2.bf16.msra.mxu0 %v10116_v1  ;;  %v10651_v1 = vld [vmem:[%s15360_s0 + $0x14] ss:$72 sps:$4 sm:$0xff]  }
 0x13c   :  { %4233 = vmatpush2.bf16.msra.mxu1 %v10119_v2  ;;  %4181 = vmatprep.subr.bf16.mxu0 %v10124_v4 }
 0x13d   :  { %4234 = vmatprep.subr.bf16.mxu1 %v10127_v5 }
 0x13f   :  { %4182 = vmatpush2.bf16.msra.mxu0 %v10122_v7  ;;  %v10166_v7 = vld [vmem:[%s15359_s1 + $0x24c] ss:$16 sps:$4 sm:$0xff]  }
 0x140   :  { %4235 = vmatpush2.bf16.msra.mxu1 %v10125_v8  ;;  %4257 = vmatprep.subr.bf16.mxu0 %v10133_v9  ;;  %v10169_v8 = vld [vmem:[%s15359_s1 + $0x44c] ss:$16 sps:$4 sm:$0xff]  }
 0x141   :  { %4310 = vmatprep.subr.bf16.mxu1 %v10136_v11  ;;  %v10167_v11 = vld [vmem:[%s15359_s1 + $0x448] ss:$16 sps:$4 sm:$0xff]  }
 0x142   :  { %v3867_v21 = vpop.f32.mrf.mxu0  ;;  %4184 = vmatmul.mubr.bf16.vlgmr.msra.gmra.mxu0 %v10128_v12  ;;  %v10172_v12 = vld [vmem:[%s15359_s1 + $0x22c] ss:$16 sps:$4 sm:$0xff]  }
 0x143   :  { %v3920_v22 = vpop.f32.mrf.mxu1  ;;  %4237 = vmatmul.mubr.bf16.vlgmr.msra.gmra.mxu1 %v10647_v25  ;;  %v3868_v26 = vadd.f32 %v3867_v21, %v11740_v50  ;;  %4258 = vmatpush1.bf16.msra.mxu0 %v10131_v13  ;;  %v10148_v50 = vld [vmem:[%s15359_s1 + $0x2ac] ss:$16 sps:$4 sm:$0xff]   ;;  %v10176_v21 = vld [vmem:[%s15359_s1 + $0x208] ss:$16 sps:$4 sm:$0xff]  }
 0x144   :  { %4311 = vmatpush1.bf16.msra.mxu1 %v10134_v15  ;;  %v11977_v31 = vpop.f32.mrf.mxu0  ;;  %4259 = vmatprep.subr.bf16.mxu0 %v10139_v18  ;;  %v10175_v13 = vld [vmem:[%s15359_s1 + $0x42c] ss:$16 sps:$4 sm:$0xff]   ;;  %v10170_v15 = vld [vmem:[%s15359_s1 + $0x228] ss:$16 sps:$4 sm:$0xff]  }
 0x145   :  { %v11979_v32 = vpop.f32.mrf.mxu1  ;;  %4312 = vmatprep.subr.bf16.mxu1 %v10142_v19  ;;  %v11987_v35 = vadd.f32 %v3920_v22, %v3868_v26  ;;  %4193 = vmatprep.mubr.bf16.mxu0 %v10143_v20  ;;  %v10173_v18 = vld [vmem:[%s15359_s1 + $0x428] ss:$16 sps:$4 sm:$0xff]   ;;  %v10178_v19 = vld [vmem:[%s15359_s1 + $0x20c] ss:$16 sps:$4 sm:$0xff]  }
 0x146   :  { %4246 = vmatprep.mubr.bf16.mxu1 %v10648_v37  ;;  %v3871_v38 = vpop.f32.mrf.mxu0  ;;  %v10181_v20 = vld [vmem:[%s15359_s1 + $0x40c] ss:$16 sps:$4 sm:$0xff]   ;;  %v10179_v22 = vld [vmem:[%s15359_s1 + $0x408] ss:$16 sps:$4 sm:$0xff]  }
 0x147   :  { %v3924_v39 = vpop.f32.mrf.mxu1  ;;  %v3872_v41 = vadd.f32 %v3871_v38, %v11761_v60  ;;  %4260 = vmatpush1.bf16.msra.mxu0 %v10137_v27  ;;  %v10157_v60 = vld [vmem:[%s15359_s1 + $0x48c] ss:$16 sps:$4 sm:$0xff]   ;;  %v10182_v27 = vld [vmem:[%s15359_s1 + $0x3e8] ss:$16 sps:$4 sm:$0xff]  }
 0x148   :  { %4313 = vmatpush1.bf16.msra.mxu1 %v10140_v28  ;;  %v12005_v44 = vpop.f32.mrf.mxu0  ;;  %4261 = vmatprep.subr.bf16.mxu0 %v10148_v50  ;;  %v10184_v25 = vld [vmem:[%s15359_s1 + $0x3ec] ss:$16 sps:$4 sm:$0xff]   ;;  %v10185_v28 = vld [vmem:[%s15359_s1 + $0x5e8] ss:$16 sps:$4 sm:$0xff]  }
 0x149   :  { %v12007_v45 = vpop.f32.mrf.mxu1  ;;  %4314 = vmatprep.subr.bf16.mxu1 %v10151_v33  ;;  %v12012_v48 = vadd.f32 %v3924_v39, %v3872_v41  ;;  %v10187_v26 = vld [vmem:[%s15359_s1 + $0x5ec] ss:$16 sps:$4 sm:$0xff]   ;;  %v10191_v37 = vld [vmem:[%s15359_s1 + $0x5c8] ss:$16 sps:$4 sm:$0xff]  }
 0x14a   :  { %v3877_v51 = vpop.f32.mrf.mxu0  ;;  %4194 = vmatmul.mubr.bf16.gmra.mxu0 %v10145_v36  ;;  %v10190_v50 = vld [vmem:[%s15359_s1 + $0x3cc] ss:$16 sps:$4 sm:$0xff]   ;;  %v10188_v36 = vld [vmem:[%s15359_s1 + $0x3c8] ss:$16 sps:$4 sm:$0xff]  }
 0x14b   :  { %v3930_v52 = vpop.f32.mrf.mxu1  ;;  %4247 = vmatmul.mubr.bf16.gmra.mxu1 %v10649_v54  ;;  %v3878_v55 = vadd.f32 %v3877_v51, %v11824_v24  ;;  %4262 = vmatpush1.bf16.msra.mxu0 %v10146_v40  ;;  %v10158_v24 = vld [vmem:[%s15359_s1 + $0x268] ss:$16 sps:$4 sm:$0xff]   ;;  %v10193_v33 = vld [vmem:[%s15359_s1 + $0x5cc] ss:$16 sps:$4 sm:$0xff]  }
 0x14c   :  { %4315 = vmatpush1.bf16.msra.mxu1 %v10149_v42  ;;  %v3879_v56 = vpop.f32.mrf.mxu0  ;;  %4263 = vmatprep.subr.bf16.mxu0 %v10154_v43  ;;  %v10196_v38 = vld [vmem:[%s15359_s1 + $0x3ac] ss:$16 sps:$4 sm:$0xff]   ;;  %v10194_v40 = vld [vmem:[%s15359_s1 + $0x3a8] ss:$16 sps:$4 sm:$0xff]  }
 0x14d   :  { %v3932_v57 = vpop.f32.mrf.mxu1  ;;  %4316 = vmatprep.subr.bf16.mxu1 %v10157_v60  ;;  %v3880_v61 = vadd.f32 %v3879_v56, %v11833_v30  ;;  %v12031_v62 = vadd.f32 %v3930_v52, %v3878_v55  ;;  %4289 = vmatprep.mubr.bf16.mxu0 %v10650_v0  ;;  %v10199_v39 = vld [vmem:[%s15359_s1 + $0x5ac] ss:$16 sps:$4 sm:$0xff]   ;;  %v10197_v41 = vld [vmem:[%s15359_s1 + $0x5a8] ss:$16 sps:$4 sm:$0xff]  }
 0x14e   :  { %4342 = vmatprep.mubr.bf16.mxu1 %v10651_v1  ;;  %v3881_v30 = vpop.f32.mrf.mxu0  ;;  %v10202_v42 = vld [vmem:[%s15359_s1 + $0x38c] ss:$16 sps:$4 sm:$0xff]   ;;  %v10200_v60 = vld [vmem:[%s15359_s1 + $0x388] ss:$16 sps:$4 sm:$0xff]  }
 0x14f   :  { %v3934_v2 = vpop.f32.mrf.mxu1  ;;  %v3882_v4 = vadd.f32 %v3881_v30, %v11841_v34  ;;  %v12046_v5 = vadd.f32 %v3932_v57, %v3880_v61  ;;  %4264 = vmatpush1.bf16.msra.mxu0 %v10152_v49  ;;  %v10164_v34 = vld [vmem:[%s15359_s1 + $0x248] ss:$16 sps:$4 sm:$0xff]   ;;  %v10205_v43 = vld [vmem:[%s15359_s1 + $0x58c] ss:$16 sps:$4 sm:$0xff]  }
 0x150   :  { %4317 = vmatpush1.bf16.msra.mxu1 %v10155_v53  ;;  %4265 = vmatprep.subr.bf16.mxu0 %v10160_v58  ;;  %v10203_v49 = vld [vmem:[%s15359_s1 + $0x588] ss:$16 sps:$4 sm:$0xff]   ;;  %v10208_v51 = vld [vmem:[%s15359_s1 + $0x36c] ss:$16 sps:$4 sm:$0xff]  }
 0x151   :  { %4318 = vmatprep.subr.bf16.mxu1 %v10163_v59  ;;  %v12054_v9 = vadd.f32 %v3934_v2, %v3882_v4  ;;  %v10211_v52 = vld [vmem:[%s15359_s1 + $0x56c] ss:$16 sps:$4 sm:$0xff]   ;;  %v10206_v53 = vld [vmem:[%s15359_s1 + $0x368] ss:$16 sps:$4 sm:$0xff]  }
 0x152   :  { %v10209_v54 = vld [vmem:[%s15359_s1 + $0x568] ss:$16 sps:$4 sm:$0xff]   ;;  %v10214_v55 = vld [vmem:[%s15359_s1 + $0x34c] ss:$16 sps:$4 sm:$0xff]  }
 0x153   :  { %4266 = vmatpush1.bf16.msra.mxu0 %v10158_v24  ;;  %v10217_v56 = vld [vmem:[%s15359_s1 + $0x54c] ss:$16 sps:$4 sm:$0xff]   ;;  %v10212_v57 = vld [vmem:[%s15359_s1 + $0x348] ss:$16 sps:$4 sm:$0xff]  }
 0x154   :  { %4319 = vmatpush1.bf16.msra.mxu1 %v10161_v63  ;;  %4267 = vmatprep.subr.bf16.mxu0 %v10166_v7  ;;  %v10215_v58 = vld [vmem:[%s15359_s1 + $0x548] ss:$16 sps:$4 sm:$0xff]   ;;  %v10220_v59 = vld [vmem:[%s15359_s1 + $0x32c] ss:$16 sps:$4 sm:$0xff]  }
 0x155   :  { %4320 = vmatprep.subr.bf16.mxu1 %v10169_v8  ;;  %v10223_v61 = vld [vmem:[%s15359_s1 + $0x52c] ss:$16 sps:$4 sm:$0xff]   ;;  %v10218_v24 = vld [vmem:[%s15359_s1 + $0x328] ss:$16 sps:$4 sm:$0xff]  }
 0x156   :  { %v10221_v63 = vld [vmem:[%s15359_s1 + $0x528] ss:$16 sps:$4 sm:$0xff]   ;;  %v10226_v0 = vld [vmem:[%s15359_s1 + $0x30c] ss:$16 sps:$4 sm:$0xff]  }
 0x157   :  { %4268 = vmatpush1.bf16.msra.mxu0 %v10164_v34  ;;  %v10229_v1 = vld [vmem:[%s15359_s1 + $0x50c] ss:$16 sps:$4 sm:$0xff]   ;;  %v10224_v30 = vld [vmem:[%s15359_s1 + $0x308] ss:$16 sps:$4 sm:$0xff]  }
 0x158   :  { %4321 = vmatpush1.bf16.msra.mxu1 %v10167_v11  ;;  %4269 = vmatprep.subr.bf16.mxu0 %v10172_v12  ;;  %v10227_v2 = vld [vmem:[%s15359_s1 + $0x508] ss:$16 sps:$4 sm:$0xff]   ;;  %v10232_v4 = vld [vmem:[%s15359_s1 + $0x6ec] ss:$16 sps:$4 sm:$0xff]   ;;  %v12194_v11 = vpop.f32.mrf.mxu0  ;;  %v12196_v12 = vpop.f32.mrf.mxu1 }
 0x159   :  { %4322 = vmatprep.subr.bf16.mxu1 %v10175_v13  ;;  %v10235_v7 = vld [vmem:[%s15359_s1 + $0x8ec] ss:$16 sps:$4 sm:$0xff]   ;;  %v10230_v8 = vld [vmem:[%s15359_s1 + $0x6e8] ss:$16 sps:$4 sm:$0xff]  }
 0x15a   :  { %v10233_v34 = vld [vmem:[%s15359_s1 + $0x8e8] ss:$16 sps:$4 sm:$0xff]   ;;  %v10238_v13 = vld [vmem:[%s15359_s1 + $0x6cc] ss:$16 sps:$4 sm:$0xff]  }
 0x15b   :  { %4270 = vmatpush1.bf16.msra.mxu0 %v10170_v15  ;;  %v10241_v15 = vld [vmem:[%s15359_s1 + $0x8cc] ss:$16 sps:$4 sm:$0xff]  }
 0x15c   :  { %4323 = vmatpush1.bf16.msra.mxu1 %v10173_v18  ;;  %4271 = vmatprep.subr.bf16.mxu0 %v10178_v19  ;;  %v10236_v18 = vld [vmem:[%s15359_s1 + $0x6c8] ss:$16 sps:$4 sm:$0xff]  }
 0x15d   :  { %4324 = vmatprep.subr.bf16.mxu1 %v10181_v20 }
 0x15f   :  { %4272 = vmatpush1.bf16.msra.mxu0 %v10176_v21  ;;  %v10652_v21 = vld [vmem:[%s15360_s0 + $0x8] ss:$72 sps:$4 sm:$0xff]  }
 0x160   :  { %4325 = vmatpush1.bf16.msra.mxu1 %v10179_v22  ;;  %4273 = vmatprep.subr.bf16.mxu0 %v10184_v25  ;;  %v10653_v22 = vld [vmem:[%s15360_s0 + $0x10] ss:$72 sps:$4 sm:$0xff]  }
 0x161   :  { %4326 = vmatprep.subr.bf16.mxu1 %v10187_v26  ;;  %v10239_v26 = vld [vmem:[%s15359_s1 + $0x8c8] ss:$16 sps:$4 sm:$0xff]  }
 0x163   :  { %4274 = vmatpush2.bf16.msra.mxu0 %v10182_v27 }
 0x164   :  { %4327 = vmatpush2.bf16.msra.mxu1 %v10185_v28  ;;  %4275 = vmatprep.subr.bf16.mxu0 %v10190_v50  ;;  %v10244_v50 = vld [vmem:[%s15359_s1 + $0x6ac] ss:$16 sps:$4 sm:$0xff]  }
 0x165   :  { %4328 = vmatprep.subr.bf16.mxu1 %v10193_v33 }
 0x167   :  { %4276 = vmatpush2.bf16.msra.mxu0 %v10188_v36  ;;  %v10654_v36 = vld [vmem:[%s15360_s0 + $0x9c] ss:$72 sps:$4 sm:$0xff]  }
 0x168   :  { %4329 = vmatpush2.bf16.msra.mxu1 %v10191_v37  ;;  %4277 = vmatprep.subr.bf16.mxu0 %v10196_v38  ;;  %v10655_v37 = vld [vmem:[%s15360_s0 + $0xa4] ss:$72 sps:$4 sm:$0xff]  }
 0x169   :  { %4330 = vmatprep.subr.bf16.mxu1 %v10199_v39 }
 0x16b   :  { %4278 = vmatpush2.bf16.msra.mxu0 %v10194_v40 }
 0x16c   :  { %4331 = vmatpush2.bf16.msra.mxu1 %v10197_v41  ;;  %4279 = vmatprep.subr.bf16.mxu0 %v10202_v42  ;;  %v10242_v41 = vld [vmem:[%s15359_s1 + $0x6a8] ss:$16 sps:$4 sm:$0xff]  }
 0x16d   :  { %4332 = vmatprep.subr.bf16.mxu1 %v10205_v43  ;;  %v10245_v42 = vld [vmem:[%s15359_s1 + $0x8a8] ss:$16 sps:$4 sm:$0xff]  }
 0x16f   :  { %4280 = vmatpush2.bf16.msra.mxu0 %v10200_v60 }
 0x170   :  { %4333 = vmatpush2.bf16.msra.mxu1 %v10203_v49  ;;  %4281 = vmatprep.subr.bf16.mxu0 %v10208_v51  ;;  %v10253_v49 = vld [vmem:[%s15359_s1 + $0x88c] ss:$16 sps:$4 sm:$0xff]  }
 0x171   :  { %4334 = vmatprep.subr.bf16.mxu1 %v10211_v52 }
 0x173   :  { %4282 = vmatpush2.bf16.msra.mxu0 %v10206_v53  ;;  %v10656_v53 = vld [vmem:[%s15360_s0 + $0x98] ss:$72 sps:$4 sm:$0xff]  }
 0x174   :  { %4335 = vmatpush2.bf16.msra.mxu1 %v10209_v54  ;;  %4283 = vmatprep.subr.bf16.mxu0 %v10214_v55  ;;  %v10657_v55 = vld [vmem:[%s15360_s0 + $0xa0] ss:$72 sps:$4 sm:$0xff]  }
 0x175   :  { %4336 = vmatprep.subr.bf16.mxu1 %v10217_v56 }
 0x177   :  { %4284 = vmatpush2.bf16.msra.mxu0 %v10212_v57  ;;  %v10248_v57 = vld [vmem:[%s15359_s1 + $0x688] ss:$16 sps:$4 sm:$0xff]  }
 0x178   :  { %4337 = vmatpush2.bf16.msra.mxu1 %v10215_v58  ;;  %4285 = vmatprep.subr.bf16.mxu0 %v10220_v59  ;;  %v10251_v58 = vld [vmem:[%s15359_s1 + $0x888] ss:$16 sps:$4 sm:$0xff]  }
 0x179   :  { %4338 = vmatprep.subr.bf16.mxu1 %v10223_v61 }
 0x17b   :  { %4286 = vmatpush2.bf16.msra.mxu0 %v10218_v24  ;;  %v10256_v24 = vld [vmem:[%s15359_s1 + $0x66c] ss:$16 sps:$4 sm:$0xff]  }
 0x17c   :  { %4339 = vmatpush2.bf16.msra.mxu1 %v10221_v63  ;;  %4287 = vmatprep.subr.bf16.mxu0 %v10226_v0 }
 0x17d   :  { %4340 = vmatprep.subr.bf16.mxu1 %v10229_v1  ;;  %v10658_v1 = vld [vmem:[%s15360_s0 + $0x1c] ss:$72 sps:$4 sm:$0xff]  }
 0x17f   :  { %4288 = vmatpush2.bf16.msra.mxu0 %v10224_v30  ;;  %v10659_v30 = vld [vmem:[%s15360_s0 + $0x24] ss:$72 sps:$4 sm:$0xff]  }
 0x180   :  { %4341 = vmatpush2.bf16.msra.mxu1 %v10227_v2  ;;  %4363 = vmatprep.subr.bf16.mxu0 %v10232_v4 }
 0x181   :  { %4416 = vmatprep.subr.bf16.mxu1 %v10235_v7 }
 0x182   :  { %v3973_v19 = vpop.f32.mrf.mxu0  ;;  %4290 = vmatmul.mubr.bf16.vlgmr.msra.gmra.mxu0 %v10652_v21  ;;  %v10271_v21 = vld [vmem:[%s15359_s1 + $0x82c] ss:$16 sps:$4 sm:$0xff]  }
 0x183   :  { %v4026_v20 = vpop.f32.mrf.mxu1  ;;  %4343 = vmatmul.mubr.bf16.vlgmr.msra.gmra.mxu1 %v10653_v22  ;;  %v3974_v25 = vadd.f32 %v3973_v19, %v11987_v35  ;;  %4364 = vmatpush1.bf16.msra.mxu0 %v10230_v8  ;;  %v10247_v35 = vld [vmem:[%s15359_s1 + $0x8ac] ss:$16 sps:$4 sm:$0xff]   ;;  %v10263_v19 = vld [vmem:[%s15359_s1 + $0x848] ss:$16 sps:$4 sm:$0xff]  }
 0x184   :  { %4417 = vmatpush1.bf16.msra.mxu1 %v10233_v34  ;;  %v12217_v27 = vpop.f32.mrf.mxu0  ;;  %4365 = vmatprep.subr.bf16.mxu0 %v10238_v13  ;;  %v10257_v34 = vld [vmem:[%s15359_s1 + $0x868] ss:$16 sps:$4 sm:$0xff]   ;;  %v10262_v13 = vld [vmem:[%s15359_s1 + $0x64c] ss:$16 sps:$4 sm:$0xff]  }
 0x185   :  { %v12219_v28 = vpop.f32.mrf.mxu1  ;;  %4418 = vmatprep.subr.bf16.mxu1 %v10241_v15  ;;  %v12227_v33 = vadd.f32 %v4026_v20, %v3974_v25  ;;  %4299 = vmatprep.mubr.bf16.mxu0 %v10654_v36  ;;  %v10268_v20 = vld [vmem:[%s15359_s1 + $0x62c] ss:$16 sps:$4 sm:$0xff]   ;;  %v10266_v22 = vld [vmem:[%s15359_s1 + $0x628] ss:$16 sps:$4 sm:$0xff]  }
 0x186   :  { %4352 = vmatprep.mubr.bf16.mxu1 %v10655_v37  ;;  %v3977_v38 = vpop.f32.mrf.mxu0  ;;  %v10269_v25 = vld [vmem:[%s15359_s1 + $0x828] ss:$16 sps:$4 sm:$0xff]   ;;  %v10280_v37 = vld [vmem:[%s15359_s1 + $0x7ec] ss:$16 sps:$4 sm:$0xff]  }
 0x187   :  { %v4030_v39 = vpop.f32.mrf.mxu1  ;;  %v3978_v40 = vadd.f32 %v3977_v38, %v12012_v48  ;;  %4366 = vmatpush1.bf16.msra.mxu0 %v10236_v18  ;;  %v10250_v48 = vld [vmem:[%s15359_s1 + $0x68c] ss:$16 sps:$4 sm:$0xff]   ;;  %v10260_v18 = vld [vmem:[%s15359_s1 + $0x648] ss:$16 sps:$4 sm:$0xff]  }
 0x188   :  { %4419 = vmatpush1.bf16.msra.mxu1 %v10239_v26  ;;  %v12242_v43 = vpop.f32.mrf.mxu0  ;;  %4367 = vmatprep.subr.bf16.mxu0 %v10244_v50  ;;  %v10274_v26 = vld [vmem:[%s15359_s1 + $0x60c] ss:$16 sps:$4 sm:$0xff]   ;;  %v10275_v36 = vld [vmem:[%s15359_s1 + $0x808] ss:$16 sps:$4 sm:$0xff]  }
 0x189   :  { %v12244_v60 = vpop.f32.mrf.mxu1  ;;  %4420 = vmatprep.subr.bf16.mxu1 %v10247_v35  ;;  %v12252_v51 = vadd.f32 %v4030_v39, %v3978_v40  ;;  %v10277_v50 = vld [vmem:[%s15359_s1 + $0x80c] ss:$16 sps:$4 sm:$0xff]   ;;  %v10272_v35 = vld [vmem:[%s15359_s1 + $0x608] ss:$16 sps:$4 sm:$0xff]  }
 0x18a   :  { %v3983_v52 = vpop.f32.mrf.mxu0  ;;  %4300 = vmatmul.mubr.bf16.gmra.mxu0 %v10656_v53  ;;  %v10283_v38 = vld [vmem:[%s15359_s1 + $0x9ec] ss:$16 sps:$4 sm:$0xff]   ;;  %v10278_v39 = vld [vmem:[%s15359_s1 + $0x7e8] ss:$16 sps:$4 sm:$0xff]  }
 0x18b   :  { %v4036_v54 = vpop.f32.mrf.mxu1  ;;  %4353 = vmatmul.mubr.bf16.gmra.mxu1 %v10657_v55  ;;  %v3984_v56 = vadd.f32 %v3983_v52, %v12031_v62  ;;  %4368 = vmatpush1.bf16.msra.mxu0 %v10242_v41  ;;  %v10259_v62 = vld [vmem:[%s15359_s1 + $0x86c] ss:$16 sps:$4 sm:$0xff]   ;;  %v10281_v40 = vld [vmem:[%s15359_s1 + $0x9e8] ss:$16 sps:$4 sm:$0xff]  }
 0x18c   :  { %4421 = vmatpush1.bf16.msra.mxu1 %v10245_v42  ;;  %v3985_v59 = vpop.f32.mrf.mxu0  ;;  %4369 = vmatprep.subr.bf16.mxu0 %v10250_v48  ;;  %v10286_v41 = vld [vmem:[%s15359_s1 + $0x7cc] ss:$16 sps:$4 sm:$0xff]   ;;  %v10284_v48 = vld [vmem:[%s15359_s1 + $0x7c8] ss:$16 sps:$4 sm:$0xff]  }
 0x18d   :  { %v4038_v61 = vpop.f32.mrf.mxu1  ;;  %4422 = vmatprep.subr.bf16.mxu1 %v10253_v49  ;;  %v3986_v63 = vadd.f32 %v3985_v59, %v12046_v5  ;;  %v12274_v0 = vadd.f32 %v4036_v54, %v3984_v56  ;;  %4395 = vmatprep.mubr.bf16.mxu0 %v10658_v1  ;;  %v10254_v5 = vld [vmem:[%s15359_s1 + $0x668] ss:$16 sps:$4 sm:$0xff]   ;;  %v10289_v42 = vld [vmem:[%s15359_s1 + $0x9cc] ss:$16 sps:$4 sm:$0xff]  }
 0x18e   :  { %4448 = vmatprep.mubr.bf16.mxu1 %v10659_v30  ;;  %v3987_v2 = vpop.f32.mrf.mxu0  ;;  %v10287_v49 = vld [vmem:[%s15359_s1 + $0x9c8] ss:$16 sps:$4 sm:$0xff]   ;;  %v10292_v52 = vld [vmem:[%s15359_s1 + $0x7ac] ss:$16 sps:$4 sm:$0xff]  }
 0x18f   :  { %v4040_v4 = vpop.f32.mrf.mxu1  ;;  %v3988_v7 = vadd.f32 %v3987_v2, %v12054_v9  ;;  %v12283_v8 = vadd.f32 %v4038_v61, %v3986_v63  ;;  %4370 = vmatpush1.bf16.msra.mxu0 %v10248_v57  ;;  %v10265_v9 = vld [vmem:[%s15359_s1 + $0x84c] ss:$16 sps:$4 sm:$0xff]   ;;  %v10290_v54 = vld [vmem:[%s15359_s1 + $0x7a8] ss:$16 sps:$4 sm:$0xff]  }
 0x190   :  { %4423 = vmatpush1.bf16.msra.mxu1 %v10251_v58  ;;  %4371 = vmatprep.subr.bf16.mxu0 %v10256_v24  ;;  %v10295_v53 = vld [vmem:[%s15359_s1 + $0x9ac] ss:$16 sps:$4 sm:$0xff]   ;;  %v10293_v55 = vld [vmem:[%s15359_s1 + $0x9a8] ss:$16 sps:$4 sm:$0xff]  }
 0x191   :  { %4424 = vmatprep.subr.bf16.mxu1 %v10259_v62  ;;  %v12297_v15 = vadd.f32 %v4040_v4, %v3988_v7  ;;  %v10298_v56 = vld [vmem:[%s15359_s1 + $0x78c] ss:$16 sps:$4 sm:$0xff]   ;;  %v10296_v58 = vld [vmem:[%s15359_s1 + $0x788] ss:$16 sps:$4 sm:$0xff]  }
 0x192   :  { %v10301_v57 = vld [vmem:[%s15359_s1 + $0x98c] ss:$16 sps:$4 sm:$0xff]   ;;  %v10299_v59 = vld [vmem:[%s15359_s1 + $0x988] ss:$16 sps:$4 sm:$0xff]  }
 0x193   :  { %4372 = vmatpush1.bf16.msra.mxu0 %v10254_v5  ;;  %v10304_v61 = vld [vmem:[%s15359_s1 + $0x76c] ss:$16 sps:$4 sm:$0xff]   ;;  %v10302_v62 = vld [vmem:[%s15359_s1 + $0x768] ss:$16 sps:$4 sm:$0xff]  }
 0x194   :  { %4425 = vmatpush1.bf16.msra.mxu1 %v10257_v34  ;;  %4373 = vmatprep.subr.bf16.mxu0 %v10262_v13  ;;  %v10307_v24 = vld [vmem:[%s15359_s1 + $0x96c] ss:$16 sps:$4 sm:$0xff]   ;;  %v10305_v63 = vld [vmem:[%s15359_s1 + $0x968] ss:$16 sps:$4 sm:$0xff]  }
 0x195   :  { %4426 = vmatprep.subr.bf16.mxu1 %v10265_v9  ;;  %v10310_v1 = vld [vmem:[%s15359_s1 + $0x74c] ss:$16 sps:$4 sm:$0xff]   ;;  %v10308_v2 = vld [vmem:[%s15359_s1 + $0x748] ss:$16 sps:$4 sm:$0xff]  }
 0x196   :  { %v10313_v30 = vld [vmem:[%s15359_s1 + $0x94c] ss:$16 sps:$4 sm:$0xff]   ;;  %v10311_v4 = vld [vmem:[%s15359_s1 + $0x948] ss:$16 sps:$4 sm:$0xff]  }
 0x197   :  { %4374 = vmatpush1.bf16.msra.mxu0 %v10260_v18  ;;  %v10316_v7 = vld [vmem:[%s15359_s1 + $0x72c] ss:$16 sps:$4 sm:$0xff]   ;;  %v10314_v34 = vld [vmem:[%s15359_s1 + $0x728] ss:$16 sps:$4 sm:$0xff]  }
 0x198   :  { %4427 = vmatpush1.bf16.msra.mxu1 %v10263_v19  ;;  %4375 = vmatprep.subr.bf16.mxu0 %v10268_v20  ;;  %v10319_v5 = vld [vmem:[%s15359_s1 + $0x92c] ss:$16 sps:$4 sm:$0xff]   ;;  %v10317_v13 = vld [vmem:[%s15359_s1 + $0x928] ss:$16 sps:$4 sm:$0xff]  }
 0x199   :  { %4428 = vmatprep.subr.bf16.mxu1 %v10271_v21  ;;  %v10322_v9 = vld [vmem:[%s15359_s1 + $0x70c] ss:$16 sps:$4 sm:$0xff]   ;;  %v10320_v19 = vld [vmem:[%s15359_s1 + $0x708] ss:$16 sps:$4 sm:$0xff]  }
 0x19a   :  { %v10325_v18 = vld [vmem:[%s15359_s1 + $0x90c] ss:$16 sps:$4 sm:$0xff]   ;;  %v10323_v20 = vld [vmem:[%s15359_s1 + $0x908] ss:$16 sps:$4 sm:$0xff]  }
 0x19b   :  { %4376 = vmatpush1.bf16.msra.mxu0 %v10266_v22  ;;  %v10328_v21 = vld [vmem:[%s15359_s1 + $0xaec] ss:$16 sps:$4 sm:$0xff]  }
 0x19c   :  { %4429 = vmatpush1.bf16.msra.mxu1 %v10269_v25  ;;  %4377 = vmatprep.subr.bf16.mxu0 %v10274_v26  ;;  %v10331_v22 = vld [vmem:[%s15359_s1 + $0xcec] ss:$16 sps:$4 sm:$0xff]   ;;  %v10326_v25 = vld [vmem:[%s15359_s1 + $0xae8] ss:$16 sps:$4 sm:$0xff]  }
 0x19d   :  { %4430 = vmatprep.subr.bf16.mxu1 %v10277_v50  ;;  %v10329_v26 = vld [vmem:[%s15359_s1 + $0xce8] ss:$16 sps:$4 sm:$0xff]   ;;  %v12437_v50 = vpop.f32.mrf.mxu0 }
 0x19f   :  { %4378 = vmatpush1.bf16.msra.mxu0 %v10272_v35  ;;  %v10334_v35 = vld [vmem:[%s15359_s1 + $0xacc] ss:$16 sps:$4 sm:$0xff]  }
 0x1a0   :  { %4431 = vmatpush1.bf16.msra.mxu1 %v10275_v36  ;;  %4379 = vmatprep.subr.bf16.mxu0 %v10280_v37  ;;  %v10337_v36 = vld [vmem:[%s15359_s1 + $0xccc] ss:$16 sps:$4 sm:$0xff]  }
 0x1a1   :  { %4432 = vmatprep.subr.bf16.mxu1 %v10283_v38  ;;  %v10660_v38 = vld [vmem:[%s15360_s0 + $0x18] ss:$72 sps:$4 sm:$0xff]  }
 0x1a3   :  { %4380 = vmatpush2.bf16.msra.mxu0 %v10278_v39  ;;  %v10661_v39 = vld [vmem:[%s15360_s0 + $0x20] ss:$72 sps:$4 sm:$0xff]  }
 0x1a4   :  { %4433 = vmatpush2.bf16.msra.mxu1 %v10281_v40  ;;  %4381 = vmatprep.subr.bf16.mxu0 %v10286_v41  ;;  %v10332_v41 = vld [vmem:[%s15359_s1 + $0xac8] ss:$16 sps:$4 sm:$0xff]  }
 0x1a5   :  { %4434 = vmatprep.subr.bf16.mxu1 %v10289_v42  ;;  %v10335_v42 = vld [vmem:[%s15359_s1 + $0xcc8] ss:$16 sps:$4 sm:$0xff]  }
 0x1a7   :  { %4382 = vmatpush2.bf16.msra.mxu0 %v10284_v48 }
 0x1a8   :  { %4435 = vmatpush2.bf16.msra.mxu1 %v10287_v49  ;;  %4383 = vmatprep.subr.bf16.mxu0 %v10292_v52  ;;  %v10340_v49 = vld [vmem:[%s15359_s1 + $0xaac] ss:$16 sps:$4 sm:$0xff]  }
 0x1a9   :  { %4436 = vmatprep.subr.bf16.mxu1 %v10295_v53  ;;  %v10662_v52 = vld [vmem:[%s15360_s0 + $0xac] ss:$72 sps:$4 sm:$0xff]  }
 0x1aa   :  { %v10663_v53 = vld [vmem:[%s15360_s0 + $0xb4] ss:$72 sps:$4 sm:$0xff]  }
 0x1ab   :  { %4384 = vmatpush2.bf16.msra.mxu0 %v10290_v54 }
 0x1ac   :  { %4437 = vmatpush2.bf16.msra.mxu1 %v10293_v55  ;;  %4385 = vmatprep.subr.bf16.mxu0 %v10298_v56  ;;  %v10338_v56 = vld [vmem:[%s15359_s1 + $0xaa8] ss:$16 sps:$4 sm:$0xff]  }
 0x1ad   :  { %4438 = vmatprep.subr.bf16.mxu1 %v10301_v57  ;;  %v10341_v57 = vld [vmem:[%s15359_s1 + $0xca8] ss:$16 sps:$4 sm:$0xff]  }
 0x1af   :  { %4386 = vmatpush2.bf16.msra.mxu0 %v10296_v58 }
 0x1b0   :  { %4439 = vmatpush2.bf16.msra.mxu1 %v10299_v59  ;;  %4387 = vmatprep.subr.bf16.mxu0 %v10304_v61  ;;  %v10346_v59 = vld [vmem:[%s15359_s1 + $0xa8c] ss:$16 sps:$4 sm:$0xff]  }
 0x1b1   :  { %4440 = vmatprep.subr.bf16.mxu1 %v10307_v24  ;;  %v10664_v24 = vld [vmem:[%s15360_s0 + $0xa8] ss:$72 sps:$4 sm:$0xff]  }
 0x1b3   :  { %4388 = vmatpush2.bf16.msra.mxu0 %v10302_v62  ;;  %v10665_v62 = vld [vmem:[%s15360_s0 + $0xb0] ss:$72 sps:$4 sm:$0xff]  }
 0x1b4   :  { %4441 = vmatpush2.bf16.msra.mxu1 %v10305_v63  ;;  %4389 = vmatprep.subr.bf16.mxu0 %v10310_v1  ;;  %v10344_v1 = vld [vmem:[%s15359_s1 + $0xa88] ss:$16 sps:$4 sm:$0xff]  }
 0x1b5   :  { %4442 = vmatprep.subr.bf16.mxu1 %v10313_v30  ;;  %v10347_v30 = vld [vmem:[%s15359_s1 + $0xc88] ss:$16 sps:$4 sm:$0xff]  }
 0x1b7   :  { %4390 = vmatpush2.bf16.msra.mxu0 %v10308_v2 }
 0x1b8   :  { %4443 = vmatpush2.bf16.msra.mxu1 %v10311_v4  ;;  %4391 = vmatprep.subr.bf16.mxu0 %v10316_v7  ;;  %v10352_v4 = vld [vmem:[%s15359_s1 + $0xa6c] ss:$16 sps:$4 sm:$0xff]  }
 0x1b9   :  { %4444 = vmatprep.subr.bf16.mxu1 %v10319_v5  ;;  %v10666_v5 = vld [vmem:[%s15360_s0 + $0x2c] ss:$72 sps:$4 sm:$0xff]  }
 0x1bb   :  { %4392 = vmatpush2.bf16.msra.mxu0 %v10314_v34  ;;  %v10667_v34 = vld [vmem:[%s15360_s0 + $0x34] ss:$72 sps:$4 sm:$0xff]  }
 0x1bc   :  { %4445 = vmatpush2.bf16.msra.mxu1 %v10317_v13  ;;  %4393 = vmatprep.subr.bf16.mxu0 %v10322_v9 }
 0x1bd   :  { %4446 = vmatprep.subr.bf16.mxu1 %v10325_v18  ;;  %v10353_v18 = vld [vmem:[%s15359_s1 + $0xc68] ss:$16 sps:$4 sm:$0xff]  }
 0x1bf   :  { %4394 = vmatpush2.bf16.msra.mxu0 %v10320_v19  ;;  %v10358_v19 = vld [vmem:[%s15359_s1 + $0xa4c] ss:$16 sps:$4 sm:$0xff]  }
 0x1c0   :  { %4447 = vmatpush2.bf16.msra.mxu1 %v10323_v20  ;;  %4469 = vmatprep.subr.bf16.mxu0 %v10328_v21  ;;  %v10356_v20 = vld [vmem:[%s15359_s1 + $0xa48] ss:$16 sps:$4 sm:$0xff]  }
 0x1c1   :  { %4522 = vmatprep.subr.bf16.mxu1 %v10331_v22  ;;  %v10359_v21 = vld [vmem:[%s15359_s1 + $0xc48] ss:$16 sps:$4 sm:$0xff]   ;;  %v10364_v22 = vld [vmem:[%s15359_s1 + $0xa2c] ss:$16 sps:$4 sm:$0xff]  }
 0x1c2   :  { %v4079_v37 = vpop.f32.mrf.mxu0  ;;  %4396 = vmatmul.mubr.bf16.vlgmr.msra.gmra.mxu0 %v10660_v38  ;;  %v10368_v38 = vld [vmem:[%s15359_s1 + $0xa08] ss:$16 sps:$4 sm:$0xff]  }
 0x1c3   :  { %4449 = vmatmul.mubr.bf16.vlgmr.msra.gmra.mxu1 %v10661_v39  ;;  %v12452_v40 = vadd.f32 %v4079_v37, %v12227_v33  ;;  %4470 = vmatpush1.bf16.msra.mxu0 %v10326_v25  ;;  %v10343_v33 = vld [vmem:[%s15359_s1 + $0xcac] ss:$16 sps:$4 sm:$0xff]   ;;  %v10371_v39 = vld [vmem:[%s15359_s1 + $0xc08] ss:$16 sps:$4 sm:$0xff]  }
 0x1c4   :  { %4523 = vmatpush1.bf16.msra.mxu1 %v10329_v26  ;;  %v12460_v48 = vpop.f32.mrf.mxu0  ;;  %4471 = vmatprep.subr.bf16.mxu0 %v10334_v35  ;;  %v10367_v25 = vld [vmem:[%s15359_s1 + $0xc2c] ss:$16 sps:$4 sm:$0xff]   ;;  %v10362_v26 = vld [vmem:[%s15359_s1 + $0xa28] ss:$16 sps:$4 sm:$0xff]  }
 0x1c5   :  { %4524 = vmatprep.subr.bf16.mxu1 %v10337_v36  ;;  %4405 = vmatprep.mubr.bf16.mxu0 %v10662_v52  ;;  %v10365_v35 = vld [vmem:[%s15359_s1 + $0xc28] ss:$16 sps:$4 sm:$0xff]   ;;  %v10370_v36 = vld [vmem:[%s15359_s1 + $0xa0c] ss:$16 sps:$4 sm:$0xff]  }
 0x1c6   :  { %4458 = vmatprep.mubr.bf16.mxu1 %v10663_v53  ;;  %v4083_v54 = vpop.f32.mrf.mxu0  ;;  %v10373_v37 = vld [vmem:[%s15359_s1 + $0xc0c] ss:$16 sps:$4 sm:$0xff]  }
 0x1c7   :  { %v12475_v55 = vadd.f32 %v4083_v54, %v12252_v51  ;;  %4472 = vmatpush1.bf16.msra.mxu0 %v10332_v41  ;;  %v10349_v51 = vld [vmem:[%s15359_s1 + $0xc8c] ss:$16 sps:$4 sm:$0xff]   ;;  %v10380_v54 = vld [vmem:[%s15359_s1 + $0xbc8] ss:$16 sps:$4 sm:$0xff]  }
 0x1c8   :  { %4525 = vmatpush1.bf16.msra.mxu1 %v10335_v42  ;;  %v12483_v58 = vpop.f32.mrf.mxu0  ;;  %4473 = vmatprep.subr.bf16.mxu0 %v10340_v49  ;;  %v10376_v41 = vld [vmem:[%s15359_s1 + $0xbec] ss:$16 sps:$4 sm:$0xff]   ;;  %v10374_v49 = vld [vmem:[%s15359_s1 + $0xbe8] ss:$16 sps:$4 sm:$0xff]  }
 0x1c9   :  { %4526 = vmatprep.subr.bf16.mxu1 %v10343_v33  ;;  %v10379_v42 = vld [vmem:[%s15359_s1 + $0xdec] ss:$16 sps:$4 sm:$0xff]   ;;  %v10377_v33 = vld [vmem:[%s15359_s1 + $0xde8] ss:$16 sps:$4 sm:$0xff]  }
 0x1ca   :  { %v4089_v61 = vpop.f32.mrf.mxu0  ;;  %4406 = vmatmul.mubr.bf16.gmra.mxu0 %v10664_v24  ;;  %v10382_v52 = vld [vmem:[%s15359_s1 + $0xbcc] ss:$16 sps:$4 sm:$0xff]  }
 0x1cb   :  { %4459 = vmatmul.mubr.bf16.gmra.mxu1 %v10665_v62  ;;  %v12498_v63 = vadd.f32 %v4089_v61, %v12274_v0  ;;  %4474 = vmatpush1.bf16.msra.mxu0 %v10338_v56  ;;  %v10355_v0 = vld [vmem:[%s15359_s1 + $0xc6c] ss:$16 sps:$4 sm:$0xff]   ;;  %v10383_v56 = vld [vmem:[%s15359_s1 + $0xdc8] ss:$16 sps:$4 sm:$0xff]  }
 0x1cc   :  { %4527 = vmatpush1.bf16.msra.mxu1 %v10341_v57  ;;  %v4091_v2 = vpop.f32.mrf.mxu0  ;;  %4475 = vmatprep.subr.bf16.mxu0 %v10346_v59  ;;  %v10385_v53 = vld [vmem:[%s15359_s1 + $0xdcc] ss:$16 sps:$4 sm:$0xff]   ;;  %v10389_v61 = vld [vmem:[%s15359_s1 + $0xda8] ss:$16 sps:$4 sm:$0xff]  }
 0x1cd   :  { %4528 = vmatprep.subr.bf16.mxu1 %v10349_v51  ;;  %v12513_v7 = vadd.f32 %v4091_v2, %v12283_v8  ;;  %4501 = vmatprep.mubr.bf16.mxu0 %v10666_v5  ;;  %v10350_v8 = vld [vmem:[%s15359_s1 + $0xa68] ss:$16 sps:$4 sm:$0xff]   ;;  %v10388_v57 = vld [vmem:[%s15359_s1 + $0xbac] ss:$16 sps:$4 sm:$0xff]  }
 0x1ce   :  { %4554 = vmatprep.mubr.bf16.mxu1 %v10667_v34  ;;  %v4093_v13 = vpop.f32.mrf.mxu0  ;;  %v10391_v59 = vld [vmem:[%s15359_s1 + $0xdac] ss:$16 sps:$4 sm:$0xff]   ;;  %v10386_v51 = vld [vmem:[%s15359_s1 + $0xba8] ss:$16 sps:$4 sm:$0xff]  }
 0x1cf   :  { %v12522_v9 = vadd.f32 %v4093_v13, %v12297_v15  ;;  %4476 = vmatpush1.bf16.msra.mxu0 %v10344_v1  ;;  %v10361_v15 = vld [vmem:[%s15359_s1 + $0xc4c] ss:$16 sps:$4 sm:$0xff]   ;;  %v10392_v1 = vld [vmem:[%s15359_s1 + $0xb88] ss:$16 sps:$4 sm:$0xff]  }
 0x1d0   :  { %4529 = vmatpush1.bf16.msra.mxu1 %v10347_v30  ;;  %4477 = vmatprep.subr.bf16.mxu0 %v10352_v4  ;;  %v10394_v24 = vld [vmem:[%s15359_s1 + $0xb8c] ss:$16 sps:$4 sm:$0xff]   ;;  %v10395_v30 = vld [vmem:[%s15359_s1 + $0xd88] ss:$16 sps:$4 sm:$0xff]  }
 0x1d1   :  { %4530 = vmatprep.subr.bf16.mxu1 %v10355_v0  ;;  %v10397_v62 = vld [vmem:[%s15359_s1 + $0xd8c] ss:$16 sps:$4 sm:$0xff]   ;;  %v10398_v0 = vld [vmem:[%s15359_s1 + $0xb68] ss:$16 sps:$4 sm:$0xff]  }
 0x1d2   :  { %v10400_v2 = vld [vmem:[%s15359_s1 + $0xb6c] ss:$16 sps:$4 sm:$0xff]   ;;  %v10401_v5 = vld [vmem:[%s15359_s1 + $0xd68] ss:$16 sps:$4 sm:$0xff]  }
 0x1d3   :  { %4478 = vmatpush1.bf16.msra.mxu0 %v10350_v8  ;;  %v10403_v4 = vld [vmem:[%s15359_s1 + $0xd6c] ss:$16 sps:$4 sm:$0xff]   ;;  %v12632_v8 = vpop.f32.mrf.mxu1 }
 0x1d4   :  { %4531 = vmatpush1.bf16.msra.mxu1 %v10353_v18  ;;  %4479 = vmatprep.subr.bf16.mxu0 %v10358_v19  ;;  %v10406_v34 = vld [vmem:[%s15359_s1 + $0xb4c] ss:$16 sps:$4 sm:$0xff]   ;;  %v10404_v18 = vld [vmem:[%s15359_s1 + $0xb48] ss:$16 sps:$4 sm:$0xff]  }
 0x1d5   :  { %4532 = vmatprep.subr.bf16.mxu1 %v10361_v15  ;;  %v10409_v13 = vld [vmem:[%s15359_s1 + $0xd4c] ss:$16 sps:$4 sm:$0xff]   ;;  %v10407_v19 = vld [vmem:[%s15359_s1 + $0xd48] ss:$16 sps:$4 sm:$0xff]   ;;  %v4132_v15 = vpop.f32.mrf.mxu1 }
 0x1d7   :  { %4480 = vmatpush1.bf16.msra.mxu0 %v10356_v20  ;;  %v10412_v20 = vld [vmem:[%s15359_s1 + $0xb2c] ss:$16 sps:$4 sm:$0xff]  }
 0x1d8   :  { %4533 = vmatpush1.bf16.msra.mxu1 %v10359_v21  ;;  %4481 = vmatprep.subr.bf16.mxu0 %v10364_v22  ;;  %v10415_v21 = vld [vmem:[%s15359_s1 + $0xd2c] ss:$16 sps:$4 sm:$0xff]   ;;  %v10410_v22 = vld [vmem:[%s15359_s1 + $0xb28] ss:$16 sps:$4 sm:$0xff]  }
 0x1d9   :  { %4534 = vmatprep.subr.bf16.mxu1 %v10367_v25  ;;  %v10413_v25 = vld [vmem:[%s15359_s1 + $0xd28] ss:$16 sps:$4 sm:$0xff]  }
 0x1db   :  { %4482 = vmatpush1.bf16.msra.mxu0 %v10362_v26  ;;  %v12652_v26 = vpop.f32.mrf.mxu1 }
 0x1dc   :  { %4535 = vmatpush1.bf16.msra.mxu1 %v10365_v35  ;;  %4483 = vmatprep.subr.bf16.mxu0 %v10370_v36  ;;  %v10418_v35 = vld [vmem:[%s15359_s1 + $0xb0c] ss:$16 sps:$4 sm:$0xff]  }
 0x1dd   :  { %4536 = vmatprep.subr.bf16.mxu1 %v10373_v37  ;;  %v10421_v36 = vld [vmem:[%s15359_s1 + $0xd0c] ss:$16 sps:$4 sm:$0xff]   ;;  %v10416_v37 = vld [vmem:[%s15359_s1 + $0xb08] ss:$16 sps:$4 sm:$0xff]  }
 0x1df   :  { %4484 = vmatpush1.bf16.msra.mxu0 %v10368_v38  ;;  %v10419_v38 = vld [vmem:[%s15359_s1 + $0xd08] ss:$16 sps:$4 sm:$0xff]  }
 0x1e0   :  { %4537 = vmatpush1.bf16.msra.mxu1 %v10371_v39  ;;  %4485 = vmatprep.subr.bf16.mxu0 %v10376_v41  ;;  %v4136_v39 = vpop.f32.mrf.mxu1  ;;  %v10424_v41 = vld [vmem:[%s15359_s1 + $0xeec] ss:$16 sps:$4 sm:$0xff]  }
 0x1e1   :  { %4538 = vmatprep.subr.bf16.mxu1 %v10379_v42  ;;  %v10427_v42 = vld [vmem:[%s15359_s1 + $0x10ec] ss:$16 sps:$4 sm:$0xff]  }
 0x1e3   :  { %4486 = vmatpush2.bf16.msra.mxu0 %v10374_v49  ;;  %v10422_v49 = vld [vmem:[%s15359_s1 + $0xee8] ss:$16 sps:$4 sm:$0xff]  }
 0x1e4   :  { %4539 = vmatpush2.bf16.msra.mxu1 %v10377_v33  ;;  %4487 = vmatprep.subr.bf16.mxu0 %v10382_v52  ;;  %v10425_v33 = vld [vmem:[%s15359_s1 + $0x10e8] ss:$16 sps:$4 sm:$0xff]   ;;  %v12678_v52 = vpop.f32.mrf.mxu1 }
 0x1e5   :  { %4540 = vmatprep.subr.bf16.mxu1 %v10385_v53  ;;  %v12680_v53 = vpop.f32.mrf.mxu0 }
 0x1e7   :  { %4488 = vmatpush2.bf16.msra.mxu0 %v10380_v54  ;;  %v10430_v54 = vld [vmem:[%s15359_s1 + $0xecc] ss:$16 sps:$4 sm:$0xff]  }
 0x1e8   :  { %4541 = vmatpush2.bf16.msra.mxu1 %v10383_v56  ;;  %4489 = vmatprep.subr.bf16.mxu0 %v10388_v57  ;;  %v10433_v56 = vld [vmem:[%s15359_s1 + $0x10cc] ss:$16 sps:$4 sm:$0xff]   ;;  %v4142_v57 = vpop.f32.mrf.mxu1 }
 0x1e9   :  { %4542 = vmatprep.subr.bf16.mxu1 %v10391_v59 }
 0x1eb   :  { %4490 = vmatpush2.bf16.msra.mxu0 %v10386_v51  ;;  %v10668_v51 = vld [vmem:[%s15360_s0 + $0x28] ss:$72 sps:$4 sm:$0xff]  }
 0x1ec   :  { %4543 = vmatpush2.bf16.msra.mxu1 %v10389_v61  ;;  %4491 = vmatprep.subr.bf16.mxu0 %v10394_v24  ;;  %v10669_v61 = vld [vmem:[%s15360_s0 + $0x30] ss:$72 sps:$4 sm:$0xff]   ;;  %v4133_v24 = vadd.f32 %v4132_v15, %v12452_v40  ;;  %v10439_v40 = vld [vmem:[%s15359_s1 + $0x10ac] ss:$16 sps:$4 sm:$0xff]  }
 0x1ed   :  { %4544 = vmatprep.subr.bf16.mxu1 %v10397_v62  ;;  %v10428_v62 = vld [vmem:[%s15359_s1 + $0xec8] ss:$16 sps:$4 sm:$0xff]  }
 0x1ee   :  { %v10437_v15 = vld [vmem:[%s15359_s1 + $0x10a8] ss:$16 sps:$4 sm:$0xff]  }
 0x1ef   :  { %4492 = vmatpush2.bf16.msra.mxu0 %v10392_v1  ;;  %v10431_v1 = vld [vmem:[%s15359_s1 + $0x10c8] ss:$16 sps:$4 sm:$0xff]  }
 0x1f0   :  { %4545 = vmatpush2.bf16.msra.mxu1 %v10395_v30  ;;  %4493 = vmatprep.subr.bf16.mxu0 %v10400_v2  ;;  %v10436_v2 = vld [vmem:[%s15359_s1 + $0xeac] ss:$16 sps:$4 sm:$0xff]  }
 0x1f1   :  { %4546 = vmatprep.subr.bf16.mxu1 %v10403_v4  ;;  %v4137_v4 = vadd.f32 %v4136_v39, %v12475_v55  ;;  %v10434_v55 = vld [vmem:[%s15359_s1 + $0xea8] ss:$16 sps:$4 sm:$0xff]  }
 0x1f2   :  { %v10673_v39 = vld [vmem:[%s15360_s0 + $0xc0] ss:$72 sps:$4 sm:$0xff]  }
 0x1f3   :  { %4494 = vmatpush2.bf16.msra.mxu0 %v10398_v0 }
 0x1f4   :  { %4547 = vmatpush2.bf16.msra.mxu1 %v10401_v5  ;;  %4495 = vmatprep.subr.bf16.mxu0 %v10406_v34  ;;  %v10670_v5 = vld [vmem:[%s15360_s0 + $0xbc] ss:$72 sps:$4 sm:$0xff]  }
 0x1f5   :  { %4548 = vmatprep.subr.bf16.mxu1 %v10409_v13  ;;  %v10671_v34 = vld [vmem:[%s15360_s0 + $0xc4] ss:$72 sps:$4 sm:$0xff]   ;;  %v12716_v13 = vpop.f32.mrf.mxu1 }
 0x1f7   :  { %4496 = vmatpush2.bf16.msra.mxu0 %v10404_v18 }
 0x1f8   :  { %4549 = vmatpush2.bf16.msra.mxu1 %v10407_v19  ;;  %4497 = vmatprep.subr.bf16.mxu0 %v10412_v20 }
 0x1f9   :  { %4550 = vmatprep.subr.bf16.mxu1 %v10415_v21  ;;  %v10442_v21 = vld [vmem:[%s15359_s1 + $0xe8c] ss:$16 sps:$4 sm:$0xff]  }
 0x1fb   :  { %4498 = vmatpush2.bf16.msra.mxu0 %v10410_v22  ;;  %v10445_v22 = vld [vmem:[%s15359_s1 + $0x108c] ss:$16 sps:$4 sm:$0xff]  }
 0x1fc   :  { %4551 = vmatpush2.bf16.msra.mxu1 %v10413_v25  ;;  %4499 = vmatprep.subr.bf16.mxu0 %v10418_v35 }
 0x1fd   :  { %4552 = vmatprep.subr.bf16.mxu1 %v10421_v36  ;;  %v4146_v36 = vpop.f32.mrf.mxu1 }
 0x1ff   :  { %4500 = vmatpush2.bf16.msra.mxu0 %v10416_v37 }
 0x200   :  { %4553 = vmatpush2.bf16.msra.mxu1 %v10419_v38  ;;  %4575 = vmatprep.subr.bf16.mxu0 %v10424_v41  ;;  %v10672_v38 = vld [vmem:[%s15360_s0 + $0xb8] ss:$72 sps:$4 sm:$0xff]   ;;  %v4143_v41 = vadd.f32 %v4142_v57, %v12498_v63  ;;  %v10448_v63 = vld [vmem:[%s15359_s1 + $0xe6c] ss:$16 sps:$4 sm:$0xff]   ;;  %v4147_v57 = vadd.f32 %v4146_v36, %v12522_v9 }
 0x201   :  { %4628 = vmatprep.subr.bf16.mxu1 %v10427_v42  ;;  %v10449_v9 = vld [vmem:[%s15359_s1 + $0x1068] ss:$16 sps:$4 sm:$0xff]  }
 0x202   :  { %v4185_v59 = vpop.f32.mrf.mxu0  ;;  %4502 = vmatmul.mubr.bf16.vlgmr.msra.gmra.mxu0 %v10668_v51  ;;  %v10674_v51 = vld [vmem:[%s15360_s0 + $0x3c] ss:$72 sps:$4 sm:$0xff]   ;;  %v10467_v36 = vld [vmem:[%s15359_s1 + $0x1008] ss:$16 sps:$4 sm:$0xff]  }
 0x203   :  { %4555 = vmatmul.mubr.bf16.vlgmr.msra.gmra.mxu1 %v10669_v61  ;;  %4576 = vmatpush1.bf16.msra.mxu0 %v10422_v49  ;;  %v4186_v0 = vadd.f32 %v4185_v59, %v4133_v24  ;;  %v10440_v49 = vld [vmem:[%s15359_s1 + $0xe88] ss:$16 sps:$4 sm:$0xff]   ;;  %v10675_v61 = vld [vmem:[%s15360_s0 + $0x44] ss:$72 sps:$4 sm:$0xff]  }
 0x204   :  { %4629 = vmatpush1.bf16.msra.mxu1 %v10425_v33  ;;  %v12701_v30 = vpop.f32.mrf.mxu0  ;;  %4577 = vmatprep.subr.bf16.mxu0 %v10430_v54  ;;  %v10443_v33 = vld [vmem:[%s15359_s1 + $0x1088] ss:$16 sps:$4 sm:$0xff]  }
 0x205   :  { %4630 = vmatprep.subr.bf16.mxu1 %v10433_v56  ;;  %4511 = vmatprep.mubr.bf16.mxu0 %v10670_v5  ;;  %v4681_v25 = vmax.f32 %v4186_v0, 0.0  ;;  %v10451_v56 = vld [vmem:[%s15359_s1 + $0x106c] ss:$16 sps:$4 sm:$0xff]  }
 0x206   :  { %4564 = vmatprep.mubr.bf16.mxu1 %v10671_v34  ;;  %v4189_v18 = vpop.f32.mrf.mxu0  ;;  %v10452_v34 = vld [vmem:[%s15359_s1 + $0xe48] ss:$16 sps:$4 sm:$0xff]  }
 0x207   :  { %v4190_v19 = vadd.f32 %v4189_v18, %v4137_v4  ;;  %4578 = vmatpush1.bf16.msra.mxu0 %v10428_v62  ;;  %v10455_v18 = vld [vmem:[%s15359_s1 + $0x1048] ss:$16 sps:$4 sm:$0xff]  }
 0x208   :  { %4631 = vmatpush1.bf16.msra.mxu1 %v10431_v1  ;;  %v12724_v20 = vpop.f32.mrf.mxu0  ;;  %4579 = vmatprep.subr.bf16.mxu0 %v10436_v2  ;;  %v10446_v1 = vld [vmem:[%s15359_s1 + $0xe68] ss:$16 sps:$4 sm:$0xff]   ;;  %v10454_v2 = vld [vmem:[%s15359_s1 + $0xe4c] ss:$16 sps:$4 sm:$0xff]  }
 0x209   :  { %4632 = vmatprep.subr.bf16.mxu1 %v10439_v40  ;;  %v4685_v35 = vmax.f32 %v4190_v19, 0.0  ;;  %v10457_v40 = vld [vmem:[%s15359_s1 + $0x104c] ss:$16 sps:$4 sm:$0xff]  }
 0x20a   :  { %v4195_v37 = vpop.f32.mrf.mxu0  ;;  %4512 = vmatmul.mubr.bf16.gmra.mxu0 %v10672_v38  ;;  %v10460_v19 = vld [vmem:[%s15359_s1 + $0xe2c] ss:$16 sps:$4 sm:$0xff]  }
 0x20b   :  { %4565 = vmatmul.mubr.bf16.gmra.mxu1 %v10673_v39  ;;  %v12739_v42 = vpack.c.bf16 %v4685_v35, %v4681_v25  ;;  %4580 = vmatpush1.bf16.msra.mxu0 %v10434_v55  ;;  %v4196_v59 = vadd.f32 %v4195_v37, %v4143_v41  ;;  %v10463_v55 = vld [vmem:[%s15359_s1 + $0x102c] ss:$16 sps:$4 sm:$0xff]   ;;  %v10464_v35 = vld [vmem:[%s15359_s1 + $0xe08] ss:$16 sps:$4 sm:$0xff]  }
 0x20c   :  { %4633 = vmatpush1.bf16.msra.mxu1 %v10437_v15  ;;  %v12747_v54 = vpop.f32.mrf.mxu0  ;;  %4581 = vmatprep.subr.bf16.mxu0 %v10442_v21  ;;  %v10458_v15 = vld [vmem:[%s15359_s1 + $0xe28] ss:$16 sps:$4 sm:$0xff]   ;;  %v10469_v25 = vld [vmem:[%s15359_s1 + $0x100c] ss:$16 sps:$4 sm:$0xff]  }
 0x20d   :  { %4634 = vmatprep.subr.bf16.mxu1 %v10445_v22  ;;  %4607 = vmatprep.mubr.bf16.mxu0 %v10674_v51  ;;  %v4689_v4 = vmax.f32 %v4196_v59, 0.0  ;;  %v10461_v21 = vld [vmem:[%s15359_s1 + $0x1028] ss:$16 sps:$4 sm:$0xff]   ;;  %v10466_v22 = vld [vmem:[%s15359_s1 + $0xe0c] ss:$16 sps:$4 sm:$0xff]  }
 0x20e   :  { %4660 = vmatprep.mubr.bf16.mxu1 %v10675_v61  ;;  %v4199_v24 = vpop.f32.mrf.mxu0  ;;  %v10472_v37 = vld [vmem:[%s15359_s1 + $0xfec] ss:$16 sps:$4 sm:$0xff]   ;;  %v10470_v39 = vld [vmem:[%s15359_s1 + $0xfe8] ss:$16 sps:$4 sm:$0xff]  }
 0x20f   :  { %v4200_v62 = vadd.f32 %v4199_v24, %v4147_v57  ;;  %4582 = vmatpush1.bf16.msra.mxu0 %v10440_v49  ;;  %v10475_v38 = vld [vmem:[%s15359_s1 + $0x11ec] ss:$16 sps:$4 sm:$0xff]   ;;  %v10473_v41 = vld [vmem:[%s15359_s1 + $0x11e8] ss:$16 sps:$4 sm:$0xff]  }
 0x210   :  { %4635 = vmatpush1.bf16.msra.mxu1 %v10443_v33  ;;  %4583 = vmatprep.subr.bf16.mxu0 %v10448_v63  ;;  %v10478_v49 = vld [vmem:[%s15359_s1 + $0xfcc] ss:$16 sps:$4 sm:$0xff]   ;;  %v10476_v63 = vld [vmem:[%s15359_s1 + $0xfc8] ss:$16 sps:$4 sm:$0xff]  }
 0x211   :  { %4636 = vmatprep.subr.bf16.mxu1 %v10451_v56  ;;  %v4693_v0 = vmax.f32 %v4200_v62, 0.0  ;;  %v10481_v33 = vld [vmem:[%s15359_s1 + $0x11cc] ss:$16 sps:$4 sm:$0xff]   ;;  %v10479_v56 = vld [vmem:[%s15359_s1 + $0x11c8] ss:$16 sps:$4 sm:$0xff]  }
 0x212   :  { %v10484_v57 = vld [vmem:[%s15359_s1 + $0xfac] ss:$16 sps:$4 sm:$0xff]   ;;  %v10482_v51 = vld [vmem:[%s15359_s1 + $0xfa8] ss:$16 sps:$4 sm:$0xff]  }
 0x213   :  { %v12774_v5 = vpack.c.bf16 %v4693_v0, %v4689_v4  ;;  %4584 = vmatpush1.bf16.msra.mxu0 %v10446_v1  ;;  %v10487_v59 = vld [vmem:[%s15359_s1 + $0x11ac] ss:$16 sps:$4 sm:$0xff]   ;;  %v10485_v61 = vld [vmem:[%s15359_s1 + $0x11a8] ss:$16 sps:$4 sm:$0xff]   ;;  %v3768_v1 = vadd.f32 %v11790_v6, %v11800_v10 }
 0x214   :  { %4637 = vmatpush1.bf16.msra.mxu1 %v10449_v9  ;;  %4585 = vmatprep.subr.bf16.mxu0 %v10454_v2  ;;  %v10490_v24 = vld [vmem:[%s15359_s1 + $0xf8c] ss:$16 sps:$4 sm:$0xff]   ;;  %v3764_v9 = vadd.f32 %v11730_v46, %v11800_v10  ;;  %v10488_v2 = vld [vmem:[%s15359_s1 + $0xf88] ss:$16 sps:$4 sm:$0xff]  }
 0x215   :  { %15501 = vst [vmem:[#allocation5_spill] sm:$0xff] %v12774_v5  ;;  %4638 = vmatprep.subr.bf16.mxu1 %v10457_v40  ;;  %v10493_v62 = vld [vmem:[%s15359_s1 + $0x118c] ss:$16 sps:$4 sm:$0xff]   ;;  %v10491_v40 = vld [vmem:[%s15359_s1 + $0x1188] ss:$16 sps:$4 sm:$0xff]   ;;  %v3821_v6 = vadd.f32 %v11809_v14, %v3768_v1 }
 0x216   :  { %v10496_v4 = vld [vmem:[%s15359_s1 + $0xf6c] ss:$16 sps:$4 sm:$0xff]   ;;  %v3817_v0 = vadd.f32 %v11732_v47, %v3764_v9  ;;  %v10677_v1 = vld [vmem:[%s15360_s0 + $0x40] ss:$72 sps:$4 sm:$0xff]  }
 0x217   :  { %4586 = vmatpush1.bf16.msra.mxu0 %v10452_v34  ;;  %v10499_v46 = vld [vmem:[%s15359_s1 + $0x116c] ss:$16 sps:$4 sm:$0xff]   ;;  %v3874_v34 = vadd.f32 %v12005_v44, %v3821_v6 }
 0x218   :  { %4639 = vmatpush1.bf16.msra.mxu1 %v10455_v18  ;;  %4587 = vmatprep.subr.bf16.mxu0 %v10460_v19  ;;  %v10494_v18 = vld [vmem:[%s15359_s1 + $0xf68] ss:$16 sps:$4 sm:$0xff]   ;;  %v10502_v14 = vld [vmem:[%s15359_s1 + $0xf4c] ss:$16 sps:$4 sm:$0xff]   ;;  %v3870_v44 = vadd.f32 %v11977_v31, %v3817_v0 }
 0x219   :  { %4640 = vmatprep.subr.bf16.mxu1 %v10463_v55  ;;  %v10497_v19 = vld [vmem:[%s15359_s1 + $0x1168] ss:$16 sps:$4 sm:$0xff]   ;;  %v10505_v47 = vld [vmem:[%s15359_s1 + $0x114c] ss:$16 sps:$4 sm:$0xff]   ;;  %v3927_v55 = vadd.f32 %v12007_v45, %v3874_v34 }
 0x21a   :  { %v10511_v31 = vld [vmem:[%s15359_s1 + $0x112c] ss:$16 sps:$4 sm:$0xff]   ;;  %v3923_v45 = vadd.f32 %v11979_v32, %v3870_v44  ;;  %v10681_v44 = vld [vmem:[%s15360_s0 + $0xd0] ss:$72 sps:$4 sm:$0xff]  }
 0x21b   :  { %4588 = vmatpush1.bf16.msra.mxu0 %v10458_v15  ;;  %v10500_v15 = vld [vmem:[%s15359_s1 + $0xf48] ss:$16 sps:$4 sm:$0xff]   ;;  %v10514_v32 = vld [vmem:[%s15359_s1 + $0xf0c] ss:$16 sps:$4 sm:$0xff]  }
 0x21c   :  { %4641 = vmatpush1.bf16.msra.mxu1 %v10461_v21  ;;  %4589 = vmatprep.subr.bf16.mxu0 %v10466_v22  ;;  %v10503_v21 = vld [vmem:[%s15359_s1 + $0x1148] ss:$16 sps:$4 sm:$0xff]   ;;  %v10508_v22 = vld [vmem:[%s15359_s1 + $0xf2c] ss:$16 sps:$4 sm:$0xff]  }
 0x21d   :  { %4642 = vmatprep.subr.bf16.mxu1 %v10469_v25  ;;  %v3980_v25 = vadd.f32 %v12242_v43, %v3927_v55  ;;  %v10678_v9 = vld [vmem:[%s15360_s0 + $0xcc] ss:$72 sps:$4 sm:$0xff]  }
 0x21f   :  { %4590 = vmatpush1.bf16.msra.mxu0 %v10464_v35  ;;  %v3976_v35 = vadd.f32 %v12217_v27, %v3923_v45  ;;  %v10517_v27 = vld [vmem:[%s15359_s1 + $0x110c] ss:$16 sps:$4 sm:$0xff]   ;;  %v4033_v43 = vadd.f32 %v12244_v60, %v3980_v25  ;;  %v10515_v60 = vld [vmem:[%s15359_s1 + $0x1108] ss:$16 sps:$4 sm:$0xff]   ;;  %v4893_v45 = vld [vmem:[%s15362_s3 + $0x5e0] sm:$0xff] }
 0x220   :  { %4643 = vmatpush1.bf16.msra.mxu1 %v10467_v36  ;;  %4591 = vmatprep.subr.bf16.mxu0 %v10472_v37  ;;  %v10506_v36 = vld [vmem:[%s15359_s1 + $0xf28] ss:$16 sps:$4 sm:$0xff]  }
 0x221   :  { %4644 = vmatprep.subr.bf16.mxu1 %v10475_v38  ;;  %v10509_v37 = vld [vmem:[%s15359_s1 + $0x1128] ss:$16 sps:$4 sm:$0xff]   ;;  %v4761_v38 = vld [vmem:[%s15362_s3 + $0x1c0] sm:$0xff] }
 0x223   :  { %4592 = vmatpush2.bf16.msra.mxu0 %v10470_v39  ;;  %v4765_v39 = vld [vmem:[%s15362_s3 + $0x1e0] sm:$0xff] }
 0x224   :  { %4645 = vmatpush2.bf16.msra.mxu1 %v10473_v41  ;;  %4593 = vmatprep.subr.bf16.mxu0 %v10478_v49  ;;  %v4029_v41 = vadd.f32 %v12219_v28, %v3976_v35  ;;  %v4086_v49 = vadd.f32 %v12483_v58, %v4033_v43  ;;  %v4753_v28 = vld [vmem:[%s15362_s3 + $0x180] sm:$0xff] }
 0x225   :  { %4646 = vmatprep.subr.bf16.mxu1 %v10481_v33  ;;  %v10512_v33 = vld [vmem:[%s15359_s1 + $0xf08] ss:$16 sps:$4 sm:$0xff]   ;;  %v4757_v58 = vld [vmem:[%s15362_s3 + $0x1a0] sm:$0xff] }
 0x226   :  { %v4881_v43 = vld [vmem:[%s15362_s3 + $0x580] sm:$0xff] }
 0x227   :  { %4594 = vmatpush2.bf16.msra.mxu0 %v10476_v63  ;;  %v9077_v63 = vcombine.high %v4761_v38, %v4765_v39 }
 0x228   :  { %4647 = vmatpush2.bf16.msra.mxu1 %v10479_v56  ;;  %4595 = vmatprep.subr.bf16.mxu0 %v10484_v57  ;;  %v4082_v56 = vadd.f32 %v12460_v48, %v4029_v41  ;;  %v4139_v57 = vadd.f32 %v12678_v52, %v4086_v49  ;;  %v4745_v48 = vld [vmem:[%s15362_s3 + $0x140] sm:$0xff] }
 0x229   :  { %4648 = vmatprep.subr.bf16.mxu1 %v10487_v59  ;;  %v9076_v59 = vcombine.low %v4761_v38, %v4765_v39  ;;  %v10676_v52 = vld [vmem:[%s15360_s0 + $0x38] ss:$72 sps:$4 sm:$0xff]  }
 0x22a   :  { %v4885_v38 = vld [vmem:[%s15362_s3 + $0x5a0] sm:$0xff] }
 0x22b   :  { %4596 = vmatpush2.bf16.msra.mxu0 %v10482_v51  ;;  %v9069_v51 = vcombine.high %v4753_v28, %v4757_v58  ;;  %v9196_v41 = vcombine.low %v4881_v43, %v4885_v38  ;;  %v9197_v49 = vcombine.high %v4881_v43, %v4885_v38  ;;  %v4797_v43 = vld [vmem:[%s15362_s3 + $0x2e0] sm:$0xff] }
 0x22c   :  { %4649 = vmatpush2.bf16.msra.mxu1 %v10485_v61  ;;  %4597 = vmatprep.subr.bf16.mxu0 %v10490_v24  ;;  %v4135_v61 = vadd.f32 %v12652_v26, %v4082_v56  ;;  %v4192_v24 = vadd.f32 %v12724_v20, %v4139_v57  ;;  %v9068_v20 = vcombine.low %v4753_v28, %v4757_v58  ;;  %v4873_v56 = vld [vmem:[%s15362_s3 + $0x540] sm:$0xff] }
 0x22d   :  { %4650 = vmatprep.subr.bf16.mxu1 %v10493_v62  ;;  %v4749_v62 = vld [vmem:[%s15362_s3 + $0x160] sm:$0xff] }
 0x22e   :  { %v4188_v26 = vadd.f32 %v12701_v30, %v4135_v61  ;;  %v4741_v30 = vld [vmem:[%s15362_s3 + $0x120] sm:$0xff]  ;;  %v9060_v0 = vcombine.low %v4745_v48, %v4749_v62 }
 0x22f   :  { %4598 = vmatpush2.bf16.msra.mxu0 %v10488_v2  ;;  %v9061_v2 = vcombine.high %v4745_v48, %v4749_v62  ;;  %v4877_v28 = vld [vmem:[%s15362_s3 + $0x560] sm:$0xff] }
 0x230   :  { %4651 = vmatpush2.bf16.msra.mxu1 %v10491_v40  ;;  %4599 = vmatprep.subr.bf16.mxu0 %v10496_v4  ;;  %v10679_v40 = vld [vmem:[%s15360_s0 + $0xd4] ss:$72 sps:$4 sm:$0xff]   ;;  %v4686_v4 = vmax.f32 %v4192_v24, 0.0  ;;  %v4682_v6 = vmax.f32 %v4188_v26, 0.0  ;;  %v9188_v57 = vcombine.low %v4873_v56, %v4877_v28  ;;  %v4825_v61 = vld [vmem:[%s15362_s3 + $0x3c0] sm:$0xff] }
 0x231   :  { %4652 = vmatprep.subr.bf16.mxu1 %v10499_v46  ;;  %v4737_v46 = vld [vmem:[%s15362_s3 + $0x100] sm:$0xff] }
 0x232   :  { %v9053_v34 = vcombine.high %v4737_v46, %v4741_v30  ;;  %v9052_v55 = vcombine.low %v4737_v46, %v4741_v30  ;;  %v4829_v24 = vld [vmem:[%s15362_s3 + $0x3e0] sm:$0xff] }
 0x233   :  { %4600 = vmatpush2.bf16.msra.mxu0 %v10494_v18  ;;  %v12958_v18 = vpack.c.bf16 %v4686_v4, %v4682_v6  ;;  %v4865_v48 = vld [vmem:[%s15362_s3 + $0x500] sm:$0xff]  ;;  %v9140_v46 = vcombine.low %v4825_v61, %v4829_v24 }
 0x234   :  { %4653 = vmatpush2.bf16.msra.mxu1 %v10497_v19  ;;  %4601 = vmatprep.subr.bf16.mxu0 %v10502_v14  ;;  %v4729_v19 = vld [vmem:[%s15362_s3 + $0xc0] sm:$0xff] }
 0x235   :  { %4654 = vmatprep.subr.bf16.mxu1 %v10505_v47  ;;  %15502 = vst [vmem:[#allocation6_spill] sm:$0xff] %v12958_v18  ;;  %v4733_v14 = vld [vmem:[%s15362_s3 + $0xe0] sm:$0xff]  ;;  %v10680_v47 = vld [vmem:[%s15360_s0 + $0xc8] ss:$72 sps:$4 sm:$0xff]  }
 0x236   :  { %v9044_v25 = vcombine.low %v4729_v19, %v4733_v14  ;;  %v4869_v62 = vld [vmem:[%s15362_s3 + $0x520] sm:$0xff] }
 0x237   :  { %4602 = vmatpush2.bf16.msra.mxu0 %v10500_v15  ;;  %v9045_v15 = vcombine.high %v4729_v19, %v4733_v14  ;;  %v9181_v26 = vcombine.high %v4865_v48, %v4869_v62  ;;  %v4861_v4 = vld [vmem:[%s15362_s3 + $0x4e0] sm:$0xff] }
 0x238   :  { %4655 = vmatpush2.bf16.msra.mxu1 %v10503_v21  ;;  %4603 = vmatprep.subr.bf16.mxu0 %v10508_v22  ;;  %v4721_v21 = vld [vmem:[%s15362_s3 + $0x80] sm:$0xff] }
 0x239   :  { %4656 = vmatprep.subr.bf16.mxu1 %v10511_v31  ;;  %v4725_v22 = vld [vmem:[%s15362_s3 + $0xa0] sm:$0xff] }
 0x23a   :  { %v4889_v31 = vld [vmem:[%s15362_s3 + $0x5c0] sm:$0xff]  ;;  %v9036_v39 = vcombine.low %v4721_v21, %v4725_v22 }
 0x23b   :  { %4604 = vmatpush2.bf16.msra.mxu0 %v10506_v36  ;;  %v9205_v35 = vcombine.high %v4889_v31, %v4893_v45  ;;  %v9037_v36 = vcombine.high %v4721_v21, %v4725_v22  ;;  %v4809_v19 = vld [vmem:[%s15362_s3 + $0x340] sm:$0xff] }
 0x23c   :  { %4657 = vmatpush2.bf16.msra.mxu1 %v10509_v37  ;;  %4605 = vmatprep.subr.bf16.mxu0 %v10514_v32  ;;  %v9204_v37 = vcombine.low %v4889_v31, %v4893_v45  ;;  %v4713_v32 = vld [vmem:[%s15362_s3 + $0x40] sm:$0xff] }
 0x23d   :  { %4658 = vmatprep.subr.bf16.mxu1 %v10517_v27  ;;  %v4717_v27 = vld [vmem:[%s15362_s3 + $0x60] sm:$0xff] }
 0x23e   :  { %v9028_v58 = vcombine.low %v4713_v32, %v4717_v27  ;;  %v4813_v14 = vld [vmem:[%s15362_s3 + $0x360] sm:$0xff] }
 0x23f   :  { %4606 = vmatpush2.bf16.msra.mxu0 %v10512_v33  ;;  %v9029_v33 = vcombine.high %v4713_v32, %v4717_v27  ;;  %v4801_v22 = vld [vmem:[%s15362_s3 + $0x300] sm:$0xff] }
 0x240   :  { %4659 = vmatpush2.bf16.msra.mxu1 %v10515_v60  ;;  %6283 = vmatprep.subr.bf16.mxu0 %v9077_v63  ;;  %v4705_v60 = vld [vmem:[%s15362_s3] sm:$0xff] }
 0x241   :  { %6336 = vmatprep.subr.bf16.mxu1 %v9205_v35  ;;  %v4709_v63 = vld [vmem:[%s15362_s3 + $0x20] sm:$0xff]  ;;  %v9124_v35 = vcombine.low %v4809_v19, %v4813_v14 }
 0x242   :  { %4608 = vmatmul.mubr.bf16.vlgmr.msra.gmra.mxu0 %v10676_v52  ;;  %v9020_v52 = vcombine.low %v4705_v60, %v4709_v63  ;;  %v4805_v31 = vld [vmem:[%s15362_s3 + $0x320] sm:$0xff] }
 0x243   :  { %4661 = vmatmul.mubr.bf16.vlgmr.msra.gmra.mxu1 %v10677_v1  ;;  %6284 = vmatpush1.bf16.msra.mxu0 %v9076_v59  ;;  %v9189_v59 = vcombine.high %v4873_v56, %v4877_v28  ;;  %v9180_v1 = vcombine.low %v4865_v48, %v4869_v62  ;;  %v4841_v45 = vld [vmem:[%s15362_s3 + $0x440] sm:$0xff]  ;;  %v9117_v32 = vcombine.high %v4801_v22, %v4805_v31 }
 0x244   :  { %4617 = vmatprep.mubr.bf16.mxu0 %v10678_v9  ;;  %6285 = vmatprep.subr.bf16.mxu0 %v9069_v51  ;;  %v9021_v51 = vcombine.high %v4705_v60, %v4709_v63  ;;  %v4817_v9 = vld [vmem:[%s15362_s3 + $0x380] sm:$0xff] }
 0x245   :  { %4670 = vmatprep.mubr.bf16.mxu1 %v10679_v40  ;;  %6337 = vmatpush1.bf16.msra.mxu1 %v9204_v37  ;;  %v4857_v40 = vld [vmem:[%s15362_s3 + $0x4c0] sm:$0xff] }
 0x246   :  { %6338 = vmatprep.subr.bf16.mxu1 %v9197_v49  ;;  %v9172_v30 = vcombine.low %v4857_v40, %v4861_v4  ;;  %v9173_v6 = vcombine.high %v4857_v40, %v4861_v4  ;;  %v4793_v27 = vld [vmem:[%s15362_s3 + $0x2c0] sm:$0xff] }
 0x247   :  { %6286 = vmatpush1.bf16.msra.mxu0 %v9068_v20  ;;  %v9141_v20 = vcombine.high %v4825_v61, %v4829_v24  ;;  %v4837_v38 = vld [vmem:[%s15362_s3 + $0x420] sm:$0xff]  ;;  %v9109_v60 = vcombine.high %v4793_v27, %v4797_v43 }
 0x248   :  { %6287 = vmatprep.subr.bf16.mxu0 %v9061_v2  ;;  %v4821_v2 = vld [vmem:[%s15362_s3 + $0x3a0] sm:$0xff] }
 0x249   :  { %6339 = vmatpush1.bf16.msra.mxu1 %v9196_v41  ;;  %v9116_v41 = vcombine.low %v4801_v22, %v4805_v31  ;;  %v4785_v56 = vld [vmem:[%s15362_s3 + $0x280] sm:$0xff] }
 0x24a   :  { %4618 = vmatmul.mubr.bf16.gmra.mxu0 %v10680_v47  ;;  %6340 = vmatprep.subr.bf16.mxu1 %v9189_v59  ;;  %v4849_v47 = vld [vmem:[%s15362_s3 + $0x480] sm:$0xff] }
 0x24b   :  { %4671 = vmatmul.mubr.bf16.gmra.mxu1 %v10681_v44  ;;  %6288 = vmatpush1.bf16.msra.mxu0 %v9060_v0  ;;  %v9133_v0 = vcombine.high %v4817_v9, %v4821_v2  ;;  %v4853_v44 = vld [vmem:[%s15362_s3 + $0x4a0] sm:$0xff] }
 0x24c   :  { %6315 = vmatprep.mubr.bf16.mxu0 %v12958_v18  ;;  %6289 = vmatprep.subr.bf16.mxu0 %v9053_v34  ;;  %v3778_v34 = vadd.f32 %v11954_v16, %v11800_v10  ;;  %v9132_v10 = vcombine.low %v4817_v9, %v4821_v2  ;;  %v9164_v16 = vcombine.low %v4849_v47, %v4853_v44  ;;  %v4789_v28 = vld [vmem:[%s15362_s3 + $0x2a0] sm:$0xff]  ;;  %v4148_v9 = vpop.f32.mrf.mxu1 }
 0x24d   :  { %6341 = vmatpush1.bf16.msra.mxu1 %v9188_v57  ;;  %v4777_v24 = vld [vmem:[%s15362_s3 + $0x240] sm:$0xff] }
 0x24e   :  { %6342 = vmatprep.subr.bf16.mxu1 %v9181_v26  ;;  %v3831_v21 = vadd.f32 %v11956_v17, %v3778_v34  ;;  %v4781_v48 = vld [vmem:[%s15362_s3 + $0x260] sm:$0xff] }
 0x24f   :  { %6290 = vmatpush1.bf16.msra.mxu0 %v9052_v55  ;;  %v9165_v55 = vcombine.high %v4849_v47, %v4853_v44  ;;  %v4945_v62 = vld [vmem:[%s15362_s3 + $0x780] sm:$0xff]  ;;  %v9093_v2 = vcombine.high %v4777_v24, %v4781_v48  ;;  %v4145_v47 = vadd.f32 %v12716_v13, %v12513_v7 }
 0x250   :  { %6291 = vmatprep.subr.bf16.mxu0 %v9045_v15  ;;  %v9125_v15 = vcombine.high %v4809_v19, %v4813_v14  ;;  %v3884_v17 = vadd.f32 %v12194_v11, %v3831_v21  ;;  %v4833_v11 = vld [vmem:[%s15362_s3 + $0x400] sm:$0xff] }
 0x251   :  { %6343 = vmatpush1.bf16.msra.mxu1 %v9180_v1  ;;  %v9148_v49 = vcombine.low %v4833_v11, %v4837_v38  ;;  %v9100_v1 = vcombine.low %v4785_v56, %v4789_v28  ;;  %v4769_v40 = vld [vmem:[%s15362_s3 + $0x200] sm:$0xff]  ;;  %v4198_v7 = vadd.f32 %v12747_v54, %v4145_v47 }
 0x252   :  { %6344 = vmatprep.subr.bf16.mxu1 %v9173_v6  ;;  %v4773_v4 = vld [vmem:[%s15362_s3 + $0x220] sm:$0xff] }
 0x253   :  { %6292 = vmatpush1.bf16.msra.mxu0 %v9044_v25  ;;  %v4845_v25 = vld [vmem:[%s15362_s3 + $0x460] sm:$0xff]  ;;  %v9085_v14 = vcombine.high %v4769_v40, %v4773_v4  ;;  %v9084_v13 = vcombine.low %v4769_v40, %v4773_v4  ;;  %v13191_v40 = vld [vmem:[%s15362_s3 + $0x5c8] sm:$0xff] }
 0x254   :  { %6293 = vmatprep.subr.bf16.mxu0 %v9037_v36  ;;  %v9156_v36 = vcombine.low %v4841_v45, %v4845_v25  ;;  %v9157_v37 = vcombine.high %v4841_v45, %v4845_v25  ;;  %v4754_v25 = vld [vmem:[%s15362_s3 + $0x188] sm:$0xff]  ;;  %v4921_v54 = vld [vmem:[%s15362_s3 + $0x6c0] sm:$0xff]  ;;  %15503 = vst [vmem:[#allocation7_spill] sm:$0xff] %v13191_v40 }
 0x255   :  { %6345 = vmatpush1.bf16.msra.mxu1 %v9172_v30  ;;  %v4941_v30 = vld [vmem:[%s15362_s3 + $0x760] sm:$0xff]  ;;  %v13196_v4 = vld [vmem:[%s15362_s3 + $0x5e8] sm:$0xff] }
 0x256   :  { %6346 = vmatprep.subr.bf16.mxu1 %v9165_v55  ;;  %v4929_v55 = vld [vmem:[%s15362_s3 + $0x700] sm:$0xff]  ;;  %15504 = vst [vmem:[#allocation8_spill] sm:$0xff] %v13196_v4 }
 0x257   :  { %6294 = vmatpush1.bf16.msra.mxu0 %v9036_v39  ;;  %v3937_v39 = vadd.f32 %v12196_v12, %v3884_v17  ;;  %v4953_v12 = vld [vmem:[%s15362_s3 + $0x7c0] sm:$0xff]  ;;  %v4758_v17 = vld [vmem:[%s15362_s3 + $0x1a8] sm:$0xff] }
 0x258   :  { %6295 = vmatprep.subr.bf16.mxu0 %v9029_v33  ;;  %v9149_v33 = vcombine.high %v4833_v11, %v4837_v38  ;;  %v4746_v38 = vld [vmem:[%s15362_s3 + $0x148] sm:$0xff] }
 0x259   :  { %6347 = vmatpush1.bf16.msra.mxu1 %v9164_v16  ;;  %v3990_v63 = vadd.f32 %v12437_v50, %v3937_v39  ;;  %v9108_v50 = vcombine.low %v4793_v27, %v4797_v43  ;;  %v4766_v16 = vld [vmem:[%s15362_s3 + $0x1e8] sm:$0xff]  ;;  %v9071_v43 = vcombine.high %v4754_v25, %v4758_v17 }
 0x25a   :  { %6348 = vmatprep.subr.bf16.mxu1 %v9157_v37  ;;  %v4750_v39 = vld [vmem:[%s15362_s3 + $0x168] sm:$0xff] }
 0x25b   :  { %6296 = vmatpush1.bf16.msra.mxu0 %v9028_v58  ;;  %v4957_v58 = vld [vmem:[%s15362_s3 + $0x7e0] sm:$0xff]  ;;  %v4043_v61 = vadd.f32 %v12632_v8, %v3990_v63  ;;  %v9063_v63 = vcombine.high %v4746_v38, %v4750_v39 }
 0x25c   :  { %6297 = vmatprep.subr.bf16.mxu0 %v9021_v51  ;;  %v9268_v57 = vcombine.low %v4953_v12, %v4957_v58  ;;  %v9269_v59 = vcombine.high %v4953_v12, %v4957_v58  ;;  %v9101_v51 = vcombine.high %v4785_v56, %v4789_v28  ;;  %v4738_v28 = vld [vmem:[%s15362_s3 + $0x108] sm:$0xff]  ;;  %v4905_v58 = vld [vmem:[%s15362_s3 + $0x640] sm:$0xff] }
 0x25d   :  { %6349 = vmatpush1.bf16.msra.mxu1 %v9156_v36  ;;  %v4096_v8 = vadd.f32 %v12680_v53, %v4043_v61  ;;  %v4937_v53 = vld [vmem:[%s15362_s3 + $0x740] sm:$0xff]  ;;  %v4690_v36 = vmax.f32 %v4198_v7, 0.0  ;;  %v4742_v12 = vld [vmem:[%s15362_s3 + $0x128] sm:$0xff] }
 0x25e   :  { %6350 = vmatprep.subr.bf16.mxu1 %v9149_v33  ;;  %v9252_v34 = vcombine.low %v4937_v53, %v4941_v30  ;;  %v9253_v19 = vcombine.high %v4937_v53, %v4941_v30  ;;  %v9070_v33 = vcombine.low %v4754_v25, %v4758_v17  ;;  %v9207_v53 = vcombine.high %v13191_v40, %v13196_v4  ;;  %v4826_v7 = vld [vmem:[%s15362_s3 + $0x3c8] sm:$0xff]  ;;  %v4787_v4 = vld [vmem:[%s15362_s3 + $0x290] sm:$0xff] }
 0x25f   :  { %6298 = vmatpush1.bf16.msra.mxu0 %v9020_v52  ;;  %v4949_v52 = vld [vmem:[%s15362_s3 + $0x7a0] sm:$0xff]  ;;  %v4149_v6 = vadd.f32 %v4148_v9, %v4096_v8  ;;  %v9054_v8 = vcombine.low %v4738_v28, %v4742_v12  ;;  %v4722_v9 = vld [vmem:[%s15362_s3 + $0x88] sm:$0xff] }
 0x260   :  { %6299 = vmatprep.subr.bf16.mxu0 %v9141_v20  ;;  %v9260_v26 = vcombine.low %v4945_v62, %v4949_v52  ;;  %v9261_v20 = vcombine.high %v4945_v62, %v4949_v52  ;;  %v4897_v62 = vld [vmem:[%s15362_s3 + $0x600] sm:$0xff]  ;;  %v4822_v25 = vld [vmem:[%s15362_s3 + $0x3a8] sm:$0xff] }
 0x261   :  { %6351 = vmatpush1.bf16.msra.mxu1 %v9148_v49  ;;  %v4917_v49 = vld [vmem:[%s15362_s3 + $0x6a0] sm:$0xff] }
 0x262   :  { %6352 = vmatprep.subr.bf16.mxu1 %v9269_v59  ;;  %v4901_v52 = vld [vmem:[%s15362_s3 + $0x620] sm:$0xff] }
 0x263   :  { %6300 = vmatpush2.bf16.msra.mxu0 %v9140_v46  ;;  %v4201_v46 = vpop.f32.mrf.mxu0 }
 0x264   :  { %6301 = vmatprep.subr.bf16.mxu0 %v9133_v0  ;;  %v9092_v0 = vcombine.low %v4777_v24, %v4781_v48  ;;  %v4202_v44 = vadd.f32 %v4201_v46, %v4149_v6  ;;  %v4730_v24 = vld [vmem:[%s15362_s3 + $0xc8] sm:$0xff]  ;;  %v13434_v6 = vsub.s32 2, %v11667_v23 }
 0x265   :  { %6353 = vmatpush2.bf16.msra.mxu1 %v9268_v57  ;;  %v9062_v57 = vcombine.low %v4746_v38, %v4750_v39  ;;  %v4734_v48 = vld [vmem:[%s15362_s3 + $0xe8] sm:$0xff] }
 0x266   :  { %6354 = vmatprep.subr.bf16.mxu1 %v9261_v20  ;;  %v4694_v45 = vmax.f32 %v4202_v44, 0.0  ;;  %v9212_v20 = vcombine.low %v4897_v62, %v4901_v52  ;;  %v9046_v46 = vcombine.low %v4730_v24, %v4734_v48  ;;  %v4706_v44 = vld [vmem:[%s15362_s3 + $0x8] sm:$0xff]  ;;  %15509 = vst [vmem:[#allocation13_spill] sm:$0xff] %v13434_v6 }
 0x267   :  { %6302 = vmatpush2.bf16.msra.mxu0 %v9132_v10  ;;  %v4762_v10 = vld [vmem:[%s15362_s3 + $0x1c8] sm:$0xff] }
 0x268   :  { %6303 = vmatprep.subr.bf16.mxu0 %v9125_v15  ;;  %v4933_v15 = vld [vmem:[%s15362_s3 + $0x720] sm:$0xff]  ;;  %v9079_v31 = vcombine.high %v4762_v10, %v4766_v16  ;;  %v9078_v37 = vcombine.low %v4762_v10, %v4766_v16  ;;  %v13140_v11 = vpack.c.bf16 %v4694_v45, %v4690_v36  ;;  %v4710_v10 = vld [vmem:[%s15362_s3 + $0x28] sm:$0xff] }
 0x269   :  { %6355 = vmatpush2.bf16.msra.mxu1 %v9260_v26  ;;  %v9244_v21 = vcombine.low %v4929_v55, %v4933_v15  ;;  %v9245_v22 = vcombine.high %v4929_v55, %v4933_v15  ;;  %v9047_v26 = vcombine.high %v4730_v24, %v4734_v48  ;;  %v9023_v15 = vcombine.high %v4706_v44, %v4710_v10  ;;  %v4818_v45 = vld [vmem:[%s15362_s3 + $0x388] sm:$0xff] }
 0x26a   :  { %6356 = vmatprep.subr.bf16.mxu1 %v9253_v19  ;;  %v13208_v19 = vpop.f32.mrf.mxu1  ;;  %v9135_v36 = vcombine.high %v4818_v45, %v4822_v25  ;;  %v4802_v39 = vld [vmem:[%s15362_s3 + $0x308] sm:$0xff] }
 0x26b   :  { %6304 = vmatpush2.bf16.msra.mxu0 %v9124_v35  ;;  %v4925_v35 = vld [vmem:[%s15362_s3 + $0x6e0] sm:$0xff] }
 0x26c   :  { %6305 = vmatprep.subr.bf16.mxu0 %v9117_v32  ;;  %v9236_v32 = vcombine.low %v4921_v54, %v4925_v35  ;;  %v9237_v27 = vcombine.high %v4921_v54, %v4925_v35  ;;  %v13216_v16 = vpop.f32.mrf.mxu1 }
 0x26d   :  { %6357 = vmatpush2.bf16.msra.mxu1 %v9252_v34  ;;  %v4718_v34 = vld [vmem:[%s15362_s3 + $0x68] sm:$0xff] }
 0x26e   :  { %6358 = vmatprep.subr.bf16.mxu1 %v9245_v22  ;;  %v9022_v22 = vcombine.low %v4706_v44, %v4710_v10 }
 0x26f   :  { %6306 = vmatpush2.bf16.msra.mxu0 %v9116_v41  ;;  %v4913_v41 = vld [vmem:[%s15362_s3 + $0x680] sm:$0xff] }
 0x270   :  { %6307 = vmatprep.subr.bf16.mxu0 %v9109_v60  ;;  %v9229_v60 = vcombine.high %v4913_v41, %v4917_v49  ;;  %v9228_v56 = vcombine.low %v4913_v41, %v4917_v49  ;;  %v4806_v41 = vld [vmem:[%s15362_s3 + $0x328] sm:$0xff] }
 0x271   :  { %6359 = vmatpush2.bf16.msra.mxu1 %v9244_v21  ;;  %v13224_v21 = vpop.f32.mrf.mxu1 }
 0x272   :  { %6360 = vmatprep.subr.bf16.mxu1 %v9237_v27  ;;  %v9134_v27 = vcombine.low %v4818_v45, %v4822_v25 }
 0x273   :  { %6308 = vmatpush2.bf16.msra.mxu0 %v9108_v50  ;;  %v4909_v50 = vld [vmem:[%s15362_s3 + $0x660] sm:$0xff]  ;;  %v13232_v17 = vpop.f32.mrf.mxu1 }
 0x274   :  { %6309 = vmatprep.subr.bf16.mxu0 %v9101_v51  ;;  %v9221_v59 = vcombine.high %v4905_v58, %v4909_v50  ;;  %v9055_v51 = vcombine.high %v4738_v28, %v4742_v12  ;;  %v9220_v61 = vcombine.low %v4905_v58, %v4909_v50  ;;  %v4798_v28 = vld [vmem:[%s15362_s3 + $0x2e8] sm:$0xff]  ;;  %v9118_v12 = vcombine.low %v4802_v39, %v4806_v41 }
 0x275   :  { %6361 = vmatpush2.bf16.msra.mxu1 %v9236_v32  ;;  %v13234_v35 = vpop.f32.mrf.mxu1  ;;  %v4814_v32 = vld [vmem:[%s15362_s3 + $0x368] sm:$0xff] }
 0x276   :  { %6362 = vmatprep.subr.bf16.mxu1 %v9229_v60  ;;  %v13252_v60 = vpop.f32.mrf.mxu0 }
 0x277   :  { %6310 = vmatpush2.bf16.msra.mxu0 %v9100_v1  ;;  %v9213_v1 = vcombine.high %v4897_v62, %v4901_v52  ;;  %v4778_v52 = vld [vmem:[%s15362_s3 + $0x248] sm:$0xff] }
 0x278   :  { %6311 = vmatprep.subr.bf16.mxu0 %v9093_v2  ;;  %v4726_v2 = vld [vmem:[%s15362_s3 + $0xa8] sm:$0xff]  ;;  %v13262_v50 = vpop.f32.mrf.mxu0 }
 0x279   :  { %6363 = vmatpush2.bf16.msra.mxu1 %v9228_v56  ;;  %v9039_v30 = vcombine.high %v4722_v9, %v4726_v2  ;;  %v4794_v56 = vld [vmem:[%s15362_s3 + $0x2c8] sm:$0xff] }
 0x27a   :  { %6364 = vmatprep.subr.bf16.mxu1 %v9221_v59  ;;  %v4786_v59 = vld [vmem:[%s15362_s3 + $0x288] sm:$0xff]  ;;  %v9110_v24 = vcombine.low %v4794_v56, %v4798_v28  ;;  %v13272_v48 = vpop.f32.mrf.mxu0 }
 0x27b   :  { %6312 = vmatpush2.bf16.msra.mxu0 %v9092_v0  ;;  %v4714_v0 = vld [vmem:[%s15362_s3 + $0x48] sm:$0xff] }
 0x27c   :  { %6313 = vmatprep.subr.bf16.mxu0 %v9085_v14  ;;  %v9038_v14 = vcombine.low %v4722_v9, %v4726_v2  ;;  %v9031_v47 = vcombine.high %v4714_v0, %v4718_v34  ;;  %v9030_v55 = vcombine.low %v4714_v0, %v4718_v34  ;;  %v4770_v2 = vld [vmem:[%s15362_s3 + $0x208] sm:$0xff] }
 0x27d   :  { %6365 = vmatpush2.bf16.msra.mxu1 %v9220_v61 }
 0x27e   :  { %6366 = vmatprep.subr.bf16.mxu1 %v9213_v1 }
 0x27f   :  { %6314 = vmatpush2.bf16.msra.mxu0 %v9084_v13  ;;  %v4830_v13 = vld [vmem:[%s15362_s3 + $0x3e8] sm:$0xff] }
 0x280   :  { %6389 = vmatprep.subr.bf16.mxu0 %v9079_v31  ;;  %v9143_v31 = vcombine.high %v4826_v7, %v4830_v13  ;;  %v9142_v54 = vcombine.low %v4826_v7, %v4830_v13  ;;  %v4755_v13 = vld [vmem:[%s15362_s3 + $0x190] sm:$0xff] }
 0x281   :  { %6367 = vmatpush2.bf16.msra.mxu1 %v9212_v20  ;;  %v13282_v20 = vpop.f32.mrf.mxu0 }
 0x282   :  { %6316 = vmatmul.mubr.bf16.vlgmr.msra.gmra.mxu0 %v12739_v42  ;;  %6442 = vmatprep.subr.bf16.mxu1 %v9207_v53 }
 0x283   :  { %6325 = vmatprep.mubr.bf16.mxu0 %v13140_v11  ;;  %6390 = vmatpush1.bf16.msra.mxu0 %v9078_v37  ;;  %v4810_v37 = vld [vmem:[%s15362_s3 + $0x348] sm:$0xff]  ;;  %v13292_v0 = vpop.f32.mrf.mxu0 }
 0x284   :  { %6391 = vmatprep.subr.bf16.mxu0 %v9071_v43  ;;  %v13242_v43 = vpop.f32.mrf.mxu1  ;;  %v9127_v38 = vcombine.high %v4810_v37, %v4814_v32  ;;  %v9126_v49 = vcombine.low %v4810_v37, %v4814_v32  ;;  %v4751_v37 = vld [vmem:[%s15362_s3 + $0x170] sm:$0xff] }
 0x287   :  { %6392 = vmatpush1.bf16.msra.mxu0 %v9070_v33  ;;  %v13250_v33 = vpop.f32.mrf.mxu1 }
 0x288   :  { %6393 = vmatprep.subr.bf16.mxu0 %v9063_v63  ;;  %v9119_v63 = vcombine.high %v4802_v39, %v4806_v41  ;;  %v4739_v41 = vld [vmem:[%s15362_s3 + $0x110] sm:$0xff] }
 0x289   :  { %v13260_v58 = vpop.f32.mrf.mxu1 }
 0x28a   :  { %6326 = vmatmul.mubr.bf16.gmra.mxu0 %v12774_v5 }
 0x28b   :  { %6394 = vmatpush1.bf16.msra.mxu0 %v9062_v57  ;;  %6421 = vmatprep.mubr.bf16.mxu0 %v12958_v18  ;;  %v9111_v57 = vcombine.high %v4794_v56, %v4798_v28  ;;  %v13270_v61 = vpop.f32.mrf.mxu1 }
 0x28c   :  { %6395 = vmatprep.subr.bf16.mxu0 %v9055_v51  ;;  %v4790_v51 = vld [vmem:[%s15362_s3 + $0x2a8] sm:$0xff] }
 0x28d   :  { %v9103_v62 = vcombine.high %v4786_v59, %v4790_v51  ;;  %v13280_v1 = vpop.f32.mrf.mxu1 }
 0x28f   :  { %6396 = vmatpush1.bf16.msra.mxu0 %v9054_v8  ;;  %v4782_v8 = vld [vmem:[%s15362_s3 + $0x268] sm:$0xff]  ;;  %v13290_v53 = vpop.f32.mrf.mxu1 }
 0x290   :  { %6397 = vmatprep.subr.bf16.mxu0 %v9047_v26  ;;  %v9102_v26 = vcombine.low %v4786_v59, %v4790_v51  ;;  %v9095_v9 = vcombine.high %v4778_v52, %v4782_v8  ;;  %v4735_v59 = vld [vmem:[%s15362_s3 + $0xf0] sm:$0xff] }
 0x291   :  { %v13300_v44 = vpop.f32.mrf.mxu1 }
 0x293   :  { %6398 = vmatpush1.bf16.msra.mxu0 %v9046_v46  ;;  %v4774_v46 = vld [vmem:[%s15362_s3 + $0x228] sm:$0xff] }
 0x294   :  { %6399 = vmatprep.subr.bf16.mxu0 %v9039_v30  ;;  %v9094_v30 = vcombine.low %v4778_v52, %v4782_v8  ;;  %v9087_v34 = vcombine.high %v4770_v2, %v4774_v46  ;;  %v9086_v10 = vcombine.low %v4770_v2, %v4774_v46  ;;  %v4723_v8 = vld [vmem:[%s15362_s3 + $0x90] sm:$0xff] }
 0x297   :  { %6400 = vmatpush1.bf16.msra.mxu0 %v9038_v14  ;;  %v4763_v14 = vld [vmem:[%s15362_s3 + $0x1d0] sm:$0xff] }
 0x298   :  { %6401 = vmatprep.subr.bf16.mxu0 %v9031_v47  ;;  %v4767_v47 = vld [vmem:[%s15362_s3 + $0x1f0] sm:$0xff] }
 0x299   :  { %v9081_v7 = vcombine.high %v4763_v14, %v4767_v47 }
 0x29b   :  { %6402 = vmatpush1.bf16.msra.mxu0 %v9030_v55  ;;  %v13302_v55 = vpop.f32.mrf.mxu0 }
 0x29c   :  { %6403 = vmatprep.subr.bf16.mxu0 %v9023_v15  ;;  %v13304_v15 = vpop.f32.mrf.mxu1 }
 0x29d   :  { %v13312_v45 = vpop.f32.mrf.mxu0 }
 0x29e   :  { %v13314_v25 = vpop.f32.mrf.mxu1 }
 0x29f   :  { %6404 = vmatpush1.bf16.msra.mxu0 %v9022_v22  ;;  %v4759_v22 = vld [vmem:[%s15362_s3 + $0x1b0] sm:$0xff] }
 0x2a0   :  { %6405 = vmatprep.subr.bf16.mxu0 %v9143_v31  ;;  %v9080_v31 = vcombine.low %v4763_v14, %v4767_v47  ;;  %v9072_v32 = vcombine.low %v4755_v13, %v4759_v22  ;;  %v4719_v14 = vld [vmem:[%s15362_s3 + $0x70] sm:$0xff] }
 0x2a3   :  { %6406 = vmatpush2.bf16.msra.mxu0 %v9142_v54  ;;  %v9073_v54 = vcombine.high %v4755_v13, %v4759_v22  ;;  %v4707_v22 = vld [vmem:[%s15362_s3 + $0x10] sm:$0xff] }
 0x2a4   :  { %6407 = vmatprep.subr.bf16.mxu0 %v9135_v36  ;;  %v4747_v36 = vld [vmem:[%s15362_s3 + $0x150] sm:$0xff] }
 0x2a5   :  { %v9065_v39 = vcombine.high %v4747_v36, %v4751_v37  ;;  %v9064_v56 = vcombine.low %v4747_v36, %v4751_v37 }
 0x2a7   :  { %6408 = vmatpush2.bf16.msra.mxu0 %v9134_v27  ;;  %v13324_v27 = vpop.f32.mrf.mxu0 }
 0x2a8   :  { %6409 = vmatprep.subr.bf16.mxu0 %v9127_v38  ;;  %v13326_v38 = vpop.f32.mrf.mxu1 }
 0x2aa   :  { %v13336_v28 = vpop.f32.mrf.mxu1 }
 0x2ab   :  { %6410 = vmatpush2.bf16.msra.mxu0 %v9126_v49  ;;  %v4743_v49 = vld [vmem:[%s15362_s3 + $0x130] sm:$0xff] }
 0x2ac   :  { %6411 = vmatprep.subr.bf16.mxu0 %v9119_v63  ;;  %v13334_v63 = vpop.f32.mrf.mxu0  ;;  %v13344_v51 = vpop.f32.mrf.mxu1 }
 0x2af   :  { %6412 = vmatpush2.bf16.msra.mxu0 %v9118_v12  ;;  %v9057_v12 = vcombine.high %v4739_v41, %v4743_v49 }
 0x2b0   :  { %6413 = vmatprep.subr.bf16.mxu0 %v9111_v57  ;;  %v4731_v57 = vld [vmem:[%s15362_s3 + $0xd0] sm:$0xff] }
 0x2b1   :  { %v9049_v52 = vcombine.high %v4731_v57, %v4735_v59  ;;  %v9048_v46 = vcombine.low %v4731_v57, %v4735_v59 }
 0x2b3   :  { %6414 = vmatpush2.bf16.msra.mxu0 %v9110_v24  ;;  %v13346_v24 = vpop.f32.mrf.mxu0 }
 0x2b4   :  { %6415 = vmatprep.subr.bf16.mxu0 %v9103_v62  ;;  %v9056_v62 = vcombine.low %v4739_v41, %v4743_v49  ;;  %v4827_v41 = vld [vmem:[%s15362_s3 + $0x3d0] sm:$0xff] }
 0x2b5   :  { %v13358_v2 = vpop.f32.mrf.mxu0  ;;  %v4831_v49 = vld [vmem:[%s15362_s3 + $0x3f0] sm:$0xff] }
 0x2b6   :  { %v9145_v59 = vcombine.high %v4827_v41, %v4831_v49 }
 0x2b7   :  { %6416 = vmatpush2.bf16.msra.mxu0 %v9102_v26  ;;  %v4727_v26 = vld [vmem:[%s15362_s3 + $0xb0] sm:$0xff] }
 0x2b8   :  { %6417 = vmatprep.subr.bf16.mxu0 %v9095_v9  ;;  %v13356_v9 = vpop.f32.mrf.mxu1 }
 0x2ba   :  { %v13366_v47 = vpop.f32.mrf.mxu1 }
 0x2bb   :  { %6418 = vmatpush2.bf16.msra.mxu0 %v9094_v30  ;;  %v9041_v30 = vcombine.high %v4723_v8, %v4727_v26 }
 0x2bc   :  { %6419 = vmatprep.subr.bf16.mxu0 %v9087_v34  ;;  %v4715_v34 = vld [vmem:[%s15362_s3 + $0x50] sm:$0xff] }
 0x2bd   :  { %v9033_v13 = vcombine.high %v4715_v34, %v4719_v14  ;;  %v9032_v37 = vcombine.low %v4715_v34, %v4719_v14  ;;  %v4811_v34 = vld [vmem:[%s15362_s3 + $0x350] sm:$0xff] }
 0x2be   :  { %v4815_v14 = vld [vmem:[%s15362_s3 + $0x370] sm:$0xff] }
 0x2bf   :  { %6420 = vmatpush2.bf16.msra.mxu0 %v9086_v10  ;;  %v13368_v10 = vpop.f32.mrf.mxu0 }
 0x2c0   :  { %6495 = vmatprep.subr.bf16.mxu0 %v9081_v7  ;;  %v9040_v7 = vcombine.low %v4723_v8, %v4727_v26  ;;  %v9144_v26 = vcombine.low %v4827_v41, %v4831_v49  ;;  %v4807_v41 = vld [vmem:[%s15362_s3 + $0x330] sm:$0xff] }
 0x2c1   :  { %v13378_v36 = vpop.f32.mrf.mxu0 }
 0x2c2   :  { %6422 = vmatmul.mubr.bf16.vlgmr.msra.gmra.mxu0 %v12739_v42 }
 0x2c3   :  { %6431 = vmatprep.mubr.bf16.mxu0 %v13140_v11  ;;  %6496 = vmatpush1.bf16.msra.mxu0 %v9080_v31  ;;  %v4711_v31 = vld [vmem:[%s15362_s3 + $0x30] sm:$0xff] }
 0x2c4   :  { %6497 = vmatprep.subr.bf16.mxu0 %v9073_v54  ;;  %v13376_v54 = vpop.f32.mrf.mxu1 }
 0x2c7   :  { %6498 = vmatpush1.bf16.msra.mxu0 %v9072_v32  ;;  %v13380_v32 = vpop.f32.mrf.mxu1 }
 0x2c8   :  { %6499 = vmatprep.subr.bf16.mxu0 %v9065_v39  ;;  %15505 = vst [vmem:[#allocation9_spill] sm:$0xff] %v13380_v32  ;;  %v9025_v39 = vcombine.high %v4707_v22, %v4711_v31 }
 0x2c9   :  { %v13390_v57 = vpop.f32.mrf.mxu1 }
 0x2ca   :  { %6432 = vmatmul.mubr.bf16.gmra.mxu0 %v12774_v5  ;;  %v4783_v5 = vld [vmem:[%s15362_s3 + $0x270] sm:$0xff] }
 0x2cb   :  { %6500 = vmatpush1.bf16.msra.mxu0 %v9064_v56  ;;  %6527 = vmatprep.mubr.bf16.mxu0 %v12958_v18  ;;  %v13388_v56 = vpop.f32.mrf.mxu0  ;;  %v4779_v18 = vld [vmem:[%s15362_s3 + $0x250] sm:$0xff] }
 0x2cc   :  { %6501 = vmatprep.subr.bf16.mxu0 %v9057_v12  ;;  %v9024_v12 = vcombine.low %v4707_v22, %v4711_v31 }
 0x2cd   :  { %v13398_v8 = vpop.f32.mrf.mxu0 }
 0x2cf   :  { %6502 = vmatpush1.bf16.msra.mxu0 %v9056_v62  ;;  %v4819_v62 = vld [vmem:[%s15362_s3 + $0x390] sm:$0xff] }
 0x2d0   :  { %6503 = vmatprep.subr.bf16.mxu0 %v9049_v52  ;;  %v4823_v52 = vld [vmem:[%s15362_s3 + $0x3b0] sm:$0xff] }
 0x2d3   :  { %6504 = vmatpush1.bf16.msra.mxu0 %v9048_v46  ;;  %v13400_v46 = vpop.f32.mrf.mxu1 }
 0x2d4   :  { %6505 = vmatprep.subr.bf16.mxu0 %v9041_v30  ;;  %15506 = vst [vmem:[#allocation10_spill] sm:$0xff] %v13400_v46  ;;  %v9137_v30 = vcombine.high %v4819_v62, %v4823_v52  ;;  %v9097_v46 = vcombine.high %v4779_v18, %v4783_v5 }
 0x2d5   :  { %v13410_v22 = vpop.f32.mrf.mxu1 }
 0x2d6   :  { %15507 = vst [vmem:[#allocation11_spill] sm:$0xff] %v13410_v22 }
 0x2d7   :  { %6506 = vmatpush1.bf16.msra.mxu0 %v9040_v7  ;;  %v13408_v7 = vpop.f32.mrf.mxu0  ;;  %v13420_v49 = vpop.f32.mrf.mxu1 }
 0x2d8   :  { %6507 = vmatprep.subr.bf16.mxu0 %v9033_v13  ;;  %v9136_v13 = vcombine.low %v4819_v62, %v4823_v52  ;;  %v13425_v52 = vsub.s32 3, %v11667_v23  ;;  %v4791_v23 = vld [vmem:[%s15362_s3 + $0x2b0] sm:$0xff] }
 0x2d9   :  { %v13412_v31 = vpop.f32.mrf.mxu0  ;;  %v9105_v40 = vcombine.high %v4787_v4, %v4791_v23 }
 0x2da   :  { %15508 = vst [vmem:[#allocation12_spill] sm:$0xff] %v13425_v52  ;;  %v662_v3 = vrot.slane %v10682_v29, %v13425_v52 }
 0x2db   :  { %6508 = vmatpush1.bf16.msra.mxu0 %v9032_v37  ;;  %v9129_v37 = vcombine.high %v4811_v34, %v4815_v14 }
 0x2dc   :  { %6509 = vmatprep.subr.bf16.mxu0 %v9025_v39  ;;  %v4803_v39 = vld [vmem:[%s15362_s3 + $0x310] sm:$0xff]  ;;  %v4241_v52 = vadd.f32 %v13216_v16, %v662_v3  ;;  %v4245_v32 = vadd.f32 %v13232_v17, %v662_v3 }
 0x2dd   :  { %v9121_v62 = vcombine.high %v4803_v39, %v4807_v41 }
 0x2df   :  { %6510 = vmatpush1.bf16.msra.mxu0 %v9024_v12  ;;  %v9128_v12 = vcombine.low %v4811_v34, %v4815_v14  ;;  %v9120_v34 = vcombine.low %v4803_v39, %v4807_v41  ;;  %v658_v39 = vrot.slane %v10682_v29, %v13434_v6 }
 0x2e0   :  { %6511 = vmatprep.subr.bf16.mxu0 %v9145_v59  ;;  %v13422_v59 = vpop.f32.mrf.mxu0 }
 0x2e1   :  { %v4239_v29 = vadd.f32 %v13208_v19, %v658_v39 }
 0x2e2   :  { %v13438_v14 = vpop.f32.mrf.mxu0 }
 0x2e3   :  { %6512 = vmatpush2.bf16.msra.mxu0 %v9144_v26  ;;  %v4795_v26 = vld [vmem:[%s15362_s3 + $0x2d0] sm:$0xff]  ;;  %v4292_v16 = vadd.f32 %v13252_v60, %v4239_v29  ;;  %v4298_v60 = vadd.f32 %v13282_v20, %v4245_v32 }
 0x2e4   :  { %6513 = vmatprep.subr.bf16.mxu0 %v9137_v30  ;;  %v4799_v30 = vld [vmem:[%s15362_s3 + $0x2f0] sm:$0xff] }
 0x2e7   :  { %6514 = vmatpush2.bf16.msra.mxu0 %v9136_v13  ;;  %v13436_v13 = vpop.f32.mrf.mxu1 }
 0x2e8   :  { %6515 = vmatprep.subr.bf16.mxu0 %v9129_v37  ;;  %v9113_v37 = vcombine.high %v4795_v26, %v4799_v30 }
 0x2e9   :  { %v13451_v41 = vpop.f32.mrf.mxu1 }
 0x2eb   :  { %6516 = vmatpush2.bf16.msra.mxu0 %v9128_v12  ;;  %v9112_v12 = vcombine.low %v4795_v26, %v4799_v30  ;;  %v13463_v6 = vpop.f32.mrf.mxu1  ;;  %v4243_v26 = vadd.f32 %v13224_v21, %v658_v39  ;;  %v4294_v30 = vadd.f32 %v13262_v50, %v4241_v52  ;;  %v4771_v21 = vld [vmem:[%s15362_s3 + $0x210] sm:$0xff]  ;;  %v9096_v50 = vcombine.low %v4779_v18, %v4783_v5  ;;  %v4768_v5 = vld [vmem:[%s15362_s3 + $0x1f8] sm:$0xff] }
 0x2ec   :  { %6517 = vmatprep.subr.bf16.mxu0 %v9121_v62  ;;  %v13453_v62 = vpop.f32.mrf.mxu0  ;;  %v4249_v18 = vadd.f32 %v13234_v35, %v658_v39 }
 0x2ed   :  { %v13470_v22 = vpop.f32.mrf.mxu1  ;;  %v4296_v19 = vadd.f32 %v13272_v48, %v4243_v26 }
 0x2ef   :  { %6518 = vmatpush2.bf16.msra.mxu0 %v9120_v34  ;;  %v9104_v34 = vcombine.low %v4787_v4, %v4791_v23  ;;  %v4775_v23 = vld [vmem:[%s15362_s3 + $0x230] sm:$0xff]  ;;  %v4347_v4 = vadd.f32 %v13280_v1, %v4294_v30  ;;  %v13485_v17 = vpop.f32.mrf.mxu1  ;;  %v4349_v29 = vadd.f32 %v13290_v53, %v4296_v19  ;;  %v4764_v1 = vld [vmem:[%s15362_s3 + $0x1d8] sm:$0xff]  ;;  %v4302_v30 = vadd.f32 %v13292_v0, %v4249_v18 }
 0x2f0   :  { %6519 = vmatprep.subr.bf16.mxu0 %v9113_v37  ;;  %v13468_v37 = vpop.f32.mrf.mxu0  ;;  %v9089_v48 = vcombine.high %v4771_v21, %v4775_v23  ;;  %v9088_v32 = vcombine.low %v4771_v21, %v4775_v23  ;;  %v9083_v35 = vcombine.high %v4764_v1, %v4768_v5 }
 0x2f1   :  { %v4400_v26 = vadd.f32 %v13346_v24, %v4347_v4  ;;  %v4402_v24 = vadd.f32 %v13358_v2, %v4349_v29 }
 0x2f2   :  { %v13483_v52 = vpop.f32.mrf.mxu0 }
 0x2f3   :  { %6520 = vmatpush2.bf16.msra.mxu0 %v9112_v12  ;;  %v4251_v12 = vadd.f32 %v13242_v43, %v662_v3  ;;  %v4351_v43 = vadd.f32 %v13300_v44, %v4298_v60  ;;  %v4453_v44 = vadd.f32 %v13356_v9, %v4400_v26 }
 0x2f4   :  { %6521 = vmatprep.subr.bf16.mxu0 %v9105_v40  ;;  %v4345_v40 = vadd.f32 %v13270_v61, %v4292_v16  ;;  %v4253_v61 = vadd.f32 %v13250_v33, %v658_v39  ;;  %v13506_v16 = vpop.f32.mrf.mxu1  ;;  %v4355_v39 = vadd.f32 %v13304_v15, %v4302_v30  ;;  %v4752_v15 = vld [vmem:[%s15362_s3 + $0x178] sm:$0xff] }
 0x2f5   :  { %v4304_v53 = vadd.f32 %v13302_v55, %v4251_v12  ;;  %v4404_v55 = vadd.f32 %v13368_v10, %v4351_v43  ;;  %v4506_v9 = vadd.f32 %v13422_v59, %v4453_v44  ;;  %v9082_v10 = vcombine.low %v4764_v1, %v4768_v5  ;;  %v4748_v59 = vld [vmem:[%s15362_s3 + $0x158] sm:$0xff]  ;;  %v15511_v43 = vld [vmem:[#allocation10_spill] sm:$0xff] }
 0x2f6   :  { %v4398_v20 = vadd.f32 %v13334_v63, %v4345_v40  ;;  %v4306_v33 = vadd.f32 %v13312_v45, %v4253_v61  ;;  %v4756_v63 = vld [vmem:[%s15362_s3 + $0x198] sm:$0xff]  ;;  %v4455_v45 = vadd.f32 %v13366_v47, %v4402_v24  ;;  %v13524_v23 = vpop.f32.mrf.mxu1  ;;  %v4408_v60 = vadd.f32 %v13378_v36, %v4355_v39 }
 0x2f7   :  { %6522 = vmatpush2.bf16.msra.mxu0 %v9104_v34  ;;  %v13504_v34 = vpop.f32.mrf.mxu0  ;;  %v4357_v2 = vadd.f32 %v13314_v25, %v4304_v53  ;;  %v9067_v29 = vcombine.high %v4748_v59, %v4752_v15 }
 0x2f8   :  { %6523 = vmatprep.subr.bf16.mxu0 %v9097_v46  ;;  %v4255_v46 = vadd.f32 %v13260_v58, %v662_v3  ;;  %v4760_v3 = vld [vmem:[%s15362_s3 + $0x1b8] sm:$0xff]  ;;  %v4451_v0 = vadd.f32 %v13344_v51, %v4398_v20  ;;  %v4457_v51 = vadd.f32 %v13376_v54, %v4404_v55  ;;  %v4508_v47 = vadd.f32 %v13438_v14, %v4455_v45 }
 0x2f9   :  { %v4519_v21 = vpop.f32.mrf.mxu0  ;;  %v9075_v4 = vcombine.high %v4756_v63, %v4760_v3  ;;  %v4410_v25 = vadd.f32 %v13388_v56, %v4357_v2  ;;  %v9074_v54 = vcombine.low %v4756_v63, %v4760_v3  ;;  %v4559_v14 = vadd.f32 %v13436_v13, %v4506_v9  ;;  %v4740_v13 = vld [vmem:[%s15362_s3 + $0x118] sm:$0xff] }
 0x2fa   :  { %v4308_v58 = vadd.f32 %v13324_v27, %v4255_v46  ;;  %v4504_v19 = vadd.f32 %v13412_v31, %v4451_v0  ;;  %v4359_v27 = vadd.f32 %v13326_v38, %v4306_v33  ;;  %v4510_v40 = vadd.f32 %v13453_v62, %v4457_v51  ;;  %v4744_v62 = vld [vmem:[%s15362_s3 + $0x138] sm:$0xff] }
 0x2fb   :  { %6524 = vmatpush2.bf16.msra.mxu0 %v9096_v50  ;;  %v4463_v26 = vadd.f32 %v13390_v57, %v4410_v25  ;;  %v4561_v1 = vadd.f32 %v13451_v41, %v4508_v47  ;;  %v9066_v20 = vcombine.low %v4748_v59, %v4752_v15  ;;  %v9059_v44 = vcombine.high %v4740_v13, %v4744_v62  ;;  %v4882_v59 = vld [vmem:[%s15362_s3 + $0x588] sm:$0xff] }
 0x2fc   :  { %6525 = vmatprep.subr.bf16.mxu0 %v9089_v48  ;;  %v4361_v31 = vadd.f32 %v13336_v28, %v4308_v58  ;;  %v4412_v56 = vadd.f32 %v13398_v8, %v4359_v27  ;;  %v4557_v28 = vadd.f32 %v13420_v49, %v4504_v19  ;;  %v4563_v57 = vadd.f32 %v13463_v6, %v4510_v40  ;;  %v4732_v6 = vld [vmem:[%s15362_s3 + $0xd8] sm:$0xff]  ;;  %v15514_v19 = vld [vmem:[#allocation6_spill] sm:$0xff] }
 0x2fd   :  { %v4516_v41 = vadd.f32 %v13483_v52, %v4463_v26  ;;  %v4736_v52 = vld [vmem:[%s15362_s3 + $0xf8] sm:$0xff]  ;;  %v9058_v9 = vcombine.low %v4740_v13, %v4744_v62 }
 0x2fe   :  { %v4414_v48 = vadd.f32 %v13408_v7, %v4361_v31  ;;  %v15510_v7 = vld [vmem:[#allocation9_spill] sm:$0xff]  ;;  %v4465_v53 = vadd.f32 %v15511_v43, %v4412_v56  ;;  %v9051_v47 = vcombine.high %v4732_v6, %v4736_v52  ;;  %v15516_v43 = vld [vmem:[#allocation8_spill] sm:$0xff] }
 0x2ff   :  { %6526 = vmatpush2.bf16.msra.mxu0 %v9088_v32  ;;  %v4461_v5 = vadd.f32 %v15510_v7, %v4408_v60  ;;  %v15512_v32 = vld [vmem:[#allocation11_spill] sm:$0xff] }
 0x300   :  { %6601 = vmatprep.subr.bf16.mxu0 %v9083_v35  ;;  %v4467_v46 = vadd.f32 %v15512_v32, %v4414_v48  ;;  %v4518_v55 = vadd.f32 %v13504_v34, %v4465_v53  ;;  %v4886_v60 = vld [vmem:[%s15362_s3 + $0x5a8] sm:$0xff] }
 0x301   :  { %v4514_v30 = vadd.f32 %v13468_v37, %v4461_v5  ;;  %v15513_v37 = vld [vmem:[#allocation5_spill] sm:$0xff]  ;;  %v9199_v26 = vcombine.high %v4882_v59, %v4886_v60 }
 0x302   :  { %v4609_v50 = vpop.f32.mrf.mxu0  ;;  %6528 = vmatmul.mubr.bf16.vlgmr.msra.gmra.mxu0 %v12739_v42  ;;  %v4520_v34 = vadd.f32 %v4519_v21, %v4467_v46  ;;  %v4571_v15 = vadd.f32 %v13506_v16, %v4518_v55  ;;  %v4716_v5 = vld [vmem:[%s15362_s3 + $0x58] sm:$0xff] }
 0x303   :  { %v4662_v38 = vpop.f32.mrf.mxu1  ;;  %6537 = vmatprep.mubr.bf16.mxu0 %v13140_v11  ;;  %6602 = vmatpush1.bf16.msra.mxu0 %v9082_v10  ;;  %v4610_v49 = vadd.f32 %v4609_v50, %v4557_v28  ;;  %v4569_v10 = vadd.f32 %v13485_v17, %v4516_v41  ;;  %v4728_v50 = vld [vmem:[%s15362_s3 + $0xb8] sm:$0xff]  ;;  %v9050_v28 = vcombine.low %v4732_v6, %v4736_v52 }
 0x304   :  { %v4611_v12 = vpop.f32.mrf.mxu0  ;;  %6603 = vmatprep.subr.bf16.mxu0 %v9075_v4  ;;  %v4567_v4 = vadd.f32 %v13470_v22, %v4514_v30  ;;  %v4724_v22 = vld [vmem:[%s15362_s3 + $0x98] sm:$0xff]  ;;  %v4573_v16 = vadd.f32 %v13524_v23, %v4520_v34  ;;  %v4878_v23 = vld [vmem:[%s15362_s3 + $0x568] sm:$0xff] }
 0x305   :  { %v4664_v36 = vpop.f32.mrf.mxu1  ;;  %v4612_v8 = vadd.f32 %v4611_v12, %v4559_v14  ;;  %v4663_v0 = vadd.f32 %v4662_v38, %v4610_v49  ;;  %v4720_v49 = vld [vmem:[%s15362_s3 + $0x78] sm:$0xff]  ;;  %v9042_v41 = vcombine.low %v4724_v22, %v4728_v50 }
 0x306   :  { %v4613_v18 = vpop.f32.mrf.mxu0  ;;  %v9035_v46 = vcombine.high %v4716_v5, %v4720_v49  ;;  %v4828_v34 = vld [vmem:[%s15362_s3 + $0x3d8] sm:$0xff] }
 0x307   :  { %v4666_v61 = vpop.f32.mrf.mxu1  ;;  %v4614_v24 = vadd.f32 %v4613_v18, %v4561_v1  ;;  %6604 = vmatpush1.bf16.msra.mxu0 %v9074_v54  ;;  %v4665_v63 = vadd.f32 %v4664_v36, %v4612_v8  ;;  %v4683_v38 = vmax.f32 %v4663_v0, 0.0  ;;  %v9043_v1 = vcombine.high %v4724_v22, %v4728_v50  ;;  %v4874_v8 = vld [vmem:[%s15362_s3 + $0x548] sm:$0xff]  ;;  %v4812_v50 = vld [vmem:[%s15362_s3 + $0x358] sm:$0xff] }
 0x308   :  { %v4615_v35 = vpop.f32.mrf.mxu0  ;;  %6605 = vmatprep.subr.bf16.mxu0 %v9067_v29  ;;  %v9191_v32 = vcombine.high %v4874_v8, %v4878_v23  ;;  %v9190_v6 = vcombine.low %v4874_v8, %v4878_v23  ;;  %v9034_v0 = vcombine.low %v4716_v5, %v4720_v49  ;;  %v4846_v22 = vld [vmem:[%s15362_s3 + $0x468] sm:$0xff]  ;;  %v4796_v23 = vld [vmem:[%s15362_s3 + $0x2d8] sm:$0xff] }
 0x309   :  { %v4668_v33 = vpop.f32.mrf.mxu1  ;;  %v4667_v3 = vadd.f32 %v4666_v61, %v4614_v24  ;;  %v4616_v58 = vadd.f32 %v4615_v35, %v4563_v57  ;;  %v4684_v31 = vmax.f32 %v4665_v63, 0.0  ;;  %v9198_v57 = vcombine.low %v4882_v59, %v4886_v60  ;;  %v4708_v63 = vld [vmem:[%s15362_s3 + $0x18] sm:$0xff]  ;;  %v4954_v8 = vld [vmem:[%s15362_s3 + $0x7c8] sm:$0xff] }
 0x30a   :  { %v4619_v2 = vpop.f32.mrf.mxu0  ;;  %6538 = vmatmul.mubr.bf16.gmra.mxu0 %v15513_v37  ;;  %v4820_v59 = vld [vmem:[%s15362_s3 + $0x398] sm:$0xff] }
 0x30b   :  { %v4672_v45 = vpop.f32.mrf.mxu1  ;;  %v4669_v39 = vadd.f32 %v4668_v33, %v4616_v58  ;;  %6606 = vmatpush1.bf16.msra.mxu0 %v9066_v20  ;;  %6633 = vmatprep.mubr.bf16.mxu0 %v15514_v19  ;;  %v4687_v27 = vmax.f32 %v4667_v3, 0.0  ;;  %v4620_v54 = vadd.f32 %v4619_v2, %v4567_v4  ;;  %v15515_v20 = vld [vmem:[#allocation7_spill] sm:$0xff]  ;;  %v4712_v3 = vld [vmem:[%s15362_s3 + $0x38] sm:$0xff] }
 0x30c   :  { %v4621_v51 = vpop.f32.mrf.mxu0  ;;  %6607 = vmatprep.subr.bf16.mxu0 %v9059_v44  ;;  %v15517_v53 = vcombine.low %v15515_v20, %v15516_v43  ;;  %v4866_v33 = vld [vmem:[%s15362_s3 + $0x508] sm:$0xff]  ;;  %v9026_v4 = vcombine.low %v4708_v63, %v4712_v3  ;;  %v4800_v5 = vld [vmem:[%s15362_s3 + $0x2f8] sm:$0xff] }
 0x30d   :  { %v4674_v25 = vpop.f32.mrf.mxu1  ;;  %v4688_v17 = vmax.f32 %v4669_v39, 0.0  ;;  %v4622_v21 = vadd.f32 %v4621_v51, %v4569_v10  ;;  %v13586_v12 = vpack.c.bf16 %v4687_v27, %v4683_v38  ;;  %v4673_v18 = vadd.f32 %v4672_v45, %v4620_v54  ;;  %v4870_v44 = vld [vmem:[%s15362_s3 + $0x528] sm:$0xff]  ;;  %v4832_v39 = vld [vmem:[%s15362_s3 + $0x3f8] sm:$0xff] }
 0x30e   :  { %v4623_v56 = vpop.f32.mrf.mxu0  ;;  %v9183_v2 = vcombine.high %v4866_v33, %v4870_v44  ;;  %v9027_v45 = vcombine.high %v4708_v63, %v4712_v3  ;;  %v4862_v10 = vld [vmem:[%s15362_s3 + $0x4e8] sm:$0xff]  ;;  %v9182_v19 = vcombine.low %v4866_v33, %v4870_v44  ;;  %v9147_v51 = vcombine.high %v4828_v34, %v4832_v39  ;;  %v4816_v38 = vld [vmem:[%s15362_s3 + $0x378] sm:$0xff] }
 0x30f   :  { %v4676_v14 = vpop.f32.mrf.mxu1  ;;  %v13584_v40 = vpack.c.bf16 %v4688_v17, %v4684_v31  ;;  %v4624_v48 = vadd.f32 %v4623_v56, %v4571_v15  ;;  %6608 = vmatpush1.bf16.msra.mxu0 %v9058_v9  ;;  %v4675_v13 = vadd.f32 %v4674_v25, %v4622_v21  ;;  %v4691_v55 = vmax.f32 %v4673_v18, 0.0  ;;  %v4858_v9 = vld [vmem:[%s15362_s3 + $0x4c8] sm:$0xff]  ;;  %v4824_v15 = vld [vmem:[%s15362_s3 + $0x3b8] sm:$0xff] }
 0x310   :  { %v4625_v36 = vpop.f32.mrf.mxu0  ;;  %6609 = vmatprep.subr.bf16.mxu0 %v9051_v47  ;;  %v9175_v27 = vcombine.high %v4858_v9, %v4862_v10  ;;  %v4850_v25 = vld [vmem:[%s15362_s3 + $0x488] sm:$0xff]  ;;  %v9174_v31 = vcombine.low %v4858_v9, %v4862_v10  ;;  %v9146_v21 = vcombine.low %v4828_v34, %v4832_v39  ;;  %v9139_v54 = vcombine.high %v4820_v59, %v4824_v15  ;;  %v4780_v44 = vld [vmem:[%s15362_s3 + $0x258] sm:$0xff] }
 0x311   :  { %v4678_v29 = vpop.f32.mrf.mxu1  ;;  %v4626_v62 = vadd.f32 %v4625_v36, %v4573_v16  ;;  %v4677_v7 = vadd.f32 %v4676_v14, %v4624_v48  ;;  %6368 = vmatprep.mubr.bf16.mxu1 %v13584_v40  ;;  %v4692_v30 = vmax.f32 %v4675_v13, 0.0  ;;  %v4854_v47 = vld [vmem:[%s15362_s3 + $0x4a8] sm:$0xff]  ;;  %v9138_v48 = vcombine.low %v4820_v59, %v4824_v15  ;;  %v4804_v36 = vld [vmem:[%s15362_s3 + $0x318] sm:$0xff] }
 0x312   :  { %6369 = vmatmul.mubr.bf16.vlgmr.msra.gmra.mxu1 %v13586_v12  ;;  %v4842_v17 = vld [vmem:[%s15362_s3 + $0x448] sm:$0xff]  ;;  %v9167_v60 = vcombine.high %v4850_v25, %v4854_v47  ;;  %v9166_v56 = vcombine.low %v4850_v25, %v4854_v47  ;;  %v4772_v9 = vld [vmem:[%s15362_s3 + $0x218] sm:$0xff] }
 0x313   :  { %v4679_v61 = vadd.f32 %v4678_v29, %v4626_v62  ;;  %6443 = vmatpush1.bf16.msra.mxu1 %v15517_v53  ;;  %6610 = vmatpush1.bf16.msra.mxu0 %v9050_v28  ;;  %v4695_v24 = vmax.f32 %v4677_v7, 0.0  ;;  %v4834_v14 = vld [vmem:[%s15362_s3 + $0x408] sm:$0xff]  ;;  %v9159_v28 = vcombine.high %v4842_v17, %v4846_v22  ;;  %v4808_v29 = vld [vmem:[%s15362_s3 + $0x338] sm:$0xff]  ;;  %v9130_v62 = vcombine.low %v4812_v50, %v4816_v38 }
 0x314   :  { %6444 = vmatprep.subr.bf16.mxu1 %v9199_v26  ;;  %6611 = vmatprep.subr.bf16.mxu0 %v9043_v1  ;;  %v4838_v16 = vld [vmem:[%s15362_s3 + $0x428] sm:$0xff]  ;;  %v9131_v26 = vcombine.high %v4812_v50, %v4816_v38  ;;  %v9158_v1 = vcombine.low %v4842_v17, %v4846_v22  ;;  %v9123_v49 = vcombine.high %v4804_v36, %v4808_v29  ;;  %v4776_v10 = vld [vmem:[%s15362_s3 + $0x238] sm:$0xff] }
 0x315   :  { %v4696_v35 = vmax.f32 %v4679_v61, 0.0  ;;  %v13619_v52 = vpack.c.bf16 %v4695_v24, %v4691_v55  ;;  %v4958_v13 = vld [vmem:[%s15362_s3 + $0x7e8] sm:$0xff]  ;;  %v9151_v7 = vcombine.high %v4834_v14, %v4838_v16  ;;  %v9150_v18 = vcombine.low %v4834_v14, %v4838_v16  ;;  %v4784_v55 = vld [vmem:[%s15362_s3 + $0x278] sm:$0xff] }
 0x316   :  { %v4946_v61 = vld [vmem:[%s15362_s3 + $0x788] sm:$0xff]  ;;  %v9122_v43 = vcombine.low %v4804_v36, %v4808_v29  ;;  %v9271_v53 = vcombine.high %v4954_v8, %v4958_v13  ;;  %v9115_v24 = vcombine.high %v4796_v23, %v4800_v5  ;;  %v9099_v34 = vcombine.high %v4780_v44, %v4784_v55  ;;  %v10523_v36 = vld [vmem:[%s15363_s5 + $0xc0] ss:$16 sps:$4 sm:$0xff]  }
 0x317   :  { %v13617_v58 = vpack.c.bf16 %v4696_v35, %v4692_v30  ;;  %6445 = vmatpush1.bf16.msra.mxu1 %v9198_v57  ;;  %6612 = vmatpush1.bf16.msra.mxu0 %v9042_v41  ;;  %v4950_v20 = vld [vmem:[%s15362_s3 + $0x7a8] sm:$0xff]  ;;  %v4788_v57 = vld [vmem:[%s15362_s3 + $0x298] sm:$0xff]  ;;  %v9114_v35 = vcombine.low %v4796_v23, %v4800_v5  ;;  %v9091_v25 = vcombine.high %v4772_v9, %v4776_v10  ;;  %v4883_v23 = vld [vmem:[%s15362_s3 + $0x590] sm:$0xff] }
 0x318   :  { %6446 = vmatprep.subr.bf16.mxu1 %v9191_v32  ;;  %6613 = vmatprep.subr.bf16.mxu0 %v9035_v46  ;;  %v4792_v41 = vld [vmem:[%s15362_s3 + $0x2b8] sm:$0xff]  ;;  %v9270_v32 = vcombine.low %v4954_v8, %v4958_v13  ;;  %v4938_v46 = vld [vmem:[%s15362_s3 + $0x748] sm:$0xff]  ;;  %v9263_v33 = vcombine.high %v4946_v61, %v4950_v20  ;;  %v9262_v3 = vcombine.low %v4946_v61, %v4950_v20  ;;  %v10526_v8 = vld [vmem:[%s15363_s5 + $0xa0] ss:$16 sps:$4 sm:$0xff]  }
 0x319   :  { %6378 = vmatprep.mubr.bf16.mxu1 %v13617_v58  ;;  %v4942_v30 = vld [vmem:[%s15362_s3 + $0x768] sm:$0xff]  ;;  %v9107_v63 = vcombine.high %v4788_v57, %v4792_v41  ;;  %v10527_v13 = vld [vmem:[%s15363_s5 + $0x84] ss:$16 sps:$4 sm:$0xff]  }
 0x31a   :  { %6379 = vmatmul.mubr.bf16.gmra.mxu1 %v13619_v52  ;;  %v9254_v39 = vcombine.low %v4938_v46, %v4942_v30  ;;  %v4914_v59 = vld [vmem:[%s15362_s3 + $0x688] sm:$0xff]  ;;  %v4887_v5 = vld [vmem:[%s15362_s3 + $0x5b0] sm:$0xff] }
 0x31b   :  { %6447 = vmatpush1.bf16.msra.mxu1 %v9190_v6  ;;  %6474 = vmatprep.mubr.bf16.mxu1 %v13584_v40  ;;  %v4930_v6 = vld [vmem:[%s15362_s3 + $0x708] sm:$0xff]  ;;  %v9201_v61 = vcombine.high %v4883_v23, %v4887_v5  ;;  %v4875_v20 = vld [vmem:[%s15362_s3 + $0x550] sm:$0xff] }
 0x31c   :  { %6614 = vmatpush1.bf16.msra.mxu0 %v9034_v0  ;;  %6448 = vmatprep.subr.bf16.mxu1 %v9183_v2  ;;  %v4934_v0 = vld [vmem:[%s15362_s3 + $0x728] sm:$0xff]  ;;  %v9106_v2 = vcombine.low %v4788_v57, %v4792_v41  ;;  %v10533_v57 = vld [vmem:[%s15363_s5 + $0x44] ss:$16 sps:$4 sm:$0xff]   ;;  %v9200_v41 = vcombine.low %v4883_v23, %v4887_v5 }
 0x31d   :  { %6615 = vmatprep.subr.bf16.mxu0 %v9027_v45  ;;  %v9255_v45 = vcombine.high %v4938_v46, %v4942_v30  ;;  %v9246_v47 = vcombine.low %v4930_v6, %v4934_v0  ;;  %v4918_v15 = vld [vmem:[%s15362_s3 + $0x6a8] sm:$0xff]  ;;  %v4871_v46 = vld [vmem:[%s15362_s3 + $0x530] sm:$0xff] }
 0x31e   :  { %v9231_v22 = vcombine.high %v4914_v59, %v4918_v15  ;;  %v4906_v50 = vld [vmem:[%s15362_s3 + $0x648] sm:$0xff]  ;;  %v9230_v14 = vcombine.low %v4914_v59, %v4918_v15  ;;  %v10535_v30 = vld [vmem:[%s15363_s5 + $0x40] ss:$16 sps:$4 sm:$0xff]  }
 0x31f   :  { %6449 = vmatpush1.bf16.msra.mxu1 %v9182_v19  ;;  %v4922_v19 = vld [vmem:[%s15362_s3 + $0x6c8] sm:$0xff]  ;;  %v4835_v15 = vld [vmem:[%s15362_s3 + $0x410] sm:$0xff] }
 0x320   :  { %6616 = vmatpush1.bf16.msra.mxu0 %v9026_v4  ;;  %6450 = vmatprep.subr.bf16.mxu1 %v9175_v27  ;;  %v9098_v4 = vcombine.low %v4780_v44, %v4784_v55  ;;  %v9247_v27 = vcombine.high %v4930_v6, %v4934_v0  ;;  %v4910_v38 = vld [vmem:[%s15362_s3 + $0x668] sm:$0xff]  ;;  %v4859_v55 = vld [vmem:[%s15362_s3 + $0x4d0] sm:$0xff] }
 0x321   :  { %6617 = vmatprep.subr.bf16.mxu0 %v9147_v51  ;;  %v4926_v51 = vld [vmem:[%s15362_s3 + $0x6e8] sm:$0xff]  ;;  %v9223_v16 = vcombine.high %v4906_v50, %v4910_v38  ;;  %v10539_v6 = vld [vmem:[%s15363_s5 + $0x4] ss:$16 sps:$4 sm:$0xff]  }
 0x322   :  { %v9239_v17 = vcombine.high %v4922_v19, %v4926_v51  ;;  %v4931_v23 = vld [vmem:[%s15362_s3 + $0x710] sm:$0xff] }
 0x323   :  { %6451 = vmatpush1.bf16.msra.mxu1 %v9174_v31  ;;  %v9090_v31 = vcombine.low %v4772_v9, %v4776_v10  ;;  %v4855_v9 = vld [vmem:[%s15362_s3 + $0x4b0] sm:$0xff] }
 0x324   :  { %6618 = vmatpush2.bf16.msra.mxu0 %v9146_v21  ;;  %6452 = vmatprep.subr.bf16.mxu1 %v9167_v60  ;;  %v10518_v21 = vld [vmem:[%s15363_s5 + $0xe4] ss:$16 sps:$4 sm:$0xff]   ;;  %v9238_v60 = vcombine.low %v4922_v19, %v4926_v51  ;;  %v10541_v10 = vld [vmem:[%s15363_s5] ss:$16 sps:$4 sm:$0xff]  }
 0x325   :  { %6619 = vmatprep.subr.bf16.mxu0 %v9139_v54  ;;  %v10520_v54 = vld [vmem:[%s15363_s5 + $0xe0] ss:$16 sps:$4 sm:$0xff]  }
 0x326   :  { %v10544_v51 = vld [vmem:[%s15363_s5 + $0x1e0] ss:$16 sps:$4 sm:$0xff]  }
 0x327   :  { %6453 = vmatpush1.bf16.msra.mxu1 %v9166_v56  ;;  %v10521_v56 = vld [vmem:[%s15363_s5 + $0xc4] ss:$16 sps:$4 sm:$0xff]  }
 0x328   :  { %6620 = vmatpush2.bf16.msra.mxu0 %v9138_v48  ;;  %6454 = vmatprep.subr.bf16.mxu1 %v9159_v28  ;;  %v4898_v48 = vld [vmem:[%s15362_s3 + $0x608] sm:$0xff]  ;;  %v4935_v5 = vld [vmem:[%s15362_s3 + $0x730] sm:$0xff] }
 0x329   :  { %6621 = vmatprep.subr.bf16.mxu0 %v9131_v26  ;;  %v4902_v28 = vld [vmem:[%s15362_s3 + $0x628] sm:$0xff]  ;;  %v4891_v26 = vld [vmem:[%s15362_s3 + $0x5d0] sm:$0xff] }
 0x32a   :  { %v9215_v29 = vcombine.high %v4898_v48, %v4902_v28 }
 0x32b   :  { %6455 = vmatpush1.bf16.msra.mxu1 %v9158_v1  ;;  %v4895_v1 = vld [vmem:[%s15362_s3 + $0x5f0] sm:$0xff] }
 0x32c   :  { %6622 = vmatpush2.bf16.msra.mxu0 %v9130_v62  ;;  %6456 = vmatprep.subr.bf16.mxu1 %v9151_v7  ;;  %v9214_v62 = vcombine.low %v4898_v48, %v4902_v28  ;;  %v9209_v7 = vcombine.high %v4891_v26, %v4895_v1  ;;  %v4947_v48 = vld [vmem:[%s15362_s3 + $0x790] sm:$0xff] }
 0x32d   :  { %6623 = vmatprep.subr.bf16.mxu0 %v9123_v49  ;;  %v10529_v49 = vld [vmem:[%s15363_s5 + $0x80] ss:$16 sps:$4 sm:$0xff]  }
 0x32e   :  { %v4951_v28 = vld [vmem:[%s15362_s3 + $0x7b0] sm:$0xff] }
 0x32f   :  { %6457 = vmatpush1.bf16.msra.mxu1 %v9150_v18  ;;  %v9208_v18 = vcombine.low %v4891_v26, %v4895_v1  ;;  %v4939_v26 = vld [vmem:[%s15362_s3 + $0x750] sm:$0xff] }
 0x330   :  { %6624 = vmatpush2.bf16.msra.mxu0 %v9122_v43  ;;  %6458 = vmatprep.subr.bf16.mxu1 %v9271_v53  ;;  %v4879_v43 = vld [vmem:[%s15362_s3 + $0x570] sm:$0xff] }
 0x331   :  { %6625 = vmatprep.subr.bf16.mxu0 %v9115_v24  ;;  %v10532_v53 = vld [vmem:[%s15363_s5 + $0x60] ss:$16 sps:$4 sm:$0xff]   ;;  %v9193_v24 = vcombine.high %v4875_v20, %v4879_v43 }
 0x332   :  { %v4943_v1 = vld [vmem:[%s15362_s3 + $0x770] sm:$0xff] }
 0x333   :  { %6459 = vmatpush2.bf16.msra.mxu1 %v9270_v32  ;;  %v4867_v32 = vld [vmem:[%s15362_s3 + $0x510] sm:$0xff] }
 0x334   :  { %6626 = vmatpush2.bf16.msra.mxu0 %v9114_v35  ;;  %6460 = vmatprep.subr.bf16.mxu1 %v9263_v33  ;;  %v10536_v35 = vld [vmem:[%s15363_s5 + $0x24] ss:$16 sps:$4 sm:$0xff]   ;;  %v9192_v33 = vcombine.low %v4875_v20, %v4879_v43  ;;  %v9185_v44 = vcombine.high %v4867_v32, %v4871_v46  ;;  %v9184_v0 = vcombine.low %v4867_v32, %v4871_v46 }
 0x335   :  { %6627 = vmatprep.subr.bf16.mxu0 %v9107_v63  ;;  %v4863_v63 = vld [vmem:[%s15362_s3 + $0x4f0] sm:$0xff] }
 0x336   :  { %v4923_v20 = vld [vmem:[%s15362_s3 + $0x6d0] sm:$0xff] }
 0x337   :  { %6461 = vmatpush2.bf16.msra.mxu1 %v9262_v3  ;;  %v10538_v3 = vld [vmem:[%s15363_s5 + $0x20] ss:$16 sps:$4 sm:$0xff]  }
 0x338   :  { %6628 = vmatpush2.bf16.msra.mxu0 %v9106_v2  ;;  %6462 = vmatprep.subr.bf16.mxu1 %v9255_v45  ;;  %v9177_v2 = vcombine.high %v4859_v55, %v4863_v63  ;;  %v4851_v45 = vld [vmem:[%s15362_s3 + $0x490] sm:$0xff] }
 0x339   :  { %6629 = vmatprep.subr.bf16.mxu0 %v9099_v34  ;;  %v10542_v34 = vld [vmem:[%s15363_s5 + $0x1e4] ss:$16 sps:$4 sm:$0xff]   ;;  %v9169_v19 = vcombine.high %v4851_v45, %v4855_v9 }
 0x33a   :  { %v4927_v43 = vld [vmem:[%s15362_s3 + $0x6f0] sm:$0xff] }
 0x33b   :  { %6463 = vmatpush2.bf16.msra.mxu1 %v9254_v39  ;;  %v9176_v39 = vcombine.low %v4859_v55, %v4863_v63  ;;  %v4915_v32 = vld [vmem:[%s15362_s3 + $0x690] sm:$0xff] }
 0x33c   :  { %6630 = vmatpush2.bf16.msra.mxu0 %v9098_v4  ;;  %6464 = vmatprep.subr.bf16.mxu1 %v9247_v27  ;;  %v4843_v4 = vld [vmem:[%s15362_s3 + $0x450] sm:$0xff] }
 0x33d   :  { %6631 = vmatprep.subr.bf16.mxu0 %v9091_v25  ;;  %v4847_v27 = vld [vmem:[%s15362_s3 + $0x470] sm:$0xff] }
 0x33e   :  { %v10545_v25 = vld [vmem:[%s15363_s5 + $0x1c4] ss:$16 sps:$4 sm:$0xff]   ;;  %v9161_v59 = vcombine.high %v4843_v4, %v4847_v27 }
 0x33f   :  { %6465 = vmatpush2.bf16.msra.mxu1 %v9246_v47  ;;  %v9168_v47 = vcombine.low %v4851_v45, %v4855_v9  ;;  %v4919_v46 = vld [vmem:[%s15362_s3 + $0x6b0] sm:$0xff]  ;;  %v4892_v9 = vld [vmem:[%s15362_s3 + $0x5d8] sm:$0xff] }
 0x340   :  { %6632 = vmatpush2.bf16.msra.mxu0 %v9090_v31  ;;  %6466 = vmatprep.subr.bf16.mxu1 %v9239_v17  ;;  %v4839_v31 = vld [vmem:[%s15362_s3 + $0x430] sm:$0xff]  ;;  %v9232_v63 = vcombine.low %v4915_v32, %v4919_v46 }
 0x341   :  { %7149 = vmatprep.subr.bf16.mxu0 %v10518_v21  ;;  %v10547_v17 = vld [vmem:[%s15363_s5 + $0x1c0] ss:$16 sps:$4 sm:$0xff]   ;;  %v10548_v21 = vld [vmem:[%s15363_s5 + $0x1a4] ss:$16 sps:$4 sm:$0xff]  }
 0x342   :  { %v4911_v55 = vld [vmem:[%s15362_s3 + $0x670] sm:$0xff] }
 0x343   :  { %6467 = vmatpush2.bf16.msra.mxu1 %v9238_v60  ;;  %6634 = vmatmul.mubr.bf16.vlgmr.msra.gmra.mxu0 %v12739_v42  ;;  %v10524_v42 = vld [vmem:[%s15363_s5 + $0xa4] ss:$16 sps:$4 sm:$0xff]   ;;  %v9160_v60 = vcombine.low %v4843_v4, %v4847_v27  ;;  %v4888_v4 = vld [vmem:[%s15362_s3 + $0x5b8] sm:$0xff] }
 0x344   :  { %6643 = vmatprep.mubr.bf16.mxu0 %v13140_v11  ;;  %6468 = vmatprep.subr.bf16.mxu1 %v9231_v22  ;;  %v9222_v11 = vcombine.low %v4906_v50, %v4910_v38  ;;  %v9153_v22 = vcombine.high %v4835_v15, %v4839_v31  ;;  %v4955_v50 = vld [vmem:[%s15362_s3 + $0x7d0] sm:$0xff] }
 0x345   :  { %7150 = vmatpush1.bf16.msra.mxu0 %v10520_v54  ;;  %v4959_v38 = vld [vmem:[%s15362_s3 + $0x7f0] sm:$0xff] }
 0x346   :  { %7151 = vmatprep.subr.bf16.mxu0 %v10521_v56  ;;  %v10550_v54 = vld [vmem:[%s15363_s5 + $0x1a0] ss:$16 sps:$4 sm:$0xff]   ;;  %v10551_v56 = vld [vmem:[%s15363_s5 + $0x184] ss:$16 sps:$4 sm:$0xff]  }
 0x347   :  { %6469 = vmatpush2.bf16.msra.mxu1 %v9230_v14  ;;  %v9152_v14 = vcombine.low %v4835_v15, %v4839_v31  ;;  %v4868_v31 = vld [vmem:[%s15362_s3 + $0x518] sm:$0xff] }
 0x348   :  { %6470 = vmatprep.subr.bf16.mxu1 %v9223_v16  ;;  %v9273_v16 = vcombine.high %v4955_v50, %v4959_v38 }
 0x349   :  { %7152 = vmatpush1.bf16.msra.mxu0 %v10523_v36  ;;  %v10553_v36 = vld [vmem:[%s15363_s5 + $0x180] ss:$16 sps:$4 sm:$0xff]  }
 0x34a   :  { %7153 = vmatprep.subr.bf16.mxu0 %v10524_v42  ;;  %v10554_v42 = vld [vmem:[%s15363_s5 + $0x164] ss:$16 sps:$4 sm:$0xff]  }
 0x34b   :  { %6471 = vmatpush2.bf16.msra.mxu1 %v9222_v11  ;;  %6644 = vmatmul.mubr.bf16.gmra.mxu0 %v15513_v37  ;;  %v10530_v37 = vld [vmem:[%s15363_s5 + $0x64] ss:$16 sps:$4 sm:$0xff]   ;;  %v9272_v11 = vcombine.low %v4955_v50, %v4959_v38  ;;  %v4864_v50 = vld [vmem:[%s15362_s3 + $0x4f8] sm:$0xff] }
 0x34c   :  { %6472 = vmatprep.subr.bf16.mxu1 %v9215_v29  ;;  %v9265_v29 = vcombine.high %v4947_v48, %v4951_v28 }
 0x34d   :  { %7154 = vmatpush1.bf16.msra.mxu0 %v10526_v8  ;;  %v10556_v8 = vld [vmem:[%s15363_s5 + $0x160] ss:$16 sps:$4 sm:$0xff]  }
 0x34e   :  { %7155 = vmatprep.subr.bf16.mxu0 %v10527_v13  ;;  %v10560_v13 = vld [vmem:[%s15363_s5 + $0x144] ss:$16 sps:$4 sm:$0xff]  }
 0x34f   :  { %6473 = vmatpush2.bf16.msra.mxu1 %v9214_v62  ;;  %v9264_v62 = vcombine.low %v4947_v48, %v4951_v28  ;;  %v4844_v28 = vld [vmem:[%s15362_s3 + $0x458] sm:$0xff] }
 0x350   :  { %6548 = vmatprep.subr.bf16.mxu1 %v9209_v7  ;;  %v9257_v7 = vcombine.high %v4939_v26, %v4943_v1 }
 0x351   :  { %7156 = vmatpush1.bf16.msra.mxu0 %v10529_v49  ;;  %v10562_v49 = vld [vmem:[%s15363_s5 + $0x140] ss:$16 sps:$4 sm:$0xff]  }
 0x352   :  { %6475 = vmatmul.mubr.bf16.vlgmr.msra.gmra.mxu1 %v13586_v12  ;;  %7157 = vmatprep.subr.bf16.mxu0 %v10530_v37  ;;  %v10566_v37 = vld [vmem:[%s15363_s5 + $0x124] ss:$16 sps:$4 sm:$0xff]  }
 0x353   :  { %6484 = vmatprep.mubr.bf16.mxu1 %v13617_v58  ;;  %6549 = vmatpush1.bf16.msra.mxu1 %v9208_v18  ;;  %v9256_v18 = vcombine.low %v4939_v26, %v4943_v1 }
 0x354   :  { %6550 = vmatprep.subr.bf16.mxu1 %v9201_v61  ;;  %v9249_v61 = vcombine.high %v4931_v23, %v4935_v5 }
 0x355   :  { %7158 = vmatpush1.bf16.msra.mxu0 %v10532_v53  ;;  %v10568_v53 = vld [vmem:[%s15363_s5 + $0x120] ss:$16 sps:$4 sm:$0xff]  }
 0x356   :  { %7159 = vmatprep.subr.bf16.mxu0 %v10533_v57  ;;  %v10572_v57 = vld [vmem:[%s15363_s5 + $0x104] ss:$16 sps:$4 sm:$0xff]  }
 0x357   :  { %6551 = vmatpush1.bf16.msra.mxu1 %v9200_v41  ;;  %v9248_v41 = vcombine.low %v4931_v23, %v4935_v5  ;;  %v4948_v23 = vld [vmem:[%s15362_s3 + $0x798] sm:$0xff] }
 0x358   :  { %6552 = vmatprep.subr.bf16.mxu1 %v9193_v24  ;;  %v9241_v24 = vcombine.high %v4923_v20, %v4927_v43  ;;  %v4952_v5 = vld [vmem:[%s15362_s3 + $0x7b8] sm:$0xff] }
 0x359   :  { %7160 = vmatpush1.bf16.msra.mxu0 %v10535_v30  ;;  %v10574_v30 = vld [vmem:[%s15363_s5 + $0x100] ss:$16 sps:$4 sm:$0xff]  }
 0x35a   :  { %6485 = vmatmul.mubr.bf16.gmra.mxu1 %v13619_v52  ;;  %7161 = vmatprep.subr.bf16.mxu0 %v10536_v35  ;;  %v9240_v35 = vcombine.low %v4923_v20, %v4927_v43  ;;  %v9266_v20 = vcombine.low %v4948_v23, %v4952_v5 }
 0x35b   :  { %6553 = vmatpush1.bf16.msra.mxu1 %v9192_v33  ;;  %6580 = vmatprep.mubr.bf16.mxu1 %v13584_v40  ;;  %v9233_v33 = vcombine.high %v4915_v32, %v4919_v46  ;;  %v4924_v32 = vld [vmem:[%s15362_s3 + $0x6d8] sm:$0xff] }
 0x35c   :  { %6554 = vmatprep.subr.bf16.mxu1 %v9185_v44  ;;  %v4907_v44 = vld [vmem:[%s15362_s3 + $0x650] sm:$0xff]  ;;  %v4928_v46 = vld [vmem:[%s15362_s3 + $0x6f8] sm:$0xff] }
 0x35d   :  { %7162 = vmatpush1.bf16.msra.mxu0 %v10538_v3  ;;  %v9225_v3 = vcombine.high %v4907_v44, %v4911_v55 }
 0x35e   :  { %7163 = vmatprep.subr.bf16.mxu0 %v10539_v6  ;;  %v4899_v6 = vld [vmem:[%s15362_s3 + $0x610] sm:$0xff] }
 0x35f   :  { %6555 = vmatpush1.bf16.msra.mxu1 %v9184_v0  ;;  %v4903_v0 = vld [vmem:[%s15362_s3 + $0x630] sm:$0xff] }
 0x360   :  { %6556 = vmatprep.subr.bf16.mxu1 %v9177_v2  ;;  %v9224_v2 = vcombine.low %v4907_v44, %v4911_v55  ;;  %v9217_v45 = vcombine.high %v4899_v6, %v4903_v0  ;;  %v4920_v44 = vld [vmem:[%s15362_s3 + $0x6b8] sm:$0xff]  ;;  %v9242_v55 = vcombine.low %v4924_v32, %v4928_v46 }
 0x361   :  { %7164 = vmatpush1.bf16.msra.mxu0 %v10541_v10  ;;  %v4896_v10 = vld [vmem:[%s15362_s3 + $0x5f8] sm:$0xff] }
 0x362   :  { %7165 = vmatprep.subr.bf16.mxu0 %v10542_v34  ;;  %v9216_v34 = vcombine.low %v4899_v6, %v4903_v0  ;;  %v9210_v27 = vcombine.low %v4892_v9, %v4896_v10  ;;  %v4908_v6 = vld [vmem:[%s15362_s3 + $0x658] sm:$0xff] }
 0x363   :  { %6557 = vmatpush1.bf16.msra.mxu1 %v9176_v39  ;;  %v9211_v39 = vcombine.high %v4892_v9, %v4896_v10  ;;  %v4912_v0 = vld [vmem:[%s15362_s3 + $0x678] sm:$0xff] }
 0x364   :  { %6558 = vmatprep.subr.bf16.mxu1 %v9169_v19  ;;  %v4884_v19 = vld [vmem:[%s15362_s3 + $0x598] sm:$0xff]  ;;  %v9227_v9 = vcombine.high %v4908_v6, %v4912_v0 }
 0x365   :  { %7166 = vmatpush2.bf16.msra.mxu0 %v10544_v51  ;;  %v9203_v51 = vcombine.high %v4884_v19, %v4888_v4  ;;  %v4900_v10 = vld [vmem:[%s15362_s3 + $0x618] sm:$0xff] }
 0x366   :  { %7167 = vmatprep.subr.bf16.mxu0 %v10545_v25  ;;  %v4876_v25 = vld [vmem:[%s15362_s3 + $0x558] sm:$0xff] }
 0x367   :  { %6559 = vmatpush1.bf16.msra.mxu1 %v9168_v47  ;;  %v4880_v47 = vld [vmem:[%s15362_s3 + $0x578] sm:$0xff] }
 0x368   :  { %6560 = vmatprep.subr.bf16.mxu1 %v9161_v59  ;;  %v9202_v59 = vcombine.low %v4884_v19, %v4888_v4  ;;  %v9195_v15 = vcombine.high %v4876_v25, %v4880_v47 }
 0x369   :  { %7168 = vmatpush2.bf16.msra.mxu0 %v10547_v17  ;;  %v4872_v17 = vld [vmem:[%s15362_s3 + $0x538] sm:$0xff] }
 0x36a   :  { %7169 = vmatprep.subr.bf16.mxu0 %v10548_v21  ;;  %v9194_v21 = vcombine.low %v4876_v25, %v4880_v47  ;;  %v9186_v38 = vcombine.low %v4868_v31, %v4872_v17  ;;  %v14046_v25 = vld [vmem:[%s15363_s5 + $0xec] ss:$16 sps:$4 sm:$0xff]   ;;  %v14051_v47 = vld [vmem:[%s15364_s4] sm:$0xff] }
 0x36b   :  { %6561 = vmatpush1.bf16.msra.mxu1 %v9160_v60  ;;  %v9187_v60 = vcombine.high %v4868_v31, %v4872_v17  ;;  %v14062_v31 = vld [vmem:[%s15363_s5 + $0xcc] ss:$16 sps:$4 sm:$0xff]   ;;  %v15518_v17 = vld [vmem:[#allocation4_spill] sm:$0xff] }
 0x36c   :  { %6562 = vmatprep.subr.bf16.mxu1 %v9153_v22  ;;  %v4860_v22 = vld [vmem:[%s15362_s3 + $0x4d8] sm:$0xff] }
 0x36d   :  { %7170 = vmatpush2.bf16.msra.mxu0 %v10550_v54  ;;  %v9179_v54 = vcombine.high %v4860_v22, %v4864_v50 }
 0x36e   :  { %7171 = vmatprep.subr.bf16.mxu0 %v10551_v56  ;;  %v4852_v56 = vld [vmem:[%s15362_s3 + $0x498] sm:$0xff] }
 0x36f   :  { %6563 = vmatpush1.bf16.msra.mxu1 %v9152_v14  ;;  %v4856_v14 = vld [vmem:[%s15362_s3 + $0x4b8] sm:$0xff] }
 0x370   :  { %6564 = vmatprep.subr.bf16.mxu1 %v9273_v16  ;;  %v9178_v16 = vcombine.low %v4860_v22, %v4864_v50  ;;  %v9171_v48 = vcombine.high %v4852_v56, %v4856_v14 }
 0x371   :  { %7172 = vmatpush2.bf16.msra.mxu0 %v10553_v36  ;;  %v9170_v36 = vcombine.low %v4852_v56, %v4856_v14  ;;  %v14080_v14 = vld [vmem:[%s15363_s5 + $0xac] ss:$16 sps:$4 sm:$0xff]  }
 0x372   :  { %7173 = vmatprep.subr.bf16.mxu0 %v10554_v42 }
 0x373   :  { %6565 = vmatpush2.bf16.msra.mxu1 %v9272_v11  ;;  %v4836_v11 = vld [vmem:[%s15362_s3 + $0x418] sm:$0xff] }
 0x374   :  { %6566 = vmatprep.subr.bf16.mxu1 %v9265_v29  ;;  %v4840_v29 = vld [vmem:[%s15362_s3 + $0x438] sm:$0xff] }
 0x375   :  { %7174 = vmatpush2.bf16.msra.mxu0 %v10556_v8  ;;  %v9155_v1 = vcombine.high %v4836_v11, %v4840_v29  ;;  %v4956_v8 = vld [vmem:[%s15362_s3 + $0x7d8] sm:$0xff] }
 0x376   :  { %7175 = vmatprep.subr.bf16.mxu0 %v10560_v13  ;;  %v4960_v13 = vld [vmem:[%s15362_s3 + $0x7f8] sm:$0xff] }
 0x377   :  { %6567 = vmatpush2.bf16.msra.mxu1 %v9264_v62  ;;  %v9154_v62 = vcombine.low %v4836_v11, %v4840_v29 }
 0x378   :  { %6568 = vmatprep.subr.bf16.mxu1 %v9257_v7  ;;  %v9275_v7 = vcombine.high %v4956_v8, %v4960_v13 }
 0x379   :  { %7176 = vmatpush2.bf16.msra.mxu0 %v10562_v49  ;;  %v9274_v49 = vcombine.low %v4956_v8, %v4960_v13 }
 0x37a   :  { %7177 = vmatprep.subr.bf16.mxu0 %v10566_v37  ;;  %v9267_v37 = vcombine.high %v4948_v23, %v4952_v5  ;;  %v14099_v5 = vld [vmem:[%s15363_s5 + $0x88] ss:$16 sps:$4 sm:$0xff]  }
 0x37b   :  { %6569 = vmatpush2.bf16.msra.mxu1 %v9256_v18  ;;  %v4940_v18 = vld [vmem:[%s15362_s3 + $0x758] sm:$0xff] }
 0x37c   :  { %6570 = vmatprep.subr.bf16.mxu1 %v9249_v61  ;;  %v4944_v61 = vld [vmem:[%s15362_s3 + $0x778] sm:$0xff] }
 0x37d   :  { %7178 = vmatpush2.bf16.msra.mxu0 %v10568_v53  ;;  %v9259_v43 = vcombine.high %v4940_v18, %v4944_v61  ;;  %v4932_v53 = vld [vmem:[%s15362_s3 + $0x718] sm:$0xff] }
 0x37e   :  { %7179 = vmatprep.subr.bf16.mxu0 %v10572_v57  ;;  %v4936_v57 = vld [vmem:[%s15362_s3 + $0x738] sm:$0xff] }
 0x37f   :  { %6571 = vmatpush2.bf16.msra.mxu1 %v9248_v41  ;;  %v9258_v41 = vcombine.low %v4940_v18, %v4944_v61 }
 0x380   :  { %6572 = vmatprep.subr.bf16.mxu1 %v9241_v24  ;;  %v9251_v24 = vcombine.high %v4932_v53, %v4936_v57 }
 0x381   :  { %7180 = vmatpush2.bf16.msra.mxu0 %v10574_v30  ;;  %v9250_v30 = vcombine.low %v4932_v53, %v4936_v57 }
 0x383   :  { %6573 = vmatpush2.bf16.msra.mxu1 %v9240_v35  ;;  %v9243_v35 = vcombine.high %v4924_v32, %v4928_v46 }
 0x384   :  { %6574 = vmatprep.subr.bf16.mxu1 %v9233_v33  ;;  %v4916_v33 = vld [vmem:[%s15362_s3 + $0x698] sm:$0xff] }
 0x387   :  { %6575 = vmatpush2.bf16.msra.mxu1 %v9232_v63  ;;  %v6317_v63 = vpop.f32.mrf.mxu0 }
 0x388   :  { %6576 = vmatprep.subr.bf16.mxu1 %v9225_v3  ;;  %v9235_v3 = vcombine.high %v4916_v33, %v4920_v44 }
 0x38b   :  { %6577 = vmatpush2.bf16.msra.mxu1 %v9224_v2  ;;  %v9234_v2 = vcombine.low %v4916_v33, %v4920_v44  ;;  %v14119_v44 = vld [vmem:[%s15363_s5 + $0x4c] ss:$16 sps:$4 sm:$0xff]  }
 0x38c   :  { %6578 = vmatprep.subr.bf16.mxu1 %v9217_v45  ;;  %v6319_v45 = vpop.f32.mrf.mxu0 }
 0x38e   :  { %v6321_v19 = vpop.f32.mrf.mxu0 }
 0x38f   :  { %6579 = vmatpush2.bf16.msra.mxu1 %v9216_v34  ;;  %v4904_v34 = vld [vmem:[%s15362_s3 + $0x638] sm:$0xff] }
 0x390   :  { %6654 = vmatprep.subr.bf16.mxu1 %v9211_v39  ;;  %v9226_v39 = vcombine.low %v4908_v6, %v4912_v0  ;;  %v9219_v4 = vcombine.high %v4900_v10, %v4904_v34  ;;  %v14126_v0 = vld [vmem:[%s15363_s5 + $0x48] ss:$16 sps:$4 sm:$0xff]  }
 0x392   :  { %6581 = vmatmul.mubr.bf16.vlgmr.msra.gmra.mxu1 %v13586_v12 }
 0x393   :  { %6590 = vmatprep.mubr.bf16.mxu1 %v13617_v58  ;;  %6655 = vmatpush1.bf16.msra.mxu1 %v9210_v27  ;;  %v9218_v27 = vcombine.low %v4900_v10, %v4904_v34  ;;  %v14137_v10 = vld [vmem:[%s15363_s5 + $0x28] ss:$16 sps:$4 sm:$0xff]  }
 0x394   :  { %6656 = vmatprep.subr.bf16.mxu1 %v9203_v51  ;;  %v6323_v51 = vpop.f32.mrf.mxu0 }
 0x397   :  { %6657 = vmatpush1.bf16.msra.mxu1 %v9202_v59  ;;  %v14056_v59 = vld [vmem:[%s15363_s5 + $0xe8] ss:$16 sps:$4 sm:$0xff]  }
 0x398   :  { %6658 = vmatprep.subr.bf16.mxu1 %v9195_v15  ;;  %v6327_v15 = vpop.f32.mrf.mxu0 }
 0x39a   :  { %6591 = vmatmul.mubr.bf16.gmra.mxu1 %v13619_v52 }
 0x39b   :  { %6659 = vmatpush1.bf16.msra.mxu1 %v9194_v21  ;;  %6686 = vmatprep.mubr.bf16.mxu1 %v13584_v40  ;;  %v4848_v40 = vld [vmem:[%s15362_s3 + $0x478] sm:$0xff]  ;;  %v4970_v21 = vrot.slane %v14051_v47, %v15518_v17 }
 0x39c   :  { %6660 = vmatprep.subr.bf16.mxu1 %v9187_v60  ;;  %v9163_v42 = vcombine.high %v4844_v28, %v4848_v40  ;;  %v9162_v26 = vcombine.low %v4844_v28, %v4848_v40  ;;  %v15519_v60 = vld [vmem:[#allocation3_spill] sm:$0xff] }
 0x39d   :  { %v4966_v22 = vrot.slane %v14051_v47, %v15519_v60  ;;  %v6324_v28 = vadd.f32 %v6323_v51, %v4970_v21  ;;  %v14168_v51 = vld [vmem:[%s15363_s5 + $0x1ec] ss:$16 sps:$4 sm:$0xff]  }
 0x39e   :  { %15520 = vst [vmem:[#allocation9_spill] sm:$0xff] %v14168_v51 }
 0x39f   :  { %6661 = vmatpush1.bf16.msra.mxu1 %v9186_v38  ;;  %v14074_v38 = vld [vmem:[%s15363_s5 + $0xc8] ss:$16 sps:$4 sm:$0xff]   ;;  %v6328_v53 = vadd.f32 %v6327_v15, %v4966_v22 }
 0x3a0   :  { %6662 = vmatprep.subr.bf16.mxu1 %v9179_v54  ;;  %v6329_v54 = vpop.f32.mrf.mxu0  ;;  %v14176_v15 = vld [vmem:[%s15363_s5 + $0x1e8] ss:$16 sps:$4 sm:$0xff]  }
 0x3a1   :  { %v6330_v61 = vadd.f32 %v6329_v54, %v4970_v21  ;;  %15521 = vst [vmem:[#allocation10_spill] sm:$0xff] %v14176_v15  ;;  %v14200_v54 = vld [vmem:[%s15363_s5 + $0x1a8] ss:$16 sps:$4 sm:$0xff]  }
 0x3a2   :  { %v6331_v11 = vpop.f32.mrf.mxu0  ;;  %15525 = vst [vmem:[#allocation7_spill] sm:$0xff] %v14200_v54 }
 0x3a3   :  { %6663 = vmatpush1.bf16.msra.mxu1 %v9178_v16  ;;  %v6322_v16 = vadd.f32 %v6321_v19, %v4966_v22  ;;  %v14149_v19 = vld [vmem:[%s15365_s7 + $0x78] sm:$0xff]  }
 0x3a4   :  { %6664 = vmatprep.subr.bf16.mxu1 %v9171_v48  ;;  %v6318_v48 = vadd.f32 %v6317_v63, %v4966_v22  ;;  %9373 = vmatprep.subr.bf16.mxu0 %v14149_v19 }
 0x3a7   :  { %6665 = vmatpush1.bf16.msra.mxu1 %v9170_v36 }
 0x3a8   :  { %6666 = vmatprep.subr.bf16.mxu1 %v9163_v42  ;;  %v14086_v42 = vld [vmem:[%s15363_s5 + $0xa8] ss:$16 sps:$4 sm:$0xff]  }
 0x3ab   :  { %6667 = vmatpush1.bf16.msra.mxu1 %v9162_v26 }
 0x3ac   :  { %6668 = vmatprep.subr.bf16.mxu1 %v9155_v1  ;;  %v14092_v1 = vld [vmem:[%s15363_s5 + $0x8c] ss:$16 sps:$4 sm:$0xff]  }
 0x3af   :  { %6669 = vmatpush1.bf16.msra.mxu1 %v9154_v62 }
 0x3b0   :  { %6670 = vmatprep.subr.bf16.mxu1 %v9275_v7 }
 0x3b3   :  { %6671 = vmatpush2.bf16.msra.mxu1 %v9274_v49  ;;  %v6333_v49 = vpop.f32.mrf.mxu0 }
 0x3b4   :  { %6672 = vmatprep.subr.bf16.mxu1 %v9267_v37 }
 0x3b7   :  { %6673 = vmatpush2.bf16.msra.mxu1 %v9266_v20  ;;  %v6332_v20 = vadd.f32 %v6331_v11, %v4966_v22  ;;  %v14188_v22 = vld [vmem:[%s15363_s5 + $0x1c8] ss:$16 sps:$4 sm:$0xff]   ;;  %v14245_v11 = vld [vmem:[%s15363_s5 + $0x12c] ss:$16 sps:$4 sm:$0xff]  }
 0x3b8   :  { %6674 = vmatprep.subr.bf16.mxu1 %v9259_v43  ;;  %15523 = vst [vmem:[#allocation5_spill] sm:$0xff] %v14188_v22  ;;  %15532 = vst [vmem:[#allocation17_spill] sm:$0xff] %v14245_v11 }
 0x3bb   :  { %6675 = vmatpush2.bf16.msra.mxu1 %v9258_v41 }
 0x3bc   :  { %6676 = vmatprep.subr.bf16.mxu1 %v9251_v24  ;;  %v6334_v24 = vadd.f32 %v6333_v49, %v4970_v21 }
 0x3bf   :  { %6677 = vmatpush2.bf16.msra.mxu1 %v9250_v30  ;;  %v14113_v30 = vld [vmem:[%s15363_s5 + $0x68] ss:$16 sps:$4 sm:$0xff]  }
 0x3c0   :  { %6678 = vmatprep.subr.bf16.mxu1 %v9243_v35 }
 0x3c3   :  { %6679 = vmatpush2.bf16.msra.mxu1 %v9242_v55 }
 0x3c4   :  { %6680 = vmatprep.subr.bf16.mxu1 %v9235_v3 }
 0x3c7   :  { %6681 = vmatpush2.bf16.msra.mxu1 %v9234_v2 }
 0x3c8   :  { %6682 = vmatprep.subr.bf16.mxu1 %v9227_v9 }
 0x3cb   :  { %6683 = vmatpush2.bf16.msra.mxu1 %v9226_v39  ;;  %v14144_v39 = vld [vmem:[%s15363_s5 + $0xc] ss:$16 sps:$4 sm:$0xff]  }
 0x3cc   :  { %6684 = vmatprep.subr.bf16.mxu1 %v9219_v4  ;;  %v14155_v4 = vld [vmem:[%s15365_s7 + $0x38] sm:$0xff]  }
 0x3cf   :  { %6685 = vmatpush2.bf16.msra.mxu1 %v9218_v27  ;;  %v14162_v27 = vld [vmem:[%s15363_s5 + $0x8] ss:$16 sps:$4 sm:$0xff]  }
 0x3d0   :  { %7202 = vmatprep.subr.bf16.mxu1 %v14046_v25 }
 0x3d2   :  { %6687 = vmatmul.mubr.bf16.vlgmr.msra.gmra.mxu1 %v13586_v12  ;;  %v6370_v50 = vpop.f32.mrf.mxu1  ;;  %v6320_v12 = vadd.f32 %v6319_v45, %v4970_v21  ;;  %v14132_v45 = vld [vmem:[%s15363_s5 + $0x2c] ss:$16 sps:$4 sm:$0xff]  }
 0x3d3   :  { %6696 = vmatprep.mubr.bf16.mxu1 %v13617_v58  ;;  %7203 = vmatpush1.bf16.msra.mxu1 %v14056_v59  ;;  %v6371_v29 = vadd.f32 %v6370_v50, %v6318_v48  ;;  %v14181_v21 = vld [vmem:[%s15363_s5 + $0x1cc] ss:$16 sps:$4 sm:$0xff]   ;;  %v14225_v48 = vld [vmem:[%s15363_s5 + $0x168] ss:$16 sps:$4 sm:$0xff]  }
 0x3d4   :  { %v6372_v56 = vpop.f32.mrf.mxu1  ;;  %7204 = vmatprep.subr.bf16.mxu1 %v14062_v31  ;;  %15522 = vst [vmem:[#allocation11_spill] sm:$0xff] %v14181_v21  ;;  %v14193_v50 = vld [vmem:[%s15363_s5 + $0x1ac] ss:$16 sps:$4 sm:$0xff]   ;;  %15529 = vst [vmem:[#allocation14_spill] sm:$0xff] %v14225_v48 }
 0x3d5   :  { %v6373_v40 = vadd.f32 %v6372_v56, %v6320_v12  ;;  %v6707_v37 = vmax.f32 %v6371_v29, 0.0  ;;  %15524 = vst [vmem:[#allocation6_spill] sm:$0xff] %v14193_v50  ;;  %v14205_v56 = vld [vmem:[%s15363_s5 + $0x18c] ss:$16 sps:$4 sm:$0xff]   ;;  %v14212_v12 = vld [vmem:[%s15363_s5 + $0x188] ss:$16 sps:$4 sm:$0xff]  }
 0x3d6   :  { %v6374_v58 = vpop.f32.mrf.mxu1  ;;  %15526 = vst [vmem:[#allocation8_spill] sm:$0xff] %v14205_v56  ;;  %15527 = vst [vmem:[#allocation4_spill] sm:$0xff] %v14212_v12  ;;  %v14251_v29 = vld [vmem:[%s15363_s5 + $0x128] ss:$16 sps:$4 sm:$0xff]  }
 0x3d7   :  { %v6375_v36 = vadd.f32 %v6374_v58, %v6322_v16  ;;  %7205 = vmatpush1.bf16.msra.mxu1 %v14074_v38  ;;  %v6708_v7 = vmax.f32 %v6373_v40, 0.0  ;;  %v14219_v16 = vld [vmem:[%s15363_s5 + $0x16c] ss:$16 sps:$4 sm:$0xff]   ;;  %v6423_v58 = vpop.f32.mrf.mxu0  ;;  %v14237_v40 = vld [vmem:[%s15363_s5 + $0x148] ss:$16 sps:$4 sm:$0xff]   ;;  %15533 = vst [vmem:[#allocation18_spill] sm:$0xff] %v14251_v29 }
 0x3d8   :  { %v6376_v26 = vpop.f32.mrf.mxu1  ;;  %7206 = vmatprep.subr.bf16.mxu1 %v14080_v14  ;;  %15528 = vst [vmem:[#allocation3_spill] sm:$0xff] %v14219_v16  ;;  %15531 = vst [vmem:[#allocation16_spill] sm:$0xff] %v14237_v40 }
 0x3d9   :  { %v6377_v8 = vadd.f32 %v6376_v26, %v6324_v28  ;;  %v6715_v13 = vmax.f32 %v6375_v36, 0.0  ;;  %v14231_v28 = vld [vmem:[%s15363_s5 + $0x14c] ss:$16 sps:$4 sm:$0xff]   ;;  %v14239_v36 = vpop.f32.mrf.mxu0 }
 0x3da   :  { %6697 = vmatmul.mubr.bf16.gmra.mxu1 %v13619_v52  ;;  %v6380_v62 = vpop.f32.mrf.mxu1  ;;  %v14105_v52 = vld [vmem:[%s15363_s5 + $0x6c] ss:$16 sps:$4 sm:$0xff]   ;;  %15530 = vst [vmem:[#allocation15_spill] sm:$0xff] %v14231_v28 }
 0x3db   :  { %v6716_v23 = vmax.f32 %v6377_v8, 0.0  ;;  %7207 = vmatpush1.bf16.msra.mxu1 %v14086_v42  ;;  %v14107_v57 = vpack.c.bf16 %v6715_v13, %v6707_v37  ;;  %v6381_v35 = vadd.f32 %v6380_v62, %v6328_v53  ;;  %v6427_v26 = vpop.f32.mrf.mxu0  ;;  %v14257_v8 = vld [vmem:[%s15363_s5 + $0x10c] ss:$16 sps:$4 sm:$0xff]   ;;  %v14263_v13 = vld [vmem:[%s15363_s5 + $0x108] ss:$16 sps:$4 sm:$0xff]   ;;  %v14274_v37 = vld [vmem:[%s15365_s7 + $0x70] sm:$0xff]  }
 0x3dc   :  { %v6382_v18 = vpop.f32.mrf.mxu1  ;;  %7208 = vmatprep.subr.bf16.mxu1 %v14092_v1  ;;  %15534 = vst [vmem:[#allocation19_spill] sm:$0xff] %v14257_v8  ;;  %15535 = vst [vmem:[#allocation20_spill] sm:$0xff] %v14263_v13 }
 0x3dd   :  { %v6740_v43 = vpack.c.bf16 %v6716_v23, %v6708_v7  ;;  %v6383_v32 = vadd.f32 %v6382_v18, %v6330_v61  ;;  %v6723_v2 = vmax.f32 %v6381_v35, 0.0  ;;  %v14265_v62 = vpop.f32.mrf.mxu0  ;;  %v15536_v7 = vld [vmem:[#allocation13_spill] sm:$0xff]  ;;  %v14279_v61 = vld [vmem:[%s15365_s7 + $0x30] sm:$0xff]  }
 0x3de   :  { %v6384_v41 = vpop.f32.mrf.mxu1  ;;  %v4974_v23 = vrot.slane %v14051_v47, %v15536_v7 }
 0x3df   :  { %v6385_v46 = vadd.f32 %v6384_v41, %v6332_v20  ;;  %7209 = vmatpush1.bf16.msra.mxu1 %v14099_v5  ;;  %7181 = vmatprep.mubr.bf16.mxu0 %v6740_v43  ;;  %v6724_v3 = vmax.f32 %v6383_v32, 0.0  ;;  %v6433_v49 = vpop.f32.mrf.mxu0 }
 0x3e0   :  { %7234 = vmatprep.mubr.bf16.mxu1 %v6740_v43  ;;  %v6386_v33 = vpop.f32.mrf.mxu1  ;;  %7182 = vmatmul.mubr.bf16.vlgmr.msra.gmra.mxu0 %v14107_v57  ;;  %v6424_v18 = vadd.f32 %v6423_v58, %v4974_v23  ;;  %v6428_v32 = vadd.f32 %v6427_v26, %v4974_v23  ;;  %v15537_v26 = vld [vmem:[#allocation12_spill] sm:$0xff] }
 0x3e1   :  { %v6387_v55 = vadd.f32 %v6386_v33, %v6334_v24  ;;  %7210 = vmatprep.subr.bf16.mxu1 %v14105_v52  ;;  %v6731_v63 = vmax.f32 %v6385_v46, 0.0  ;;  %9374 = vmatpush3.bf16.msra.mxu0 %v14155_v4  ;;  %v6435_v53 = vpop.f32.mrf.mxu0  ;;  %v14289_v24 = vld [vmem:[%s15365_s7 + $0x68] sm:$0xff]  }
 0x3e2   :  { %9375 = vmatprep.subr.bf16.mxu0 %v14274_v37  ;;  %v14294_v46 = vld [vmem:[%s15365_s7 + $0x28] sm:$0xff]  }
 0x3e3   :  { %v6732_v6 = vmax.f32 %v6387_v55, 0.0  ;;  %7211 = vmatpush1.bf16.msra.mxu1 %v14113_v30  ;;  %v14139_v34 = vpack.c.bf16 %v6731_v63, %v6723_v2  ;;  %v6437_v33 = vpop.f32.mrf.mxu0  ;;  %v14303_v63 = vld [vmem:[%s15365_s7 + $0x60] sm:$0xff]  }
 0x3e4   :  { %7212 = vmatprep.subr.bf16.mxu1 %v14119_v44 }
 0x3e5   :  { %v6742_v9 = vpack.c.bf16 %v6732_v6, %v6724_v3  ;;  %9376 = vmatpush3.bf16.msra.mxu0 %v14279_v61  ;;  %v6434_v3 = vadd.f32 %v6433_v49, %v4974_v23  ;;  %v6439_v49 = vpop.f32.mrf.mxu0 }
 0x3e6   :  { %9377 = vmatprep.subr.bf16.mxu0 %v14289_v24 }
 0x3e7   :  { %7213 = vmatpush1.bf16.msra.mxu1 %v14126_v0  ;;  %7191 = vmatprep.mubr.bf16.mxu0 %v6742_v9 }
 0x3e8   :  { %7192 = vmatmul.mubr.bf16.gmra.mxu0 %v14139_v34  ;;  %7214 = vmatprep.subr.bf16.mxu1 %v14132_v45 }
 0x3e9   :  { %9378 = vmatpush3.bf16.msra.mxu0 %v14294_v46 }
 0x3ea   :  { %9379 = vmatprep.subr.bf16.mxu0 %v14303_v63 }
 0x3eb   :  { %7215 = vmatpush1.bf16.msra.mxu1 %v14137_v10 }
 0x3ec   :  { %7216 = vmatprep.subr.bf16.mxu1 %v14144_v39 }
 0x3ef   :  { %7217 = vmatpush1.bf16.msra.mxu1 %v14162_v27 }
 0x3f0   :  { %7218 = vmatprep.subr.bf16.mxu1 %v14168_v51 }
 0x3f3   :  { %7219 = vmatpush2.bf16.msra.mxu1 %v14176_v15 }
 0x3f4   :  { %7220 = vmatprep.subr.bf16.mxu1 %v14181_v21 }
 0x3f7   :  { %7221 = vmatpush2.bf16.msra.mxu1 %v14188_v22 }
 0x3f8   :  { %7222 = vmatprep.subr.bf16.mxu1 %v14193_v50  ;;  %v14458_v50 = vld [vmem:[%s15365_s7 + $0xc8] sm:$0xff]  }
 0x3f9   :  { %15559 = vst [vmem:[#allocation38_spill] sm:$0xff] %v14458_v50 }
 0x3fb   :  { %7223 = vmatpush2.bf16.msra.mxu1 %v14200_v54 }
 0x3fc   :  { %7224 = vmatprep.subr.bf16.mxu1 %v14205_v56  ;;  %v14446_v56 = vld [vmem:[%s15365_s7 + $0xd0] sm:$0xff]  }
 0x3fd   :  { %15557 = vst [vmem:[#allocation36_spill] sm:$0xff] %v14446_v56 }
 0x3ff   :  { %7225 = vmatpush2.bf16.msra.mxu1 %v14212_v12 }
 0x400   :  { %7226 = vmatprep.subr.bf16.mxu1 %v14219_v16 }
 0x403   :  { %7227 = vmatpush2.bf16.msra.mxu1 %v14225_v48 }
 0x404   :  { %7228 = vmatprep.subr.bf16.mxu1 %v14231_v28 }
 0x407   :  { %7229 = vmatpush2.bf16.msra.mxu1 %v14237_v40  ;;  %v14418_v40 = vld [vmem:[%s15365_s7 + $0xe0] sm:$0xff]  }
 0x408   :  { %7230 = vmatprep.subr.bf16.mxu1 %v14245_v11  ;;  %v14341_v11 = vld [vmem:[%s15365_s7 + $0x10] sm:$0xff]   ;;  %15552 = vst [vmem:[#allocation33_spill] sm:$0xff] %v14418_v40 }
 0x409   :  { %15540 = vst [vmem:[#allocation21_spill] sm:$0xff] %v14341_v11 }
 0x40b   :  { %7231 = vmatpush2.bf16.msra.mxu1 %v14251_v29 }
 0x40c   :  { %7232 = vmatprep.subr.bf16.mxu1 %v14257_v8 }
 0x40f   :  { %7233 = vmatpush2.bf16.msra.mxu1 %v14263_v13  ;;  %v14328_v13 = vld [vmem:[%s15365_s7 + $0x18] sm:$0xff]  }
 0x410   :  { %15538 = vst [vmem:[#allocation13_spill] sm:$0xff] %v14328_v13 }
 0x412   :  { %v6476_v20 = vpop.f32.mrf.mxu1  ;;  %7235 = vmatmul.mubr.bf16.vlgmr.msra.gmra.mxu1 %v14107_v57 }
 0x413   :  { %v6477_v43 = vadd.f32 %v6476_v20, %v6424_v18  ;;  %7244 = vmatprep.mubr.bf16.mxu1 %v6742_v9  ;;  %v14308_v9 = vld [vmem:[%s15365_s7 + $0x20] sm:$0xff]   ;;  %v14314_v18 = vrot.slane %v14051_v47, %v15537_v26 }
 0x414   :  { %v14284_v41 = vpop.f32.mrf.mxu1  ;;  %9380 = vmatpush3.bf16.msra.mxu0 %v14308_v9 }
 0x415   :  { %v6709_v6 = vmax.f32 %v6477_v43, 0.0 }
 0x416   :  { %v6480_v57 = vpop.f32.mrf.mxu1 }
 0x417   :  { %v6481_v35 = vadd.f32 %v6480_v57, %v6428_v32  ;;  %v14322_v57 = vld [vmem:[%s15365_s7 + $0x58] sm:$0xff]  }
 0x418   :  { %v14298_v55 = vpop.f32.mrf.mxu1  ;;  %9381 = vmatprep.subr.bf16.mxu0 %v14322_v57 }
 0x419   :  { %v6717_v2 = vmax.f32 %v6481_v35, 0.0  ;;  %v6438_v35 = vadd.f32 %v6437_v33, %v4974_v23  ;;  %9382 = vmatpush3.bf16.msra.mxu0 %v14328_v13 }
 0x41a   :  { %v6486_v58 = vpop.f32.mrf.mxu1  ;;  %7245 = vmatmul.mubr.bf16.gmra.mxu1 %v14139_v34  ;;  %v6436_v34 = vadd.f32 %v6435_v53, %v14314_v18  ;;  %v14336_v53 = vld [vmem:[%s15365_s7 + $0x50] sm:$0xff]  }
 0x41b   :  { %v14316_v20 = vpack.c.bf16 %v6717_v2, %v6709_v6  ;;  %v6487_v32 = vadd.f32 %v6486_v58, %v6434_v3  ;;  %v6440_v3 = vadd.f32 %v6439_v49, %v14314_v18  ;;  %15539 = vst [vmem:[#allocation12_spill] sm:$0xff] %v14336_v53  ;;  %9383 = vmatprep.subr.bf16.mxu0 %v14336_v53 }
 0x41c   :  { %v6488_v43 = vpop.f32.mrf.mxu1 }
 0x41d   :  { %v6489_v2 = vadd.f32 %v6488_v43, %v6436_v34  ;;  %v6725_v23 = vmax.f32 %v6487_v32, 0.0  ;;  %9384 = vmatpush3.bf16.msra.mxu0 %v14341_v11  ;;  %v14470_v11 = vld [vmem:[%s15365_s7 + $0xc0] sm:$0xff]  }
 0x41e   :  { %v6490_v6 = vpop.f32.mrf.mxu1  ;;  %15561 = vst [vmem:[#allocation40_spill] sm:$0xff] %v14470_v11 }
 0x41f   :  { %v6491_v58 = vadd.f32 %v6490_v6, %v6438_v35  ;;  %v6726_v49 = vmax.f32 %v6489_v2, 0.0  ;;  %v14350_v35 = vld [vmem:[%s15365_s7 + $0x48] sm:$0xff]   ;;  %v14369_v6 = vld [vmem:[%s15365_s7] sm:$0xff]   ;;  %v14382_v2 = vld [vmem:[%s15365_s7 + $0xf8] sm:$0xff]  }
 0x420   :  { %v6492_v8 = vpop.f32.mrf.mxu1  ;;  %15541 = vst [vmem:[#allocation22_spill] sm:$0xff] %v14350_v35  ;;  %9385 = vmatprep.subr.bf16.mxu0 %v14350_v35  ;;  %15544 = vst [vmem:[#allocation25_spill] sm:$0xff] %v14369_v6  ;;  %9401 = vmatprep.subr.bf16.mxu1 %v14382_v2  ;;  %v14463_v35 = vld [vmem:[%s15365_s7 + $0x88] sm:$0xff]  }
 0x421   :  { %v6733_v33 = vmax.f32 %v6491_v58, 0.0  ;;  %v6493_v29 = vadd.f32 %v6492_v8, %v6440_v3  ;;  %v14357_v8 = vld [vmem:[%s15365_s7 + $0x8] sm:$0xff]   ;;  %v14376_v3 = vld [vmem:[%s15363_s5 + $0xe4] ss:$16 sps:$4 sm:$0xff]   ;;  %15546 = vst [vmem:[#allocation27_spill] sm:$0xff] %v14382_v2  ;;  %v14388_v58 = vld [vmem:[%s15365_s7 + $0xb8] sm:$0xff]  }
 0x422   :  { %15542 = vst [vmem:[#allocation23_spill] sm:$0xff] %v14357_v8  ;;  %9386 = vmatpush3.bf16.msra.mxu0 %v14357_v8  ;;  %15545 = vst [vmem:[#allocation26_spill] sm:$0xff] %v14376_v3  ;;  %9402 = vmatpush3.bf16.msra.mxu1 %v14388_v58  ;;  %v14406_v2 = vld [vmem:[%s15365_s7 + $0xe8] sm:$0xff]  }
 0x423   :  { %v14344_v43 = vpack.c.bf16 %v6733_v33, %v6725_v23  ;;  %v6734_v34 = vmax.f32 %v6493_v29, 0.0  ;;  %v14364_v29 = vld [vmem:[%s15365_s7 + $0x40] sm:$0xff]   ;;  %15547 = vst [vmem:[#allocation28_spill] sm:$0xff] %v14388_v58  ;;  %v6529_v23 = vpop.f32.mrf.mxu0  ;;  %v14394_v33 = vld [vmem:[%s15365_s7 + $0xf0] sm:$0xff]   ;;  %15550 = vst [vmem:[#allocation31_spill] sm:$0xff] %v14406_v2 }
 0x424   :  { %15543 = vst [vmem:[#allocation24_spill] sm:$0xff] %v14364_v29  ;;  %9387 = vmatprep.subr.bf16.mxu0 %v14364_v29  ;;  %15548 = vst [vmem:[#allocation29_spill] sm:$0xff] %v14394_v33  ;;  %9403 = vmatprep.subr.bf16.mxu1 %v14394_v33  ;;  %v14412_v58 = vld [vmem:[%s15365_s7 + $0xa8] sm:$0xff]  }
 0x425   :  { %v14352_v32 = vpack.c.bf16 %v6734_v34, %v6726_v49  ;;  %v14400_v49 = vld [vmem:[%s15365_s7 + $0xb0] sm:$0xff]   ;;  %v6531_v34 = vpop.f32.mrf.mxu0  ;;  %15551 = vst [vmem:[#allocation32_spill] sm:$0xff] %v14412_v58  ;;  %15560 = vst [vmem:[#allocation39_spill] sm:$0xff] %v14463_v35 }
 0x426   :  { %9388 = vmatpush3.bf16.msra.mxu0 %v14369_v6  ;;  %15549 = vst [vmem:[#allocation30_spill] sm:$0xff] %v14400_v49  ;;  %9404 = vmatpush3.bf16.msra.mxu1 %v14400_v49  ;;  %v15553_v49 = vld [vmem:[#allocation2_spill] sm:$0xff] }
 0x427   :  { %7644 = vmatprep.subr.bf16.mxu0 %v14376_v3  ;;  %9405 = vmatprep.subr.bf16.mxu1 %v14406_v2  ;;  %v6533_v33 = vpop.f32.mrf.mxu0  ;;  %v4981_v28 = vsub.s32 4, %v15553_v49  ;;  %v14425_v2 = vld [vmem:[%s15365_s7 + $0xa0] sm:$0xff]   ;;  %v4985_v48 = vsub.s32 5, %v15553_v49 }
 0x428   :  { %15554 = vst [vmem:[#allocation2_spill] sm:$0xff] %v14425_v2 }
 0x429   :  { %v6535_v16 = vpop.f32.mrf.mxu0  ;;  %v4982_v12 = vrot.slane %v14051_v47, %v4981_v28  ;;  %v4986_v3 = vrot.slane %v14051_v47, %v4985_v48  ;;  %v14451_v28 = vld [vmem:[%s15365_s7 + $0x90] sm:$0xff]  }
 0x42a   :  { %9406 = vmatpush3.bf16.msra.mxu1 %v14412_v58  ;;  %v14432_v58 = vld [vmem:[%s15365_s7 + $0xd8] sm:$0xff]   ;;  %15558 = vst [vmem:[#allocation37_spill] sm:$0xff] %v14451_v28 }
 0x42b   :  { %9407 = vmatprep.subr.bf16.mxu1 %v14418_v40  ;;  %15555 = vst [vmem:[#allocation34_spill] sm:$0xff] %v14432_v58  ;;  %v14439_v40 = vld [vmem:[%s15365_s7 + $0x98] sm:$0xff]   ;;  %v6539_v6 = vpop.f32.mrf.mxu0 }
 0x42c   :  { %15556 = vst [vmem:[#allocation35_spill] sm:$0xff] %v14439_v40 }
 0x42d   :  { %v6541_v48 = vpop.f32.mrf.mxu0 }
 0x42e   :  { %9408 = vmatpush3.bf16.msra.mxu1 %v14425_v2  ;;  %v6530_v2 = vadd.f32 %v6529_v23, %v4982_v12  ;;  %v6534_v23 = vadd.f32 %v6533_v33, %v4982_v12  ;;  %v6542_v21 = vadd.f32 %v6541_v48, %v4986_v3 }
 0x42f   :  { %9409 = vmatprep.subr.bf16.mxu1 %v14432_v58  ;;  %v6532_v58 = vadd.f32 %v6531_v34, %v4986_v3  ;;  %v6543_v34 = vpop.f32.mrf.mxu0 }
 0x432   :  { %9410 = vmatpush3.bf16.msra.mxu1 %v14439_v40 }
 0x433   :  { %9411 = vmatprep.subr.bf16.mxu1 %v14446_v56 }
 0x436   :  { %9412 = vmatpush3.bf16.msra.mxu1 %v14451_v28 }
 0x437   :  { %9413 = vmatprep.subr.bf16.mxu1 %v14458_v50 }
 0x43a   :  { %9414 = vmatpush3.bf16.msra.mxu1 %v14463_v35 }
 0x43b   :  { %9415 = vmatprep.subr.bf16.mxu1 %v14470_v11 }
 0x452   :  { %v6582_v54 = vpop.f32.mrf.mxu1 }
 0x453   :  { %v6583_v29 = vadd.f32 %v6582_v54, %v6530_v2  ;;  %v6536_v54 = vadd.f32 %v6535_v16, %v4986_v3 }
 0x454   :  { %v6584_v8 = vpop.f32.mrf.mxu1 }
 0x455   :  { %v6585_v40 = vadd.f32 %v6584_v8, %v6532_v58  ;;  %v6540_v8 = vadd.f32 %v6539_v6, %v4982_v12  ;;  %v6711_v58 = vmax.f32 %v6583_v29, 0.0 }
 0x456   :  { %v6586_v22 = vpop.f32.mrf.mxu1 }
 0x457   :  { %v6587_v2 = vadd.f32 %v6586_v22, %v6534_v23  ;;  %v14475_v22 = vld [vmem:[%s15365_s7 + $0x80] sm:$0xff]   ;;  %v6712_v16 = vmax.f32 %v6585_v40, 0.0 }
 0x458   :  { %v6588_v56 = vpop.f32.mrf.mxu1  ;;  %15562 = vst [vmem:[#allocation41_spill] sm:$0xff] %v14475_v22  ;;  %9416 = vmatpush3.bf16.msra.mxu1 %v14475_v22 }
 0x459   :  { %v6719_v33 = vmax.f32 %v6587_v2, 0.0  ;;  %v6589_v28 = vadd.f32 %v6588_v56, %v6536_v54  ;;  %v6545_v56 = vpop.f32.mrf.mxu0  ;;  %v6544_v54 = vadd.f32 %v6543_v34, %v4982_v12  ;;  %7697 = vmatprep.subr.bf16.mxu1 %v14046_v25  ;;  %v4993_v25 = vsub.s32 7, %v15553_v49 }
 0x45a   :  { %v6592_v15 = vpop.f32.mrf.mxu1  ;;  %v6546_v53 = vadd.f32 %v6545_v56, %v4986_v3 }
 0x45b   :  { %v14477_v23 = vpack.c.bf16 %v6719_v33, %v6711_v58  ;;  %v6720_v35 = vmax.f32 %v6589_v28, 0.0  ;;  %v6593_v6 = vadd.f32 %v6592_v15, %v6540_v8  ;;  %v6635_v22 = vpop.f32.mrf.mxu0  ;;  %v4994_v3 = vrot.slane %v14051_v47, %v4993_v25 }
 0x45c   :  { %v6594_v29 = vpop.f32.mrf.mxu1 }
 0x45d   :  { %15563 = vst [vmem:[#allocation42_spill] sm:$0xff] %v14477_v23  ;;  %v14481_v2 = vpack.c.bf16 %v6720_v35, %v6712_v16  ;;  %v6595_v48 = vadd.f32 %v6594_v29, %v6542_v21  ;;  %v6727_v58 = vmax.f32 %v6593_v6, 0.0  ;;  %v6637_v12 = vpop.f32.mrf.mxu0  ;;  %v4989_v21 = vsub.s32 6, %v15553_v49 }
 0x45e   :  { %v6596_v50 = vpop.f32.mrf.mxu1  ;;  %v6638_v6 = vadd.f32 %v6637_v12, %v4994_v3 }
 0x45f   :  { %15564 = vst [vmem:[#allocation43_spill] sm:$0xff] %v14481_v2  ;;  %v6597_v13 = vadd.f32 %v6596_v50, %v6544_v54  ;;  %v6728_v15 = vmax.f32 %v6595_v48, 0.0  ;;  %v6639_v35 = vpop.f32.mrf.mxu0  ;;  %v4990_v50 = vrot.slane %v14051_v47, %v4989_v21 }
 0x460   :  { %v6598_v40 = vpop.f32.mrf.mxu1 }
 0x461   :  { %v6735_v33 = vmax.f32 %v6597_v13, 0.0  ;;  %v6599_v28 = vadd.f32 %v6598_v40, %v6546_v53  ;;  %v6641_v34 = vpop.f32.mrf.mxu0  ;;  %v6636_v53 = vadd.f32 %v6635_v22, %v4990_v50  ;;  %v6640_v54 = vadd.f32 %v6639_v35, %v4990_v50 }
 0x463   :  { %v14484_v8 = vpack.c.bf16 %v6735_v33, %v6727_v58  ;;  %v6736_v23 = vmax.f32 %v6599_v28, 0.0  ;;  %v6645_v13 = vpop.f32.mrf.mxu0  ;;  %v6642_v58 = vadd.f32 %v6641_v34, %v4994_v3 }
 0x464   :  { %v6646_v49 = vadd.f32 %v6645_v13, %v4990_v50  ;;  %v14499_v13 = vld [vmem:[%s15366_s6] sm:$0xf] }
 0x465   :  { %15565 = vst [vmem:[#allocation44_spill] sm:$0xff] %v14484_v8  ;;  %v14486_v11 = vpack.c.bf16 %v6736_v23, %v6728_v15  ;;  %v6647_v29 = vpop.f32.mrf.mxu0 }
 0x466   :  { %v6648_v2 = vadd.f32 %v6647_v29, %v4994_v3 }
 0x467   :  { %15566 = vst [vmem:[#allocation45_spill] sm:$0xff] %v14486_v11  ;;  %v6649_v28 = vpop.f32.mrf.mxu0 }
 0x468   :  { %v6650_v35 = vadd.f32 %v6649_v28, %v4990_v50 }
 0x492   :  { %v6688_v16 = vpop.f32.mrf.mxu1 }
 0x493   :  { %v6689_v56 = vadd.f32 %v6688_v16, %v6636_v53  ;;  %v6651_v16 = vpop.f32.mrf.mxu0 }
 0x494   :  { %v6690_v23 = vpop.f32.mrf.mxu1 }
 0x495   :  { %v6691_v48 = vadd.f32 %v6690_v23, %v6638_v6  ;;  %v6713_v8 = vmax.f32 %v6689_v56, 0.0  ;;  %v6652_v56 = vadd.f32 %v6651_v16, %v4994_v3 }
 0x496   :  { %v6692_v40 = vpop.f32.mrf.mxu1 }
 0x497   :  { %v6693_v33 = vadd.f32 %v6692_v40, %v6640_v54  ;;  %v6714_v25 = vmax.f32 %v6691_v48, 0.0 }
 0x498   :  { %v6694_v15 = vpop.f32.mrf.mxu1 }
 0x499   :  { %v6721_v11 = vmax.f32 %v6693_v33, 0.0  ;;  %v6695_v21 = vadd.f32 %v6694_v15, %v6642_v58 }
 0x49a   :  { %v6698_v47 = vpop.f32.mrf.mxu1 }
 0x49b   :  { %v14492_v22 = vpack.c.bf16 %v6721_v11, %v6713_v8  ;;  %v6722_v12 = vmax.f32 %v6695_v21, 0.0  ;;  %v6699_v53 = vadd.f32 %v6698_v47, %v6646_v49  ;;  %v14503_v11 = vrot.slane %v14499_v13, %v15518_v17 }
 0x49c   :  { %v6700_v51 = vpop.f32.mrf.mxu1 }
 0x49d   :  { %15567 = vst [vmem:[#allocation46_spill] sm:$0xff] %v14492_v22  ;;  %v14494_v6 = vpack.c.bf16 %v6722_v12, %v6714_v25  ;;  %v6701_v34 = vadd.f32 %v6700_v51, %v6648_v2  ;;  %v6729_v8 = vmax.f32 %v6699_v53, 0.0  ;;  %v14507_v51 = vrot.slane %v14499_v13, %v15519_v60 }
 0x49e   :  { %v6702_v23 = vpop.f32.mrf.mxu1 }
 0x49f   :  { %15568 = vst [vmem:[#allocation47_spill] sm:$0xff] %v14494_v6  ;;  %v6703_v29 = vadd.f32 %v6702_v23, %v6650_v35  ;;  %v6730_v58 = vmax.f32 %v6701_v34, 0.0  ;;  %v6430_v23 = vadd.f32 %v14265_v62, %v14314_v18 }
 0x4a0   :  { %v6704_v54 = vpop.f32.mrf.mxu1  ;;  %v7183_v48 = vpop.f32.mrf.mxu0 }
 0x4a1   :  { %v6737_v40 = vmax.f32 %v6703_v29, 0.0  ;;  %v6705_v50 = vadd.f32 %v6704_v54, %v6652_v56  ;;  %v7184_v21 = vadd.f32 %v7183_v48, %v14507_v51  ;;  %v6483_v48 = vadd.f32 %v14298_v55, %v6430_v23  ;;  %v14536_v55 = vld [vmem:[%s15363_s5 + $0xc4] ss:$16 sps:$4 sm:$0xff]  }
 0x4a2   :  { %v7185_v2 = vpop.f32.mrf.mxu0  ;;  %v14575_v23 = vld [vmem:[%s15363_s5 + $0x64] ss:$16 sps:$4 sm:$0xff]  }
 0x4a3   :  { %v14509_v33 = vpack.c.bf16 %v6737_v40, %v6729_v8  ;;  %v6738_v28 = vmax.f32 %v6705_v50, 0.0  ;;  %v7186_v49 = vadd.f32 %v7185_v2, %v14503_v11  ;;  %v7255_v35 = vmax.f32 %v7184_v21, 0.0 }
 0x4a4   :  { %v7187_v3 = vpop.f32.mrf.mxu0  ;;  %v6426_v8 = vadd.f32 %v14239_v36, %v14314_v18  ;;  %v6718_v18 = vmax.f32 %v6483_v48, 0.0  ;;  %v14605_v48 = vld [vmem:[%s15363_s5 + $0x20] ss:$16 sps:$4 sm:$0xff]  }
 0x4a5   :  { %15569 = vst [vmem:[#allocation48_spill] sm:$0xff] %v14509_v33  ;;  %v14511_v15 = vpack.c.bf16 %v6738_v28, %v6730_v58  ;;  %v7188_v17 = vadd.f32 %v7187_v3, %v14507_v51  ;;  %v7256_v53 = vmax.f32 %v7186_v49, 0.0  ;;  %v14530_v3 = vld [vmem:[%s15363_s5 + $0xe0] ss:$16 sps:$4 sm:$0xff]   ;;  %v14670_v33 = vld [vmem:[%s15363_s5 + $0x184] ss:$16 sps:$4 sm:$0xff]  }
 0x4a6   :  { %v7189_v47 = vpop.f32.mrf.mxu0  ;;  %v6479_v28 = vadd.f32 %v14284_v41, %v6426_v8  ;;  %v14599_v8 = vld [vmem:[%s15363_s5 + $0x24] ss:$16 sps:$4 sm:$0xff]   ;;  %15575 = vst [vmem:[#allocation54_spill] sm:$0xff] %v14670_v33 }
 0x4a7   :  { %15570 = vst [vmem:[#allocation49_spill] sm:$0xff] %v14511_v15  ;;  %v7190_v25 = vadd.f32 %v7189_v47, %v14503_v11  ;;  %v7259_v12 = vmax.f32 %v7188_v17, 0.0 }
 0x4a8   :  { %v7193_v60 = vpop.f32.mrf.mxu0  ;;  %v6710_v21 = vmax.f32 %v6479_v28, 0.0  ;;  %v14635_v28 = vld [vmem:[%s15363_s5 + $0x1c4] ss:$16 sps:$4 sm:$0xff]  }
 0x4a9   :  { %v7260_v16 = vmax.f32 %v7190_v25, 0.0  ;;  %v7271_v29 = vpack.c.bf16 %v7259_v12, %v7255_v35  ;;  %v7194_v2 = vadd.f32 %v7193_v60, %v14507_v51  ;;  %v14542_v25 = vld [vmem:[%s15363_s5 + $0xc0] ss:$16 sps:$4 sm:$0xff]   ;;  %v14548_v60 = vld [vmem:[%s15363_s5 + $0xa4] ss:$16 sps:$4 sm:$0xff]   ;;  %15571 = vst [vmem:[#allocation50_spill] sm:$0xff] %v14635_v28 }
 0x4aa   :  { %v7195_v34 = vpop.f32.mrf.mxu0  ;;  %v14563_v35 = vld [vmem:[%s15363_s5 + $0x84] ss:$16 sps:$4 sm:$0xff]  }
 0x4ab   :  { %v7272_v56 = vpack.c.bf16 %v7260_v16, %v7256_v53  ;;  %v7196_v40 = vadd.f32 %v7195_v34, %v14503_v11  ;;  %v7263_v17 = vmax.f32 %v7194_v2, 0.0  ;;  %v14551_v53 = vpack.c.bf16 %v6718_v18, %v6710_v21  ;;  %v14556_v16 = vld [vmem:[%s15363_s5 + $0xa0] ss:$16 sps:$4 sm:$0xff]   ;;  %v14623_v2 = vld [vmem:[%s15363_s5 + $0x1e4] ss:$16 sps:$4 sm:$0xff]  }
 0x4ac   :  { %v7197_v54 = vpop.f32.mrf.mxu0  ;;  %v14569_v34 = vld [vmem:[%s15363_s5 + $0x80] ss:$16 sps:$4 sm:$0xff]   ;;  %v14646_v18 = vrot.slane %v14499_v13, %v15537_v26 }
 0x4ad   :  { %v7198_v50 = vadd.f32 %v7197_v54, %v14507_v51  ;;  %7574 = vmatprep.mubr.bf16.mxu0 %v7272_v56  ;;  %v7264_v49 = vmax.f32 %v7196_v40, 0.0  ;;  %v14581_v56 = vld [vmem:[%s15363_s5 + $0x60] ss:$16 sps:$4 sm:$0xff]   ;;  %v14611_v40 = vld [vmem:[%s15363_s5 + $0x4] ss:$16 sps:$4 sm:$0xff]  }
 0x4ae   :  { %v7199_v58 = vpop.f32.mrf.mxu0  ;;  %7575 = vmatmul.mubr.bf16.vlgmr.msra.gmra.mxu0 %v7271_v29  ;;  %v14587_v29 = vld [vmem:[%s15363_s5 + $0x44] ss:$16 sps:$4 sm:$0xff]   ;;  %v14593_v54 = vld [vmem:[%s15363_s5 + $0x40] ss:$16 sps:$4 sm:$0xff]  }
 0x4af   :  { %v7200_v62 = vadd.f32 %v7199_v58, %v14503_v11  ;;  %7645 = vmatpush1.bf16.msra.mxu0 %v14530_v3  ;;  %v7267_v36 = vmax.f32 %v7198_v50, 0.0  ;;  %v14617_v50 = vld [vmem:[%s15363_s5] ss:$16 sps:$4 sm:$0xff]  }
 0x4b0   :  { %7646 = vmatprep.subr.bf16.mxu0 %v14536_v55  ;;  %v14629_v58 = vld [vmem:[%s15363_s5 + $0x1e0] ss:$16 sps:$4 sm:$0xff]  }
 0x4b1   :  { %v7268_v41 = vmax.f32 %v7200_v62, 0.0  ;;  %v7275_v12 = vpack.c.bf16 %v7267_v36, %v7263_v17  ;;  %v14641_v36 = vld [vmem:[%s15363_s5 + $0x1c0] ss:$16 sps:$4 sm:$0xff]   ;;  %v14655_v17 = vld [vmem:[%s15363_s5 + $0x1a4] ss:$16 sps:$4 sm:$0xff]  }
 0x4b2   :  { %15572 = vst [vmem:[#allocation51_spill] sm:$0xff] %v14641_v36  ;;  %15573 = vst [vmem:[#allocation52_spill] sm:$0xff] %v14655_v17  ;;  %v14663_v26 = vld [vmem:[%s15363_s5 + $0x1a0] ss:$16 sps:$4 sm:$0xff]  }
 0x4b3   :  { %v7276_v47 = vpack.c.bf16 %v7268_v41, %v7264_v49  ;;  %7647 = vmatpush1.bf16.msra.mxu0 %v14542_v25  ;;  %v14650_v49 = vrot.slane %v14499_v13, %v15536_v7  ;;  %15574 = vst [vmem:[#allocation53_spill] sm:$0xff] %v14663_v26 }
 0x4b4   :  { %7648 = vmatprep.subr.bf16.mxu0 %v14548_v60 }
 0x4b5   :  { %7582 = vmatprep.mubr.bf16.mxu0 %v7276_v47 }
 0x4b6   :  { %7583 = vmatmul.mubr.bf16.gmra.mxu0 %v7275_v12 }
 0x4b7   :  { %7649 = vmatpush1.bf16.msra.mxu0 %v14556_v16  ;;  %7676 = vmatprep.mubr.bf16.mxu0 %v14551_v53 }
 0x4b8   :  { %7650 = vmatprep.subr.bf16.mxu0 %v14563_v35 }
 0x4bb   :  { %7651 = vmatpush1.bf16.msra.mxu0 %v14569_v34 }
 0x4bc   :  { %7652 = vmatprep.subr.bf16.mxu0 %v14575_v23 }
 0x4bf   :  { %7653 = vmatpush1.bf16.msra.mxu0 %v14581_v56 }
 0x4c0   :  { %7654 = vmatprep.subr.bf16.mxu0 %v14587_v29 }
 0x4c3   :  { %7655 = vmatpush1.bf16.msra.mxu0 %v14593_v54 }
 0x4c4   :  { %7656 = vmatprep.subr.bf16.mxu0 %v14599_v8 }
 0x4c7   :  { %7657 = vmatpush1.bf16.msra.mxu0 %v14605_v48 }
 0x4c8   :  { %7658 = vmatprep.subr.bf16.mxu0 %v14611_v40 }
 0x4cb   :  { %7659 = vmatpush1.bf16.msra.mxu0 %v14617_v50 }
 0x4cc   :  { %7660 = vmatprep.subr.bf16.mxu0 %v14623_v2 }
 0x4cf   :  { %7661 = vmatpush2.bf16.msra.mxu0 %v14629_v58 }
 0x4d0   :  { %7662 = vmatprep.subr.bf16.mxu0 %v14635_v28 }
 0x4d2   :  { %v7236_v62 = vpop.f32.mrf.mxu1 }
 0x4d3   :  { %7663 = vmatpush2.bf16.msra.mxu0 %v14641_v36  ;;  %v7237_v7 = vadd.f32 %v7236_v62, %v14650_v49  ;;  %v14683_v36 = vld [vmem:[%s15363_s5 + $0x164] ss:$16 sps:$4 sm:$0xff]  }
 0x4d4   :  { %v7238_v41 = vpop.f32.mrf.mxu1  ;;  %7664 = vmatprep.subr.bf16.mxu0 %v14655_v17 }
 0x4d5   :  { %v7239_v47 = vadd.f32 %v7238_v41, %v14646_v18  ;;  %v7257_v62 = vmax.f32 %v7237_v7, 0.0  ;;  %v14691_v7 = vld [vmem:[%s15363_s5 + $0x160] ss:$16 sps:$4 sm:$0xff]  }
 0x4d6   :  { %v7240_v21 = vpop.f32.mrf.mxu1 }
 0x4d7   :  { %v7241_v12 = vadd.f32 %v7240_v21, %v14650_v49  ;;  %7665 = vmatpush2.bf16.msra.mxu0 %v14663_v26  ;;  %v7258_v22 = vmax.f32 %v7239_v47, 0.0  ;;  %v14677_v26 = vld [vmem:[%s15363_s5 + $0x180] ss:$16 sps:$4 sm:$0xff]  }
 0x4d8   :  { %v7242_v13 = vpop.f32.mrf.mxu1  ;;  %7666 = vmatprep.subr.bf16.mxu0 %v14670_v33  ;;  %15576 = vst [vmem:[#allocation55_spill] sm:$0xff] %v14677_v26 }
 0x4d9   :  { %v7243_v41 = vadd.f32 %v7242_v13, %v14646_v18  ;;  %v7261_v21 = vmax.f32 %v7241_v12, 0.0 }
 0x4da   :  { %v7246_v15 = vpop.f32.mrf.mxu1 }
 0x4db   :  { %v7262_v6 = vmax.f32 %v7243_v41, 0.0  ;;  %7667 = vmatpush2.bf16.msra.mxu0 %v14677_v26  ;;  %v7273_v13 = vpack.c.bf16 %v7261_v21, %v7257_v62  ;;  %v7247_v26 = vadd.f32 %v7246_v15, %v14650_v49  ;;  %v14707_v15 = vld [vmem:[%s15363_s5 + $0x140] ss:$16 sps:$4 sm:$0xff]  }
 0x4dc   :  { %v7248_v17 = vpop.f32.mrf.mxu1  ;;  %7668 = vmatprep.subr.bf16.mxu0 %v14683_v36 }
 0x4dd   :  { %v7274_v12 = vpack.c.bf16 %v7262_v6, %v7258_v22  ;;  %v7249_v41 = vadd.f32 %v7248_v17, %v14646_v18  ;;  %v14698_v22 = vld [vmem:[%s15363_s5 + $0x144] ss:$16 sps:$4 sm:$0xff]  }
 0x4de   :  { %v7250_v47 = vpop.f32.mrf.mxu1 }
 0x4df   :  { %v7251_v33 = vadd.f32 %v7250_v47, %v14650_v49  ;;  %7623 = vmatprep.mubr.bf16.mxu1 %v7274_v12  ;;  %7669 = vmatpush2.bf16.msra.mxu0 %v14691_v7  ;;  %v7266_v21 = vmax.f32 %v7249_v41, 0.0  ;;  %v7265_v12 = vmax.f32 %v7247_v26, 0.0  ;;  %v15595_v26 = vld [vmem:[#allocation15_spill] sm:$0xff]  ;;  %v15596_v47 = vld [vmem:[#allocation16_spill] sm:$0xff]  ;;  %v15597_v41 = vld [vmem:[#allocation17_spill] sm:$0xff] }
 0x4e0   :  { %v7252_v28 = vpop.f32.mrf.mxu1  ;;  %7624 = vmatmul.mubr.bf16.vlgmr.msra.gmra.mxu1 %v7273_v13  ;;  %7670 = vmatprep.subr.bf16.mxu0 %v14698_v22  ;;  %v14713_v13 = vld [vmem:[%s15363_s5 + $0x124] ss:$16 sps:$4 sm:$0xff]  }
 0x4e1   :  { %v7253_v6 = vadd.f32 %v7252_v28, %v14646_v18  ;;  %7698 = vmatpush1.bf16.msra.mxu1 %v14056_v59  ;;  %v7269_v17 = vmax.f32 %v7251_v33, 0.0  ;;  %v14721_v33 = vld [vmem:[%s15363_s5 + $0x120] ss:$16 sps:$4 sm:$0xff]   ;;  %v14727_v28 = vld [vmem:[%s15363_s5 + $0x104] ss:$16 sps:$4 sm:$0xff]  }
 0x4e2   :  { %7699 = vmatprep.subr.bf16.mxu1 %v14062_v31 }
 0x4e3   :  { %v7270_v62 = vmax.f32 %v7253_v6, 0.0  ;;  %7671 = vmatpush2.bf16.msra.mxu0 %v14707_v15  ;;  %v7277_v31 = vpack.c.bf16 %v7269_v17, %v7265_v12  ;;  %v15598_v6 = vld [vmem:[#allocation18_spill] sm:$0xff]  ;;  %v15599_v17 = vld [vmem:[#allocation19_spill] sm:$0xff]  ;;  %v15602_v12 = vld [vmem:[#allocation28_spill] sm:$0xff] }
 0x4e4   :  { %7672 = vmatprep.subr.bf16.mxu0 %v14713_v13 }
 0x4e5   :  { %v7278_v59 = vpack.c.bf16 %v7270_v62, %v7266_v21  ;;  %7700 = vmatpush1.bf16.msra.mxu1 %v14074_v38  ;;  %v14736_v38 = vld [vmem:[%s15363_s5 + $0x100] ss:$16 sps:$4 sm:$0xff]   ;;  %v15601_v62 = vld [vmem:[#allocation27_spill] sm:$0xff] }
 0x4e6   :  { %7701 = vmatprep.subr.bf16.mxu1 %v14080_v14  ;;  %v15577_v14 = vld [vmem:[#allocation9_spill] sm:$0xff]  ;;  %v15600_v21 = vld [vmem:[#allocation20_spill] sm:$0xff] }
 0x4e7   :  { %7631 = vmatprep.mubr.bf16.mxu1 %v7278_v59  ;;  %7673 = vmatpush2.bf16.msra.mxu0 %v14721_v33  ;;  %v15603_v59 = vld [vmem:[#allocation29_spill] sm:$0xff] }
 0x4e8   :  { %7632 = vmatmul.mubr.bf16.gmra.mxu1 %v7277_v31  ;;  %7674 = vmatprep.subr.bf16.mxu0 %v14727_v28  ;;  %v15604_v31 = vld [vmem:[#allocation30_spill] sm:$0xff] }
 0x4e9   :  { %7702 = vmatpush1.bf16.msra.mxu1 %v14086_v42  ;;  %7729 = vmatprep.mubr.bf16.mxu1 %v14551_v53  ;;  %v15578_v42 = vld [vmem:[#allocation13_spill] sm:$0xff]  ;;  %v15594_v53 = vld [vmem:[#allocation14_spill] sm:$0xff] }
 0x4ea   :  { %7703 = vmatprep.subr.bf16.mxu1 %v14092_v1  ;;  %v15579_v1 = vld [vmem:[#allocation12_spill] sm:$0xff] }
 0x4eb   :  { %7675 = vmatpush2.bf16.msra.mxu0 %v14736_v38 }
 0x4ec   :  { %9429 = vmatprep.subr.bf16.mxu0 %v14149_v19  ;;  %v15588_v19 = vld [vmem:[#allocation7_spill] sm:$0xff] }
 0x4ed   :  { %7704 = vmatpush1.bf16.msra.mxu1 %v14099_v5  ;;  %v15580_v5 = vld [vmem:[#allocation10_spill] sm:$0xff] }
 0x4ee   :  { %7677 = vmatmul.mubr.bf16.vlgmr.msra.gmra.mxu0 %v14316_v20  ;;  %7705 = vmatprep.subr.bf16.mxu1 %v14105_v52  ;;  %v15581_v52 = vld [vmem:[#allocation11_spill] sm:$0xff] }
 0x4ef   :  { %7686 = vmatprep.mubr.bf16.mxu0 %v14352_v32  ;;  %9430 = vmatpush3.bf16.msra.mxu0 %v14155_v4  ;;  %v15589_v4 = vld [vmem:[#allocation8_spill] sm:$0xff] }
 0x4f0   :  { %9431 = vmatprep.subr.bf16.mxu0 %v14274_v37  ;;  %v15591_v37 = vld [vmem:[#allocation26_spill] sm:$0xff] }
 0x4f1   :  { %7706 = vmatpush1.bf16.msra.mxu1 %v14113_v30  ;;  %v15582_v30 = vld [vmem:[#allocation21_spill] sm:$0xff] }
 0x4f2   :  { %7707 = vmatprep.subr.bf16.mxu1 %v14119_v44  ;;  %v15583_v44 = vld [vmem:[#allocation22_spill] sm:$0xff] }
 0x4f3   :  { %9432 = vmatpush3.bf16.msra.mxu0 %v14279_v61  ;;  %v15592_v61 = vld [vmem:[#allocation4_spill] sm:$0xff] }
 0x4f4   :  { %9433 = vmatprep.subr.bf16.mxu0 %v14289_v24 }
 0x4f5   :  { %7708 = vmatpush1.bf16.msra.mxu1 %v14126_v0  ;;  %v15584_v0 = vld [vmem:[#allocation5_spill] sm:$0xff] }
 0x4f6   :  { %7687 = vmatmul.mubr.bf16.gmra.mxu0 %v14344_v43  ;;  %7709 = vmatprep.subr.bf16.mxu1 %v14132_v45  ;;  %v15585_v45 = vld [vmem:[#allocation6_spill] sm:$0xff] }
 0x4f7   :  { %9434 = vmatpush3.bf16.msra.mxu0 %v14294_v46  ;;  %v15593_v46 = vld [vmem:[#allocation3_spill] sm:$0xff] }
 0x4f8   :  { %9435 = vmatprep.subr.bf16.mxu0 %v14303_v63 }
 0x4f9   :  { %7710 = vmatpush1.bf16.msra.mxu1 %v14137_v10  ;;  %v15586_v10 = vld [vmem:[#allocation23_spill] sm:$0xff] }
 0x4fa   :  { %7711 = vmatprep.subr.bf16.mxu1 %v14144_v39  ;;  %v15587_v39 = vld [vmem:[#allocation24_spill] sm:$0xff] }
 0x4fb   :  { %9436 = vmatpush3.bf16.msra.mxu0 %v14308_v9 }
 0x4fc   :  { %9437 = vmatprep.subr.bf16.mxu0 %v14322_v57 }
 0x4fd   :  { %7712 = vmatpush1.bf16.msra.mxu1 %v14162_v27  ;;  %v15590_v27 = vld [vmem:[#allocation25_spill] sm:$0xff] }
 0x4fe   :  { %7713 = vmatprep.subr.bf16.mxu1 %v15577_v14  ;;  %v15605_v14 = vld [vmem:[#allocation31_spill] sm:$0xff] }
 0x4ff   :  { %9438 = vmatpush3.bf16.msra.mxu0 %v15578_v42 }
 0x500   :  { %9439 = vmatprep.subr.bf16.mxu0 %v15579_v1 }
 0x501   :  { %7714 = vmatpush2.bf16.msra.mxu1 %v15580_v5  ;;  %v15606_v5 = vld [vmem:[#allocation32_spill] sm:$0xff] }
 0x502   :  { %7715 = vmatprep.subr.bf16.mxu1 %v15581_v52  ;;  %v15607_v52 = vld [vmem:[#allocation33_spill] sm:$0xff] }
 0x503   :  { %9440 = vmatpush3.bf16.msra.mxu0 %v15582_v30 }
 0x504   :  { %9441 = vmatprep.subr.bf16.mxu0 %v15583_v44 }
 0x505   :  { %7716 = vmatpush2.bf16.msra.mxu1 %v15584_v0  ;;  %v15608_v0 = vld [vmem:[#allocation2_spill] sm:$0xff] }
 0x506   :  { %7717 = vmatprep.subr.bf16.mxu1 %v15585_v45  ;;  %v15609_v45 = vld [vmem:[#allocation34_spill] sm:$0xff] }
 0x507   :  { %9442 = vmatpush3.bf16.msra.mxu0 %v15586_v10 }
 0x508   :  { %9443 = vmatprep.subr.bf16.mxu0 %v15587_v39 }
 0x509   :  { %7718 = vmatpush2.bf16.msra.mxu1 %v15588_v19  ;;  %v15612_v19 = vld [vmem:[#allocation37_spill] sm:$0xff] }
 0x50a   :  { %7719 = vmatprep.subr.bf16.mxu1 %v15589_v4  ;;  %v15613_v4 = vld [vmem:[#allocation38_spill] sm:$0xff] }
 0x50b   :  { %9444 = vmatpush3.bf16.msra.mxu0 %v15590_v27 }
 0x50c   :  { %7876 = vmatprep.subr.bf16.mxu0 %v15591_v37 }
 0x50d   :  { %7720 = vmatpush2.bf16.msra.mxu1 %v15592_v61  ;;  %v15614_v61 = vld [vmem:[#allocation39_spill] sm:$0xff] }
 0x50e   :  { %7721 = vmatprep.subr.bf16.mxu1 %v15593_v46  ;;  %v15615_v46 = vld [vmem:[#allocation40_spill] sm:$0xff] }
 0x511   :  { %7722 = vmatpush2.bf16.msra.mxu1 %v15594_v53  ;;  %v14806_v53 = vld [vmem:[%s15363_s5 + $0xec] ss:$16 sps:$4 sm:$0xff]  }
 0x512   :  { %7723 = vmatprep.subr.bf16.mxu1 %v15595_v26  ;;  %15617 = vst [vmem:[#allocation9_spill] sm:$0xff] %v14806_v53 }
 0x515   :  { %7724 = vmatpush2.bf16.msra.mxu1 %v15596_v47 }
 0x516   :  { %7725 = vmatprep.subr.bf16.mxu1 %v15597_v41 }
 0x519   :  { %7726 = vmatpush2.bf16.msra.mxu1 %v15598_v6 }
 0x51a   :  { %7727 = vmatprep.subr.bf16.mxu1 %v15599_v17 }
 0x51d   :  { %7728 = vmatpush2.bf16.msra.mxu1 %v15600_v21 }
 0x51e   :  { %9457 = vmatprep.subr.bf16.mxu1 %v15601_v62 }
 0x520   :  { %7730 = vmatmul.mubr.bf16.vlgmr.msra.gmra.mxu1 %v14316_v20  ;;  %v15610_v20 = vld [vmem:[#allocation35_spill] sm:$0xff] }
 0x521   :  { %7739 = vmatprep.mubr.bf16.mxu1 %v14352_v32  ;;  %9458 = vmatpush3.bf16.msra.mxu1 %v15602_v12  ;;  %v15611_v32 = vld [vmem:[#allocation36_spill] sm:$0xff] }
 0x522   :  { %9459 = vmatprep.subr.bf16.mxu1 %v15603_v59 }
 0x525   :  { %9460 = vmatpush3.bf16.msra.mxu1 %v15604_v31 }
 0x526   :  { %9461 = vmatprep.subr.bf16.mxu1 %v15605_v14 }
 0x528   :  { %7740 = vmatmul.mubr.bf16.gmra.mxu1 %v14344_v43  ;;  %v15616_v43 = vld [vmem:[#allocation41_spill] sm:$0xff] }
 0x529   :  { %9462 = vmatpush3.bf16.msra.mxu1 %v15606_v5 }
 0x52a   :  { %9463 = vmatprep.subr.bf16.mxu1 %v15607_v52 }
 0x52d   :  { %9464 = vmatpush3.bf16.msra.mxu1 %v15608_v0 }
 0x52e   :  { %9465 = vmatprep.subr.bf16.mxu1 %v15609_v45 }
 0x531   :  { %9466 = vmatpush3.bf16.msra.mxu1 %v15610_v20 }
 0x532   :  { %9467 = vmatprep.subr.bf16.mxu1 %v15611_v32 }
 0x535   :  { %9468 = vmatpush3.bf16.msra.mxu1 %v15612_v19 }
 0x536   :  { %9469 = vmatprep.subr.bf16.mxu1 %v15613_v4 }
 0x539   :  { %9470 = vmatpush3.bf16.msra.mxu1 %v15614_v61 }
 0x53a   :  { %9471 = vmatprep.subr.bf16.mxu1 %v15615_v46 }
 0x53d   :  { %9472 = vmatpush3.bf16.msra.mxu1 %v15616_v43  ;;  %v14812_v43 = vld [vmem:[%s15367_s8] ss:$0 sm:$0xff] }
 0x53e   :  { %7929 = vmatprep.subr.bf16.mxu1 %v14806_v53 }
 0x56e   :  { %v9389_v26 = vpop.f32.mrf.mxu0 }
 0x570   :  { %v9390_v47 = vpop.f32.mrf.mxu0 }
 0x571   :  { %v9391_v41 = vadd.f32 %v9390_v47, %v9389_v26 }
 0x572   :  { %v9392_v6 = vpop.f32.mrf.mxu0 }
 0x573   :  { %v7577_v53 = vadd.f32 %v9391_v41, %v14812_v43 }
 0x574   :  { %v9393_v17 = vpop.f32.mrf.mxu0 }
 0x575   :  { %v9394_v21 = vadd.f32 %v9393_v17, %v9392_v6 }
 0x576   :  { %v9395_v4 = vpop.f32.mrf.mxu0 }
 0x577   :  { %v7580_v17 = vadd.f32 %v9394_v21, %v14812_v43 }
 0x578   :  { %v9396_v19 = vpop.f32.mrf.mxu0 }
 0x579   :  { %v9397_v61 = vadd.f32 %v9396_v19, %v9395_v4 }
 0x57a   :  { %v9398_v32 = vpop.f32.mrf.mxu0 }
 0x57c   :  { %v9399_v46 = vpop.f32.mrf.mxu0 }
 0x57d   :  { %v9400_v20 = vadd.f32 %v9399_v46, %v9398_v32  ;;  %v7585_v46 = vadd.f32 %v9397_v61, %v14812_v43 }
 0x5a0   :  { %v9417_v45 = vpop.f32.mrf.mxu1 }
 0x5a2   :  { %v9418_v0 = vpop.f32.mrf.mxu1 }
 0x5a3   :  { %v9419_v52 = vadd.f32 %v9418_v0, %v9417_v45  ;;  %v7588_v0 = vadd.f32 %v9400_v20, %v14812_v43 }
 0x5a4   :  { %v9420_v26 = vpop.f32.mrf.mxu1 }
 0x5a5   :  { %v14815_v47 = vadd.f32 %v9419_v52, %v7577_v53 }
 0x5a6   :  { %v9421_v6 = vpop.f32.mrf.mxu1 }
 0x5a7   :  { %15618 = vst [vmem:[#allocation13_spill] sm:$0xff] %v14815_v47  ;;  %v9422_v19 = vadd.f32 %v9421_v6, %v9420_v26 }
 0x5a8   :  { %v9423_v4 = vpop.f32.mrf.mxu1 }
 0x5a9   :  { %v14818_v5 = vadd.f32 %v9422_v19, %v7580_v17 }
 0x5aa   :  { %v9424_v32 = vpop.f32.mrf.mxu1 }
 0x5ab   :  { %15619 = vst [vmem:[#allocation12_spill] sm:$0xff] %v14818_v5  ;;  %v9425_v14 = vadd.f32 %v9424_v32, %v9423_v4 }
 0x5ac   :  { %v9426_v31 = vpop.f32.mrf.mxu1 }
 0x5ad   :  { %v14821_v59 = vadd.f32 %v9425_v14, %v7585_v46 }
 0x5ae   :  { %v9427_v12 = vpop.f32.mrf.mxu1  ;;  %v7678_v41 = vpop.f32.mrf.mxu0 }
 0x5af   :  { %15620 = vst [vmem:[#allocation10_spill] sm:$0xff] %v14821_v59  ;;  %v9428_v52 = vadd.f32 %v9427_v12, %v9426_v31  ;;  %v7679_v17 = vadd.f32 %v7678_v41, %v14507_v51 }
 0x5b0   :  { %v7680_v45 = vpop.f32.mrf.mxu0 }
 0x5b1   :  { %v14824_v53 = vadd.f32 %v9428_v52, %v7588_v0  ;;  %v7681_v26 = vadd.f32 %v7680_v45, %v14503_v11  ;;  %v7750_v59 = vmax.f32 %v7679_v17, 0.0 }
 0x5b2   :  { %v7682_v21 = vpop.f32.mrf.mxu0 }
 0x5b3   :  { %15621 = vst [vmem:[#allocation11_spill] sm:$0xff] %v14824_v53  ;;  %v7683_v6 = vadd.f32 %v7682_v21, %v14507_v51  ;;  %v7751_v32 = vmax.f32 %v7681_v26, 0.0  ;;  %v15628_v53 = vld [vmem:[#allocation55_spill] sm:$0xff] }
 0x5b4   :  { %v7684_v61 = vpop.f32.mrf.mxu0 }
 0x5b5   :  { %v7685_v19 = vadd.f32 %v7684_v61, %v14503_v11  ;;  %v7754_v14 = vmax.f32 %v7683_v6, 0.0 }
 0x5b6   :  { %v7688_v4 = vpop.f32.mrf.mxu0 }
 0x5b7   :  { %v7755_v46 = vmax.f32 %v7685_v19, 0.0  ;;  %v7766_v31 = vpack.c.bf16 %v7754_v14, %v7750_v59  ;;  %v7689_v21 = vadd.f32 %v7688_v4, %v14507_v51  ;;  %v15622_v4 = vld [vmem:[#allocation43_spill] sm:$0xff] }
 0x5b8   :  { %v7690_v20 = vpop.f32.mrf.mxu0 }
 0x5b9   :  { %v7767_v12 = vpack.c.bf16 %v7755_v46, %v7751_v32  ;;  %v7691_v52 = vadd.f32 %v7690_v20, %v14503_v11  ;;  %v7758_v59 = vmax.f32 %v7689_v21, 0.0  ;;  %v15623_v32 = vld [vmem:[#allocation50_spill] sm:$0xff]  ;;  %v15624_v20 = vld [vmem:[#allocation51_spill] sm:$0xff]  ;;  %v15626_v21 = vld [vmem:[#allocation53_spill] sm:$0xff] }
 0x5ba   :  { %v7692_v0 = vpop.f32.mrf.mxu0 }
 0x5bb   :  { %v7693_v45 = vadd.f32 %v7692_v0, %v14507_v51  ;;  %7806 = vmatprep.mubr.bf16.mxu0 %v7767_v12  ;;  %v7759_v6 = vmax.f32 %v7691_v52, 0.0 }
 0x5bc   :  { %v7694_v41 = vpop.f32.mrf.mxu0  ;;  %7807 = vmatmul.mubr.bf16.vlgmr.msra.gmra.mxu0 %v7766_v31  ;;  %v15625_v31 = vld [vmem:[#allocation52_spill] sm:$0xff] }
 0x5bd   :  { %v7695_v61 = vadd.f32 %v7694_v41, %v14503_v11  ;;  %7877 = vmatpush1.bf16.msra.mxu0 %v14530_v3  ;;  %v7762_v26 = vmax.f32 %v7693_v45, 0.0 }
 0x5be   :  { %7878 = vmatprep.subr.bf16.mxu0 %v14536_v55 }
 0x5bf   :  { %v7763_v17 = vmax.f32 %v7695_v61, 0.0  ;;  %v7770_v14 = vpack.c.bf16 %v7762_v26, %v7758_v59  ;;  %v15627_v26 = vld [vmem:[#allocation54_spill] sm:$0xff] }
 0x5c1   :  { %v7771_v19 = vpack.c.bf16 %v7763_v17, %v7759_v6  ;;  %7879 = vmatpush1.bf16.msra.mxu0 %v14542_v25 }
 0x5c2   :  { %7880 = vmatprep.subr.bf16.mxu0 %v14548_v60 }
 0x5c3   :  { %7814 = vmatprep.mubr.bf16.mxu0 %v7771_v19 }
 0x5c4   :  { %7815 = vmatmul.mubr.bf16.gmra.mxu0 %v7770_v14 }
 0x5c5   :  { %7881 = vmatpush1.bf16.msra.mxu0 %v14556_v16  ;;  %7908 = vmatprep.mubr.bf16.mxu0 %v15622_v4 }
 0x5c6   :  { %7882 = vmatprep.subr.bf16.mxu0 %v14563_v35 }
 0x5c9   :  { %7883 = vmatpush1.bf16.msra.mxu0 %v14569_v34 }
 0x5ca   :  { %7884 = vmatprep.subr.bf16.mxu0 %v14575_v23 }
 0x5cd   :  { %7885 = vmatpush1.bf16.msra.mxu0 %v14581_v56 }
 0x5ce   :  { %7886 = vmatprep.subr.bf16.mxu0 %v14587_v29 }
 0x5d1   :  { %7887 = vmatpush1.bf16.msra.mxu0 %v14593_v54 }
 0x5d2   :  { %7888 = vmatprep.subr.bf16.mxu0 %v14599_v8 }
 0x5d5   :  { %7889 = vmatpush1.bf16.msra.mxu0 %v14605_v48 }
 0x5d6   :  { %7890 = vmatprep.subr.bf16.mxu0 %v14611_v40 }
 0x5d9   :  { %7891 = vmatpush1.bf16.msra.mxu0 %v14617_v50 }
 0x5da   :  { %7892 = vmatprep.subr.bf16.mxu0 %v14623_v2 }
 0x5dd   :  { %7893 = vmatpush2.bf16.msra.mxu0 %v14629_v58 }
 0x5de   :  { %7894 = vmatprep.subr.bf16.mxu0 %v15623_v32 }
 0x5e0   :  { %v7731_v46 = vpop.f32.mrf.mxu1 }
 0x5e1   :  { %7895 = vmatpush2.bf16.msra.mxu0 %v15624_v20  ;;  %v7732_v41 = vadd.f32 %v7731_v46, %v14650_v49 }
 0x5e2   :  { %v7733_v12 = vpop.f32.mrf.mxu1  ;;  %7896 = vmatprep.subr.bf16.mxu0 %v15625_v31 }
 0x5e3   :  { %v7734_v52 = vadd.f32 %v7733_v12, %v14646_v18  ;;  %v7752_v5 = vmax.f32 %v7732_v41, 0.0 }
 0x5e4   :  { %v7735_v0 = vpop.f32.mrf.mxu1 }
 0x5e5   :  { %v7736_v45 = vadd.f32 %v7735_v0, %v14650_v49  ;;  %7897 = vmatpush2.bf16.msra.mxu0 %v15626_v21  ;;  %v7753_v19 = vmax.f32 %v7734_v52, 0.0 }
 0x5e6   :  { %v7737_v61 = vpop.f32.mrf.mxu1  ;;  %7898 = vmatprep.subr.bf16.mxu0 %v15627_v26 }
 0x5e7   :  { %v7738_v6 = vadd.f32 %v7737_v61, %v14646_v18  ;;  %v7756_v17 = vmax.f32 %v7736_v45, 0.0 }
 0x5e8   :  { %v7741_v59 = vpop.f32.mrf.mxu1 }
 0x5e9   :  { %v7757_v14 = vmax.f32 %v7738_v6, 0.0  ;;  %7899 = vmatpush2.bf16.msra.mxu0 %v15628_v53  ;;  %v7768_v0 = vpack.c.bf16 %v7756_v17, %v7752_v5  ;;  %v7742_v45 = vadd.f32 %v7741_v59, %v14650_v49  ;;  %v14872_v5 = vld [vmem:[%s15363_s5 + $0xe8] ss:$16 sps:$4 sm:$0xff]  }
 0x5ea   :  { %v7743_v47 = vpop.f32.mrf.mxu1  ;;  %7900 = vmatprep.subr.bf16.mxu0 %v14683_v36 }
 0x5eb   :  { %v7769_v12 = vpack.c.bf16 %v7757_v14, %v7753_v19  ;;  %v7744_v46 = vadd.f32 %v7743_v47, %v14646_v18  ;;  %v7760_v17 = vmax.f32 %v7742_v45, 0.0  ;;  %v14886_v19 = vld [vmem:[%s15363_s5 + $0xc8] ss:$16 sps:$4 sm:$0xff]   ;;  %v14892_v14 = vld [vmem:[%s15363_s5 + $0xac] ss:$16 sps:$4 sm:$0xff]   ;;  %v15630_v45 = vld [vmem:[#allocation42_spill] sm:$0xff] }
 0x5ec   :  { %v7745_v21 = vpop.f32.mrf.mxu1 }
 0x5ed   :  { %v7746_v31 = vadd.f32 %v7745_v21, %v14650_v49  ;;  %7855 = vmatprep.mubr.bf16.mxu1 %v7769_v12  ;;  %7901 = vmatpush2.bf16.msra.mxu0 %v14691_v7  ;;  %v14878_v21 = vld [vmem:[%s15363_s5 + $0xcc] ss:$16 sps:$4 sm:$0xff]   ;;  %v7761_v61 = vmax.f32 %v7744_v46, 0.0  ;;  %v14900_v12 = vld [vmem:[%s15363_s5 + $0xa8] ss:$16 sps:$4 sm:$0xff]  }
 0x5ee   :  { %v7747_v52 = vpop.f32.mrf.mxu1  ;;  %7856 = vmatmul.mubr.bf16.vlgmr.msra.gmra.mxu1 %v7768_v0  ;;  %7902 = vmatprep.subr.bf16.mxu0 %v14698_v22  ;;  %v14907_v0 = vld [vmem:[%s15363_s5 + $0x8c] ss:$16 sps:$4 sm:$0xff]  }
 0x5ef   :  { %v7748_v41 = vadd.f32 %v7747_v52, %v14646_v18  ;;  %7930 = vmatpush1.bf16.msra.mxu1 %v14872_v5  ;;  %v7764_v47 = vmax.f32 %v7746_v31, 0.0  ;;  %v14914_v46 = vld [vmem:[%s15365_s7 + $0x78] sm:$0xff]  }
 0x5f0   :  { %7931 = vmatprep.subr.bf16.mxu1 %v14878_v21  ;;  %v14927_v52 = vld [vmem:[%s15363_s5 + $0x6c] ss:$16 sps:$4 sm:$0xff]  }
 0x5f1   :  { %v7765_v6 = vmax.f32 %v7748_v41, 0.0  ;;  %7903 = vmatpush2.bf16.msra.mxu0 %v14707_v15  ;;  %v7772_v31 = vpack.c.bf16 %v7764_v47, %v7760_v17  ;;  %15631 = vst [vmem:[#allocation22_spill] sm:$0xff] %v14927_v52  ;;  %v15632_v41 = vld [vmem:[#allocation45_spill] sm:$0xff] }
 0x5f2   :  { %7904 = vmatprep.subr.bf16.mxu0 %v14713_v13  ;;  %v14934_v47 = vld [vmem:[%s15365_s7 + $0x38] sm:$0xff]  }
 0x5f3   :  { %v7773_v59 = vpack.c.bf16 %v7765_v6, %v7761_v61  ;;  %7932 = vmatpush1.bf16.msra.mxu1 %v14886_v19  ;;  %15633 = vst [vmem:[#allocation5_spill] sm:$0xff] %v14934_v47  ;;  %v14940_v61 = vld [vmem:[%s15365_s7 + $0x70] sm:$0xff]   ;;  %v14946_v6 = vld [vmem:[%s15363_s5 + $0x68] ss:$16 sps:$4 sm:$0xff]   ;;  %v14952_v17 = vld [vmem:[%s15363_s5 + $0x4c] ss:$16 sps:$4 sm:$0xff]  }
 0x5f4   :  { %7933 = vmatprep.subr.bf16.mxu1 %v14892_v14  ;;  %15634 = vst [vmem:[#allocation6_spill] sm:$0xff] %v14940_v61  ;;  %15635 = vst [vmem:[#allocation23_spill] sm:$0xff] %v14946_v6 }
 0x5f5   :  { %7863 = vmatprep.mubr.bf16.mxu1 %v7773_v59  ;;  %7905 = vmatpush2.bf16.msra.mxu0 %v14721_v33  ;;  %15636 = vst [vmem:[#allocation24_spill] sm:$0xff] %v14952_v17  ;;  %v14958_v59 = vld [vmem:[%s15365_s7 + $0x30] sm:$0xff]  }
 0x5f6   :  { %7864 = vmatmul.mubr.bf16.gmra.mxu1 %v7772_v31  ;;  %7906 = vmatprep.subr.bf16.mxu0 %v14727_v28  ;;  %15637 = vst [vmem:[#allocation7_spill] sm:$0xff] %v14958_v59  ;;  %v14965_v31 = vld [vmem:[%s15363_s5 + $0x48] ss:$16 sps:$4 sm:$0xff]  }
 0x5f7   :  { %7934 = vmatpush1.bf16.msra.mxu1 %v14900_v12  ;;  %7961 = vmatprep.mubr.bf16.mxu1 %v15622_v4  ;;  %v14920_v4 = vld [vmem:[%s15363_s5 + $0x88] ss:$16 sps:$4 sm:$0xff]   ;;  %15638 = vst [vmem:[#allocation8_spill] sm:$0xff] %v14965_v31 }
 0x5f8   :  { %7935 = vmatprep.subr.bf16.mxu1 %v14907_v0  ;;  %15629 = vst [vmem:[#allocation21_spill] sm:$0xff] %v14920_v4 }
 0x5f9   :  { %7907 = vmatpush2.bf16.msra.mxu0 %v14736_v38 }
 0x5fa   :  { %9485 = vmatprep.subr.bf16.mxu0 %v14914_v46 }
 0x5fb   :  { %7936 = vmatpush1.bf16.msra.mxu1 %v14920_v4 }
 0x5fc   :  { %7909 = vmatmul.mubr.bf16.vlgmr.msra.gmra.mxu0 %v15630_v45  ;;  %7937 = vmatprep.subr.bf16.mxu1 %v14927_v52 }
 0x5fd   :  { %7918 = vmatprep.mubr.bf16.mxu0 %v15632_v41  ;;  %9486 = vmatpush3.bf16.msra.mxu0 %v14934_v47 }
 0x5fe   :  { %9487 = vmatprep.subr.bf16.mxu0 %v14940_v61 }
 0x5ff   :  { %7938 = vmatpush1.bf16.msra.mxu1 %v14946_v6  ;;  %v15639_v6 = vld [vmem:[#allocation44_spill] sm:$0xff] }
 0x600   :  { %7939 = vmatprep.subr.bf16.mxu1 %v14952_v17  ;;  %v14972_v17 = vld [vmem:[%s15363_s5 + $0x2c] ss:$16 sps:$4 sm:$0xff]  }
 0x601   :  { %9488 = vmatpush3.bf16.msra.mxu0 %v14958_v59  ;;  %15640 = vst [vmem:[#allocation25_spill] sm:$0xff] %v14972_v17 }
 0x602   :  { %9489 = vmatprep.subr.bf16.mxu0 %v14289_v24  ;;  %v14978_v24 = vld [vmem:[%s15365_s7 + $0x28] sm:$0xff]  }
 0x603   :  { %7940 = vmatpush1.bf16.msra.mxu1 %v14965_v31  ;;  %15641 = vst [vmem:[#allocation26_spill] sm:$0xff] %v14978_v24  ;;  %v14985_v31 = vld [vmem:[%s15363_s5 + $0x28] ss:$16 sps:$4 sm:$0xff]  }
 0x604   :  { %7919 = vmatmul.mubr.bf16.gmra.mxu0 %v15639_v6  ;;  %7941 = vmatprep.subr.bf16.mxu1 %v14972_v17  ;;  %15642 = vst [vmem:[#allocation4_spill] sm:$0xff] %v14985_v31  ;;  %v14991_v17 = vld [vmem:[%s15363_s5 + $0xc] ss:$16 sps:$4 sm:$0xff]  }
 0x605   :  { %9490 = vmatpush3.bf16.msra.mxu0 %v14978_v24  ;;  %15643 = vst [vmem:[#allocation3_spill] sm:$0xff] %v14991_v17 }
 0x606   :  { %9491 = vmatprep.subr.bf16.mxu0 %v14303_v63  ;;  %v14999_v63 = vld [vmem:[%s15363_s5 + $0x8] ss:$16 sps:$4 sm:$0xff]  }
 0x607   :  { %7942 = vmatpush1.bf16.msra.mxu1 %v14985_v31  ;;  %15644 = vst [vmem:[#allocation14_spill] sm:$0xff] %v14999_v63  ;;  %v15005_v31 = vld [vmem:[%s15363_s5 + $0x1ec] ss:$16 sps:$4 sm:$0xff]  }
 0x608   :  { %7943 = vmatprep.subr.bf16.mxu1 %v14991_v17  ;;  %15645 = vst [vmem:[#allocation15_spill] sm:$0xff] %v15005_v31 }
 0x609   :  { %9492 = vmatpush3.bf16.msra.mxu0 %v14308_v9  ;;  %v15013_v9 = vld [vmem:[%s15363_s5 + $0x1e8] ss:$16 sps:$4 sm:$0xff]  }
 0x60a   :  { %9493 = vmatprep.subr.bf16.mxu0 %v14322_v57  ;;  %15646 = vst [vmem:[#allocation16_spill] sm:$0xff] %v15013_v9  ;;  %v15019_v57 = vld [vmem:[%s15363_s5 + $0x1cc] ss:$16 sps:$4 sm:$0xff]  }
 0x60b   :  { %7944 = vmatpush1.bf16.msra.mxu1 %v14999_v63  ;;  %15647 = vst [vmem:[#allocation17_spill] sm:$0xff] %v15019_v57 }
 0x60c   :  { %7945 = vmatprep.subr.bf16.mxu1 %v15005_v31 }
 0x60d   :  { %9494 = vmatpush3.bf16.msra.mxu0 %v15578_v42  ;;  %v15027_v42 = vld [vmem:[%s15363_s5 + $0x1c8] ss:$16 sps:$4 sm:$0xff]  }
 0x60e   :  { %9495 = vmatprep.subr.bf16.mxu0 %v15579_v1  ;;  %15648 = vst [vmem:[#allocation18_spill] sm:$0xff] %v15027_v42  ;;  %v15033_v1 = vld [vmem:[%s15363_s5 + $0x1ac] ss:$16 sps:$4 sm:$0xff]  }
 0x60f   :  { %7946 = vmatpush2.bf16.msra.mxu1 %v15013_v9  ;;  %15649 = vst [vmem:[#allocation19_spill] sm:$0xff] %v15033_v1 }
 0x610   :  { %7947 = vmatprep.subr.bf16.mxu1 %v15019_v57 }
 0x611   :  { %9496 = vmatpush3.bf16.msra.mxu0 %v15582_v30  ;;  %v15041_v30 = vld [vmem:[%s15363_s5 + $0x1a8] ss:$16 sps:$4 sm:$0xff]  }
 0x612   :  { %9497 = vmatprep.subr.bf16.mxu0 %v15583_v44  ;;  %15650 = vst [vmem:[#allocation20_spill] sm:$0xff] %v15041_v30  ;;  %v15047_v44 = vld [vmem:[%s15363_s5 + $0x18c] ss:$16 sps:$4 sm:$0xff]  }
 0x613   :  { %7948 = vmatpush2.bf16.msra.mxu1 %v15027_v42  ;;  %15651 = vst [vmem:[#allocation27_spill] sm:$0xff] %v15047_v44 }
 0x614   :  { %7949 = vmatprep.subr.bf16.mxu1 %v15033_v1  ;;  %v15666_v1 = vld [vmem:[#allocation33_spill] sm:$0xff] }
 0x615   :  { %9498 = vmatpush3.bf16.msra.mxu0 %v15586_v10  ;;  %v15055_v10 = vld [vmem:[%s15363_s5 + $0x188] ss:$16 sps:$4 sm:$0xff]  }
 0x616   :  { %9499 = vmatprep.subr.bf16.mxu0 %v15587_v39  ;;  %15652 = vst [vmem:[#allocation43_spill] sm:$0xff] %v15055_v10  ;;  %v15061_v39 = vld [vmem:[%s15363_s5 + $0x16c] ss:$16 sps:$4 sm:$0xff]  }
 0x617   :  { %7950 = vmatpush2.bf16.msra.mxu1 %v15041_v30  ;;  %15653 = vst [vmem:[#allocation50_spill] sm:$0xff] %v15061_v39  ;;  %v15665_v30 = vld [vmem:[#allocation32_spill] sm:$0xff] }
 0x618   :  { %7951 = vmatprep.subr.bf16.mxu1 %v15047_v44  ;;  %v15663_v44 = vld [vmem:[#allocation30_spill] sm:$0xff] }
 0x619   :  { %9500 = vmatpush3.bf16.msra.mxu0 %v15590_v27  ;;  %v15067_v27 = vld [vmem:[%s15363_s5 + $0x168] ss:$16 sps:$4 sm:$0xff]  }
 0x61a   :  { %8108 = vmatprep.subr.bf16.mxu0 %v15591_v37  ;;  %15654 = vst [vmem:[#allocation51_spill] sm:$0xff] %v15067_v27  ;;  %v15073_v37 = vld [vmem:[%s15363_s5 + $0x14c] ss:$16 sps:$4 sm:$0xff]  }
 0x61b   :  { %7952 = vmatpush2.bf16.msra.mxu1 %v15055_v10  ;;  %15655 = vst [vmem:[#allocation54_spill] sm:$0xff] %v15073_v37  ;;  %v15079_v10 = vld [vmem:[%s15363_s5 + $0x148] ss:$16 sps:$4 sm:$0xff]  }
 0x61c   :  { %7953 = vmatprep.subr.bf16.mxu1 %v15061_v39  ;;  %15656 = vst [vmem:[#allocation55_spill] sm:$0xff] %v15079_v10  ;;  %v15085_v39 = vld [vmem:[%s15363_s5 + $0x12c] ss:$16 sps:$4 sm:$0xff]  }
 0x61d   :  { %15657 = vst [vmem:[#allocation42_spill] sm:$0xff] %v15085_v39 }
 0x61f   :  { %7954 = vmatpush2.bf16.msra.mxu1 %v15067_v27  ;;  %v15091_v27 = vld [vmem:[%s15363_s5 + $0x128] ss:$16 sps:$4 sm:$0xff]  }
 0x620   :  { %7955 = vmatprep.subr.bf16.mxu1 %v15073_v37  ;;  %15658 = vst [vmem:[#allocation45_spill] sm:$0xff] %v15091_v27  ;;  %v15097_v37 = vld [vmem:[%s15363_s5 + $0x10c] ss:$16 sps:$4 sm:$0xff]  }
 0x621   :  { %15659 = vst [vmem:[#allocation44_spill] sm:$0xff] %v15097_v37 }
 0x623   :  { %7956 = vmatpush2.bf16.msra.mxu1 %v15079_v10  ;;  %v15103_v10 = vld [vmem:[%s15363_s5 + $0x108] ss:$16 sps:$4 sm:$0xff]   ;;  %s10780_s5 = smov 4  }
 0x624   :  { %7957 = vmatprep.subr.bf16.mxu1 %v15085_v39  ;;  %15660 = vst [vmem:[#allocation56_spill] sm:$0xff] %v15103_v10  ;;  %v15662_v39 = vld [vmem:[#allocation29_spill] sm:$0xff] }
 0x627   :  { %7958 = vmatpush2.bf16.msra.mxu1 %v15091_v27  ;;  %v15661_v27 = vld [vmem:[#allocation28_spill] sm:$0xff] }
 0x628   :  { %7959 = vmatprep.subr.bf16.mxu1 %v15097_v37  ;;  %v15664_v37 = vld [vmem:[#allocation31_spill] sm:$0xff] }
 0x62b   :  { %7960 = vmatpush2.bf16.msra.mxu1 %v15103_v10  ;;  %v15667_v10 = vld [vmem:[#allocation2_spill] sm:$0xff] }
 0x62c   :  { %9513 = vmatprep.subr.bf16.mxu1 %v15601_v62  ;;  %v15668_v62 = vld [vmem:[#allocation34_spill] sm:$0xff] }
 0x62e   :  { %7962 = vmatmul.mubr.bf16.vlgmr.msra.gmra.mxu1 %v15630_v45  ;;  %v15669_v45 = vld [vmem:[#allocation35_spill] sm:$0xff] }
 0x62f   :  { %7971 = vmatprep.mubr.bf16.mxu1 %v15632_v41  ;;  %9514 = vmatpush3.bf16.msra.mxu1 %v15661_v27  ;;  %v15670_v41 = vld [vmem:[#allocation36_spill] sm:$0xff]  ;;  %v15671_v27 = vld [vmem:[#allocation37_spill] sm:$0xff] }
 0x630   :  { %9515 = vmatprep.subr.bf16.mxu1 %v15662_v39  ;;  %v15672_v39 = vld [vmem:[#allocation38_spill] sm:$0xff] }
 0x633   :  { %9516 = vmatpush3.bf16.msra.mxu1 %v15663_v44  ;;  %v15673_v44 = vld [vmem:[#allocation39_spill] sm:$0xff] }
 0x634   :  { %9517 = vmatprep.subr.bf16.mxu1 %v15664_v37  ;;  %v15674_v37 = vld [vmem:[#allocation40_spill] sm:$0xff] }
 0x636   :  { %7972 = vmatmul.mubr.bf16.gmra.mxu1 %v15639_v6  ;;  %v15675_v6 = vld [vmem:[#allocation41_spill] sm:$0xff] }
 0x637   :  { %9518 = vmatpush3.bf16.msra.mxu1 %v15665_v30  ;;  %v15676_v30 = vld [vmem:[#allocation9_spill] sm:$0xff] }
 0x638   :  { %9519 = vmatprep.subr.bf16.mxu1 %v15666_v1 }
 0x63b   :  { %9520 = vmatpush3.bf16.msra.mxu1 %v15667_v10 }
 0x63c   :  { %9521 = vmatprep.subr.bf16.mxu1 %v15668_v62 }
 0x63f   :  { %9522 = vmatpush3.bf16.msra.mxu1 %v15669_v45 }
 0x640   :  { %9523 = vmatprep.subr.bf16.mxu1 %v15670_v41 }
 0x643   :  { %9524 = vmatpush3.bf16.msra.mxu1 %v15671_v27 }
 0x644   :  { %9525 = vmatprep.subr.bf16.mxu1 %v15672_v39 }
 0x647   :  { %9526 = vmatpush3.bf16.msra.mxu1 %v15673_v44 }
 0x648   :  { %9527 = vmatprep.subr.bf16.mxu1 %v15674_v37 }
 0x64b   :  { %9528 = vmatpush3.bf16.msra.mxu1 %v15675_v6 }
 0x64c   :  { %8161 = vmatprep.subr.bf16.mxu1 %v15676_v30 }
 0x67c   :  { %v9445_v1 = vpop.f32.mrf.mxu0 }
 0x67e   :  { %v9446_v10 = vpop.f32.mrf.mxu0 }
 0x67f   :  { %v9447_v45 = vadd.f32 %v9446_v10, %v9445_v1 }
 0x680   :  { %v9448_v42 = vpop.f32.mrf.mxu0 }
 0x681   :  { %v7809_v27 = vadd.f32 %v9447_v45, %v14812_v43 }
 0x682   :  { %v9449_v62 = vpop.f32.mrf.mxu0 }
 0x683   :  { %v9450_v39 = vadd.f32 %v9449_v62, %v9448_v42 }
 0x684   :  { %v9451_v57 = vpop.f32.mrf.mxu0 }
 0x685   :  { %v7812_v6 = vadd.f32 %v9450_v39, %v14812_v43 }
 0x686   :  { %v9452_v9 = vpop.f32.mrf.mxu0 }
 0x687   :  { %v9453_v30 = vadd.f32 %v9452_v9, %v9451_v57 }
 0x688   :  { %v9454_v44 = vpop.f32.mrf.mxu0 }
 0x689   :  { %v7817_v52 = vadd.f32 %v9453_v30, %v14812_v43 }
 0x68a   :  { %v9455_v61 = vpop.f32.mrf.mxu0 }
 0x68b   :  { %v9456_v4 = vadd.f32 %v9455_v61, %v9454_v44 }
 0x6ae   :  { %v9473_v41 = vpop.f32.mrf.mxu1 }
 0x6b0   :  { %v9474_v31 = vpop.f32.mrf.mxu1 }
 0x6b1   :  { %v9475_v63 = vadd.f32 %v9474_v31, %v9473_v41  ;;  %v7820_v41 = vadd.f32 %v9456_v4, %v14812_v43 }
 0x6b2   :  { %v9476_v17 = vpop.f32.mrf.mxu1 }
 0x6b3   :  { %v7858_v37 = vadd.f32 %v9475_v63, %v7809_v27 }
 0x6b4   :  { %v9477_v24 = vpop.f32.mrf.mxu1 }
 0x6b5   :  { %v9478_v59 = vadd.f32 %v9477_v24, %v9476_v17  ;;  %8340 = vrot.lane.b32.xlu0 %v7858_v37, %s10780_s5 }
 0x6b6   :  { %v9479_v47 = vpop.f32.mrf.mxu1 }
 0x6b7   :  { %v7861_v1 = vadd.f32 %v9478_v59, %v7812_v6 }
 0x6b8   :  { %v9480_v10 = vpop.f32.mrf.mxu1 }
 0x6b9   :  { %v9481_v45 = vadd.f32 %v9480_v10, %v9479_v47  ;;  %8342 = vrot.lane.b32.xlu0 %v7861_v1, %s10780_s5 }
 0x6ba   :  { %v9482_v31 = vpop.f32.mrf.mxu1 }
 0x6bb   :  { %v7866_v42 = vadd.f32 %v9481_v45, %v7817_v52 }
 0x6bc   :  { %v9483_v62 = vpop.f32.mrf.mxu1  ;;  %v7910_v63 = vpop.f32.mrf.mxu0 }
 0x6bd   :  { %v9484_v27 = vadd.f32 %v9483_v62, %v9482_v31  ;;  %8344 = vrot.lane.b32.xlu1 %v7866_v42, %s10780_s5  ;;  %v7911_v61 = vadd.f32 %v7910_v63, %v14507_v51 }
 0x6be   :  { %v7912_v17 = vpop.f32.mrf.mxu0 }
 0x6bf   :  { %v7869_v24 = vadd.f32 %v9484_v27, %v7820_v41  ;;  %v7913_v57 = vadd.f32 %v7912_v17, %v14503_v11  ;;  %v7982_v4 = vmax.f32 %v7911_v61, 0.0  ;;  %v15677_v61 = vld [vmem:[#allocation47_spill] sm:$0xff] }
 0x6c0   :  { %v7914_v9 = vpop.f32.mrf.mxu0 }
 0x6c1   :  { %v7915_v59 = vadd.f32 %v7914_v9, %v14507_v51  ;;  %8346 = vrot.lane.b32.xlu1 %v7869_v24, %s10780_s5  ;;  %v7983_v37 = vmax.f32 %v7913_v57, 0.0 }
 0x6c2   :  { %v7916_v47 = vpop.f32.mrf.mxu0 }
 0x6c3   :  { %v7917_v39 = vadd.f32 %v7916_v47, %v14503_v11  ;;  %v7986_v52 = vmax.f32 %v7915_v59, 0.0 }
 0x6c4   :  { %v7920_v44 = vpop.f32.mrf.mxu0 }
 0x6c5   :  { %v7987_v6 = vmax.f32 %v7917_v39, 0.0  ;;  %v7998_v10 = vpack.c.bf16 %v7986_v52, %v7982_v4  ;;  %v7921_v62 = vadd.f32 %v7920_v44, %v14507_v51 }
 0x6c6   :  { %v7922_v30 = vpop.f32.mrf.mxu0 }
 0x6c7   :  { %v7999_v1 = vpack.c.bf16 %v7987_v6, %v7983_v37  ;;  %v7923_v31 = vadd.f32 %v7922_v30, %v14503_v11  ;;  %v7990_v9 = vmax.f32 %v7921_v62, 0.0  ;;  %v15692_v30 = vld [vmem:[#allocation26_spill] sm:$0xff] }
 0x6c8   :  { %v7924_v45 = vpop.f32.mrf.mxu0  ;;  %v15695_v62 = vld [vmem:[#allocation14_spill] sm:$0xff] }
 0x6c9   :  { %v7925_v42 = vadd.f32 %v7924_v45, %v14507_v51  ;;  %8038 = vmatprep.mubr.bf16.mxu0 %v7999_v1  ;;  %v7991_v17 = vmax.f32 %v7923_v31, 0.0  ;;  %v10753_v1 = vld [vmem:[%s15365_s7 + $0x60] sm:$0xff]   ;;  %v15694_v45 = vld [vmem:[#allocation3_spill] sm:$0xff] }
 0x6ca   :  { %v7926_v63 = vpop.f32.mrf.mxu0  ;;  %8039 = vmatmul.mubr.bf16.vlgmr.msra.gmra.mxu0 %v7998_v10  ;;  %v15693_v10 = vld [vmem:[#allocation4_spill] sm:$0xff]  ;;  %v10754_v31 = vld [vmem:[%s15365_s7 + $0x20] sm:$0xff]  }
 0x6cb   :  { %v7927_v41 = vadd.f32 %v7926_v63, %v14503_v11  ;;  %8109 = vmatpush1.bf16.msra.mxu0 %v14530_v3  ;;  %v7994_v27 = vmax.f32 %v7925_v42, 0.0  ;;  %v10755_v42 = vld [vmem:[%s15365_s7 + $0x58] sm:$0xff]   ;;  %v15696_v63 = vld [vmem:[#allocation15_spill] sm:$0xff] }
 0x6cc   :  { %8110 = vmatprep.subr.bf16.mxu0 %v14536_v55 }
 0x6cd   :  { %v7995_v24 = vmax.f32 %v7927_v41, 0.0  ;;  %v8002_v59 = vpack.c.bf16 %v7994_v27, %v7990_v9  ;;  %v10756_v41 = vld [vmem:[%s15365_s7 + $0x18] sm:$0xff]   ;;  %v10757_v27 = vld [vmem:[%s15365_s7 + $0x50] sm:$0xff]  }
 0x6ce   :  { %v10758_v9 = vld [vmem:[%s15365_s7 + $0x10] sm:$0xff]  }
 0x6cf   :  { %v8003_v57 = vpack.c.bf16 %v7995_v24, %v7991_v17  ;;  %8111 = vmatpush1.bf16.msra.mxu0 %v14542_v25  ;;  %v15678_v25 = vld [vmem:[#allocation52_spill] sm:$0xff]  ;;  %v15698_v24 = vld [vmem:[#allocation17_spill] sm:$0xff] }
 0x6d0   :  { %8112 = vmatprep.subr.bf16.mxu0 %v14548_v60  ;;  %v15697_v17 = vld [vmem:[#allocation16_spill] sm:$0xff] }
 0x6d1   :  { %8046 = vmatprep.mubr.bf16.mxu0 %v8003_v57  ;;  %v10759_v57 = vld [vmem:[%s15365_s7 + $0x48] sm:$0xff]  }
 0x6d2   :  { %8047 = vmatmul.mubr.bf16.gmra.mxu0 %v8002_v59  ;;  %v15699_v59 = vld [vmem:[#allocation18_spill] sm:$0xff] }
 0x6d3   :  { %8113 = vmatpush1.bf16.msra.mxu0 %v14556_v16  ;;  %8140 = vmatprep.mubr.bf16.mxu0 %v15677_v61 }
 0x6d4   :  { %8114 = vmatprep.subr.bf16.mxu0 %v14563_v35 }
 0x6d7   :  { %8115 = vmatpush1.bf16.msra.mxu0 %v14569_v34  ;;  %v15679_v34 = vld [vmem:[#allocation53_spill] sm:$0xff] }
 0x6d8   :  { %8116 = vmatprep.subr.bf16.mxu0 %v14575_v23 }
 0x6db   :  { %8117 = vmatpush1.bf16.msra.mxu0 %v14581_v56 }
 0x6dc   :  { %8118 = vmatprep.subr.bf16.mxu0 %v14587_v29 }
 0x6df   :  { %8119 = vmatpush1.bf16.msra.mxu0 %v14593_v54 }
 0x6e0   :  { %8120 = vmatprep.subr.bf16.mxu0 %v14599_v8 }
 0x6e3   :  { %8121 = vmatpush1.bf16.msra.mxu0 %v14605_v48 }
 0x6e4   :  { %8122 = vmatprep.subr.bf16.mxu0 %v14611_v40 }
 0x6e7   :  { %8123 = vmatpush1.bf16.msra.mxu0 %v14617_v50 }
 0x6e8   :  { %8124 = vmatprep.subr.bf16.mxu0 %v14623_v2 }
 0x6eb   :  { %8125 = vmatpush2.bf16.msra.mxu0 %v14629_v58 }
 0x6ec   :  { %8126 = vmatprep.subr.bf16.mxu0 %v15623_v32 }
 0x6ee   :  { %v7963_v3 = vpop.f32.mrf.mxu1 }
 0x6ef   :  { %8127 = vmatpush2.bf16.msra.mxu0 %v15624_v20  ;;  %v7964_v23 = vadd.f32 %v7963_v3, %v14650_v49  ;;  %v10760_v3 = vld [vmem:[%s15365_s7 + $0x8] sm:$0xff]  }
 0x6f0   :  { %v7965_v55 = vpop.f32.mrf.mxu1  ;;  %8128 = vmatprep.subr.bf16.mxu0 %v15678_v25  ;;  %v15701_v25 = vld [vmem:[#allocation20_spill] sm:$0xff] }
 0x6f1   :  { %v7966_v16 = vadd.f32 %v7965_v55, %v14646_v18  ;;  %v7984_v50 = vmax.f32 %v7964_v23, 0.0  ;;  %v10761_v55 = vld [vmem:[%s15365_s7 + $0x40] sm:$0xff]   ;;  %v15705_v23 = vld [vmem:[#allocation51_spill] sm:$0xff] }
 0x6f2   :  { %v7967_v60 = vpop.f32.mrf.mxu1 }
 0x6f3   :  { %v7968_v35 = vadd.f32 %v7967_v60, %v14650_v49  ;;  %8129 = vmatpush2.bf16.msra.mxu0 %v15679_v34  ;;  %v7985_v48 = vmax.f32 %v7966_v16, 0.0  ;;  %v15702_v60 = vld [vmem:[#allocation27_spill] sm:$0xff]  ;;  %v10762_v16 = vld [vmem:[%s15365_s7] sm:$0xff]  }
 0x6f4   :  { %v7969_v56 = vpop.f32.mrf.mxu1  ;;  %8130 = vmatprep.subr.bf16.mxu0 %v15627_v26  ;;  %v15704_v34 = vld [vmem:[#allocation50_spill] sm:$0xff] }
 0x6f5   :  { %v7970_v29 = vadd.f32 %v7969_v56, %v14646_v18  ;;  %v7988_v54 = vmax.f32 %v7968_v35, 0.0  ;;  %v15703_v35 = vld [vmem:[#allocation43_spill] sm:$0xff]  ;;  %v15706_v56 = vld [vmem:[#allocation54_spill] sm:$0xff] }
 0x6f6   :  { %v7973_v8 = vpop.f32.mrf.mxu1 }
 0x6f7   :  { %v7989_v40 = vmax.f32 %v7970_v29, 0.0  ;;  %8131 = vmatpush2.bf16.msra.mxu0 %v15628_v53  ;;  %v8000_v32 = vpack.c.bf16 %v7988_v54, %v7984_v50  ;;  %v7974_v26 = vadd.f32 %v7973_v8, %v14650_v49  ;;  %v15707_v29 = vld [vmem:[#allocation55_spill] sm:$0xff]  ;;  %v15708_v54 = vld [vmem:[#allocation42_spill] sm:$0xff]  ;;  %v15709_v8 = vld [vmem:[#allocation45_spill] sm:$0xff] }
 0x6f8   :  { %v7975_v2 = vpop.f32.mrf.mxu1  ;;  %8132 = vmatprep.subr.bf16.mxu0 %v14683_v36  ;;  %v10763_v50 = vld [vmem:[%s15365_s7 + $0xf8] sm:$0xff]  }
 0x6f9   :  { %v8001_v58 = vpack.c.bf16 %v7989_v40, %v7985_v48  ;;  %v7976_v47 = vadd.f32 %v7975_v2, %v14646_v18  ;;  %v7992_v6 = vmax.f32 %v7974_v26, 0.0  ;;  %v15710_v48 = vld [vmem:[#allocation44_spill] sm:$0xff]  ;;  %v10764_v2 = vld [vmem:[%s15365_s7 + $0xb8] sm:$0xff]   ;;  %v10770_v26 = vld [vmem:[%s15365_s7 + $0xa0] sm:$0xff]  }
 0x6fa   :  { %v7977_v20 = vpop.f32.mrf.mxu1  ;;  %v15711_v40 = vld [vmem:[#allocation56_spill] sm:$0xff] }
 0x6fb   :  { %v7978_v39 = vadd.f32 %v7977_v20, %v14650_v49  ;;  %8087 = vmatprep.mubr.bf16.mxu1 %v8001_v58  ;;  %8133 = vmatpush2.bf16.msra.mxu0 %v14691_v7  ;;  %v7993_v44 = vmax.f32 %v7976_v47, 0.0  ;;  %v10765_v58 = vld [vmem:[%s15365_s7 + $0xf0] sm:$0xff]   ;;  %v10767_v20 = vld [vmem:[%s15365_s7 + $0xe8] sm:$0xff]  }
 0x6fc   :  { %v7979_v52 = vpop.f32.mrf.mxu1  ;;  %8088 = vmatmul.mubr.bf16.vlgmr.msra.gmra.mxu1 %v8000_v32  ;;  %8134 = vmatprep.subr.bf16.mxu0 %v14698_v22  ;;  %v15680_v22 = vld [vmem:[#allocation21_spill] sm:$0xff]  ;;  %v10766_v32 = vld [vmem:[%s15365_s7 + $0xb0] sm:$0xff]   ;;  %v10768_v47 = vld [vmem:[%s15365_s7 + $0xa8] sm:$0xff]  }
 0x6fd   :  { %v7980_v53 = vadd.f32 %v7979_v52, %v14646_v18  ;;  %8162 = vmatpush1.bf16.msra.mxu1 %v14872_v5  ;;  %v7996_v36 = vmax.f32 %v7978_v39, 0.0  ;;  %v15684_v5 = vld [vmem:[#allocation5_spill] sm:$0xff]  ;;  %v10769_v39 = vld [vmem:[%s15365_s7 + $0xe0] sm:$0xff]  }
 0x6fe   :  { %8163 = vmatprep.subr.bf16.mxu1 %v14878_v21  ;;  %v15686_v21 = vld [vmem:[#allocation23_spill] sm:$0xff]  ;;  %v10771_v52 = vld [vmem:[%s15365_s7 + $0xd8] sm:$0xff]  }
 0x6ff   :  { %v7997_v37 = vmax.f32 %v7980_v53, 0.0  ;;  %8135 = vmatpush2.bf16.msra.mxu0 %v14707_v15  ;;  %v8004_v4 = vpack.c.bf16 %v7996_v36, %v7992_v6  ;;  %v15681_v15 = vld [vmem:[#allocation46_spill] sm:$0xff]  ;;  %v10772_v53 = vld [vmem:[%s15365_s7 + $0x98] sm:$0xff]   ;;  %v10773_v36 = vld [vmem:[%s15365_s7 + $0xd0] sm:$0xff]  }
 0x700   :  { %8136 = vmatprep.subr.bf16.mxu0 %v14713_v13  ;;  %v15682_v13 = vld [vmem:[#allocation22_spill] sm:$0xff]  ;;  %v10776_v6 = vld [vmem:[%s15365_s7 + $0x88] sm:$0xff]  }
 0x701   :  { %v8005_v7 = vpack.c.bf16 %v7997_v37, %v7993_v44  ;;  %8164 = vmatpush1.bf16.msra.mxu1 %v14886_v19  ;;  %v15687_v19 = vld [vmem:[#allocation24_spill] sm:$0xff]  ;;  %v10775_v37 = vld [vmem:[%s15365_s7 + $0xc8] sm:$0xff]  }
 0x702   :  { %8165 = vmatprep.subr.bf16.mxu1 %v14892_v14  ;;  %v15688_v14 = vld [vmem:[#allocation7_spill] sm:$0xff]  ;;  %v10774_v44 = vld [vmem:[%s15365_s7 + $0x90] sm:$0xff]  }
 0x703   :  { %8095 = vmatprep.mubr.bf16.mxu1 %v8005_v7  ;;  %8137 = vmatpush2.bf16.msra.mxu0 %v14721_v33  ;;  %v15683_v33 = vld [vmem:[#allocation49_spill] sm:$0xff]  ;;  %v10777_v7 = vld [vmem:[%s15365_s7 + $0xc0] sm:$0xff]  }
 0x704   :  { %8096 = vmatmul.mubr.bf16.gmra.mxu1 %v8004_v4  ;;  %8138 = vmatprep.subr.bf16.mxu0 %v14727_v28  ;;  %v15685_v28 = vld [vmem:[#allocation6_spill] sm:$0xff] }
 0x705   :  { %8166 = vmatpush1.bf16.msra.mxu1 %v14900_v12  ;;  %8193 = vmatprep.mubr.bf16.mxu1 %v15677_v61  ;;  %v15689_v12 = vld [vmem:[#allocation8_spill] sm:$0xff]  ;;  %v15700_v61 = vld [vmem:[#allocation19_spill] sm:$0xff]  ;;  %v10778_v4 = vld [vmem:[%s15365_s7 + $0x80] sm:$0xff]  }
 0x706   :  { %8167 = vmatprep.subr.bf16.mxu1 %v14907_v0  ;;  %v15690_v0 = vld [vmem:[#allocation48_spill] sm:$0xff] }
 0x707   :  { %8139 = vmatpush2.bf16.msra.mxu0 %v14736_v38  ;;  %v10752_v38 = vld [vmem:[%s15365_s7 + $0x68] sm:$0xff]   ;;  %s10781_s7 = smov 8  }
 0x708   :  { %9541 = vmatprep.subr.bf16.mxu0 %v14914_v46  ;;  %v15691_v46 = vld [vmem:[#allocation25_spill] sm:$0xff] }
 0x709   :  { %8168 = vmatpush1.bf16.msra.mxu1 %v15680_v22 }
 0x70a   :  { %8141 = vmatmul.mubr.bf16.vlgmr.msra.gmra.mxu0 %v15681_v15  ;;  %8169 = vmatprep.subr.bf16.mxu1 %v15682_v13 }
 0x70b   :  { %8150 = vmatprep.mubr.bf16.mxu0 %v15683_v33  ;;  %9542 = vmatpush3.bf16.msra.mxu0 %v15684_v5 }
 0x70c   :  { %9543 = vmatprep.subr.bf16.mxu0 %v15685_v28 }
 0x70d   :  { %8170 = vmatpush1.bf16.msra.mxu1 %v15686_v21 }
 0x70e   :  { %8171 = vmatprep.subr.bf16.mxu1 %v15687_v19 }
 0x70f   :  { %9544 = vmatpush3.bf16.msra.mxu0 %v15688_v14 }
 0x710   :  { %9545 = vmatprep.subr.bf16.mxu0 %v10752_v38 }
 0x711   :  { %8172 = vmatpush1.bf16.msra.mxu1 %v15689_v12 }
 0x712   :  { %8151 = vmatmul.mubr.bf16.gmra.mxu0 %v15690_v0  ;;  %8173 = vmatprep.subr.bf16.mxu1 %v15691_v46 }
 0x713   :  { %9546 = vmatpush3.bf16.msra.mxu0 %v15692_v30 }
 0x714   :  { %9547 = vmatprep.subr.bf16.mxu0 %v10753_v1 }
 0x715   :  { %8174 = vmatpush1.bf16.msra.mxu1 %v15693_v10 }
 0x716   :  { %8175 = vmatprep.subr.bf16.mxu1 %v15694_v45 }
 0x717   :  { %9548 = vmatpush3.bf16.msra.mxu0 %v10754_v31 }
 0x718   :  { %9549 = vmatprep.subr.bf16.mxu0 %v10755_v42 }
 0x719   :  { %8176 = vmatpush1.bf16.msra.mxu1 %v15695_v62 }
 0x71a   :  { %8177 = vmatprep.subr.bf16.mxu1 %v15696_v63 }
 0x71b   :  { %9550 = vmatpush3.bf16.msra.mxu0 %v10756_v41 }
 0x71c   :  { %9551 = vmatprep.subr.bf16.mxu0 %v10757_v27 }
 0x71d   :  { %8178 = vmatpush2.bf16.msra.mxu1 %v15697_v17 }
 0x71e   :  { %8179 = vmatprep.subr.bf16.mxu1 %v15698_v24 }
 0x71f   :  { %9552 = vmatpush3.bf16.msra.mxu0 %v10758_v9 }
 0x720   :  { %9553 = vmatprep.subr.bf16.mxu0 %v10759_v57 }
 0x721   :  { %8180 = vmatpush2.bf16.msra.mxu1 %v15699_v59 }
 0x722   :  { %8181 = vmatprep.subr.bf16.mxu1 %v15700_v61 }
 0x723   :  { %9554 = vmatpush3.bf16.msra.mxu0 %v10760_v3 }
 0x724   :  { %9555 = vmatprep.subr.bf16.mxu0 %v10761_v55 }
 0x725   :  { %8182 = vmatpush2.bf16.msra.mxu1 %v15701_v25 }
 0x726   :  { %8183 = vmatprep.subr.bf16.mxu1 %v15702_v60 }
 0x727   :  { %9556 = vmatpush3.bf16.msra.mxu0 %v10762_v16 }
 0x729   :  { %8184 = vmatpush2.bf16.msra.mxu1 %v15703_v35 }
 0x72a   :  { %8185 = vmatprep.subr.bf16.mxu1 %v15704_v34 }
 0x72d   :  { %8186 = vmatpush2.bf16.msra.mxu1 %v15705_v23 }
 0x72e   :  { %8187 = vmatprep.subr.bf16.mxu1 %v15706_v56 }
 0x731   :  { %8188 = vmatpush2.bf16.msra.mxu1 %v15707_v29 }
 0x732   :  { %8189 = vmatprep.subr.bf16.mxu1 %v15708_v54 }
 0x735   :  { %8190 = vmatpush2.bf16.msra.mxu1 %v15709_v8 }
 0x736   :  { %8191 = vmatprep.subr.bf16.mxu1 %v15710_v48 }
 0x739   :  { %8192 = vmatpush2.bf16.msra.mxu1 %v15711_v40 }
 0x73a   :  { %9569 = vmatprep.subr.bf16.mxu1 %v10763_v50 }
 0x73c   :  { %8194 = vmatmul.mubr.bf16.vlgmr.msra.gmra.mxu1 %v15681_v15 }
 0x73d   :  { %8203 = vmatprep.mubr.bf16.mxu1 %v15683_v33  ;;  %9570 = vmatpush3.bf16.msra.mxu1 %v10764_v2 }
 0x73e   :  { %9571 = vmatprep.subr.bf16.mxu1 %v10765_v58 }
 0x741   :  { %9572 = vmatpush3.bf16.msra.mxu1 %v10766_v32 }
 0x742   :  { %9573 = vmatprep.subr.bf16.mxu1 %v10767_v20 }
 0x744   :  { %8204 = vmatmul.mubr.bf16.gmra.mxu1 %v15690_v0 }
 0x745   :  { %9574 = vmatpush3.bf16.msra.mxu1 %v10768_v47 }
 0x746   :  { %9575 = vmatprep.subr.bf16.mxu1 %v10769_v39 }
 0x749   :  { %9576 = vmatpush3.bf16.msra.mxu1 %v10770_v26 }
 0x74a   :  { %9577 = vmatprep.subr.bf16.mxu1 %v10771_v52 }
 0x74d   :  { %9578 = vmatpush3.bf16.msra.mxu1 %v10772_v53 }
 0x74e   :  { %9579 = vmatprep.subr.bf16.mxu1 %v10773_v36 }
 0x751   :  { %9580 = vmatpush3.bf16.msra.mxu1 %v10774_v44 }
 0x752   :  { %9581 = vmatprep.subr.bf16.mxu1 %v10775_v37 }
 0x755   :  { %9582 = vmatpush3.bf16.msra.mxu1 %v10776_v6 }
 0x756   :  { %9583 = vmatprep.subr.bf16.mxu1 %v10777_v7 }
 0x759   :  { %9584 = vmatpush3.bf16.msra.mxu1 %v10778_v4 }
 0x78a   :  { %v9501_v22 = vpop.f32.mrf.mxu0 }
 0x78c   :  { %v9502_v15 = vpop.f32.mrf.mxu0 }
 0x78d   :  { %v9503_v28 = vadd.f32 %v9502_v15, %v9501_v22 }
 0x78e   :  { %v9504_v13 = vpop.f32.mrf.mxu0 }
 0x78f   :  { %v8041_v38 = vadd.f32 %v9503_v28, %v14812_v43 }
 0x790   :  { %v9505_v33 = vpop.f32.mrf.mxu0 }
 0x791   :  { %v9506_v12 = vadd.f32 %v9505_v33, %v9504_v13 }
 0x792   :  { %v9507_v5 = vpop.f32.mrf.mxu0 }
 0x793   :  { %v8044_v45 = vadd.f32 %v9506_v12, %v14812_v43 }
 0x794   :  { %v9508_v21 = vpop.f32.mrf.mxu0 }
 0x795   :  { %v9509_v31 = vadd.f32 %v9508_v21, %v9507_v5 }
 0x796   :  { %v9510_v46 = vpop.f32.mrf.mxu0 }
 0x797   :  { %v8049_v17 = vadd.f32 %v9509_v31, %v14812_v43 }
 0x798   :  { %v9511_v62 = vpop.f32.mrf.mxu0 }
 0x799   :  { %v9512_v24 = vadd.f32 %v9511_v62, %v9510_v46 }
 0x79b   :  { %v8052_v55 = vadd.f32 %v9512_v24, %v14812_v43 }
 0x7bc   :  { %v9529_v19 = vpop.f32.mrf.mxu1 }
 0x7be   :  { %v9530_v14 = vpop.f32.mrf.mxu1 }
 0x7bf   :  { %v9531_v0 = vadd.f32 %v9530_v14, %v9529_v19 }
 0x7c0   :  { %v9532_v30 = vpop.f32.mrf.mxu1 }
 0x7c1   :  { %v8090_v1 = vadd.f32 %v9531_v0, %v8041_v38 }
 0x7c2   :  { %v9533_v10 = vpop.f32.mrf.mxu1 }
 0x7c3   :  { %v9534_v42 = vadd.f32 %v9533_v10, %v9532_v30  ;;  %8356 = vrot.lane.b32.xlu0 %v8090_v1, %s10781_s7 }
 0x7c4   :  { %v9535_v63 = vpop.f32.mrf.mxu1 }
 0x7c5   :  { %v8093_v41 = vadd.f32 %v9534_v42, %v8044_v45 }
 0x7c6   :  { %v9536_v27 = vpop.f32.mrf.mxu1 }
 0x7c7   :  { %v9537_v9 = vadd.f32 %v9536_v27, %v9535_v63  ;;  %8358 = vrot.lane.b32.xlu1 %v8093_v41, %s10781_s7 }
 0x7c8   :  { %v9538_v57 = vpop.f32.mrf.mxu1 }
 0x7c9   :  { %v8098_v59 = vadd.f32 %v9537_v9, %v8049_v17 }
 0x7ca   :  { %v9539_v61 = vpop.f32.mrf.mxu1  ;;  %v8142_v3 = vpop.f32.mrf.mxu0 }
 0x7cb   :  { %v9540_v25 = vadd.f32 %v9539_v61, %v9538_v57  ;;  %8360 = vrot.lane.b32.xlu0 %v8098_v59, %s10781_s7  ;;  %v8143_v56 = vadd.f32 %v8142_v3, %v14507_v51 }
 0x7cc   :  { %v8144_v60 = vpop.f32.mrf.mxu0 }
 0x7cd   :  { %v8101_v16 = vadd.f32 %v9540_v25, %v8052_v55  ;;  %v8145_v34 = vadd.f32 %v8144_v60, %v14503_v11  ;;  %v8214_v2 = vmax.f32 %v8143_v56, 0.0 }
 0x7ce   :  { %v8146_v35 = vpop.f32.mrf.mxu0 }
 0x7cf   :  { %v8147_v23 = vadd.f32 %v8146_v35, %v14507_v51  ;;  %8362 = vrot.lane.b32.xlu1 %v8101_v16, %s10781_s7  ;;  %v8215_v40 = vmax.f32 %v8145_v34, 0.0 }
 0x7d0   :  { %v8148_v29 = vpop.f32.mrf.mxu0 }
 0x7d1   :  { %v8149_v54 = vadd.f32 %v8148_v29, %v14503_v11  ;;  %v8218_v8 = vmax.f32 %v8147_v23, 0.0 }
 0x7d2   :  { %v8152_v48 = vpop.f32.mrf.mxu0 }
 0x7d3   :  { %v8219_v50 = vmax.f32 %v8149_v54, 0.0  ;;  %v8230_v20 = vpack.c.bf16 %v8218_v8, %v8214_v2  ;;  %v8153_v52 = vadd.f32 %v8152_v48, %v14507_v51 }
 0x7d4   :  { %v8154_v58 = vpop.f32.mrf.mxu0 }
 0x7d5   :  { %v8231_v32 = vpack.c.bf16 %v8219_v50, %v8215_v40  ;;  %v8155_v39 = vadd.f32 %v8154_v58, %v14503_v11  ;;  %v8222_v7 = vmax.f32 %v8153_v52, 0.0 }
 0x7d6   :  { %v8156_v47 = vpop.f32.mrf.mxu0 }
 0x7d7   :  { %v8157_v26 = vadd.f32 %v8156_v47, %v14507_v51  ;;  %8270 = vmatprep.mubr.bf16.mxu0 %v8231_v32  ;;  %v8223_v37 = vmax.f32 %v8155_v39, 0.0  ;;  %v10779_v47 = vld [vmem:[%s15367_s8] ss:$0 sm:$0xff] }
 0x7d8   :  { %v8158_v53 = vpop.f32.mrf.mxu0  ;;  %8271 = vmatmul.mubr.bf16.vlgmr.msra.gmra.mxu0 %v8230_v20 }
 0x7d9   :  { %v8159_v36 = vadd.f32 %v8158_v53, %v14503_v11  ;;  %v8226_v44 = vmax.f32 %v8157_v26, 0.0 }
 0x7db   :  { %v8227_v6 = vmax.f32 %v8159_v36, 0.0  ;;  %v8234_v22 = vpack.c.bf16 %v8226_v44, %v8222_v7  ;;  %v8341_v7 = vpop.permute.xlu0 %8340 }
 0x7dd   :  { %v8235_v4 = vpack.c.bf16 %v8227_v6, %v8223_v37 }
 0x7df   :  { %8278 = vmatprep.mubr.bf16.mxu0 %v8235_v4  ;;  %v8345_v4 = vpop.permute.xlu1 %8344 }
 0x7e0   :  { %8279 = vmatmul.mubr.bf16.gmra.mxu0 %v8234_v22  ;;  %v8343_v22 = vpop.permute.xlu0 %8342 }
 0x7fc   :  { %v8195_v15 = vpop.f32.mrf.mxu1 }
 0x7fd   :  { %v8196_v51 = vadd.f32 %v8195_v15, %v14650_v49  ;;  %v8347_v15 = vpop.permute.xlu1 %8346 }
 0x7fe   :  { %v8197_v13 = vpop.f32.mrf.mxu1 }
 0x7ff   :  { %v8198_v5 = vadd.f32 %v8197_v13, %v14646_v18  ;;  %v8216_v0 = vmax.f32 %v8196_v51, 0.0 }
 0x800   :  { %v8199_v33 = vpop.f32.mrf.mxu1 }
 0x801   :  { %v8200_v28 = vadd.f32 %v8199_v33, %v14650_v49  ;;  %v8217_v38 = vmax.f32 %v8198_v5, 0.0 }
 0x802   :  { %v8201_v21 = vpop.f32.mrf.mxu1 }
 0x803   :  { %v8202_v11 = vadd.f32 %v8201_v21, %v14646_v18  ;;  %v8220_v19 = vmax.f32 %v8200_v28, 0.0  ;;  %v15712_v28 = vld [vmem:[#allocation13_spill] sm:$0xff] }
 0x804   :  { %v8205_v14 = vpop.f32.mrf.mxu1  ;;  %v8385_v51 = vsel %vm8384_vm0, %v15712_v28, %v8341_v7 }
 0x805   :  { %v8221_v12 = vmax.f32 %v8202_v11, 0.0  ;;  %v8232_v1 = vpack.c.bf16 %v8220_v19, %v8216_v0  ;;  %v8206_v42 = vadd.f32 %v8205_v14, %v14650_v49 }
 0x806   :  { %v8207_v46 = vpop.f32.mrf.mxu1 }
 0x807   :  { %v8233_v30 = vpack.c.bf16 %v8221_v12, %v8217_v38  ;;  %v8208_v45 = vadd.f32 %v8207_v46, %v14646_v18  ;;  %v8224_v24 = vmax.f32 %v8206_v42, 0.0  ;;  %v15713_v38 = vld [vmem:[#allocation12_spill] sm:$0xff] }
 0x808   :  { %v8209_v10 = vpop.f32.mrf.mxu1  ;;  %v8386_v12 = vsel %vm8384_vm0, %v15713_v38, %v8343_v22 }
 0x809   :  { %v8210_v31 = vadd.f32 %v8209_v10, %v14650_v49  ;;  %8319 = vmatprep.mubr.bf16.mxu1 %v8233_v30  ;;  %v8225_v27 = vmax.f32 %v8208_v45, 0.0 }
 0x80a   :  { %v8211_v62 = vpop.f32.mrf.mxu1  ;;  %8320 = vmatmul.mubr.bf16.vlgmr.msra.gmra.mxu1 %v8232_v1  ;;  %v15714_v1 = vld [vmem:[#allocation10_spill] sm:$0xff] }
 0x80b   :  { %v8212_v63 = vadd.f32 %v8211_v62, %v14646_v18  ;;  %v8228_v41 = vmax.f32 %v8210_v31, 0.0  ;;  %v8387_v10 = vsel %vm8384_vm0, %v15714_v1, %v8345_v4  ;;  %v15715_v62 = vld [vmem:[#allocation11_spill] sm:$0xff] }
 0x80d   :  { %v8229_v17 = vmax.f32 %v8212_v63, 0.0  ;;  %v8236_v57 = vpack.c.bf16 %v8228_v41, %v8224_v24  ;;  %v8388_v63 = vsel %vm8384_vm0, %v15715_v62, %v8347_v15 }
 0x80f   :  { %v8237_v9 = vpack.c.bf16 %v8229_v17, %v8225_v27 }
 0x811   :  { %8327 = vmatprep.mubr.bf16.mxu1 %v8237_v9 }
 0x812   :  { %8328 = vmatmul.mubr.bf16.gmra.mxu1 %v8236_v57 }
 0x835   :  { %v8357_v13 = vpop.permute.xlu0 %8356 }
 0x836   :  { %v8390_v21 = vsel %vm8389_vm1, %v8385_v51, %v8357_v13 }
 0x839   :  { %v8359_v33 = vpop.permute.xlu1 %8358 }
 0x83a   :  { %v8391_v0 = vsel %vm8389_vm1, %v8386_v12, %v8359_v33 }
 0x83d   :  { %v8361_v5 = vpop.permute.xlu0 %8360 }
 0x83e   :  { %v8392_v45 = vsel %vm8389_vm1, %v8387_v10, %v8361_v5 }
 0x841   :  { %v8363_v11 = vpop.permute.xlu1 %8362 }
 0x842   :  { %v8393_v41 = vsel %vm8389_vm1, %v8388_v63, %v8363_v11 }
 0x898   :  { %v9557_v59 = vpop.f32.mrf.mxu0 }
 0x89a   :  { %v9558_v61 = vpop.f32.mrf.mxu0 }
 0x89b   :  { %v9559_v60 = vadd.f32 %v9558_v61, %v9557_v59 }
 0x89c   :  { %v9560_v3 = vpop.f32.mrf.mxu0 }
 0x89d   :  { %v8273_v34 = vadd.f32 %v9559_v60, %v14812_v43 }
 0x89e   :  { %v9561_v55 = vpop.f32.mrf.mxu0 }
 0x89f   :  { %v9562_v18 = vadd.f32 %v9561_v55, %v9560_v3 }
 0x8a0   :  { %v9563_v25 = vpop.f32.mrf.mxu0 }
 0x8a1   :  { %v8276_v48 = vadd.f32 %v9562_v18, %v14812_v43 }
 0x8a2   :  { %v9564_v16 = vpop.f32.mrf.mxu0 }
 0x8a3   :  { %v9565_v40 = vadd.f32 %v9564_v16, %v9563_v25 }
 0x8a4   :  { %v9566_v56 = vpop.f32.mrf.mxu0 }
 0x8a5   :  { %v8281_v39 = vadd.f32 %v10779_v47, %v9565_v40 }
 0x8a6   :  { %v9567_v2 = vpop.f32.mrf.mxu0 }
 0x8a7   :  { %v9568_v26 = vadd.f32 %v9567_v2, %v9566_v56 }
 0x8a9   :  { %v8284_v43 = vadd.f32 %v10779_v47, %v9568_v26 }
 0x8ca   :  { %v9585_v49 = vpop.f32.mrf.mxu1 }
 0x8cc   :  { %v9586_v35 = vpop.f32.mrf.mxu1 }
 0x8cd   :  { %v9587_v23 = vadd.f32 %v9586_v35, %v9585_v49 }
 0x8ce   :  { %v9588_v29 = vpop.f32.mrf.mxu1 }
 0x8cf   :  { %v8322_v54 = vadd.f32 %v9587_v23, %v8273_v34 }
 0x8d0   :  { %v9589_v8 = vpop.f32.mrf.mxu1 }
 0x8d1   :  { %v9590_v50 = vadd.f32 %v9589_v8, %v9588_v29  ;;  %8372 = vrot.lane.b32.xlu0 %v8322_v54, %s10782_s20 }
 0x8d2   :  { %v9591_v58 = vpop.f32.mrf.mxu1 }
 0x8d3   :  { %v8325_v32 = vadd.f32 %v9590_v50, %v8276_v48 }
 0x8d4   :  { %v9592_v20 = vpop.f32.mrf.mxu1 }
 0x8d5   :  { %v9593_v52 = vadd.f32 %v9592_v20, %v9591_v58  ;;  %8374 = vrot.lane.b32.xlu1 %v8325_v32, %s10782_s20 }
 0x8d6   :  { %v9594_v53 = vpop.f32.mrf.mxu1 }
 0x8d7   :  { %v8330_v36 = vadd.f32 %v9593_v52, %v8281_v39 }
 0x8d8   :  { %v9595_v44 = vpop.f32.mrf.mxu1 }
 0x8d9   :  { %v9596_v37 = vadd.f32 %v9595_v44, %v9594_v53  ;;  %8376 = vrot.lane.b32.xlu0 %v8330_v36, %s10782_s20 }
 0x8db   :  { %v8333_v6 = vadd.f32 %v9596_v37, %v8284_v43 }
 0x8dd   :  { %8378 = vrot.lane.b32.xlu1 %v8333_v6, %s10782_s20 }
 0x943   :  { %v8373_v19 = vpop.permute.xlu0 %8372 }
 0x944   :  { %v8395_v14 = vsel %vm8394_vm2, %v8390_v21, %v8373_v19 }
 0x945   :  { %8400 = vst.msk [vmem:[%s15368_s9] sm:$0xff] %vm8399_vm3, %v8395_v14 }
 0x947   :  { %v8375_v46 = vpop.permute.xlu1 %8374 }
 0x948   :  { %v8396_v30 = vsel %vm8394_vm2, %v8391_v0, %v8375_v46 }
 0x949   :  { %8401 = vst.msk [vmem:[%s15368_s9 + $0x8] sm:$0xff] %vm8399_vm3, %v8396_v30 }
 0x94b   :  { %v8377_v31 = vpop.permute.xlu0 %8376 }
 0x94c   :  { %v8397_v42 = vsel %vm8394_vm2, %v8392_v45, %v8377_v31 }
 0x94d   :  { %8402 = vst.msk [vmem:[%s15368_s9 + $0x10] sm:$0xff] %vm8399_vm3, %v8397_v42 }
 0x94f   :  { %v8379_v27 = vpop.permute.xlu1 %8378 }
 0x950   :  { %v8398_v17 = vsel %vm8394_vm2, %v8393_v41, %v8379_v27 }
 0x951   :  { %8403 = vst.msk [vmem:[%s15368_s9 + $0x18] sm:$0xff] %vm8399_vm3, %v8398_v17 }

</bundles_post_ra>
